<compile_context>
chip_gen: v6e
topology: v6e:2x2x1
jax: 0.10.0
libtpu: 0.0.40
codegen_flags: <defaults>
</compile_context>

<pallas_src>
import functools

import jax
import jax.numpy as jnp
from jax.experimental import pallas as pl
from jax.experimental.pallas import tpu as pltpu


def _upsample_kernel(x_ref, w_ref, b_ref, e_ref, o_ref, *,
                     negative_slope, precision):
    """One grid step: 1x1 conv + folded BN + LeakyReLU + nearest 2x upsample.

    x_ref: (1, Cin,  bh*W)           lane-dense flattened input rows
    w_ref: (Cout, Cin)               1x1 conv weight with BN scale folded in
    b_ref: (Cout, 1)                 folded BN + conv bias (f32)
    e_ref: (bh*W, bh*scale^2*W)      block-diagonal 0/1 duplication matrix
    o_ref: (1, Cout, bh*scale^2*W)   packed, lane-dense output slab
    """
    x = x_ref[0]                                    # (Cin, bh*W)
    w = w_ref[...]                                  # (Cout, Cin)

    # 1x1 conv (channel contraction) on the MXU, f32 accumulate; bias +
    # LeakyReLU(0.1) stay f32 on the VPU (v5e has no bf16 VPU).
    y = jnp.dot(w, x, preferred_element_type=jnp.float32,
                precision=precision) + b_ref[...]   # (Cout, bh*W)
    y = jnp.where(y > 0, y, negative_slope * y)

    # Nearest-neighbour 2x upsample of the WHOLE block in one matmul against
    # the block-diagonal duplication matrix, then one lane-dense store.
    up = jnp.dot(y.astype(e_ref.dtype), e_ref[...],
                 preferred_element_type=jnp.float32,
                 precision=precision)               # (Cout, bh*s^2*W)
    o_ref[0] = up.astype(o_ref.dtype)


def _tile_vmem_bytes(bh, W, cin, cout, scale, in_bytes, out_bytes, e_bytes,
                     param_bytes):
    """Double-buffered VMEM footprint of one grid step's operands."""
    s2 = scale * scale
    in_tile = cin * bh * W * in_bytes
    out_tile = cout * bh * s2 * W * out_bytes
    e_tile = (bh * W) * (bh * s2 * W) * e_bytes
    # BlockSpec double-buffers every operand (constant-index w/b/E included).
    return 2 * (in_tile + out_tile + e_tile + param_bytes)


def _choose_block_h(n_batch, H, W, cin, cout, scale, in_bytes, out_bytes,
                    e_bytes, param_bytes, vmem_budget, min_parallel_steps=1):
    """Largest row-block per grid step that divides H, respects the lane
    (128) tiling rule, and fits double-buffered within the VMEM budget."""

    def tiling_ok(bh):
        # Sublane dims of all blocks (Cin / Cout) are full-extent, so only the
        # lane (last) dims constrain bh: bh*W and bh*scale^2*W must be
        # multiples of 128 unless the block spans the full extent (bh == H).
        if H % bh:
            return False
        return bh == H or (bh * W) % 128 == 0

    def fits(bh):
        return _tile_vmem_bytes(bh, W, cin, cout, scale, in_bytes, out_bytes,
                                e_bytes, param_bytes) <= vmem_budget

    legal = [bh for bh in range(1, H + 1) if tiling_ok(bh)]
    candidates = [bh for bh in legal if fits(bh)]
    if not candidates:
        # Even the smallest legal block busts the budget (huge feature maps):
        # take the smallest legal block; the caller raises vmem_limit_bytes.
        return min(legal)
    best = max(candidates)
    # Multi-TensorCore chips (v7x): keep >= 2 grid steps along 'parallel' axes
    # so both cores get work.  On 1-TC chips this constraint is skipped.
    if min_parallel_steps > 1 and n_batch * (H // best) < min_parallel_steps:
        smaller = [bh for bh in candidates
                   if n_batch * (H // bh) >= min_parallel_steps]
        if smaller:
            best = max(smaller)
    return best


def _tpu_vmem_and_cores():
    """(physical VMEM bytes per core, TensorCores per chip), safe fallback."""
    try:
        info = pltpu.get_tpu_info()
        vmem = int(info.vmem_capacity_bytes)
        if vmem <= 0:
            raise ValueError(vmem)
    except Exception:
        return 64 * 2**20, 2          # conservative (v7x-like) fallback
    cores = None
    for attr in ("num_cores", "core_count", "num_tensorcores",
                 "tensorcore_count"):
        val = getattr(info, attr, None)
        if isinstance(val, int) and val > 0:
            cores = val
            break
    if cores is None:
        cores = 2 if vmem <= 64 * 2**20 else 1   # 64 MiB VMEM => v7x (2 TCs)
    return vmem, cores


def upsample_forward(x, w, conv_bias, gamma, beta,
                     running_mean=None, running_var=None, *,
                     scale=2, eps=1e-5, negative_slope=0.1,
                     block_h=None, out_dtype=None, compute_dtype=None):
    """x: (N, Cin, H, W) NCHW.  Returns (N, Cout, scale*H, scale*W) NCHW."""
    N, Cin, H, W = x.shape
    Cout = w.shape[0]
    out_dtype = jnp.dtype(x.dtype if out_dtype is None else out_dtype)
    if compute_dtype is None:
        # bf16 in/out halves both HBM streams (the 4x output write dominates)
        # and is the native MXU rate; elementwise stays f32 inside the kernel.
        compute_dtype = jnp.bfloat16 if x.dtype == jnp.bfloat16 else jnp.float32
    compute_dtype = jnp.dtype(compute_dtype)
    precision = (jax.lax.Precision.DEFAULT if compute_dtype == jnp.bfloat16
                 else jax.lax.Precision.HIGHEST)

    if running_mean is None:
        running_mean = jnp.zeros((Cout,), jnp.float32)
    if running_var is None:
        running_var = jnp.ones((Cout,), jnp.float32)

    # Fold inference BatchNorm (running stats) and the conv bias into the
    # 1x1-conv weight / bias (one-time O(Cin*Cout) work outside the kernel).
    bn_scale = gamma.astype(jnp.float32) / jnp.sqrt(
        running_var.astype(jnp.float32) + eps)                        # (Cout,)
    w_folded = (w.reshape(Cout, Cin).astype(jnp.float32)
                * bn_scale[:, None]).astype(compute_dtype)
    b_folded = (beta.astype(jnp.float32)
                + bn_scale * (conv_bias.astype(jnp.float32)
                              - running_mean.astype(jnp.float32)))
    b_folded = b_folded.reshape(Cout, 1)                      # f32 in-kernel

    s2 = scale * scale
    in_bytes = compute_dtype.itemsize
    out_bytes = out_dtype.itemsize
    e_bytes = in_bytes
    param_bytes = Cout * Cin * in_bytes + Cout * 4            # w + bias

    vmem_cap, n_cores = _tpu_vmem_and_cores()
    vmem_budget = vmem_cap // 4      # 32 MiB on v5e/v6e (128 MiB), 16 MiB v7x

    if block_h is None:
        bh = _choose_block_h(N, H, W, Cin, Cout, scale, in_bytes, out_bytes,
                             e_bytes, param_bytes, vmem_budget,
                             min_parallel_steps=2 if n_cores >= 2 else 1)
    else:
        bh = int(block_h)
        if H % bh or not (bh == H or (bh * W) % 128 == 0):
            raise ValueError(
                f"block_h={bh} must divide H={H} and either equal H or make "
                f"block_h*W a multiple of 128 (got {bh * W}).")

    packed_w = bh * s2 * W           # lane-dense output slab width per block

    # Block-diagonal 0/1 duplication matrix for the whole row-block:
    # input element (r, w) feeds packed lane  r*s^2*W + i*s*W + s*w + j.
    rows = jnp.arange(bh * W)
    cols = jnp.arange(packed_w)
    r_in, w_in = rows // W, rows % W
    r_out = cols // (s2 * W)
    w_out = (cols % (scale * W)) // scale
    e_mat = ((r_in[:, None] == r_out[None, :])
             & (w_in[:, None] == w_out[None, :])).astype(compute_dtype)

    # Free row-major reshape (no transpose): lane-dense (Cin, bh*W) input tile.
    x_flat = x.reshape(N, Cin, H * W).astype(compute_dtype)

    needed = _tile_vmem_bytes(bh, W, Cin, Cout, scale, in_bytes, out_bytes,
                              e_bytes, param_bytes)
    vmem_limit = int(min(vmem_cap * 3 // 4, 100 * 2**20))
    vmem_limit = int(max(vmem_limit,
                         min(needed + (4 << 20), vmem_cap - (4 << 20))))

    out_elems = N * Cout * s2 * H * W
    cost = pl.CostEstimate(
        flops=int(2 * N * H * W * Cin * Cout                 # 1x1 conv
                  + 2 * N * H * W * Cout * packed_w),        # dup matmul
        transcendentals=0,
        bytes_accessed=int(x_flat.size * in_bytes + out_elems * out_bytes
                           + e_mat.size * e_bytes + param_bytes))

    kernel = functools.partial(_upsample_kernel,
                               negative_slope=negative_slope,
                               precision=precision)

    out_packed = pl.pallas_call(
        kernel,
        out_shape=jax.ShapeDtypeStruct((N, Cout, H * s2 * W), out_dtype),
        grid_spec=pltpu.PrefetchScalarGridSpec(
            num_scalar_prefetch=0,
            grid=(N, H // bh),
            in_specs=[
                pl.BlockSpec((1, Cin, bh * W), lambda n, i: (n, 0, i)),
                pl.BlockSpec((Cout, Cin), lambda n, i: (0, 0)),
                pl.BlockSpec((Cout, 1), lambda n, i: (0, 0)),
                pl.BlockSpec((bh * W, packed_w), lambda n, i: (0, 0)),
            ],
            out_specs=pl.BlockSpec((1, Cout, packed_w),
                                   lambda n, i: (n, 0, i)),
        ),
        compiler_params=pltpu.CompilerParams(
            dimension_semantics=("parallel", "parallel"),
            vmem_limit_bytes=vmem_limit),
        cost_estimate=cost,
    )(x_flat, w_folded, b_folded, e_mat)

    # (N, Cout, H*s^2*W) -> (N, Cout, s*H, s*W): pure row-major re-chunking of
    # the trailing axis -> free (no transpose of the 4x-upsampled tensor).
    return out_packed.reshape(N, Cout, scale * H, scale * W)


def _reference(x, w, conv_bias, gamma, beta, running_mean, running_var,
               *, scale=2, eps=1e-5, negative_slope=0.1):
    N, Cin, H, W = x.shape
    Cout = w.shape[0]
    y = jnp.einsum("nchw,oc->nohw", x, w.reshape(Cout, Cin),
                   precision=jax.lax.Precision.HIGHEST)
    y = y + conv_bias[None, :, None, None]
    inv = gamma / jnp.sqrt(running_var + eps)
    y = inv[None, :, None, None] * (y - running_mean[None, :, None, None]) \
        + beta[None, :, None, None]
    y = jnp.where(y > 0, y, negative_slope * y)
    y = jnp.repeat(jnp.repeat(y, scale, axis=2), scale, axis=3)
    return y


if __name__ == "__main__":
    key = jax.random.PRNGKey(0)
    k_x, k_w, k_b, k_g, k_beta, k_m, k_v = jax.random.split(key, 7)

    N, Cin, H, W = 2, 4, 16, 16
    Cout = 8

    x = jax.random.normal(k_x, (N, Cin, H, W), dtype=jnp.float32)
    # Conv2d(in=4, out=8, kernel_size=1) parameters
    w = jax.random.normal(k_w, (Cout, Cin, 1, 1), dtype=jnp.float32) * 0.1
    conv_bias = jax.random.normal(k_b, (Cout,), dtype=jnp.float32) * 0.1
    # BatchNorm2d(8) parameters + non-trivial running stats (inference fold)
    gamma = 1.0 + 0.1 * jax.random.normal(k_g, (Cout,), dtype=jnp.float32)
    beta = 0.1 * jax.random.normal(k_beta, (Cout,), dtype=jnp.float32)
    running_mean = 0.1 * jax.random.normal(k_m, (Cout,), dtype=jnp.float32)
    running_var = 1.0 + 0.1 * jnp.abs(jax.random.normal(k_v, (Cout,), jnp.float32))

    ref = _reference(x, w, conv_bias, gamma, beta, running_mean, running_var)

    # f32 path (matches PyTorch f32 forward semantics).
    out = upsample_forward(x, w, conv_bias, gamma, beta,
                           running_mean, running_var)
    out = jax.block_until_ready(out)
    assert out.shape == (N, Cout, 2 * H, 2 * W), out.shape
    assert out.dtype == jnp.float32, out.dtype
    assert jnp.allclose(out, ref, atol=1e-4, rtol=1e-4), "f32 mismatch vs ref"

    # bf16 I/O path (perf-review recommended deployment path): halves both
    # HBM streams of this bandwidth-bound op; looser tolerance for bf16.
    out_bf16 = upsample_forward(x.astype(jnp.bfloat16), w, conv_bias, gamma,
                                beta, running_mean, running_var)
    out_bf16 = jax.block_until_ready(out_bf16)
    assert out_bf16.shape == (N, Cout, 2 * H, 2 * W), out_bf16.shape
    assert out_bf16.dtype == jnp.bfloat16, out_bf16.dtype
    assert jnp.allclose(out_bf16.astype(jnp.float32), ref,
                        atol=5e-2, rtol=5e-2), "bf16 mismatch vs ref"

    print("KERNEL_OK")
</pallas_src>

<mosaic_0001>
module attributes {stable_mosaic.version = 11 : i64} {
  func.func @_upsample_kernel(%arg0: i32, %arg1: i32, %arg2: memref<1x4x256xf32, #tpu.memory_space<vmem>>, %arg3: memref<8x4xf32, #tpu.memory_space<vmem>>, %arg4: memref<8x1xf32, #tpu.memory_space<vmem>>, %arg5: memref<256x1024xf32, #tpu.memory_space<vmem>>, %arg6: memref<1x8x1024xf32, #tpu.memory_space<vmem>>) attributes {dimension_semantics = [#tpu.dimension_semantics<parallel>, #tpu.dimension_semantics<parallel>], iteration_bounds = array<i64: 2, 1>, scalar_prefetch = 0 : i64, scratch_operands = 0 : i64, tpu.core_type = #tpu.core_type<tc>, window_params = [{transform_indices = @transform_0, window_bounds = array<i64: 1, 4, 256>}, {pipeline_mode = #tpu.pipeline_mode<synchronous>, transform_indices = @transform_1, window_bounds = array<i64: 8, 4>}, {pipeline_mode = #tpu.pipeline_mode<synchronous>, transform_indices = @transform_2, window_bounds = array<i64: 8, 1>}, {pipeline_mode = #tpu.pipeline_mode<synchronous>, transform_indices = @transform_3, window_bounds = array<i64: 256, 1024>}, {transform_indices = @transform_4, window_bounds = array<i64: 1, 8, 1024>}]} {
    %c0 = arith.constant 0 : index
    %c0_0 = arith.constant 0 : index
    %c0_1 = arith.constant 0 : index
    %0 = vector.load %arg2[%c0, %c0_0, %c0_1] : memref<1x4x256xf32, #tpu.memory_space<vmem>>, vector<1x4x256xf32>
    %1 = vector.shape_cast %0 : vector<1x4x256xf32> to vector<4x256xf32>
    %c0_2 = arith.constant 0 : index
    %c0_3 = arith.constant 0 : index
    %2 = vector.load %arg3[%c0_2, %c0_3] : memref<8x4xf32, #tpu.memory_space<vmem>>, vector<8x4xf32>
    %cst = arith.constant dense<0.000000e+00> : vector<8x256xf32>
    %3 = tpu.matmul %2, %1, %cst {dimension_numbers = #tpu.dot_dimension_numbers<[1], [0], [0], [1], [0, 0, 1, 1], [], []>, precision = #tpu.contract_precision<fp32>} : vector<8x4xf32>, vector<4x256xf32>, vector<8x256xf32> -> vector<8x256xf32>
    %c0_4 = arith.constant 0 : index
    %c0_5 = arith.constant 0 : index
    %4 = vector.load %arg4[%c0_4, %c0_5] : memref<8x1xf32, #tpu.memory_space<vmem>>, vector<8x1xf32>
    %5 = vector.broadcast %4 : vector<8x1xf32> to vector<8x256xf32>
    %6 = arith.addf %3, %5 : vector<8x256xf32>
    %cst_6 = arith.constant 0.000000e+00 : f32
    %7 = vector.broadcast %cst_6 : f32 to vector<8x256xf32>
    %8 = arith.cmpf ogt, %6, %7 : vector<8x256xf32>
    %cst_7 = arith.constant 1.000000e-01 : f32
    %9 = vector.broadcast %cst_7 : f32 to vector<8x256xf32>
    %10 = arith.mulf %9, %6 : vector<8x256xf32>
    %11 = arith.select %8, %6, %10 : vector<8x256xi1>, vector<8x256xf32>
    %c0_8 = arith.constant 0 : index
    %c0_9 = arith.constant 0 : index
    %12 = vector.load %arg5[%c0_8, %c0_9] : memref<256x1024xf32, #tpu.memory_space<vmem>>, vector<256x1024xf32>
    %cst_10 = arith.constant dense<0.000000e+00> : vector<8x1024xf32>
    %13 = tpu.matmul %11, %12, %cst_10 {dimension_numbers = #tpu.dot_dimension_numbers<[1], [0], [0], [1], [0, 0, 1, 1], [], []>, precision = #tpu.contract_precision<fp32>} : vector<8x256xf32>, vector<256x1024xf32>, vector<8x1024xf32> -> vector<8x1024xf32>
    %c0_11 = arith.constant 0 : index
    %c0_12 = arith.constant 0 : index
    %c0_13 = arith.constant 0 : index
    %14 = vector.load %arg6[%c0_11, %c0_12, %c0_13] : memref<1x8x1024xf32, #tpu.memory_space<vmem>>, vector<1x8x1024xf32>
    %15 = vector.shape_cast %14 : vector<1x8x1024xf32> to vector<8x1024xf32>
    %16 = vector.shape_cast %13 : vector<8x1024xf32> to vector<1x8x1024xf32>
    tpu.vector_store %arg6[%c0_11, %c0_12, %c0_13], %16 {strides = array<i32>} : memref<1x8x1024xf32, #tpu.memory_space<vmem>>, vector<1x8x1024xf32>,
    return
  }
  func.func @transform_0(%arg0: i32, %arg1: i32) -> (i32, i32, i32) {
    %c0_i32 = arith.constant 0 : i32
    %c0_i32_0 = arith.constant 0 : i32
    return %arg0, %c0_i32, %arg1 : i32, i32, i32
  }
  func.func @transform_1(%arg0: i32, %arg1: i32) -> (i32, i32) {
    %c0_i32 = arith.constant 0 : i32
    %c0_i32_0 = arith.constant 0 : i32
    %c0_i32_1 = arith.constant 0 : i32
    return %c0_i32, %c0_i32_0 : i32, i32
  }
  func.func @transform_2(%arg0: i32, %arg1: i32) -> (i32, i32) {
    %c0_i32 = arith.constant 0 : i32
    %c0_i32_0 = arith.constant 0 : i32
    %c0_i32_1 = arith.constant 0 : i32
    return %c0_i32, %c0_i32_0 : i32, i32
  }
  func.func @transform_3(%arg0: i32, %arg1: i32) -> (i32, i32) {
    %c0_i32 = arith.constant 0 : i32
    %c0_i32_0 = arith.constant 0 : i32
    %c0_i32_1 = arith.constant 0 : i32
    return %c0_i32, %c0_i32_0 : i32, i32
  }
  func.func @transform_4(%arg0: i32, %arg1: i32) -> (i32, i32, i32) {
    %c0_i32 = arith.constant 0 : i32
    %c0_i32_0 = arith.constant 0 : i32
    return %arg0, %c0_i32, %arg1 : i32, i32, i32
  }
}

</mosaic_0001>

<bundles_post_ra>
// kernel: tpu_custom_call.1
= control target key start
LH: loop header
LB: loop body
LE: loop exit
PB: predicated region body
PF: predicated region fallthrough
CT: control target
= control target key end

     0   :  { %9 = vsyncpa [#allocation3], 0  ;;  %s11302_s0 = inlined_call_operand.vmem [shape: f32[2,4,256], index: 0, kind: input, shape index: {}]   ;;  %s11303_s1 = inlined_call_operand.vmem [shape: f32[8,4], index: 1, kind: input, shape index: {}]   ;;  %s11304_s2 = inlined_call_operand.vmem [shape: f32[8,1], index: 2, kind: input, shape index: {}]   ;;  %s11305_s3 = inlined_call_operand.hbm [shape: f32[256,1024], index: 3, kind: input, shape index: {}]   ;;  %s11306_s4 = inlined_call_operand.hbm [shape: f32[2,8,1024], index: 4, kind: output, shape index: {}]  }
   0x1   :  { %10 = vsyncpa [#allocation4], 0 }
   0x2   :  { %12 = vsyncpa [#allocation4 + $0x1], 0  ;;  %s6465_s15 = smov 0   ;;  %s6467_s16 = smov 0  }
   0x3   :  { %s6469_s17 = smov 0   ;;  %s6471_s18 = smov 0  }
   0x4   :  { %s6473_s19 = smov 0   ;;  %s6475_s20 = smov 0  }
   0x5 LB: > { %s6237_s21 = sadd.s32 4294967295, %s6432_s20   ;;  %s6238_s22 = sadd.s32 4294967294, %s6432_s20   ;;  %s6432_s20 = sphi %s6475_s20, %s18_s20   ;;  %s6428_s19 = sphi %s6473_s19, %s13810_s19   ;;  %s6424_s18 = sphi %s6471_s18, %s13809_s18   ;;  %s6420_s17 = sphi %s6469_s17, %s13808_s17   ;;  %s6416_s16 = sphi %s6467_s16, %s13807_s16   ;;  %s6412_s15 = sphi %s6465_s15, %s13806_s15  }
   0x6   : > { %s30_s23 = sadd.s32 1, %s6428_s19  ;;  %s130_s24 = sadd.s32 1, %s6420_s17 }
   0x7   : > { %p32_p0 = scmp.ge.s32.totalorder %s30_s23, 2  ;;  %p140_p1 = scmp.ne.s32.totalorder %s6420_s17, %s6416_s16 }
   0x8   : > { %p141_p2 = scmp.eq.s32.totalorder %s6237_s21, 1  ;;  %p146_p3 = scmp.ne.s32.totalorder %s6416_s16, %s6412_s15 }
   0x9   : > { %s13812_s23 = smov (%p32_p0, %s30_s23), 0  ;;  %p147_p5 = scmp.eq.s32.totalorder %s6238_s22, 1 }
   0xa   : > { %p6505_p4 = por %p141_p2, %p140_p1  ;;  %s125_s26 = ssub.s32 %s6428_s19, %s13812_s23 }
   0xb   : > { %p6239_p6 = scmp.ge.s32.totalorder %s6432_s20, 1  ;;  %p128_p7 = scmp.eq.s32.totalorder %s125_s26, 0 }
   0xc   : > { %p6512_p8 = por %p147_p5, %p146_p3  ;;  %p154_p9 = scmp.lt.s32.totalorder %s6432_s20, 3 }
   0xd   : > { %s6518_s28 = scalar_select %p128_p7, %s6420_s17, %s130_s24  }
   0xe   : > { %p6520_p10 = pnand %p6239_p6, %p154_p9  ;;  %p6524_p11 = scmp.eq.s32.totalorder %s6237_s21, 0 }
   0xf   : > { %s6434_s5 = smov [#allocation2]  }
  0x10   : > { %p6260_p12 = pneg %p6520_p10  ;;  %s172_s6 = sshll.u32 %s6434_s5, 4  ;;  %s173_s6 = int_to_ptr.vmem [resolvable:$true] %s172_s6 }
  0x11   : > { %s6337_s7 = scalar_lea.vmem %s173_s6, 32768  ;;  %p6345_p5 = scmp.lt.s32.totalorder %s173_s6, %s173_s6 }
  0x12   : > { %p6261_p13 = pnand %p6524_p11, %p6260_p12  ;;  %p6338_p1 = scmp.ne.s32.totalorder %s173_s6, %s6337_s7 }
  0x13   : > { %p6346_p6 = scmp.lt.s32.totalorder %s6337_s7, %s6337_s7 }
  0x14   : > { %p6328_p0 = pneg %p6261_p13 }
  0x15   : > { %p6347_p7 = por %p6346_p6, %p6345_p5 }
  0x16   : > { %p6340_p2 = pnand %p6338_p1, %p6328_p0 }
  0x18   : > { %p6341_p3 = pneg %p6340_p2 }
  0x1a   : > { %p6348_p9 = pnand %p6347_p7, %p6341_p3 }
  0x1c   : > { %6351 = shalt.err (!%p6348_p9)
}
  0x1d   : > { %s6435_s8 = smov 1024   ;;  %s6436_s9 = smov 64  }
  0x1e   : > { %6263 = dma.hbm_to_vmem [thread:$0]  (!%p6261_p13), %s11305_s3, 32768, %s173_s6, [#allocation3], %s6435_s8, %s6435_s8, %s6436_s9  }
  0x1f   : > { %201 = sbr.rel (%p6520_p10) target bundleno = 1236 (0x4d4), region = 36 }
  0x24   : > { %6403 = dma.done.wait (%p6524_p11), [#allocation3], 32768  }
  0x25   : > { %6405 = vsyncadd (%p6524_p11), [#allocation3], 4294934528  ;;  %p232_p12 = scmp.lt.s32.totalorder %s6424_s18, 1  ;;  %v6437_v0 = vmov 0.0   ;;  %v6438_v1 = vmov 0   ;;  %vm256_vm0 = vcmask 1043456  }
  0x26   : > { %327 = vmatprep.mubr.f32.mxu0 %v6437_v0  ;;  %413 = vmatprep.mubr.f32.mxu1 %v6437_v0  ;;  %vm252_vm1 = vcmask 31744   ;;  %v243_v3 = vld [vmem:[%s11303_s1] sm:$0xff]  ;;  %v853_v8 = vld [vmem:[#allocation2 + $0x3c8] sm:$0xff]  ;;  %s228_s5 = sand.u32 1, %s6416_s16   ;;  %s6253_s8 = sshll.u32 %s6424_s18, 10 }
  0x27   : > { %s233_s12 = scalar_select %p232_p12, %s6424_s18, 1  ;;  %6324 = vset.pattern.permute.xlu0 %v6438_v1  ;;  %v244_v4 = vld [vmem:[%s11304_s2] sm:$0xff]  ;;  %v254_v7 = vsel %vm252_vm1, %v243_v3, 0  ;;  %v845_v10 = vld [vmem:[#allocation2 + $0x388] sm:$0xff]  ;;  %v6559_v13 = vand.u32 4294901760, %v853_v8 }
  0x28   : > { %247 = vperm.xlu0 %6324, %v244_v4   ;;  %v852_v9 = vld [vmem:[#allocation2 + $0x3c0] sm:$0xff]  ;;  %v6557_v12 = vand.u32 4294901760, %v254_v7  ;;  %v837_v16 = vld [vmem:[#allocation2 + $0x348] sm:$0xff]  ;;  %v6564_v18 = vand.u32 4294901760, %v845_v10  ;;  %s9126_s6 = sshll.u32 %s228_s5, 6  ;;  %s6439_s18 = smov [#allocation5]  }
  0x29   : > { %s6252_s13 = sshll.u32 %s233_s12, 3  ;;  %12154 = vst [vmem:[#allocation8_spill] sm:$0xff] %v6559_v13  ;;  %v6561_v14 = vand.u32 4294901760, %v852_v9  ;;  %v844_v15 = vld [vmem:[#allocation2 + $0x380] sm:$0xff]  ;;  %v6568_v20 = vand.u32 4294901760, %v837_v16  ;;  %v6579_v24 = vsub.f32 %v853_v8, %v6559_v13  ;;  %v829_v45 = vld [vmem:[#allocation2 + $0x308] sm:$0xff]  ;;  %s6147_s12 = scalar_lea.hbm %s11306_s4, %s6253_s8 }
  0x2a   : > { %s239_s22 = scalar_lea.vmem %s11302_s0, %s6252_s13  ;;  %v6566_v19 = vand.u32 4294901760, %v844_v15  ;;  %v6573_v22 = vsub.f32 %v254_v7, %v6557_v12  ;;  %v6585_v26 = vsub.f32 %v845_v10, %v6564_v18  ;;  %v836_v41 = vld [vmem:[#allocation2 + $0x340] sm:$0xff]  ;;  %v821_v47 = vld [vmem:[#allocation2 + $0x2c8] sm:$0xff]  ;;  %v6640_v62 = vand.u32 4294901760, %v829_v45  ;;  %s9198_s7 = scalar_lea.vmem [#allocation5], %s9126_s6 }
  0x2b   : > { %v242_v2 = vld [vmem:[%s239_s22] sm:$0xff]  ;;  %12155 = vst [vmem:[#allocation9_spill] sm:$0xff] %v6579_v24  ;;  %v6582_v25 = vsub.f32 %v852_v9, %v6561_v14  ;;  %v6591_v28 = vsub.f32 %v837_v16, %v6568_v20  ;;  %v11318_v32 = vand.u32 4294901760, %v6579_v24  ;;  %v813_v53 = vld [vmem:[#allocation2 + $0x288] sm:$0xff]  ;;  %v6638_v61 = vand.u32 4294901760, %v836_v41  ;;  %s6149_s9 = sshll.u32 %s9198_s7, 4  ;;  %s6150_s9 = int_to_ptr.vmem [resolvable:$true] %s6149_s9 }
  0x2c   : > { %v251_v5 = vcombine.high %v242_v2, %v242_v2  ;;  %v257_v6 = vsel %vm256_vm0, %v242_v2, 0  ;;  %v6588_v27 = vsub.f32 %v844_v15, %v6566_v19  ;;  %v330_v29 = vand.u32 4294901760, %v6573_v22  ;;  %v828_v46 = vld [vmem:[#allocation2 + $0x300] sm:$0xff]  ;;  %v805_v59 = vld [vmem:[#allocation2 + $0x248] sm:$0xff]  ;;  %s6133_s13 = scalar_lea.sflag [#allocation4], %s228_s5  ;;  %s6352_s14 = scalar_lea.vmem %s6150_s9, 1024 }
  0x2d   : > { %v6555_v11 = vand.u32 4294901760, %v257_v6  ;;  %v11317_v33 = vand.u32 4294901760, %v6582_v25  ;;  %v11316_v34 = vand.u32 4294901760, %v6585_v26  ;;  %v11313_v36 = vand.u32 4294901760, %v6591_v28  ;;  %v820_v52 = vld [vmem:[#allocation2 + $0x2c0] sm:$0xff]  ;;  %p6353_p10 = scmp.ne.s32.totalorder %s6150_s9, %s6352_s14  ;;  %s6356_s21 = sshll.u32 %s6439_s18, 4  ;;  %s6357_s21 = int_to_ptr.vmem [resolvable:$false] %s6356_s21 }
  0x2e   : > { %v259_v17 = vsel %vm256_vm0, %v251_v5, 0  ;;  %v11315_v35 = vand.u32 4294901760, %v6588_v27  ;;  %v331_v37 = vsub.f32 %v6573_v22, %v330_v29  ;;  %v6612_v40 = vsub.f32 %v6579_v24, %v11318_v32  ;;  %v812_v54 = vld [vmem:[#allocation2 + $0x280] sm:$0xff]  ;;  %s6358_s22 = scalar_lea.vmem %s6357_s21, 2048  ;;  %p6359_p0 = scmp.lt.s32.totalorder %s6150_s9, %s6357_s21 }
  0x2f   : > { %v6570_v21 = vand.u32 4294901760, %v259_v17  ;;  %v6576_v23 = vsub.f32 %v257_v6, %v6555_v11  ;;  %v6617_v42 = vsub.f32 %v6582_v25, %v11317_v33  ;;  %v6622_v43 = vsub.f32 %v6585_v26, %v11316_v34  ;;  %v773_v33 = vld [vmem:[#allocation2 + $0x148] sm:$0xff]  ;;  %p6354_p11 = pnand %p6353_p10, %p6505_p4  ;;  %p6360_p1 = scmp.lt.s32.totalorder %s6358_s22, %s6352_s14 }
  0x30   : > { %v6627_v44 = vsub.f32 %v6588_v27, %v11315_v35  ;;  %v332_v48 = vand.u32 4294901760, %v331_v37  ;;  %v6632_v51 = vsub.f32 %v6591_v28, %v11313_v36  ;;  %v1137_v55 = vand.u32 4294901760, %v6612_v40  ;;  %v780_v36 = vld [vmem:[#allocation2 + $0x180] sm:$0xff] }
  0x31   : > { %292 = vmatprep.subr.mxu0 %v6570_v21  ;;  %v370_v30 = vsub.f32 %v259_v17, %v6570_v21  ;;  %v377_v31 = vand.u32 4294901760, %v6576_v23  ;;  %v1143_v56 = vand.u32 4294901760, %v6617_v42  ;;  %v1149_v57 = vand.u32 4294901760, %v6622_v43  ;;  %p6355_p13 = pneg %p6354_p11  ;;  %p6361_p2 = por %p6360_p1, %p6359_p0 }
  0x32   : > { %294 = vmatpush1.msra.mxu0 %v6555_v11  ;;  %v1155_v58 = vand.u32 4294901760, %v6627_v44  ;;  %v6642_v63 = vand.u32 4294901760, %v828_v46  ;;  %v6646_v1 = vand.u32 4294901760, %v821_v47  ;;  %v6648_v2 = vand.u32 4294901760, %v820_v52 }
  0x33   : > { %v371_v38 = vand.u32 4294901760, %v370_v30  ;;  %453 = vmatprep.subr.mxu0 %v370_v30  ;;  %v378_v39 = vsub.f32 %v6576_v23, %v377_v31  ;;  %333 = vmatmul.mubr.f32.vlgmr.msra.gmra.mxu0 %v332_v48  ;;  %v6650_v3 = vand.u32 4294901760, %v813_v53  ;;  %v6652_v4 = vand.u32 4294901760, %v812_v54  ;;  %p6362_p3 = pnand %p6361_p2, %p6355_p13 }
  0x34   : > { %456 = vmatpush1.msra.mxu0 %v6576_v23  ;;  %489 = vmatprep.mubr.f32.mxu0 %v6437_v0  ;;  %v6655_v5 = vsub.f32 %v836_v41, %v6638_v61  ;;  %v6658_v6 = vsub.f32 %v829_v45, %v6640_v62  ;;  %v6661_v7 = vsub.f32 %v828_v46, %v6642_v63  ;;  %v6663_v8 = vand.u32 4294901760, %v805_v59 }
  0x35   : > { %v372_v49 = vsub.f32 %v370_v30, %v371_v38  ;;  %v379_v50 = vand.u32 4294901760, %v378_v39  ;;  %607 = vmatprep.subr.mxu0 %v371_v38  ;;  %v6666_v9 = vsub.f32 %v821_v47, %v6646_v1  ;;  %v6669_v10 = vsub.f32 %v820_v52, %v6648_v2  ;;  %v804_v39 = vld [vmem:[#allocation2 + $0x240] sm:$0xff] }
  0x36   : > { %v6672_v15 = vsub.f32 %v813_v53, %v6650_v3  ;;  %v6675_v16 = vsub.f32 %v812_v54, %v6652_v4  ;;  %v11312_v17 = vand.u32 4294901760, %v6655_v5  ;;  %v11311_v30 = vand.u32 4294901760, %v6658_v6 }
  0x37   : > { %v373_v60 = vand.u32 4294901760, %v372_v49  ;;  %12156 = vst [vmem:[#allocation10_spill] sm:$0xff] %v6669_v10  ;;  %v11308_v37 = vand.u32 4294901760, %v6661_v7  ;;  %v6683_v38 = vsub.f32 %v805_v59, %v6663_v8  ;;  %492 = vmatmul.mubr.f32.vlgmr.msra.gmra.mxu0 %v6573_v22  ;;  %v11307_v41 = vand.u32 4294901760, %v6666_v9  ;;  %v797_v59 = vld [vmem:[#allocation2 + $0x208] sm:$0xff] }
  0x38   : > { %12157 = vst [vmem:[#allocation11_spill] sm:$0xff] %v6672_v15  ;;  %12158 = vst [vmem:[#allocation12_spill] sm:$0xff] %v6675_v16  ;;  %v11310_v45 = vand.u32 4294901760, %v6669_v10  ;;  %v11309_v46 = vand.u32 4294901760, %v6672_v15  ;;  %v11314_v47 = vand.u32 4294901760, %v6675_v16  ;;  %611 = vmatpush1.msra.mxu0 %v377_v31  ;;  %v6697_v48 = vsub.f32 %v6655_v5, %v11312_v17  ;;  %644 = vmatprep.mubr.f32.mxu0 %v6437_v0  ;;  %v781_v17 = vld [vmem:[#allocation2 + $0x188] sm:$0xff] }
  0x39   : > { %374 = vmatprep.subr.mxu1 %v373_v60  ;;  %12159 = vst [vmem:[#allocation13_spill] sm:$0xff] %v6683_v38  ;;  %v6702_v49 = vsub.f32 %v6658_v6, %v11311_v30  ;;  %v11319_v52 = vand.u32 4294901760, %v6683_v38  ;;  %v6715_v23 = vsub.f32 %v6666_v9, %v11307_v41  ;;  %v6727_v54 = vand.u32 4294901760, %v804_v39  ;;  %v796_v60 = vld [vmem:[#allocation2 + $0x200] sm:$0xff]  ;;  %989 = vmatprep.subr.mxu0 %v6559_v13 }
  0x3a   : > { %380 = vmatpush1.msra.mxu1 %v379_v50  ;;  %v6707_v50 = vsub.f32 %v6661_v7, %v11308_v37  ;;  %v6720_v31 = vsub.f32 %v6669_v10, %v11310_v45  ;;  %v6725_v53 = vsub.f32 %v6672_v15, %v11309_v46  ;;  %v1167_v41 = vand.u32 4294901760, %v6697_v48  ;;  %v789_v45 = vld [vmem:[#allocation2 + $0x1c8] sm:$0xff]  ;;  %v788_v30 = vld [vmem:[#allocation2 + $0x1c0] sm:$0xff] }
  0x3b   : > { %415 = vmatmul.mubr.f32.vlgmr.msra.gmra.mxu1 %v6557_v12  ;;  %529 = vmatprep.subr.mxu1 %v6570_v21  ;;  %v1173_v37 = vand.u32 4294901760, %v6702_v49  ;;  %v6738_v46 = vsub.f32 %v6675_v16, %v11314_v47  ;;  %v6752_v47 = vsub.f32 %v6683_v38, %v11319_v52  ;;  %v6757_v35 = vand.u32 4294901760, %v797_v59 }
  0x3c   : > { %531 = vmatpush1.msra.mxu1 %v6555_v11  ;;  %564 = vmatprep.mubr.f32.mxu1 %v6437_v0  ;;  %v6759_v34 = vand.u32 4294901760, %v796_v60  ;;  %v6763_v32 = vand.u32 4294901760, %v789_v45  ;;  %v6765_v40 = vand.u32 4294901760, %v788_v30 }
  0x3d   : > { %683 = vmatprep.subr.mxu1 %v6570_v21  ;;  %v1161_v21 = vand.u32 4294901760, %v6632_v51  ;;  %646 = vmatmul.mubr.f32.vlgmr.msra.gmra.mxu0 %v6557_v12  ;;  %v6773_v52 = vsub.f32 %v797_v59, %v6757_v35  ;;  %v6778_v51 = vand.u32 4294901760, %v780_v36  ;;  %v6792_v59 = vand.u32 4294901760, %v773_v33 }
  0x3e   : > { %991 = vmatpush1.msra.mxu0 %v6561_v14  ;;  %12161 = vst [vmem:[#allocation15_spill] sm:$0xff] %v6765_v40  ;;  %v6776_v48 = vsub.f32 %v796_v60, %v6759_v34  ;;  %v1209_v22 = vand.u32 4294901760, %v6752_v47  ;;  %v12185_v38 = vand.u32 4294901760, %v6738_v46 }
  0x3f   : > { %568 = vmatmul.mubr.f32.vlgmr.msra.gmra.mxu1 %v330_v29  ;;  %993 = vmatprep.subr.mxu0 %v6564_v18  ;;  %12163 = vst [vmem:[#allocation17_spill] sm:$0xff] %v6773_v52  ;;  %v6814_v60 = vsub.f32 %v773_v33, %v6792_v59 }
  0x40   : > { %685 = vmatpush1.msra.mxu1 %v6555_v11  ;;  %718 = vmatprep.mubr.f32.mxu1 %v6437_v0  ;;  %v6755_v11 = vsub.f32 %v804_v39, %v6727_v54  ;;  %12164 = vst [vmem:[#allocation18_spill] sm:$0xff] %v6776_v48  ;;  %v6784_v0 = vsub.f32 %v789_v45, %v6763_v32 }
  0x41   : > { %1138 = vmatprep.subr.mxu1 %v1137_v55  ;;  %v6767_v55 = vand.u32 4294901760, %v781_v17  ;;  %995 = vmatpush1.msra.mxu0 %v6566_v19  ;;  %v6805_v45 = vsub.f32 %v780_v36, %v6778_v51  ;;  %12169 = vst [vmem:[#allocation23_spill] sm:$0xff] %v6814_v60 }
  0x42   : > { %12160 = vst [vmem:[#allocation14_spill] sm:$0xff] %v6755_v11  ;;  %v11320_v39 = vand.u32 4294901760, %v6755_v11  ;;  %12165 = vst [vmem:[#allocation19_spill] sm:$0xff] %v6784_v0  ;;  %997 = vmatprep.subr.mxu0 %v6568_v20  ;;  %v11323_v43 = vand.u32 4294901760, %v6784_v0 }
  0x43   : > { %12162 = vst [vmem:[#allocation16_spill] sm:$0xff] %v6767_v55  ;;  %720 = vmatmul.mubr.f32.vlgmr.msra.gmra.mxu1 %v6557_v12  ;;  %v6787_v12 = vsub.f32 %v788_v30, %v6765_v40  ;;  %v6790_v29 = vsub.f32 %v781_v17, %v6767_v55  ;;  %v11321_v30 = vand.u32 4294901760, %v6776_v48  ;;  %12168 = vst [vmem:[#allocation22_spill] sm:$0xff] %v6805_v45  ;;  %999 = vmatpush1.msra.mxu0 %v6638_v61 }
  0x44   : > { %1144 = vmatpush1.msra.mxu1 %v1143_v56  ;;  %v6800_v42 = vsub.f32 %v6755_v11, %v11320_v39  ;;  %v11322_v56 = vand.u32 4294901760, %v6773_v52  ;;  %v772_v39 = vld [vmem:[#allocation2 + $0x140] sm:$0xff]  ;;  %1001 = vmatprep.subr.mxu0 %v6640_v62  ;;  %v6833_v33 = vsub.f32 %v6784_v0, %v11323_v43  ;;  %v749_v0 = vld [vmem:[#allocation2 + $0x88] sm:$0xff] }
  0x45   : > { %12166 = vst [vmem:[#allocation20_spill] sm:$0xff] %v6787_v12  ;;  %12167 = vst [vmem:[#allocation21_spill] sm:$0xff] %v6790_v29  ;;  %1150 = vmatprep.subr.mxu1 %v1149_v57  ;;  %v11324_v57 = vand.u32 4294901760, %v6787_v12  ;;  %v11327_v17 = vand.u32 4294901760, %v6790_v29  ;;  %v6826_v44 = vsub.f32 %v6776_v48, %v11321_v30  ;;  %1003 = vmatpush1.msra.mxu0 %v6642_v63  ;;  %v756_v30 = vld [vmem:[#allocation2 + $0xc0] sm:$0xff]  ;;  %v12171_v48 = vand.u32 4294901760, %v6707_v50 }
  0x46   : > { %1156 = vmatpush1.msra.mxu1 %v1155_v58  ;;  %v6821_v36 = vsub.f32 %v6773_v52, %v11322_v56  ;;  %v764_v56 = vld [vmem:[#allocation2 + $0x100] sm:$0xff]  ;;  %v1215_v43 = vand.u32 4294901760, %v6800_v42  ;;  %1005 = vmatprep.subr.mxu0 %v6646_v1  ;;  %v1233_v49 = vand.u32 4294901760, %v6833_v33  ;;  %v12173_v52 = vand.u32 4294901760, %v6814_v60  ;;  %v741_v42 = vld [vmem:[#allocation2 + $0x48] sm:$0xff] }
  0x47   : > { %1162 = vmatprep.subr.mxu1 %v1161_v21  ;;  %v6838_v47 = vsub.f32 %v6787_v12, %v11324_v57  ;;  %v6843_v21 = vsub.f32 %v6790_v29, %v11327_v17  ;;  %v12170_v57 = vand.u32 4294901760, %v6805_v45  ;;  %v6856_v17 = vand.u32 4294901760, %v772_v39  ;;  %v757_v29 = vld [vmem:[#allocation2 + $0xc8] sm:$0xff]  ;;  %1007 = vmatpush1.msra.mxu0 %v6648_v2 }
  0x48   : > { %1168 = vmatpush1.msra.mxu1 %v1167_v41  ;;  %v765_v41 = vld [vmem:[#allocation2 + $0x108] sm:$0xff]  ;;  %v1221_v58 = vand.u32 4294901760, %v6821_v36  ;;  %1009 = vmatprep.subr.mxu0 %v6650_v3  ;;  %v6871_v50 = vsub.f32 %v6814_v60, %v12173_v52  ;;  %v6878_v33 = vand.u32 4294901760, %v764_v56  ;;  %v12177_v36 = vand.u32 4294901760, %v6720_v31 }
  0x49   : > { %1174 = vmatprep.subr.mxu1 %v1173_v37  ;;  %v6854_v12 = vsub.f32 %v6805_v45, %v12170_v57  ;;  %v1227_v37 = vand.u32 4294901760, %v6826_v44  ;;  %v748_v57 = vld [vmem:[#allocation2 + $0x80] sm:$0xff]  ;;  %v12172_v45 = vand.u32 4294901760, %v6715_v23  ;;  %v6876_v44 = vand.u32 4294901760, %v765_v41  ;;  %1011 = vmatpush1.msra.mxu0 %v6652_v4 }
  0x4a   : > { %1180 = vmatpush1.msra.mxu1 %v12171_v48  ;;  %v6874_v48 = vsub.f32 %v772_v39, %v6856_v17  ;;  %12176 = vst [vmem:[#allocation26_spill] sm:$0xff] %v6878_v33  ;;  %v6886_v11 = vand.u32 4294901760, %v756_v30  ;;  %v6888_v52 = vand.u32 4294901760, %v749_v0  ;;  %v12181_v39 = vand.u32 4294901760, %v6725_v53  ;;  %1013 = vmatprep.subr.mxu0 %v6663_v8 }
  0x4b   : > { %1186 = vmatprep.subr.mxu1 %v12172_v45  ;;  %12175 = vst [vmem:[#allocation25_spill] sm:$0xff] %v6876_v44  ;;  %v6884_v45 = vand.u32 4294901760, %v757_v29  ;;  %v6895_v31 = vsub.f32 %v765_v41, %v6876_v44  ;;  %v6900_v23 = vand.u32 4294901760, %v748_v57  ;;  %1015 = vmatpush1.msra.mxu0 %v6727_v54  ;;  %v6914_v41 = vand.u32 4294901760, %v741_v42 }
  0x4c   : > { %12174 = vst [vmem:[#allocation24_spill] sm:$0xff] %v6874_v48  ;;  %1192 = vmatpush1.msra.mxu1 %v12177_v36  ;;  %12179 = vst [vmem:[#allocation28_spill] sm:$0xff] %v6886_v11  ;;  %v6898_v36 = vsub.f32 %v764_v56, %v6878_v33  ;;  %v6912_v60 = vsub.f32 %v749_v0, %v6888_v52  ;;  %v12190_v56 = vand.u32 4294901760, %v6874_v48  ;;  %1017 = vmatprep.subr.mxu0 %v6757_v35 }
  0x4d   : > { %12178 = vst [vmem:[#allocation27_spill] sm:$0xff] %v6884_v45  ;;  %12180 = vst [vmem:[#allocation29_spill] sm:$0xff] %v6888_v52  ;;  %1198 = vmatprep.subr.mxu1 %v12181_v39  ;;  %v6906_v53 = vsub.f32 %v757_v29, %v6884_v45  ;;  %v6909_v39 = vsub.f32 %v756_v30, %v6886_v11  ;;  %v6923_v29 = vsub.f32 %v748_v57, %v6900_v23 }
  0x4e   : > { %12182 = vst [vmem:[#allocation30_spill] sm:$0xff] %v6895_v31  ;;  %12183 = vst [vmem:[#allocation31_spill] sm:$0xff] %v6898_v36  ;;  %1204 = vmatpush1.msra.mxu1 %v12185_v38  ;;  %v1262_v16 = vsub.f32 %v6874_v48, %v12190_v56  ;;  %1019 = vmatpush1.msra.mxu0 %v6759_v34  ;;  %v11361_v30 = vand.u32 4294901760, %v6912_v60  ;;  %v6930_v56 = vsub.f32 %v741_v42, %v6914_v41  ;;  %v740_v48 = vld [vmem:[#allocation2 + $0x40] sm:$0xff] }
  0x4f   : > { %12184 = vst [vmem:[#allocation32_spill] sm:$0xff] %v6900_v23  ;;  %12186 = vst [vmem:[#allocation33_spill] sm:$0xff] %v6906_v53  ;;  %1210 = vmatprep.subr.mxu1 %v1209_v22  ;;  %v11354_v0 = vand.u32 4294901760, %v6906_v53  ;;  %v1257_v38 = vand.u32 4294901760, %v6871_v50  ;;  %v12193_v46 = vand.u32 4294901760, %v6895_v31  ;;  %1021 = vmatprep.subr.mxu0 %v6763_v32  ;;  %v733_v22 = vld [vmem:[#allocation2 + $0x8] sm:$0xff] }
  0x50   : > { %12187 = vst [vmem:[#allocation34_spill] sm:$0xff] %v6909_v39  ;;  %12188 = vst [vmem:[#allocation35_spill] sm:$0xff] %v6912_v60  ;;  %1216 = vmatpush1.msra.mxu1 %v1215_v43  ;;  %v12194_v43 = vand.u32 4294901760, %v6898_v36  ;;  %1023 = vmatpush1.msra.mxu0 %v6765_v40  ;;  %v980_v40 = vld [vmem:[#allocation2 + $0x7c0] sm:$0xff] }
  0x51   : > { %12189 = vst [vmem:[#allocation36_spill] sm:$0xff] %v6914_v41  ;;  %12191 = vst [vmem:[#allocation37_spill] sm:$0xff] %v6923_v29  ;;  %1222 = vmatprep.subr.mxu1 %v1221_v58  ;;  %v1268_v57 = vsub.f32 %v6895_v31, %v12193_v46  ;;  %v1280_v42 = vsub.f32 %v6906_v53, %v11354_v0  ;;  %v12195_v58 = vand.u32 4294901760, %v6909_v39  ;;  %1025 = vmatprep.subr.mxu0 %v6767_v55 }
  0x52   : > { %12192 = vst [vmem:[#allocation38_spill] sm:$0xff] %v6930_v56  ;;  %v1274_v15 = vsub.f32 %v6898_v36, %v12194_v43  ;;  %1228 = vmatpush1.msra.mxu1 %v1227_v37  ;;  %v6953_v46 = vsub.f32 %v6912_v60, %v11361_v30  ;;  %v732_v37 = vld [vmem:[#allocation2] sm:$0xff]  ;;  %v1263_v36 = vand.u32 4294901760, %v1262_v16  ;;  %v12196_v0 = vand.u32 4294901760, %v6923_v29  ;;  %v973_v30 = vld [vmem:[#allocation2 + $0x788] sm:$0xff]  ;;  %1027 = vmatpush1.msra.mxu0 %v6778_v51 }
  0x53   : > { %v6948_v50 = vsub.f32 %v6909_v39, %v12195_v58  ;;  %1234 = vmatprep.subr.mxu1 %v1233_v49  ;;  %v1269_v31 = vand.u32 4294901760, %v1268_v57  ;;  %v6962_v58 = vand.u32 4294901760, %v740_v48  ;;  %v981_v39 = vld [vmem:[#allocation2 + $0x7c8] sm:$0xff]  ;;  %v12198_v60 = vand.u32 4294901760, %v6838_v47  ;;  %v972_v57 = vld [vmem:[#allocation2 + $0x780] sm:$0xff]  ;;  %1029 = vmatprep.subr.mxu0 %v6792_v59 }
  0x54   : > { %v6960_v53 = vsub.f32 %v6923_v29, %v12196_v0  ;;  %v1275_v43 = vand.u32 4294901760, %v1274_v15  ;;  %v1281_v10 = vand.u32 4294901760, %v1280_v42  ;;  %v1293_v49 = vand.u32 4294901760, %v6953_v46  ;;  %v965_v42 = vld [vmem:[#allocation2 + $0x748] sm:$0xff]  ;;  %1031 = vmatpush1.msra.mxu0 %v6856_v17 }
  0x55   : > { %12197 = vst [vmem:[#allocation39_spill] sm:$0xff] %v6962_v58  ;;  %1240 = vmatpush1.msra.mxu1 %v12198_v60  ;;  %v1287_v16 = vand.u32 4294901760, %v6948_v50  ;;  %v12199_v0 = vand.u32 4294901760, %v6843_v21  ;;  %v12200_v29 = vand.u32 4294901760, %v6930_v56  ;;  %v6978_v15 = vsub.f32 %v740_v48, %v6962_v58  ;;  %1033 = vmatprep.subr.mxu0 %v6876_v44 }
  0x56   : > { %v6980_v60 = vand.u32 4294901760, %v733_v22  ;;  %v6982_v47 = vand.u32 4294901760, %v732_v37  ;;  %v12204_v50 = vand.u32 4294901760, %v6854_v12  ;;  %v1299_v21 = vand.u32 4294901760, %v6960_v53  ;;  %1035 = vmatpush1.msra.mxu0 %v6878_v33 }
  0x57   : > { %1246 = vmatprep.subr.mxu1 %v12199_v0  ;;  %v6975_v55 = vsub.f32 %v6930_v56, %v12200_v29  ;;  %12201 = vst [vmem:[#allocation40_spill] sm:$0xff] %v6978_v15  ;;  %v6988_v46 = vand.u32 4294901760, %v981_v39  ;;  %v6990_v0 = vand.u32 4294901760, %v980_v40  ;;  %v6992_v29 = vand.u32 4294901760, %v973_v30  ;;  %1037 = vmatprep.subr.mxu0 %v6884_v45 }
  0x58   : > { %12202 = vst [vmem:[#allocation41_spill] sm:$0xff] %v6980_v60  ;;  %12203 = vst [vmem:[#allocation42_spill] sm:$0xff] %v6982_v47  ;;  %1252 = vmatpush1.msra.mxu1 %v12204_v50  ;;  %v6997_v56 = vsub.f32 %v733_v22, %v6980_v60  ;;  %v7000_v12 = vsub.f32 %v732_v37, %v6982_v47  ;;  %v7002_v53 = vand.u32 4294901760, %v972_v57  ;;  %v7014_v44 = vand.u32 4294901760, %v965_v42 }
  0x59   : > { %12205 = vst [vmem:[#allocation43_spill] sm:$0xff] %v6988_v46  ;;  %12206 = vst [vmem:[#allocation44_spill] sm:$0xff] %v6990_v0  ;;  %1258 = vmatprep.subr.mxu1 %v1257_v38  ;;  %v7006_v50 = vsub.f32 %v981_v39, %v6988_v46  ;;  %v7009_v38 = vsub.f32 %v980_v40, %v6990_v0  ;;  %v7012_v48 = vsub.f32 %v973_v30, %v6992_v29 }
  0x5a   : > { %12207 = vst [vmem:[#allocation45_spill] sm:$0xff] %v6992_v29  ;;  %12208 = vst [vmem:[#allocation46_spill] sm:$0xff] %v6997_v56  ;;  %1264 = vmatpush1.msra.mxu1 %v1263_v36  ;;  %v12215_v22 = vand.u32 4294901760, %v6978_v15  ;;  %v7023_v39 = vsub.f32 %v972_v57, %v7002_v53  ;;  %1039 = vmatpush1.msra.mxu0 %v6886_v11  ;;  %v964_v36 = vld [vmem:[#allocation2 + $0x740] sm:$0xff]  ;;  %v1305_v33 = vand.u32 4294901760, %v6975_v55 }
  0x5b   : > { %12209 = vst [vmem:[#allocation47_spill] sm:$0xff] %v7000_v12  ;;  %12210 = vst [vmem:[#allocation48_spill] sm:$0xff] %v7002_v53  ;;  %1270 = vmatprep.subr.mxu1 %v1269_v31  ;;  %1041 = vmatprep.subr.mxu0 %v6888_v52  ;;  %v12221_v55 = vand.u32 4294901760, %v7009_v38  ;;  %v12222_v31 = vand.u32 4294901760, %v7012_v48  ;;  %v941_v52 = vld [vmem:[#allocation2 + $0x688] sm:$0xff] }
  0x5c   : > { %12211 = vst [vmem:[#allocation49_spill] sm:$0xff] %v7006_v50  ;;  %12212 = vst [vmem:[#allocation50_spill] sm:$0xff] %v7009_v38  ;;  %v1310_v37 = vsub.f32 %v6978_v15, %v12215_v22  ;;  %1276 = vmatpush1.msra.mxu1 %v1275_v43  ;;  %v7030_v22 = vsub.f32 %v965_v42, %v7014_v44  ;;  %v12218_v15 = vand.u32 4294901760, %v6997_v56  ;;  %v12219_v43 = vand.u32 4294901760, %v7000_v12 }
  0x5d   : > { %12213 = vst [vmem:[#allocation51_spill] sm:$0xff] %v7012_v48  ;;  %12214 = vst [vmem:[#allocation52_spill] sm:$0xff] %v7014_v44  ;;  %1282 = vmatprep.subr.mxu1 %v1281_v10  ;;  %v12220_v42 = vand.u32 4294901760, %v7006_v50  ;;  %v1334_v11 = vsub.f32 %v7009_v38, %v12221_v55  ;;  %1043 = vmatpush1.msra.mxu0 %v6900_v23 }
  0x5e   : > { %12216 = vst [vmem:[#allocation53_spill] sm:$0xff] %v7023_v39  ;;  %12217 = vst [vmem:[#allocation54_spill] sm:$0xff] %v7030_v22  ;;  %v1316_v57 = vsub.f32 %v6997_v56, %v12218_v15  ;;  %v1322_v40 = vsub.f32 %v7000_v12, %v12219_v43  ;;  %1288 = vmatpush1.msra.mxu1 %v1287_v16  ;;  %v1311_v30 = vand.u32 4294901760, %v1310_v37  ;;  %v957_v56 = vld [vmem:[#allocation2 + $0x708] sm:$0xff]  ;;  %v956_v43 = vld [vmem:[#allocation2 + $0x700] sm:$0xff]  ;;  %1045 = vmatprep.subr.mxu0 %v6914_v41 }
  0x5f   : > { %v1328_v10 = vsub.f32 %v7006_v50, %v12220_v42  ;;  %1294 = vmatprep.subr.mxu1 %v1293_v49  ;;  %v1340_v16 = vsub.f32 %v7012_v48, %v12222_v31  ;;  %v7053_v37 = vand.u32 4294901760, %v964_v36  ;;  %v949_v42 = vld [vmem:[#allocation2 + $0x6c8] sm:$0xff]  ;;  %v948_v50 = vld [vmem:[#allocation2 + $0x6c0] sm:$0xff]  ;;  %v12224_v15 = vand.u32 4294901760, %v7023_v39  ;;  %1047 = vmatpush1.msra.mxu0 %v6962_v58 }
  0x60   : > { %v1317_v12 = vand.u32 4294901760, %v1316_v57  ;;  %1300 = vmatpush1.msra.mxu1 %v1299_v21  ;;  %v1323_v55 = vand.u32 4294901760, %v1322_v40  ;;  %v12225_v49 = vand.u32 4294901760, %v7030_v22  ;;  %1049 = vmatprep.subr.mxu0 %v6980_v60  ;;  %v7066_v48 = vand.u32 4294901760, %v957_v56 }
  0x61   : > { %12223 = vst [vmem:[#allocation55_spill] sm:$0xff] %v7053_v37  ;;  %v1329_v38 = vand.u32 4294901760, %v1328_v10  ;;  %v1346_v23 = vsub.f32 %v7023_v39, %v12224_v15  ;;  %1306 = vmatprep.subr.mxu1 %v1305_v33  ;;  %v7063_v57 = vsub.f32 %v964_v36, %v7053_v37  ;;  %v7068_v21 = vand.u32 4294901760, %v956_v43  ;;  %1051 = vmatpush1.msra.mxu0 %v6982_v47 }
  0x62   : > { %v1352_v31 = vsub.f32 %v7030_v22, %v12225_v49  ;;  %12227 = vst [vmem:[#allocation57_spill] sm:$0xff] %v7066_v48  ;;  %1312 = vmatpush1.msra.mxu1 %v1311_v30  ;;  %v1335_v40 = vand.u32 4294901760, %v1334_v11  ;;  %v7071_v10 = vand.u32 4294901760, %v949_v42  ;;  %v7073_v33 = vand.u32 4294901760, %v948_v50  ;;  %1053 = vmatprep.subr.mxu0 %v6988_v46 }
  0x63   : > { %12226 = vst [vmem:[#allocation56_spill] sm:$0xff] %v7063_v57  ;;  %12228 = vst [vmem:[#allocation58_spill] sm:$0xff] %v7068_v21  ;;  %v7075_v15 = vand.u32 4294901760, %v941_v52  ;;  %1318 = vmatprep.subr.mxu1 %v1317_v12  ;;  %v1341_v49 = vand.u32 4294901760, %v1340_v16  ;;  %v11398_v36 = vand.u32 4294901760, %v7063_v57  ;;  %v7079_v22 = vsub.f32 %v957_v56, %v7066_v48  ;;  %1055 = vmatpush2.msra.mxu0 %v6990_v0 }
  0x64   : > { %12229 = vst [vmem:[#allocation59_spill] sm:$0xff] %v7071_v10  ;;  %12230 = vst [vmem:[#allocation60_spill] sm:$0xff] %v7073_v33  ;;  %v7082_v39 = vsub.f32 %v956_v43, %v7068_v21  ;;  %1324 = vmatpush1.msra.mxu1 %v1323_v55  ;;  %v1347_v11 = vand.u32 4294901760, %v1346_v23  ;;  %v7086_v30 = vsub.f32 %v949_v42, %v7071_v10  ;;  %v1353_v56 = vand.u32 4294901760, %v1352_v31 }
  0x65   : > { %12231 = vst [vmem:[#allocation61_spill] sm:$0xff] %v7075_v15  ;;  %12232 = vst [vmem:[#allocation62_spill] sm:$0xff] %v7079_v22  ;;  %v7090_v12 = vsub.f32 %v948_v50, %v7073_v33  ;;  %v7093_v16 = vsub.f32 %v941_v52, %v7075_v15  ;;  %1330 = vmatprep.subr.mxu1 %v1329_v38  ;;  %v1358_v43 = vsub.f32 %v7063_v57, %v11398_v36 }
  0x66   : > { %12233 = vst [vmem:[#allocation63_spill] sm:$0xff] %v7082_v39  ;;  %12234 = vst [vmem:[#allocation64_spill] sm:$0xff] %v7086_v30  ;;  %v11399_v55 = vand.u32 4294901760, %v7079_v22  ;;  %v11400_v23 = vand.u32 4294901760, %v7082_v39  ;;  %1057 = vmatprep.subr.mxu0 %v6992_v29  ;;  %1336 = vmatpush2.msra.mxu1 %v1335_v40  ;;  %v11403_v42 = vand.u32 4294901760, %v7086_v30 }
  0x67   : > { %12235 = vst [vmem:[#allocation65_spill] sm:$0xff] %v7090_v12  ;;  %12236 = vst [vmem:[#allocation66_spill] sm:$0xff] %v7093_v16  ;;  %v11405_v50 = vand.u32 4294901760, %v7090_v12  ;;  %v11404_v52 = vand.u32 4294901760, %v7093_v16  ;;  %1059 = vmatpush2.msra.mxu0 %v7002_v53  ;;  %1342 = vmatprep.subr.mxu1 %v1341_v49  ;;  %v1359_v38 = vand.u32 4294901760, %v1358_v43 }
  0x68   : > { %v1364_v31 = vsub.f32 %v7079_v22, %v11399_v55  ;;  %v1370_v36 = vsub.f32 %v7082_v39, %v11400_v23  ;;  %1061 = vmatprep.subr.mxu0 %v7014_v44  ;;  %1348 = vmatpush2.msra.mxu1 %v1347_v11  ;;  %v1376_v40 = vsub.f32 %v7086_v30, %v11403_v42  ;;  %v916_v30 = vld [vmem:[#allocation2 + $0x5c0] sm:$0xff] }
  0x69   : > { %v1382_v49 = vsub.f32 %v7090_v12, %v11405_v50  ;;  %v1388_v43 = vsub.f32 %v7093_v16, %v11404_v52  ;;  %1063 = vmatpush2.msra.mxu0 %v7053_v37  ;;  %1354 = vmatprep.subr.mxu1 %v1353_v56  ;;  %v917_v50 = vld [vmem:[#allocation2 + $0x5c8] sm:$0xff]  ;;  %v908_v22 = vld [vmem:[#allocation2 + $0x580] sm:$0xff] }
  0x6a   : > { %v1365_v55 = vand.u32 4294901760, %v1364_v31  ;;  %v1371_v23 = vand.u32 4294901760, %v1370_v36  ;;  %1065 = vmatprep.subr.mxu0 %v7066_v48  ;;  %1360 = vmatpush2.msra.mxu1 %v1359_v38  ;;  %v1377_v11 = vand.u32 4294901760, %v1376_v40  ;;  %v940_v36 = vld [vmem:[#allocation2 + $0x680] sm:$0xff]  ;;  %v933_v38 = vld [vmem:[#allocation2 + $0x648] sm:$0xff]  ;;  %v7154_v12 = vand.u32 4294901760, %v917_v50 }
  0x6b   : > { %v1383_v39 = vand.u32 4294901760, %v1382_v49  ;;  %1067 = vmatpush2.msra.mxu0 %v7068_v21  ;;  %v1389_v42 = vand.u32 4294901760, %v1388_v43  ;;  %v7127_v56 = vand.u32 4294901760, %v940_v36  ;;  %v7129_v31 = vand.u32 4294901760, %v933_v38  ;;  %v932_v40 = vld [vmem:[#allocation2 + $0x640] sm:$0xff]  ;;  %v909_v16 = vld [vmem:[#allocation2 + $0x588] sm:$0xff] }
  0x6c   : > { %1366 = vmatprep.subr.mxu1 %v1365_v55  ;;  %1069 = vmatprep.subr.mxu0 %v7071_v10  ;;  %v7134_v49 = vand.u32 4294901760, %v932_v40  ;;  %12246 = vst [vmem:[#allocation76_spill] sm:$0xff] %v7154_v12  ;;  %v900_v10 = vld [vmem:[#allocation2 + $0x540] sm:$0xff] }
  0x6d   : > { %1372 = vmatpush2.msra.mxu1 %v1371_v23  ;;  %1071 = vmatpush2.msra.mxu0 %v7073_v33  ;;  %12237 = vst [vmem:[#allocation67_spill] sm:$0xff] %v7127_v56  ;;  %12238 = vst [vmem:[#allocation68_spill] sm:$0xff] %v7129_v31  ;;  %v7132_v55 = vsub.f32 %v940_v36, %v7127_v56  ;;  %v925_v23 = vld [vmem:[#allocation2 + $0x608] sm:$0xff]  ;;  %v7138_v43 = vsub.f32 %v933_v38, %v7129_v31 }
  0x6e   : > { %1378 = vmatprep.subr.mxu1 %v1377_v11  ;;  %1073 = vmatprep.subr.mxu0 %v7075_v15  ;;  %12240 = vst [vmem:[#allocation70_spill] sm:$0xff] %v7134_v49  ;;  %v7145_v52 = vsub.f32 %v932_v40, %v7134_v49 }
  0x6f   : > { %1384 = vmatpush2.msra.mxu1 %v1383_v39  ;;  %12239 = vst [vmem:[#allocation69_spill] sm:$0xff] %v7132_v55  ;;  %1075 = vmatpush2.msra.mxu0 %v7127_v56  ;;  %12241 = vst [vmem:[#allocation71_spill] sm:$0xff] %v7138_v43  ;;  %v7140_v39 = vand.u32 4294901760, %v925_v23  ;;  %v11424_v11 = vand.u32 4294901760, %v7132_v55  ;;  %v7172_v56 = vsub.f32 %v917_v50, %v7154_v12 }
  0x70   : > { %1390 = vmatprep.subr.mxu1 %v1389_v42  ;;  %v924_v42 = vld [vmem:[#allocation2 + $0x600] sm:$0xff]  ;;  %1077 = vmatprep.subr.mxu0 %v7129_v31  ;;  %12243 = vst [vmem:[#allocation73_spill] sm:$0xff] %v7145_v52 }
  0x71   : > { %12242 = vst [vmem:[#allocation72_spill] sm:$0xff] %v7140_v39  ;;  %v7147_v36 = vand.u32 4294901760, %v924_v42  ;;  %1079 = vmatpush2.msra.mxu0 %v7134_v49  ;;  %v7152_v38 = vsub.f32 %v925_v23, %v7140_v39  ;;  %v1394_v40 = vsub.f32 %v7132_v55, %v11424_v11  ;;  %v7164_v49 = vand.u32 4294901760, %v916_v30  ;;  %12250 = vst [vmem:[#allocation79_spill] sm:$0xff] %v7172_v56 }
  0x72   : > { %1081 = vmatprep.subr.mxu0 %v7140_v39  ;;  %v12249_v23 = vand.u32 4294901760, %v7138_v43  ;;  %v7174_v11 = vand.u32 4294901760, %v909_v16  ;;  %v12252_v55 = vand.u32 4294901760, %v7145_v52 }
  0x73   : > { %12244 = vst [vmem:[#allocation74_spill] sm:$0xff] %v7147_v36  ;;  %12245 = vst [vmem:[#allocation75_spill] sm:$0xff] %v7152_v38  ;;  %v7162_v57 = vsub.f32 %v924_v42, %v7147_v36  ;;  %1083 = vmatpush2.msra.mxu0 %v7147_v36  ;;  %v11443_v39 = vand.u32 4294901760, %v7152_v38  ;;  %v1395_v42 = vand.u32 4294901760, %v1394_v40  ;;  %v7182_v33 = vsub.f32 %v916_v30, %v7164_v49 }
  0x74   : > { %12248 = vst [vmem:[#allocation78_spill] sm:$0xff] %v7164_v49  ;;  %v1400_v31 = vsub.f32 %v7138_v43, %v12249_v23  ;;  %12251 = vst [vmem:[#allocation80_spill] sm:$0xff] %v7174_v11  ;;  %1085 = vmatprep.subr.mxu0 %v7154_v12  ;;  %v1406_v15 = vsub.f32 %v7145_v52, %v12252_v55  ;;  %v901_v23 = vld [vmem:[#allocation2 + $0x548] sm:$0xff]  ;;  %v11451_v12 = vand.u32 4294901760, %v7172_v56  ;;  %v7197_v52 = vand.u32 4294901760, %v908_v22 }
  0x75   : > { %12247 = vst [vmem:[#allocation77_spill] sm:$0xff] %v7162_v57  ;;  %v11448_v36 = vand.u32 4294901760, %v7162_v57  ;;  %12253 = vst [vmem:[#allocation81_spill] sm:$0xff] %v7182_v33  ;;  %1087 = vmatpush2.msra.mxu0 %v7164_v49  ;;  %v1412_v43 = vsub.f32 %v7152_v38, %v11443_v39  ;;  %v7190_v40 = vsub.f32 %v909_v16, %v7174_v11  ;;  %1396 = vmatpush2.msra.mxu1 %v1395_v42  ;;  %v893_v49 = vld [vmem:[#allocation2 + $0x508] sm:$0xff] }
  0x76   : > { %v1401_v50 = vand.u32 4294901760, %v1400_v31  ;;  %1089 = vmatprep.subr.mxu0 %v7174_v11  ;;  %v1407_v55 = vand.u32 4294901760, %v1406_v15  ;;  %v11454_v31 = vand.u32 4294901760, %v7182_v33  ;;  %12255 = vst [vmem:[#allocation83_spill] sm:$0xff] %v7197_v52  ;;  %v1424_v16 = vsub.f32 %v7172_v56, %v11451_v12  ;;  %v892_v15 = vld [vmem:[#allocation2 + $0x500] sm:$0xff] }
  0x77   : > { %12254 = vst [vmem:[#allocation82_spill] sm:$0xff] %v7190_v40  ;;  %v1418_v30 = vsub.f32 %v7162_v57, %v11448_v36  ;;  %v1413_v39 = vand.u32 4294901760, %v1412_v43  ;;  %v11459_v38 = vand.u32 4294901760, %v7190_v40  ;;  %v7203_v11 = vand.u32 4294901760, %v901_v23  ;;  %v885_v43 = vld [vmem:[#allocation2 + $0x4c8] sm:$0xff]  ;;  %1091 = vmatpush2.msra.mxu0 %v7197_v52 }
  0x78   : > { %1402 = vmatprep.subr.mxu1 %v1401_v50  ;;  %v1430_v36 = vsub.f32 %v7182_v33, %v11454_v31  ;;  %v7209_v57 = vsub.f32 %v908_v22, %v7197_v52  ;;  %v7211_v50 = vand.u32 4294901760, %v900_v10  ;;  %v1425_v12 = vand.u32 4294901760, %v1424_v16  ;;  %v884_v31 = vld [vmem:[#allocation2 + $0x4c0] sm:$0xff]  ;;  %v877_v16 = vld [vmem:[#allocation2 + $0x488] sm:$0xff] }
  0x79   : > { %12256 = vst [vmem:[#allocation84_spill] sm:$0xff] %v7203_v11  ;;  %1408 = vmatpush2.msra.mxu1 %v1407_v55  ;;  %v1419_v42 = vand.u32 4294901760, %v1418_v30  ;;  %v1436_v56 = vsub.f32 %v7190_v40, %v11459_v38  ;;  %v7218_v55 = vsub.f32 %v901_v23, %v7203_v11  ;;  %v7220_v30 = vand.u32 4294901760, %v893_v49  ;;  %1093 = vmatprep.subr.mxu0 %v7203_v11 }
  0x7a   : > { %12257 = vst [vmem:[#allocation85_spill] sm:$0xff] %v7209_v57  ;;  %12258 = vst [vmem:[#allocation86_spill] sm:$0xff] %v7211_v50  ;;  %1414 = vmatprep.subr.mxu1 %v1413_v39  ;;  %v1431_v22 = vand.u32 4294901760, %v1430_v36  ;;  %v11464_v33 = vand.u32 4294901760, %v7209_v57  ;;  %v7225_v52 = vsub.f32 %v900_v10, %v7211_v50  ;;  %v7227_v39 = vand.u32 4294901760, %v892_v15  ;;  %1095 = vmatpush2.msra.mxu0 %v7211_v50  ;;  %v876_v36 = vld [vmem:[#allocation2 + $0x480] sm:$0xff] }
  0x7b   : > { %12259 = vst [vmem:[#allocation87_spill] sm:$0xff] %v7218_v55  ;;  %12260 = vst [vmem:[#allocation88_spill] sm:$0xff] %v7220_v30  ;;  %1420 = vmatpush2.msra.mxu1 %v1419_v42  ;;  %v1437_v23 = vand.u32 4294901760, %v1436_v56  ;;  %v11471_v38 = vand.u32 4294901760, %v7218_v55  ;;  %v7232_v40 = vsub.f32 %v893_v49, %v7220_v30  ;;  %v7234_v11 = vand.u32 4294901760, %v885_v43  ;;  %1097 = vmatprep.subr.mxu0 %v7220_v30  ;;  %v868_v50 = vld [vmem:[#allocation2 + $0x440] sm:$0xff] }
  0x7c   : > { %12261 = vst [vmem:[#allocation89_spill] sm:$0xff] %v7225_v52  ;;  %12262 = vst [vmem:[#allocation90_spill] sm:$0xff] %v7227_v39  ;;  %1426 = vmatprep.subr.mxu1 %v1425_v12  ;;  %v1442_v10 = vsub.f32 %v7209_v57, %v11464_v33  ;;  %v7242_v42 = vsub.f32 %v892_v15, %v7227_v39  ;;  %v7244_v12 = vand.u32 4294901760, %v884_v31  ;;  %1099 = vmatpush2.msra.mxu0 %v7227_v39 }
  0x7d   : > { %12263 = vst [vmem:[#allocation91_spill] sm:$0xff] %v7232_v40  ;;  %12264 = vst [vmem:[#allocation92_spill] sm:$0xff] %v7234_v11  ;;  %1432 = vmatpush2.msra.mxu1 %v1431_v22  ;;  %v1448_v56 = vsub.f32 %v7218_v55, %v11471_v38  ;;  %v11482_v49 = vand.u32 4294901760, %v7232_v40  ;;  %v7252_v22 = vsub.f32 %v885_v43, %v7234_v11  ;;  %v7254_v33 = vand.u32 4294901760, %v877_v16  ;;  %v869_v38 = vld [vmem:[#allocation2 + $0x448] sm:$0xff] }
  0x7e   : > { %12265 = vst [vmem:[#allocation93_spill] sm:$0xff] %v7242_v42  ;;  %12266 = vst [vmem:[#allocation94_spill] sm:$0xff] %v7244_v12  ;;  %1438 = vmatprep.subr.mxu1 %v1437_v23  ;;  %1101 = vmatprep.subr.mxu0 %v7234_v11  ;;  %v1443_v15 = vand.u32 4294901760, %v1442_v10  ;;  %v12269_v57 = vand.u32 4294901760, %v7225_v52  ;;  %v11487_v23 = vand.u32 4294901760, %v7242_v42  ;;  %v7262_v30 = vsub.f32 %v884_v31, %v7244_v12 }
  0x7f   : > { %12267 = vst [vmem:[#allocation95_spill] sm:$0xff] %v7252_v22  ;;  %12268 = vst [vmem:[#allocation96_spill] sm:$0xff] %v7254_v33  ;;  %1103 = vmatpush2.msra.mxu0 %v7244_v12  ;;  %v1449_v43 = vand.u32 4294901760, %v1448_v56  ;;  %v1460_v55 = vsub.f32 %v7232_v40, %v11482_v49  ;;  %v11490_v11 = vand.u32 4294901760, %v7252_v22  ;;  %v7270_v10 = vsub.f32 %v877_v16, %v7254_v33  ;;  %v861_v12 = vld [vmem:[#allocation2 + $0x408] sm:$0xff] }
  0x80   : > { %v1454_v39 = vsub.f32 %v7225_v52, %v12269_v57  ;;  %12270 = vst [vmem:[#allocation97_spill] sm:$0xff] %v7262_v30  ;;  %1105 = vmatprep.subr.mxu0 %v7254_v33  ;;  %1444 = vmatpush2.msra.mxu1 %v1443_v15  ;;  %v1466_v31 = vsub.f32 %v7242_v42, %v11487_v23  ;;  %v11491_v56 = vand.u32 4294901760, %v7262_v30  ;;  %v7277_v52 = vand.u32 4294901760, %v876_v36 }
  0x81   : > { %12271 = vst [vmem:[#allocation98_spill] sm:$0xff] %v7270_v10  ;;  %1450 = vmatprep.subr.mxu1 %v1449_v43  ;;  %v1461_v49 = vand.u32 4294901760, %v1460_v55  ;;  %v1472_v16 = vsub.f32 %v7252_v22, %v11490_v11  ;;  %v11494_v40 = vand.u32 4294901760, %v7270_v10  ;;  %v7283_v33 = vand.u32 4294901760, %v869_v38 }
  0x82   : > { %v1455_v57 = vand.u32 4294901760, %v1454_v39  ;;  %12272 = vst [vmem:[#allocation99_spill] sm:$0xff] %v7277_v52  ;;  %v860_v39 = vld [vmem:[#allocation2 + $0x400] sm:$0xff]  ;;  %v1467_v15 = vand.u32 4294901760, %v1466_v31  ;;  %v1478_v23 = vsub.f32 %v7262_v30, %v11491_v56  ;;  %v7289_v42 = vsub.f32 %v876_v36, %v7277_v52  ;;  %1107 = vmatpush2.msra.mxu0 %v7277_v52 }
  0x83   : > { %12273 = vst [vmem:[#allocation100_spill] sm:$0xff] %v7283_v33  ;;  %v7291_v43 = vand.u32 4294901760, %v868_v50  ;;  %v1473_v55 = vand.u32 4294901760, %v1472_v16  ;;  %v1484_v11 = vsub.f32 %v7270_v10, %v11494_v40  ;;  %v7300_v31 = vand.u32 4294901760, %v861_v12  ;;  %1109 = vmatprep.subr.mxu0 %v7283_v33 }
  0x84   : > { %1456 = vmatpush2.msra.mxu1 %v1455_v57  ;;  %12274 = vst [vmem:[#allocation101_spill] sm:$0xff] %v7289_v42  ;;  %v7298_v57 = vsub.f32 %v869_v38, %v7283_v33  ;;  %v1479_v36 = vand.u32 4294901760, %v1478_v23  ;;  %v11495_v56 = vand.u32 4294901760, %v7289_v42 }
  0x85   : > { %12275 = vst [vmem:[#allocation102_spill] sm:$0xff] %v7291_v43  ;;  %1462 = vmatprep.subr.mxu1 %v1461_v49  ;;  %12277 = vst [vmem:[#allocation104_spill] sm:$0xff] %v7300_v31  ;;  %v7305_v30 = vsub.f32 %v868_v50, %v7291_v43  ;;  %v7307_v49 = vand.u32 4294901760, %v860_v39  ;;  %1111 = vmatpush2.msra.mxu0 %v7291_v43  ;;  %v1485_v16 = vand.u32 4294901760, %v1484_v11 }
  0x86   : > { %12276 = vst [vmem:[#allocation103_spill] sm:$0xff] %v7298_v57  ;;  %1468 = vmatpush2.msra.mxu1 %v1467_v15  ;;  %v11498_v38 = vand.u32 4294901760, %v7298_v57  ;;  %v7312_v40 = vsub.f32 %v861_v12, %v7300_v31  ;;  %1113 = vmatprep.subr.mxu0 %v7300_v31  ;;  %v1490_v23 = vsub.f32 %v7289_v42, %v11495_v56 }
  0x87   : > { %12278 = vst [vmem:[#allocation105_spill] sm:$0xff] %v7305_v30  ;;  %12279 = vst [vmem:[#allocation106_spill] sm:$0xff] %v7307_v49  ;;  %1474 = vmatprep.subr.mxu1 %v1473_v55  ;;  %v11500_v50 = vand.u32 4294901760, %v7305_v30  ;;  %v7320_v15 = vsub.f32 %v860_v39, %v7307_v49  ;;  %1115 = vmatpush2.msra.mxu0 %v7307_v49 }
  0x88   : > { %12280 = vst [vmem:[#allocation107_spill] sm:$0xff] %v7312_v40  ;;  %1480 = vmatpush2.msra.mxu1 %v1479_v36  ;;  %v1496_v11 = vsub.f32 %v7298_v57, %v11498_v38  ;;  %v11507_v12 = vand.u32 4294901760, %v7312_v40  ;;  %1528 = vmatprep.subr.mxu0 %v6579_v24  ;;  %v1491_v55 = vand.u32 4294901760, %v1490_v23 }
  0x89   : > { %12281 = vst [vmem:[#allocation108_spill] sm:$0xff] %v7320_v15  ;;  %1486 = vmatprep.subr.mxu1 %v1485_v16  ;;  %v1502_v36 = vsub.f32 %v7305_v30, %v11500_v50  ;;  %v11514_v56 = vand.u32 4294901760, %v7320_v15 }
  0x8a   : > { %v1497_v39 = vand.u32 4294901760, %v1496_v11  ;;  %v1508_v16 = vsub.f32 %v7312_v40, %v11507_v12  ;;  %1492 = vmatpush2.msra.mxu1 %v1491_v55 }
  0x8b   : > { %v1503_v42 = vand.u32 4294901760, %v1502_v36  ;;  %v1514_v38 = vsub.f32 %v7320_v15, %v11514_v56 }
  0x8c   : > { %1498 = vmatprep.subr.mxu1 %v1497_v39  ;;  %v1509_v24 = vand.u32 4294901760, %v1508_v16 }
  0x8d   : > { %1504 = vmatpush2.msra.mxu1 %v1503_v42  ;;  %v1515_v23 = vand.u32 4294901760, %v1514_v38 }
  0x8e   : > { %1510 = vmatprep.subr.mxu1 %v1509_v24 }
  0x8f   : > { %1516 = vmatpush2.msra.mxu1 %v1515_v23 }
  0x90   : > { %1730 = vmatprep.subr.mxu1 %v6559_v13 }
  0xa3   : > { %v248_v50 = vpop.permute.xlu0 %247 }
  0xf3   : > { %v334_v11 = vpop.f32.mrf.mxu0 }
  0xf4   : > { %v335_v30 = vadd.f32 %v334_v11, %v248_v50 }
  0xf5   : > { %v336_v57 = vpop.f32.mrf.mxu0 }
  0xf6   : > { %v337_v12 = vadd.f32 %v336_v57, %v248_v50 }
  0xf7   : > { %v493_v36 = vpop.f32.mrf.mxu0 }
  0xf9   : > { %v495_v56 = vpop.f32.mrf.mxu0 }
  0xfb   : > { %v416_v10 = vpop.f32.mrf.mxu1 }
  0xfc   : > { %v417_v55 = vadd.f32 %v416_v10, %v335_v30 }
  0xfd   : > { %v418_v40 = vpop.f32.mrf.mxu1  ;;  %v647_v38 = vpop.f32.mrf.mxu0 }
  0xfe   : > { %v494_v22 = vadd.f32 %v493_v36, %v417_v55  ;;  %v419_v49 = vadd.f32 %v418_v40, %v337_v12  ;;  %v12290_v36 = vld [vmem:[#allocation10_spill] sm:$0xff] }
  0xff   : > { %v569_v39 = vpop.f32.mrf.mxu1  ;;  %v649_v13 = vpop.f32.mrf.mxu0 }
 0x100   : > { %v496_v16 = vadd.f32 %v495_v56, %v419_v49  ;;  %v570_v42 = vadd.f32 %v569_v39, %v494_v22  ;;  %v12291_v39 = vld [vmem:[#allocation15_spill] sm:$0xff] }
 0x101   : > { %v571_v24 = vpop.f32.mrf.mxu1 }
 0x102   : > { %v648_v23 = vadd.f32 %v647_v38, %v570_v42  ;;  %v572_v15 = vadd.f32 %v571_v24, %v496_v16  ;;  %v12292_v16 = vld [vmem:[#allocation11_spill] sm:$0xff]  ;;  %v12293_v42 = vld [vmem:[#allocation16_spill] sm:$0xff]  ;;  %v12295_v24 = vld [vmem:[#allocation13_spill] sm:$0xff] }
 0x103   : > { %v721_v31 = vpop.f32.mrf.mxu1  ;;  %v12294_v38 = vld [vmem:[#allocation12_spill] sm:$0xff] }
 0x104   : > { %v650_v43 = vadd.f32 %v649_v13, %v572_v15  ;;  %v722_v11 = vadd.f32 %v721_v31, %v648_v23  ;;  %v12296_v23 = vld [vmem:[#allocation14_spill] sm:$0xff] }
 0x105   : > { %v723_v33 = vpop.f32.mrf.mxu1 }
 0x106   : > { %vm726_vm2 = vcmp.gt.f32.partialorder %v722_v11, 0.0  ;;  %v728_v57 = vmul.f32 0.1, %v722_v11  ;;  %v724_v30 = vadd.f32 %v723_v33, %v650_v43 }
 0x108   : > { %v730_v10 = vsel %vm726_vm2, %v722_v11, %v728_v57  ;;  %vm727_vm3 = vcmp.gt.f32.partialorder %v724_v30, 0.0  ;;  %v729_v50 = vmul.f32 0.1, %v724_v30  ;;  %v12297_v11 = vld [vmem:[#allocation17_spill] sm:$0xff] }
 0x109   : > { %v7339_v40 = vand.u32 4294901760, %v730_v10  ;;  %v12298_v57 = vld [vmem:[#allocation25_spill] sm:$0xff] }
 0x10a   : > { %v731_v12 = vsel %vm727_vm3, %v724_v30, %v729_v50  ;;  %v12299_v30 = vld [vmem:[#allocation18_spill] sm:$0xff]  ;;  %v12301_v50 = vld [vmem:[#allocation19_spill] sm:$0xff] }
 0x10b   : > { %12282 = vst [vmem:[#allocation109_spill] sm:$0xff] %v7339_v40  ;;  %v7342_v22 = vsub.f32 %v730_v10, %v7339_v40  ;;  %v7344_v56 = vand.u32 4294901760, %v731_v12  ;;  %v12300_v10 = vld [vmem:[#allocation26_spill] sm:$0xff] }
 0x10d   : > { %12283 = vst [vmem:[#allocation110_spill] sm:$0xff] %v7342_v22  ;;  %12284 = vst [vmem:[#allocation111_spill] sm:$0xff] %v7344_v56  ;;  %v7347_v49 = vsub.f32 %v731_v12, %v7344_v56  ;;  %1518 = vmatprep.mubr.f32.mxu1 %v7344_v56  ;;  %v7351_v13 = vand.u32 4294901760, %v7342_v22  ;;  %v12302_v12 = vld [vmem:[#allocation20_spill] sm:$0xff] }
 0x10e   : > { %1520 = vmatmul.mubr.f32.vlgmr.msra.gmra.mxu1 %v7339_v40  ;;  %v12309_v40 = vld [vmem:[#allocation24_spill] sm:$0xff] }
 0x10f   : > { %12285 = vst [vmem:[#allocation112_spill] sm:$0xff] %v7347_v49  ;;  %12286 = vst [vmem:[#allocation113_spill] sm:$0xff] %v7351_v13  ;;  %1732 = vmatpush1.msra.mxu1 %v6561_v14  ;;  %v7356_v33 = vand.u32 4294901760, %v7347_v49  ;;  %v1125_v43 = vsub.f32 %v7342_v22, %v7351_v13 }
 0x110   : > { %1734 = vmatprep.subr.mxu1 %v6564_v18 }
 0x111   : > { %12287 = vst [vmem:[#allocation114_spill] sm:$0xff] %v7356_v33  ;;  %1736 = vmatpush1.msra.mxu1 %v6566_v19  ;;  %1860 = vmatprep.mubr.f32.mxu1 %v7356_v33  ;;  %v1119_v31 = vsub.f32 %v7347_v49, %v7356_v33  ;;  %v7370_v55 = vand.u32 4294901760, %v1125_v43  ;;  %v12303_v43 = vld [vmem:[#allocation28_spill] sm:$0xff] }
 0x112   : > { %1738 = vmatprep.subr.mxu1 %v6568_v20  ;;  %v12307_v33 = vld [vmem:[#allocation32_spill] sm:$0xff] }
 0x113   : > { %1740 = vmatpush1.msra.mxu1 %v6638_v61  ;;  %v7367_v15 = vand.u32 4294901760, %v1119_v31  ;;  %12289 = vst [vmem:[#allocation116_spill] sm:$0xff] %v7370_v55  ;;  %v12304_v31 = vld [vmem:[#allocation21_spill] sm:$0xff] }
 0x114   : > { %1742 = vmatprep.subr.mxu1 %v6640_v62 }
 0x115   : > { %12288 = vst [vmem:[#allocation115_spill] sm:$0xff] %v7367_v15  ;;  %1744 = vmatpush1.msra.mxu1 %v6642_v63  ;;  %1121 = vmatprep.mubr.f32.mxu0 %v7367_v15  ;;  %v12308_v15 = vld [vmem:[#allocation23_spill] sm:$0xff] }
 0x116   : > { %1746 = vmatprep.subr.mxu1 %v6646_v1  ;;  %1127 = vmatmul.mubr.f32.vlgmr.msra.gmra.mxu0 %v7370_v55  ;;  %v12306_v55 = vld [vmem:[#allocation22_spill] sm:$0xff] }
 0x117   : > { %1531 = vmatpush1.msra.mxu0 %v6582_v25  ;;  %1748 = vmatpush1.msra.mxu1 %v6648_v2 }
 0x118   : > { %1534 = vmatprep.subr.mxu0 %v6585_v26  ;;  %1720 = vmatprep.mubr.f32.mxu0 %v7347_v49  ;;  %v12305_v49 = vld [vmem:[#allocation29_spill] sm:$0xff] }
 0x119   : > { %1750 = vmatprep.subr.mxu1 %v6650_v3  ;;  %1537 = vmatpush1.msra.mxu0 %v6588_v27 }
 0x11a   : > { %1752 = vmatpush1.msra.mxu1 %v6652_v4  ;;  %1540 = vmatprep.subr.mxu0 %v6591_v28 }
 0x11b   : > { %1754 = vmatprep.subr.mxu1 %v6663_v8  ;;  %1543 = vmatpush1.msra.mxu0 %v6655_v5 }
 0x11c   : > { %1756 = vmatpush1.msra.mxu1 %v6727_v54  ;;  %1546 = vmatprep.subr.mxu0 %v6658_v6 }
 0x11d   : > { %1758 = vmatprep.subr.mxu1 %v6757_v35  ;;  %1549 = vmatpush1.msra.mxu0 %v6661_v7 }
 0x11e   : > { %1760 = vmatpush1.msra.mxu1 %v6759_v34  ;;  %1552 = vmatprep.subr.mxu0 %v6666_v9 }
 0x11f   : > { %1762 = vmatprep.subr.mxu1 %v6763_v32  ;;  %1555 = vmatpush1.msra.mxu0 %v12290_v36 }
 0x120   : > { %1764 = vmatpush1.msra.mxu1 %v12291_v39  ;;  %1558 = vmatprep.subr.mxu0 %v12292_v16 }
 0x121   : > { %1766 = vmatprep.subr.mxu1 %v12293_v42  ;;  %1561 = vmatpush1.msra.mxu0 %v12294_v38 }
 0x122   : > { %1768 = vmatpush1.msra.mxu1 %v6778_v51  ;;  %1564 = vmatprep.subr.mxu0 %v12295_v24 }
 0x123   : > { %1770 = vmatprep.subr.mxu1 %v6792_v59  ;;  %1567 = vmatpush1.msra.mxu0 %v12296_v23 }
 0x124   : > { %1772 = vmatpush1.msra.mxu1 %v6856_v17  ;;  %1570 = vmatprep.subr.mxu0 %v12297_v11 }
 0x125   : > { %1774 = vmatprep.subr.mxu1 %v12298_v57  ;;  %1573 = vmatpush1.msra.mxu0 %v12299_v30 }
 0x126   : > { %1776 = vmatpush1.msra.mxu1 %v12300_v10  ;;  %1576 = vmatprep.subr.mxu0 %v12301_v50 }
 0x127   : > { %1778 = vmatprep.subr.mxu1 %v6884_v45  ;;  %1579 = vmatpush1.msra.mxu0 %v12302_v12  ;;  %v12310_v45 = vld [vmem:[#allocation30_spill] sm:$0xff] }
 0x128   : > { %1780 = vmatpush1.msra.mxu1 %v12303_v43  ;;  %1582 = vmatprep.subr.mxu0 %v12304_v31  ;;  %v12311_v43 = vld [vmem:[#allocation31_spill] sm:$0xff] }
 0x129   : > { %1782 = vmatprep.subr.mxu1 %v12305_v49  ;;  %1585 = vmatpush1.msra.mxu0 %v12306_v55  ;;  %v12312_v49 = vld [vmem:[#allocation33_spill] sm:$0xff] }
 0x12a   : > { %1784 = vmatpush1.msra.mxu1 %v12307_v33  ;;  %1588 = vmatprep.subr.mxu0 %v12308_v15  ;;  %v12313_v33 = vld [vmem:[#allocation34_spill] sm:$0xff] }
 0x12b   : > { %1786 = vmatprep.subr.mxu1 %v6914_v41  ;;  %1591 = vmatpush1.msra.mxu0 %v12309_v40  ;;  %v12314_v41 = vld [vmem:[#allocation35_spill] sm:$0xff] }
 0x12c   : > { %1788 = vmatpush1.msra.mxu1 %v6962_v58  ;;  %1594 = vmatprep.subr.mxu0 %v12310_v45  ;;  %v12315_v58 = vld [vmem:[#allocation37_spill] sm:$0xff] }
 0x12d   : > { %1790 = vmatprep.subr.mxu1 %v6980_v60  ;;  %1597 = vmatpush1.msra.mxu0 %v12311_v43  ;;  %v12316_v60 = vld [vmem:[#allocation38_spill] sm:$0xff] }
 0x12e   : > { %1792 = vmatpush1.msra.mxu1 %v6982_v47  ;;  %1600 = vmatprep.subr.mxu0 %v12312_v49  ;;  %v12317_v47 = vld [vmem:[#allocation40_spill] sm:$0xff] }
 0x12f   : > { %1794 = vmatprep.subr.mxu1 %v6988_v46  ;;  %1603 = vmatpush1.msra.mxu0 %v12313_v33  ;;  %v12318_v46 = vld [vmem:[#allocation46_spill] sm:$0xff] }
 0x130   : > { %1796 = vmatpush2.msra.mxu1 %v6990_v0  ;;  %1606 = vmatprep.subr.mxu0 %v12314_v41  ;;  %v12319_v0 = vld [vmem:[#allocation47_spill] sm:$0xff] }
 0x131   : > { %1798 = vmatprep.subr.mxu1 %v6992_v29  ;;  %1609 = vmatpush1.msra.mxu0 %v12315_v58  ;;  %v12320_v29 = vld [vmem:[#allocation49_spill] sm:$0xff]  ;;  %v12321_v58 = vld [vmem:[#allocation59_spill] sm:$0xff] }
 0x132   : > { %1800 = vmatpush2.msra.mxu1 %v7002_v53  ;;  %1612 = vmatprep.subr.mxu0 %v12316_v60  ;;  %v12322_v53 = vld [vmem:[#allocation50_spill] sm:$0xff]  ;;  %v12323_v60 = vld [vmem:[#allocation60_spill] sm:$0xff] }
 0x133   : > { %1802 = vmatprep.subr.mxu1 %v7014_v44  ;;  %1615 = vmatpush1.msra.mxu0 %v12317_v47  ;;  %v12324_v44 = vld [vmem:[#allocation51_spill] sm:$0xff]  ;;  %v12325_v47 = vld [vmem:[#allocation61_spill] sm:$0xff] }
 0x134   : > { %1804 = vmatpush2.msra.mxu1 %v7053_v37  ;;  %1618 = vmatprep.subr.mxu0 %v12318_v46  ;;  %v12326_v37 = vld [vmem:[#allocation53_spill] sm:$0xff]  ;;  %v12327_v46 = vld [vmem:[#allocation67_spill] sm:$0xff] }
 0x135   : > { %1806 = vmatprep.subr.mxu1 %v7066_v48  ;;  %1621 = vmatpush1.msra.mxu0 %v12319_v0  ;;  %v12328_v48 = vld [vmem:[#allocation54_spill] sm:$0xff]  ;;  %v12329_v0 = vld [vmem:[#allocation68_spill] sm:$0xff] }
 0x136   : > { %1808 = vmatpush2.msra.mxu1 %v7068_v21  ;;  %1624 = vmatprep.subr.mxu0 %v12320_v29  ;;  %v12330_v21 = vld [vmem:[#allocation56_spill] sm:$0xff]  ;;  %v12331_v29 = vld [vmem:[#allocation70_spill] sm:$0xff] }
 0x137   : > { %1810 = vmatprep.subr.mxu1 %v12321_v58  ;;  %1627 = vmatpush2.msra.mxu0 %v12322_v53  ;;  %v12332_v58 = vld [vmem:[#allocation62_spill] sm:$0xff]  ;;  %v12333_v53 = vld [vmem:[#allocation72_spill] sm:$0xff] }
 0x138   : > { %1812 = vmatpush2.msra.mxu1 %v12323_v60  ;;  %1630 = vmatprep.subr.mxu0 %v12324_v44  ;;  %v12334_v60 = vld [vmem:[#allocation63_spill] sm:$0xff]  ;;  %v12335_v44 = vld [vmem:[#allocation74_spill] sm:$0xff] }
 0x139   : > { %1814 = vmatprep.subr.mxu1 %v12325_v47  ;;  %1633 = vmatpush2.msra.mxu0 %v12326_v37  ;;  %v12336_v47 = vld [vmem:[#allocation64_spill] sm:$0xff] }
 0x13a   : > { %1816 = vmatpush2.msra.mxu1 %v12327_v46  ;;  %1636 = vmatprep.subr.mxu0 %v12328_v48  ;;  %v12337_v37 = vld [vmem:[#allocation76_spill] sm:$0xff]  ;;  %v12338_v46 = vld [vmem:[#allocation65_spill] sm:$0xff]  ;;  %v12339_v48 = vld [vmem:[#allocation78_spill] sm:$0xff] }
 0x13b   : > { %1818 = vmatprep.subr.mxu1 %v12329_v0  ;;  %1639 = vmatpush2.msra.mxu0 %v12330_v21  ;;  %v12340_v0 = vld [vmem:[#allocation66_spill] sm:$0xff]  ;;  %v12341_v21 = vld [vmem:[#allocation80_spill] sm:$0xff] }
 0x13c   : > { %1820 = vmatpush2.msra.mxu1 %v12331_v29  ;;  %1642 = vmatprep.subr.mxu0 %v12332_v58  ;;  %v12342_v29 = vld [vmem:[#allocation69_spill] sm:$0xff]  ;;  %v12343_v58 = vld [vmem:[#allocation83_spill] sm:$0xff] }
 0x13d   : > { %1822 = vmatprep.subr.mxu1 %v12333_v53  ;;  %1645 = vmatpush2.msra.mxu0 %v12334_v60  ;;  %v12344_v53 = vld [vmem:[#allocation71_spill] sm:$0xff]  ;;  %v12345_v60 = vld [vmem:[#allocation84_spill] sm:$0xff] }
 0x13e   : > { %1824 = vmatpush2.msra.mxu1 %v12335_v44  ;;  %1648 = vmatprep.subr.mxu0 %v12336_v47  ;;  %v12346_v44 = vld [vmem:[#allocation73_spill] sm:$0xff]  ;;  %v12347_v47 = vld [vmem:[#allocation86_spill] sm:$0xff] }
 0x13f   : > { %1826 = vmatprep.subr.mxu1 %v12337_v37  ;;  %1651 = vmatpush2.msra.mxu0 %v12338_v46  ;;  %v12348_v37 = vld [vmem:[#allocation75_spill] sm:$0xff]  ;;  %v12349_v46 = vld [vmem:[#allocation88_spill] sm:$0xff] }
 0x140   : > { %1828 = vmatpush2.msra.mxu1 %v12339_v48  ;;  %1654 = vmatprep.subr.mxu0 %v12340_v0  ;;  %v12350_v48 = vld [vmem:[#allocation77_spill] sm:$0xff]  ;;  %v12351_v0 = vld [vmem:[#allocation90_spill] sm:$0xff] }
 0x141   : > { %1830 = vmatprep.subr.mxu1 %v12341_v21  ;;  %1657 = vmatpush2.msra.mxu0 %v12342_v29  ;;  %v12352_v21 = vld [vmem:[#allocation79_spill] sm:$0xff]  ;;  %v12353_v29 = vld [vmem:[#allocation92_spill] sm:$0xff] }
 0x142   : > { %1832 = vmatpush2.msra.mxu1 %v12343_v58  ;;  %1660 = vmatprep.subr.mxu0 %v12344_v53  ;;  %v12354_v58 = vld [vmem:[#allocation81_spill] sm:$0xff]  ;;  %v12355_v53 = vld [vmem:[#allocation94_spill] sm:$0xff] }
 0x143   : > { %1834 = vmatprep.subr.mxu1 %v12345_v60  ;;  %1663 = vmatpush2.msra.mxu0 %v12346_v44  ;;  %v12356_v60 = vld [vmem:[#allocation82_spill] sm:$0xff]  ;;  %v12357_v44 = vld [vmem:[#allocation96_spill] sm:$0xff] }
 0x144   : > { %1836 = vmatpush2.msra.mxu1 %v12347_v47  ;;  %1666 = vmatprep.subr.mxu0 %v12348_v37  ;;  %v12358_v47 = vld [vmem:[#allocation85_spill] sm:$0xff] }
 0x145   : > { %1838 = vmatprep.subr.mxu1 %v12349_v46  ;;  %1669 = vmatpush2.msra.mxu0 %v12350_v48  ;;  %v12359_v46 = vld [vmem:[#allocation87_spill] sm:$0xff]  ;;  %v12360_v48 = vld [vmem:[#allocation100_spill] sm:$0xff] }
 0x146   : > { %1840 = vmatpush2.msra.mxu1 %v12351_v0  ;;  %1672 = vmatprep.subr.mxu0 %v12352_v21  ;;  %v12361_v0 = vld [vmem:[#allocation89_spill] sm:$0xff]  ;;  %v12362_v21 = vld [vmem:[#allocation102_spill] sm:$0xff] }
 0x147   : > { %1842 = vmatprep.subr.mxu1 %v12353_v29  ;;  %1675 = vmatpush2.msra.mxu0 %v12354_v58  ;;  %v12363_v29 = vld [vmem:[#allocation91_spill] sm:$0xff]  ;;  %v12364_v58 = vld [vmem:[#allocation104_spill] sm:$0xff] }
 0x148   : > { %1844 = vmatpush2.msra.mxu1 %v12355_v53  ;;  %1678 = vmatprep.subr.mxu0 %v12356_v60  ;;  %v12365_v53 = vld [vmem:[#allocation93_spill] sm:$0xff]  ;;  %v12366_v60 = vld [vmem:[#allocation106_spill] sm:$0xff] }
 0x149   : > { %1846 = vmatprep.subr.mxu1 %v12357_v44  ;;  %1681 = vmatpush2.msra.mxu0 %v12358_v47  ;;  %v12367_v44 = vld [vmem:[#allocation95_spill] sm:$0xff] }
 0x14a   : > { %1848 = vmatpush2.msra.mxu1 %v7277_v52  ;;  %1684 = vmatprep.subr.mxu0 %v12359_v46  ;;  %v12368_v52 = vld [vmem:[#allocation8_spill] sm:$0xff]  ;;  %v12369_v46 = vld [vmem:[#allocation97_spill] sm:$0xff] }
 0x14b   : > { %1850 = vmatprep.subr.mxu1 %v12360_v48  ;;  %1687 = vmatpush2.msra.mxu0 %v12361_v0 }
 0x14c   : > { %1852 = vmatpush2.msra.mxu1 %v12362_v21  ;;  %1690 = vmatprep.subr.mxu0 %v12363_v29  ;;  %v12370_v21 = vld [vmem:[#allocation98_spill] sm:$0xff] }
 0x14d   : > { %1854 = vmatprep.subr.mxu1 %v12364_v58  ;;  %1693 = vmatpush2.msra.mxu0 %v12365_v53  ;;  %v12371_v58 = vld [vmem:[#allocation101_spill] sm:$0xff] }
 0x14e   : > { %1856 = vmatpush2.msra.mxu1 %v12366_v60  ;;  %1696 = vmatprep.subr.mxu0 %v12367_v44  ;;  %v12372_v60 = vld [vmem:[#allocation103_spill] sm:$0xff] }
 0x14f   : > { %1864 = vmatmul.mubr.f32.vlgmr.msra.gmra.mxu1 %v7351_v13  ;;  %2136 = vmatprep.subr.mxu1 %v12368_v52  ;;  %v12373_v13 = vld [vmem:[#allocation105_spill] sm:$0xff]  ;;  %v12374_v52 = vld [vmem:[#allocation107_spill] sm:$0xff] }
 0x150   : > { %1699 = vmatpush2.msra.mxu0 %v12369_v46  ;;  %2138 = vmatpush1.msra.mxu1 %v6561_v14  ;;  %v12375_v14 = vld [vmem:[#allocation108_spill] sm:$0xff] }
 0x151   : > { %2264 = vmatprep.mubr.f32.mxu1 %v7344_v56  ;;  %1702 = vmatprep.subr.mxu0 %v12370_v21 }
 0x152   : > { %2140 = vmatprep.subr.mxu1 %v6564_v18  ;;  %1705 = vmatpush2.msra.mxu0 %v12371_v58  ;;  %v12376_v18 = vld [vmem:[#allocation9_spill] sm:$0xff] }
 0x153   : > { %2142 = vmatpush1.msra.mxu1 %v6566_v19  ;;  %1708 = vmatprep.subr.mxu0 %v12372_v60  ;;  %v12377_v19 = vand.u32 4294901760, %v12376_v18  ;;  %v12417_v18 = vld [vmem:[#allocation48_spill] sm:$0xff] }
 0x154   : > { %2144 = vmatprep.subr.mxu1 %v6568_v20  ;;  %1711 = vmatpush2.msra.mxu0 %v12373_v13  ;;  %v12378_v20 = vand.u32 4294901760, %v6582_v25  ;;  %v12382_v25 = vand.u32 4294901760, %v6655_v5  ;;  %v12393_v5 = vand.u32 4294901760, %v12301_v50  ;;  %v847_v50 = vld [vmem:[#allocation2 + $0x398] sm:$0xff] }
 0x155   : > { %2146 = vmatpush1.msra.mxu1 %v6638_v61  ;;  %1714 = vmatprep.subr.mxu0 %v12374_v52  ;;  %v12379_v61 = vand.u32 4294901760, %v6585_v26  ;;  %v12383_v26 = vand.u32 4294901760, %v6658_v6  ;;  %v12394_v6 = vld [vmem:[#allocation27_spill] sm:$0xff] }
 0x156   : > { %2148 = vmatprep.subr.mxu1 %v6640_v62  ;;  %1717 = vmatpush2.msra.mxu0 %v12375_v14  ;;  %v12380_v62 = vand.u32 4294901760, %v6588_v27  ;;  %v12384_v27 = vand.u32 4294901760, %v6661_v7  ;;  %v12395_v7 = vand.u32 4294901760, %v12302_v12  ;;  %v12414_v12 = vld [vmem:[#allocation45_spill] sm:$0xff] }
 0x157   : > { %2150 = vmatpush1.msra.mxu1 %v6642_v63  ;;  %1723 = vmatmul.mubr.f32.vlgmr.msra.gmra.mxu0 %v7342_v22  ;;  %v12381_v63 = vand.u32 4294901760, %v6591_v28  ;;  %v12385_v28 = vand.u32 4294901760, %v6666_v9  ;;  %v12397_v9 = vand.u32 4294901760, %v12304_v31 }
 0x158   : > { %1873 = vmatprep.subr.mxu0 %v12377_v19  ;;  %2152 = vmatprep.subr.mxu1 %v6646_v1  ;;  %v12386_v1 = vand.u32 4294901760, %v12290_v36  ;;  %v12402_v36 = vld [vmem:[#allocation36_spill] sm:$0xff]  ;;  %v12418_v19 = vld [vmem:[#allocation38_spill] sm:$0xff] }
 0x159   : > { %1877 = vmatpush1.msra.mxu0 %v12378_v20  ;;  %2127 = vmatprep.mubr.f32.mxu0 %v7344_v56 }
 0x15a   : > { %2154 = vmatpush1.msra.mxu1 %v6648_v2  ;;  %1881 = vmatprep.subr.mxu0 %v12379_v61  ;;  %v12387_v2 = vand.u32 4294901760, %v12292_v16  ;;  %v12404_v16 = vld [vmem:[#allocation39_spill] sm:$0xff] }
 0x15b   : > { %2156 = vmatprep.subr.mxu1 %v6650_v3  ;;  %1885 = vmatpush1.msra.mxu0 %v12380_v62  ;;  %v12391_v3 = vand.u32 4294901760, %v12297_v11  ;;  %v12410_v11 = vld [vmem:[#allocation43_spill] sm:$0xff]  ;;  %v12420_v62 = vld [vmem:[#allocation52_spill] sm:$0xff] }
 0x15c   : > { %2158 = vmatpush1.msra.mxu1 %v6652_v4  ;;  %1889 = vmatprep.subr.mxu0 %v12381_v63  ;;  %v12392_v4 = vand.u32 4294901760, %v12299_v30  ;;  %v12412_v30 = vld [vmem:[#allocation44_spill] sm:$0xff]  ;;  %v839_v61 = vld [vmem:[#allocation2 + $0x358] sm:$0xff] }
 0x15d   : > { %2160 = vmatprep.subr.mxu1 %v6663_v8  ;;  %1893 = vmatpush1.msra.mxu0 %v12382_v25  ;;  %v12396_v8 = vld [vmem:[#allocation28_spill] sm:$0xff]  ;;  %v7600_v25 = vand.u32 4294901760, %v847_v50 }
 0x15e   : > { %2162 = vmatpush1.msra.mxu1 %v6727_v54  ;;  %1897 = vmatprep.subr.mxu0 %v12383_v26  ;;  %v12398_v54 = vld [vmem:[#allocation29_spill] sm:$0xff]  ;;  %v838_v26 = vld [vmem:[#allocation2 + $0x350] sm:$0xff] }
 0x15f   : > { %2164 = vmatprep.subr.mxu1 %v6757_v35  ;;  %1901 = vmatpush1.msra.mxu0 %v12384_v27  ;;  %v12388_v35 = vand.u32 4294901760, %v12294_v38  ;;  %v12406_v38 = vld [vmem:[#allocation41_spill] sm:$0xff]  ;;  %v12423_v27 = vld [vmem:[#allocation55_spill] sm:$0xff] }
 0x160   : > { %2166 = vmatpush1.msra.mxu1 %v6759_v34  ;;  %1905 = vmatprep.subr.mxu0 %v12385_v28  ;;  %v12389_v34 = vand.u32 4294901760, %v12295_v24  ;;  %v855_v24 = vld [vmem:[#allocation2 + $0x3d8] sm:$0xff]  ;;  %v12424_v28 = vld [vmem:[#allocation46_spill] sm:$0xff] }
 0x161   : > { %2168 = vmatprep.subr.mxu1 %v6763_v32  ;;  %1909 = vmatpush1.msra.mxu0 %v12386_v1  ;;  %v12390_v32 = vand.u32 4294901760, %v12296_v23  ;;  %v12408_v23 = vld [vmem:[#allocation42_spill] sm:$0xff]  ;;  %v12425_v1 = vand.u32 4294901760, %v12424_v28 }
 0x162   : > { %2170 = vmatpush1.msra.mxu1 %v12291_v39  ;;  %1913 = vmatprep.subr.mxu0 %v12387_v2  ;;  %v12403_v39 = vand.u32 4294901760, %v12309_v40  ;;  %v12411_v40 = vand.u32 4294901760, %v12313_v33  ;;  %v12419_v33 = vand.u32 4294901760, %v12418_v19  ;;  %v12452_v19 = vld [vmem:[#allocation54_spill] sm:$0xff] }
 0x163   : > { %2172 = vmatprep.subr.mxu1 %v12293_v42  ;;  %1917 = vmatpush1.msra.mxu0 %v12388_v35  ;;  %v12405_v42 = vand.u32 4294901760, %v12310_v45  ;;  %v12413_v45 = vand.u32 4294901760, %v12314_v41  ;;  %v12421_v41 = vld [vmem:[#allocation40_spill] sm:$0xff] }
 0x164   : > { %2174 = vmatpush1.msra.mxu1 %v6778_v51  ;;  %1921 = vmatprep.subr.mxu0 %v12389_v34  ;;  %v12399_v51 = vand.u32 4294901760, %v12306_v55  ;;  %v12407_v55 = vand.u32 4294901760, %v12311_v43  ;;  %v12415_v43 = vld [vmem:[#allocation37_spill] sm:$0xff]  ;;  %v12422_v63 = vand.u32 4294901760, %v12421_v41  ;;  %v831_v34 = vld [vmem:[#allocation2 + $0x318] sm:$0xff] }
 0x165   : > { %2176 = vmatprep.subr.mxu1 %v6792_v59  ;;  %1925 = vmatpush1.msra.mxu0 %v12390_v32  ;;  %v12400_v59 = vld [vmem:[#allocation32_spill] sm:$0xff]  ;;  %v12416_v31 = vand.u32 4294901760, %v12415_v43  ;;  %v12427_v32 = vld [vmem:[#allocation57_spill] sm:$0xff] }
 0x166   : > { %2178 = vmatpush1.msra.mxu1 %v6856_v17  ;;  %1929 = vmatprep.subr.mxu0 %v12391_v3  ;;  %v12401_v17 = vand.u32 4294901760, %v12308_v15  ;;  %v12409_v15 = vand.u32 4294901760, %v12312_v49  ;;  %v846_v49 = vld [vmem:[#allocation2 + $0x390] sm:$0xff]  ;;  %v12428_v3 = vld [vmem:[#allocation47_spill] sm:$0xff] }
 0x167   : > { %2180 = vmatprep.subr.mxu1 %v12298_v57  ;;  %1933 = vmatpush1.msra.mxu0 %v12392_v4  ;;  %v854_v57 = vld [vmem:[#allocation2 + $0x3d0] sm:$0xff]  ;;  %v7608_v35 = vand.u32 4294901760, %v846_v49  ;;  %v12429_v4 = vand.u32 4294901760, %v12428_v3 }
 0x168   : > { %2182 = vmatpush1.msra.mxu1 %v12300_v10  ;;  %1937 = vmatprep.subr.mxu0 %v12393_v5  ;;  %v7587_v10 = vand.u32 4294901760, %v855_v24  ;;  %v7595_v20 = vand.u32 4294901760, %v854_v57  ;;  %v7613_v5 = vand.u32 4294901760, %v839_v61 }
 0x169   : > { %2184 = vmatprep.subr.mxu1 %v12394_v6  ;;  %1941 = vmatpush1.msra.mxu0 %v12395_v7  ;;  %v830_v6 = vld [vmem:[#allocation2 + $0x310] sm:$0xff] }
 0x16a   : > { %2186 = vmatpush1.msra.mxu1 %v12396_v8  ;;  %1945 = vmatprep.subr.mxu0 %v12397_v9  ;;  %v7606_v2 = vsub.f32 %v855_v24, %v7587_v10  ;;  %12430 = vst [vmem:[#allocation15_spill] sm:$0xff] %v7613_v5  ;;  %v12431_v7 = vld [vmem:[#allocation58_spill] sm:$0xff]  ;;  %v12432_v8 = vld [vmem:[#allocation49_spill] sm:$0xff]  ;;  %v12442_v24 = vld [vmem:[#allocation51_spill] sm:$0xff] }
 0x16b   : > { %2188 = vmatprep.subr.mxu1 %v12398_v54  ;;  %1949 = vmatpush1.msra.mxu0 %v12399_v51  ;;  %v12433_v9 = vand.u32 4294901760, %v12432_v8  ;;  %v7619_v54 = vsub.f32 %v854_v57, %v7595_v20  ;;  %v7621_v51 = vand.u32 4294901760, %v838_v26  ;;  %v815_v57 = vld [vmem:[#allocation2 + $0x298] sm:$0xff] }
 0x16c   : > { %2190 = vmatpush1.msra.mxu1 %v12400_v59  ;;  %1953 = vmatprep.subr.mxu0 %v12401_v17  ;;  %12426 = vst [vmem:[#allocation10_spill] sm:$0xff] %v7606_v2  ;;  %v823_v59 = vld [vmem:[#allocation2 + $0x2d8] sm:$0xff]  ;;  %v7664_v3 = vand.u32 4294901760, %v815_v57 }
 0x16d   : > { %2192 = vmatprep.subr.mxu1 %v12402_v36  ;;  %1957 = vmatpush1.msra.mxu0 %v12403_v39  ;;  %12434 = vst [vmem:[#allocation11_spill] sm:$0xff] %v7619_v54  ;;  %12435 = vst [vmem:[#allocation16_spill] sm:$0xff] %v7621_v51  ;;  %v12436_v17 = vld [vmem:[#allocation59_spill] sm:$0xff]  ;;  %v12437_v36 = vld [vmem:[#allocation50_spill] sm:$0xff]  ;;  %v7646_v43 = vand.u32 4294901760, %v823_v59 }
 0x16e   : > { %2194 = vmatpush1.msra.mxu1 %v12404_v16  ;;  %1961 = vmatprep.subr.mxu0 %v12405_v42  ;;  %v12438_v39 = vand.u32 4294901760, %v12437_v36  ;;  %v7627_v16 = vsub.f32 %v847_v50, %v7600_v25  ;;  %v7629_v42 = vand.u32 4294901760, %v831_v34  ;;  %12460 = vst [vmem:[#allocation21_spill] sm:$0xff] %v7664_v3 }
 0x16f   : > { %2196 = vmatprep.subr.mxu1 %v12406_v38  ;;  %1965 = vmatpush1.msra.mxu0 %v12407_v55  ;;  %v822_v38 = vld [vmem:[#allocation2 + $0x2d0] sm:$0xff]  ;;  %v12441_v55 = vld [vmem:[#allocation60_spill] sm:$0xff]  ;;  %12450 = vst [vmem:[#allocation18_spill] sm:$0xff] %v7646_v43 }
 0x170   : > { %2198 = vmatpush1.msra.mxu1 %v12408_v23  ;;  %1969 = vmatprep.subr.mxu0 %v12409_v15  ;;  %12439 = vst [vmem:[#allocation12_spill] sm:$0xff] %v7627_v16  ;;  %12440 = vst [vmem:[#allocation13_spill] sm:$0xff] %v7629_v42  ;;  %v12443_v23 = vand.u32 4294901760, %v12442_v24  ;;  %v11552_v15 = vand.u32 4294901760, %v7606_v2  ;;  %v7655_v41 = vand.u32 4294901760, %v822_v38  ;;  %v12467_v24 = vld [vmem:[#allocation63_spill] sm:$0xff] }
 0x171   : > { %2200 = vmatprep.subr.mxu1 %v12410_v11  ;;  %1973 = vmatpush1.msra.mxu0 %v12411_v40  ;;  %v7636_v11 = vsub.f32 %v846_v49, %v7608_v35  ;;  %v7638_v40 = vand.u32 4294901760, %v830_v6  ;;  %v11551_v49 = vand.u32 4294901760, %v7619_v54 }
 0x172   : > { %2202 = vmatpush2.msra.mxu1 %v12412_v30  ;;  %1977 = vmatprep.subr.mxu0 %v12413_v45  ;;  %v12446_v30 = vld [vmem:[#allocation61_spill] sm:$0xff]  ;;  %12455 = vst [vmem:[#allocation19_spill] sm:$0xff] %v7655_v41 }
 0x173   : > { %2204 = vmatprep.subr.mxu1 %v12414_v12  ;;  %1981 = vmatpush1.msra.mxu0 %v12416_v31  ;;  %12444 = vst [vmem:[#allocation14_spill] sm:$0xff] %v7636_v11  ;;  %12445 = vst [vmem:[#allocation17_spill] sm:$0xff] %v7638_v40  ;;  %v12447_v45 = vld [vmem:[#allocation53_spill] sm:$0xff]  ;;  %v7644_v12 = vsub.f32 %v839_v61, %v7613_v5  ;;  %v814_v31 = vld [vmem:[#allocation2 + $0x290] sm:$0xff]  ;;  %v7676_v36 = vsub.f32 %v830_v6, %v7638_v40 }
 0x174   : > { %2206 = vmatpush2.msra.mxu1 %v12417_v18  ;;  %1985 = vmatprep.subr.mxu0 %v12419_v33  ;;  %v12448_v50 = vand.u32 4294901760, %v12447_v45  ;;  %v12451_v18 = vld [vmem:[#allocation67_spill] sm:$0xff]  ;;  %v12453_v33 = vand.u32 4294901760, %v12452_v19  ;;  %v12457_v61 = vld [vmem:[#allocation56_spill] sm:$0xff]  ;;  %v7685_v45 = vsub.f32 %v823_v59, %v7646_v43  ;;  %v798_v59 = vld [vmem:[#allocation2 + $0x210] sm:$0xff] }
 0x175   : > { %2208 = vmatprep.subr.mxu1 %v12420_v62  ;;  %1989 = vmatpush1.msra.mxu0 %v12422_v63  ;;  %12449 = vst [vmem:[#allocation25_spill] sm:$0xff] %v7644_v12  ;;  %v7653_v62 = vsub.f32 %v838_v26, %v7621_v51  ;;  %v807_v63 = vld [vmem:[#allocation2 + $0x258] sm:$0xff]  ;;  %v12458_v28 = vand.u32 4294901760, %v12457_v61  ;;  %v12462_v26 = vld [vmem:[#allocation62_spill] sm:$0xff]  ;;  %12464 = vst [vmem:[#allocation22_spill] sm:$0xff] %v7676_v36  ;;  %v7699_v61 = vsub.f32 %v822_v38, %v7655_v41 }
 0x176   : > { %2210 = vmatpush2.msra.mxu1 %v12423_v27  ;;  %1993 = vmatprep.subr.mxu0 %v12425_v1  ;;  %v12456_v27 = vld [vmem:[#allocation68_spill] sm:$0xff]  ;;  %v11550_v1 = vand.u32 4294901760, %v7627_v16  ;;  %v12463_v8 = vand.u32 4294901760, %v12462_v26  ;;  %12469 = vst [vmem:[#allocation24_spill] sm:$0xff] %v7685_v45  ;;  %v12477_v26 = vld [vmem:[#allocation65_spill] sm:$0xff] }
 0x177   : > { %2212 = vmatprep.subr.mxu1 %v12427_v32  ;;  %1997 = vmatpush1.msra.mxu0 %v12429_v4  ;;  %12454 = vst [vmem:[#allocation26_spill] sm:$0xff] %v7653_v62  ;;  %v7662_v32 = vsub.f32 %v831_v34, %v7629_v42  ;;  %v806_v4 = vld [vmem:[#allocation2 + $0x250] sm:$0xff]  ;;  %v7678_v34 = vand.u32 4294901760, %v814_v31  ;;  %v12472_v19 = vld [vmem:[#allocation64_spill] sm:$0xff]  ;;  %12474 = vst [vmem:[#allocation31_spill] sm:$0xff] %v7699_v61 }
 0x178   : > { %2214 = vmatpush2.msra.mxu1 %v12431_v7  ;;  %2001 = vmatprep.subr.mxu0 %v12433_v9  ;;  %v12461_v7 = vld [vmem:[#allocation70_spill] sm:$0xff]  ;;  %v7672_v9 = vsub.f32 %v7606_v2, %v11552_v15  ;;  %v12473_v6 = vand.u32 4294901760, %v12472_v19 }
 0x179   : > { %2216 = vmatprep.subr.mxu1 %v12436_v17  ;;  %2005 = vmatpush2.msra.mxu0 %v12438_v39  ;;  %12459 = vst [vmem:[#allocation20_spill] sm:$0xff] %v7662_v32  ;;  %v11553_v17 = vand.u32 4294901760, %v7636_v11  ;;  %12465 = vst [vmem:[#allocation23_spill] sm:$0xff] %v7678_v34  ;;  %v799_v39 = vld [vmem:[#allocation2 + $0x218] sm:$0xff]  ;;  %v12482_v19 = vld [vmem:[#allocation66_spill] sm:$0xff] }
 0x17a   : > { %2218 = vmatpush2.msra.mxu1 %v12441_v55  ;;  %2009 = vmatprep.subr.mxu0 %v12443_v23  ;;  %v12466_v55 = vld [vmem:[#allocation72_spill] sm:$0xff]  ;;  %v12468_v23 = vand.u32 4294901760, %v12467_v24  ;;  %v7715_v38 = vand.u32 4294901760, %v799_v39  ;;  %v12495_v24 = vld [vmem:[#allocation73_spill] sm:$0xff]  ;;  %v12519_v2 = vld [vmem:[#allocation82_spill] sm:$0xff] }
 0x17b   : > { %2220 = vmatprep.subr.mxu1 %v12446_v30  ;;  %2013 = vmatpush2.msra.mxu0 %v12448_v50  ;;  %v11554_v30 = vand.u32 4294901760, %v7644_v12  ;;  %v7687_v50 = vand.u32 4294901760, %v807_v63  ;;  %v12496_v22 = vand.u32 4294901760, %v12495_v24  ;;  %v12501_v24 = vand.u32 4294901760, %v7676_v36 }
 0x17c   : > { %2222 = vmatpush2.msra.mxu1 %v12451_v18  ;;  %2017 = vmatprep.subr.mxu0 %v12453_v33  ;;  %v12471_v18 = vld [vmem:[#allocation74_spill] sm:$0xff]  ;;  %v7695_v33 = vsub.f32 %v7619_v54, %v11551_v49  ;;  %12480 = vst [vmem:[#allocation35_spill] sm:$0xff] %v7715_v38  ;;  %v12486_v49 = vld [vmem:[#allocation69_spill] sm:$0xff] }
 0x17d   : > { %2224 = vmatprep.subr.mxu1 %v12456_v27  ;;  %2021 = vmatpush2.msra.mxu0 %v12458_v28  ;;  %12470 = vst [vmem:[#allocation30_spill] sm:$0xff] %v7687_v50  ;;  %v11557_v27 = vand.u32 4294901760, %v7653_v62  ;;  %v7701_v28 = vand.u32 4294901760, %v806_v4  ;;  %v12487_v15 = vand.u32 4294901760, %v12486_v49 }
 0x17e   : > { %2226 = vmatpush2.msra.mxu1 %v12461_v7  ;;  %2025 = vmatprep.subr.mxu0 %v12463_v8  ;;  %v12476_v7 = vld [vmem:[#allocation76_spill] sm:$0xff]  ;;  %v12478_v8 = vand.u32 4294901760, %v12477_v26  ;;  %v7724_v26 = vsub.f32 %v7636_v11, %v11553_v17  ;;  %v7742_v17 = vand.u32 4294901760, %v798_v59  ;;  %v12509_v11 = vld [vmem:[#allocation79_spill] sm:$0xff] }
 0x17f   : > { %2228 = vmatprep.subr.mxu1 %v12466_v55  ;;  %2029 = vmatpush2.msra.mxu0 %v12468_v23  ;;  %12475 = vst [vmem:[#allocation33_spill] sm:$0xff] %v7701_v28  ;;  %v7709_v55 = vsub.f32 %v7627_v16, %v11550_v1  ;;  %v7713_v23 = vsub.f32 %v815_v57, %v7664_v3  ;;  %v12485_v57 = vld [vmem:[#allocation80_spill] sm:$0xff]  ;;  %v12514_v16 = vld [vmem:[#allocation81_spill] sm:$0xff] }
 0x180   : > { %2230 = vmatpush2.msra.mxu1 %v12471_v18  ;;  %2033 = vmatprep.subr.mxu0 %v12473_v6  ;;  %v12481_v18 = vld [vmem:[#allocation78_spill] sm:$0xff]  ;;  %v12483_v6 = vand.u32 4294901760, %v12482_v19  ;;  %v7728_v1 = vsub.f32 %v814_v31, %v7678_v34  ;;  %12489 = vst [vmem:[#allocation100_spill] sm:$0xff] %v7742_v17  ;;  %v12490_v31 = vld [vmem:[#allocation83_spill] sm:$0xff]  ;;  %v7751_v49 = vsub.f32 %v7653_v62, %v11557_v27  ;;  %v12494_v19 = vld [vmem:[#allocation84_spill] sm:$0xff]  ;;  %v12515_v54 = vand.u32 4294901760, %v12514_v16 }
 0x181   : > { %2232 = vmatprep.subr.mxu1 %v12476_v7  ;;  %2037 = vmatpush2.msra.mxu0 %v12478_v8  ;;  %12479 = vst [vmem:[#allocation34_spill] sm:$0xff] %v7713_v23  ;;  %v791_v7 = vld [vmem:[#allocation2 + $0x1d8] sm:$0xff]  ;;  %v12504_v62 = vld [vmem:[#allocation77_spill] sm:$0xff] }
 0x182   : > { %2234 = vmatpush2.msra.mxu1 %v12481_v18  ;;  %2041 = vmatprep.subr.mxu0 %v12483_v6  ;;  %12484 = vst [vmem:[#allocation75_spill] sm:$0xff] %v7728_v1  ;;  %v7736_v18 = vsub.f32 %v7644_v12, %v11554_v30  ;;  %v7740_v6 = vsub.f32 %v807_v63, %v7687_v50  ;;  %v12491_v8 = vld [vmem:[#allocation71_spill] sm:$0xff]  ;;  %v790_v30 = vld [vmem:[#allocation2 + $0x1d0] sm:$0xff]  ;;  %v12505_v12 = vand.u32 4294901760, %v12504_v62  ;;  %v12511_v62 = vand.u32 4294901760, %v7699_v61 }
 0x183   : > { %2236 = vmatprep.subr.mxu1 %v12485_v57  ;;  %2045 = vmatpush2.msra.mxu0 %v12487_v15  ;;  %v12492_v57 = vand.u32 4294901760, %v12491_v8  ;;  %v7755_v63 = vsub.f32 %v806_v4, %v7701_v28  ;;  %v7768_v15 = vsub.f32 %v799_v39, %v7715_v38  ;;  %v12499_v4 = vld [vmem:[#allocation86_spill] sm:$0xff]  ;;  %v7777_v8 = vsub.f32 %v7676_v36, %v12501_v24  ;;  %v783_v27 = vld [vmem:[#allocation2 + $0x198] sm:$0xff]  ;;  %v12503_v39 = vld [vmem:[#allocation88_spill] sm:$0xff] }
 0x184   : > { %12488 = vst [vmem:[#allocation85_spill] sm:$0xff] %v7740_v6  ;;  %2238 = vmatpush2.msra.mxu1 %v12490_v31  ;;  %v12497_v31 = vand.u32 4294901760, %v7662_v32  ;;  %v12508_v36 = vld [vmem:[#allocation90_spill] sm:$0xff]  ;;  %v775_v24 = vld [vmem:[#allocation2 + $0x158] sm:$0xff] }
 0x185   : > { %2049 = vmatprep.subr.mxu0 %v12492_v57  ;;  %12493 = vst [vmem:[#allocation89_spill] sm:$0xff] %v7755_v63  ;;  %2240 = vmatprep.subr.mxu1 %v12494_v19  ;;  %12498 = vst [vmem:[#allocation91_spill] sm:$0xff] %v7768_v15  ;;  %v12500_v19 = vand.u32 4294901760, %v12348_v37  ;;  %v7802_v37 = vsub.f32 %v7699_v61, %v12511_v62  ;;  %v12518_v61 = vld [vmem:[#allocation94_spill] sm:$0xff]  ;;  %v767_v62 = vld [vmem:[#allocation2 + $0x118] sm:$0xff] }
 0x186   : > { %2053 = vmatpush2.msra.mxu0 %v12496_v22  ;;  %v7764_v57 = vsub.f32 %v7662_v32, %v12497_v31  ;;  %2242 = vmatpush2.msra.mxu1 %v12499_v4  ;;  %v7780_v32 = vand.u32 4294901760, %v791_v7  ;;  %v12506_v4 = vand.u32 4294901760, %v7685_v45  ;;  %v7793_v22 = vsub.f32 %v798_v59, %v7742_v17  ;;  %v782_v31 = vld [vmem:[#allocation2 + $0x190] sm:$0xff]  ;;  %v12513_v59 = vld [vmem:[#allocation92_spill] sm:$0xff]  ;;  %v12529_v38 = vld [vmem:[#allocation87_spill] sm:$0xff] }
 0x187   : > { %2057 = vmatprep.subr.mxu0 %v12500_v19  ;;  %2244 = vmatprep.subr.mxu1 %v12503_v39  ;;  %v12510_v39 = vand.u32 4294901760, %v12509_v11  ;;  %v12520_v17 = vand.u32 4294901760, %v12519_v2  ;;  %v7831_v11 = vand.u32 4294901760, %v782_v31  ;;  %v12530_v28 = vand.u32 4294901760, %v12529_v38 }
 0x188   : > { %12502 = vst [vmem:[#allocation93_spill] sm:$0xff] %v7780_v32  ;;  %2061 = vmatpush2.msra.mxu0 %v12505_v12  ;;  %v7789_v19 = vsub.f32 %v7685_v45, %v12506_v4  ;;  %12507 = vst [vmem:[#allocation95_spill] sm:$0xff] %v7793_v22  ;;  %2246 = vmatpush2.msra.mxu1 %v12508_v36  ;;  %v7805_v45 = vand.u32 4294901760, %v790_v30  ;;  %v12516_v36 = vand.u32 4294901760, %v7713_v23  ;;  %v7817_v12 = vand.u32 4294901760, %v783_v27  ;;  %v774_v4 = vld [vmem:[#allocation2 + $0x150] sm:$0xff] }
 0x189   : > { %2065 = vmatprep.subr.mxu0 %v12510_v39  ;;  %2248 = vmatprep.subr.mxu1 %v12513_v59  ;;  %12523 = vst [vmem:[#allocation101_spill] sm:$0xff] %v7831_v11  ;;  %v7857_v2 = vand.u32 4294901760, %v774_v4  ;;  %v12535_v38 = vand.u32 4294901760, %v7768_v15 }
 0x18a   : > { %12512 = vst [vmem:[#allocation8_spill] sm:$0xff] %v7805_v45  ;;  %2069 = vmatpush2.msra.mxu0 %v12515_v54  ;;  %v7814_v39 = vsub.f32 %v7713_v23, %v12516_v36  ;;  %12517 = vst [vmem:[#allocation97_spill] sm:$0xff] %v7817_v12  ;;  %2250 = vmatpush2.msra.mxu1 %v12518_v61  ;;  %v12521_v54 = vand.u32 4294901760, %v7728_v1  ;;  %v7829_v36 = vsub.f32 %v791_v7, %v7780_v32  ;;  %v12524_v23 = vld [vmem:[#allocation96_spill] sm:$0xff]  ;;  %v766_v7 = vld [vmem:[#allocation2 + $0x110] sm:$0xff] }
 0x18b   : > { %2073 = vmatprep.subr.mxu0 %v12520_v17  ;;  %2252 = vmatprep.subr.mxu1 %v12524_v23  ;;  %v12525_v61 = vand.u32 4294901760, %v12358_v47  ;;  %v12526_v17 = vand.u32 4294901760, %v7740_v6  ;;  %v12528_v32 = vld [vmem:[#allocation99_spill] sm:$0xff]  ;;  %v12531_v23 = vand.u32 4294901760, %v7755_v63  ;;  %12533 = vst [vmem:[#allocation107_spill] sm:$0xff] %v7857_v2  ;;  %v7866_v47 = vsub.f32 %v7768_v15, %v12535_v38 }
 0x18c   : > { %v7826_v59 = vsub.f32 %v7728_v1, %v12521_v54  ;;  %12522 = vst [vmem:[#allocation98_spill] sm:$0xff] %v7829_v36  ;;  %v7843_v1 = vand.u32 4294901760, %v775_v24  ;;  %2254 = vmatpush2.msra.mxu1 %v12528_v32  ;;  %v759_v54 = vld [vmem:[#allocation2 + $0xd8] sm:$0xff]  ;;  %v12534_v32 = vand.u32 4294901760, %v12361_v0  ;;  %v7881_v38 = vand.u32 4294901760, %v766_v7 }
 0x18d   : > { %2077 = vmatpush2.msra.mxu0 %v12525_v61  ;;  %v7840_v16 = vsub.f32 %v7740_v6, %v12526_v17  ;;  %v7852_v61 = vsub.f32 %v7755_v63, %v12531_v23  ;;  %v7855_v17 = vsub.f32 %v790_v30, %v7805_v45  ;;  %2256 = vmatprep.subr.mxu1 %v12360_v48  ;;  %v7871_v30 = vand.u32 4294901760, %v767_v62  ;;  %v758_v63 = vld [vmem:[#allocation2 + $0xd0] sm:$0xff]  ;;  %v751_v15 = vld [vmem:[#allocation2 + $0x98] sm:$0xff] }
 0x18e   : > { %12527 = vst [vmem:[#allocation103_spill] sm:$0xff] %v7843_v1  ;;  %2081 = vmatprep.subr.mxu0 %v12530_v28  ;;  %v7869_v23 = vsub.f32 %v783_v27, %v7817_v12  ;;  %v12538_v6 = vld [vmem:[#allocation102_spill] sm:$0xff]  ;;  %v12539_v48 = vand.u32 4294901760, %v12363_v29  ;;  %v7879_v28 = vsub.f32 %v782_v31, %v7831_v11  ;;  %12541 = vst [vmem:[#allocation28_spill] sm:$0xff] %v7881_v38  ;;  %v12542_v27 = vld [vmem:[#allocation104_spill] sm:$0xff]  ;;  %v12543_v12 = vand.u32 4294901760, %v12365_v53 }
 0x18f   : > { %12532 = vst [vmem:[#allocation105_spill] sm:$0xff] %v7855_v17  ;;  %2085 = vmatpush2.msra.mxu0 %v12534_v32  ;;  %12537 = vst [vmem:[#allocation9_spill] sm:$0xff] %v7871_v30  ;;  %2258 = vmatpush2.msra.mxu1 %v12538_v6  ;;  %v12544_v29 = vand.u32 4294901760, %v7793_v22  ;;  %v7893_v0 = vsub.f32 %v775_v24, %v7843_v1  ;;  %v7895_v31 = vand.u32 4294901760, %v759_v54  ;;  %v750_v32 = vld [vmem:[#allocation2 + $0x90] sm:$0xff]  ;;  %v12551_v24 = vld [vmem:[#allocation109_spill] sm:$0xff] }
 0x190   : > { %12536 = vst [vmem:[#allocation108_spill] sm:$0xff] %v7869_v23  ;;  %2089 = vmatprep.subr.mxu0 %v12539_v48  ;;  %12540 = vst [vmem:[#allocation27_spill] sm:$0xff] %v7879_v28  ;;  %2260 = vmatprep.subr.mxu1 %v12542_v27  ;;  %v12547_v11 = vld [vmem:[#allocation106_spill] sm:$0xff]  ;;  %v12548_v27 = vand.u32 4294901760, %v12367_v44  ;;  %v7903_v6 = vsub.f32 %v774_v4, %v7857_v2  ;;  %v12552_v1 = vand.u32 4294901760, %v7672_v9  ;;  %v7915_v53 = vand.u32 4294901760, %v751_v15 }
 0x191   : > { %2093 = vmatpush2.msra.mxu0 %v12543_v12  ;;  %v7890_v48 = vsub.f32 %v7793_v22, %v12544_v29  ;;  %12545 = vst [vmem:[#allocation29_spill] sm:$0xff] %v7893_v0  ;;  %12546 = vst [vmem:[#allocation32_spill] sm:$0xff] %v7895_v31  ;;  %2262 = vmatpush2.msra.mxu1 %v12547_v11  ;;  %v7905_v29 = vand.u32 4294901760, %v758_v63  ;;  %v743_v22 = vld [vmem:[#allocation2 + $0x58] sm:$0xff]  ;;  %v742_v12 = vld [vmem:[#allocation2 + $0x50] sm:$0xff]  ;;  %v12555_v4 = vand.u32 4294901760, %v12369_v46 }
 0x192   : > { %2097 = vmatprep.subr.mxu0 %v12548_v27  ;;  %12549 = vst [vmem:[#allocation36_spill] sm:$0xff] %v7903_v6  ;;  %2266 = vmatmul.mubr.f32.vlgmr.msra.gmra.mxu1 %v12551_v24  ;;  %v7913_v27 = vsub.f32 %v767_v62, %v7871_v30  ;;  %12554 = vst [vmem:[#allocation42_spill] sm:$0xff] %v7915_v53  ;;  %v12556_v2 = vand.u32 4294901760, %v7695_v33  ;;  %v12557_v45 = vand.u32 4294901760, %v7829_v36  ;;  %v7930_v62 = vand.u32 4294901760, %v750_v32  ;;  %v735_v44 = vld [vmem:[#allocation2 + $0x18] sm:$0xff] }
 0x193   : > { %12550 = vst [vmem:[#allocation39_spill] sm:$0xff] %v7905_v29  ;;  %2422 = vmatprep.subr.mxu1 %v12552_v1  ;;  %2101 = vmatpush2.msra.mxu0 %v12555_v4  ;;  %v7928_v11 = vsub.f32 %v766_v7, %v7881_v38  ;;  %v12560_v46 = vand.u32 4294901760, %v12370_v21  ;;  %v7940_v4 = vand.u32 4294901760, %v743_v22  ;;  %v12563_v7 = vand.u32 4294901760, %v7709_v55 }
 0x194   : > { %12553 = vst [vmem:[#allocation41_spill] sm:$0xff] %v7913_v27  ;;  %2428 = vmatpush1.msra.mxu1 %v12556_v2  ;;  %v7924_v1 = vsub.f32 %v7829_v36, %v12557_v45  ;;  %12559 = vst [vmem:[#allocation44_spill] sm:$0xff] %v7930_v62  ;;  %2802 = vmatprep.mubr.f32.mxu1 %v7344_v56  ;;  %v7938_v45 = vsub.f32 %v759_v54, %v7895_v31  ;;  %v12564_v9 = vand.u32 4294901760, %v12371_v58  ;;  %v734_v2 = vld [vmem:[#allocation2 + $0x10] sm:$0xff] }
 0x195   : > { %12558 = vst [vmem:[#allocation43_spill] sm:$0xff] %v7928_v11  ;;  %2105 = vmatprep.subr.mxu0 %v12560_v46  ;;  %12562 = vst [vmem:[#allocation37_spill] sm:$0xff] %v7940_v4  ;;  %2434 = vmatprep.subr.mxu1 %v12563_v7  ;;  %v12565_v56 = vand.u32 4294901760, %v7855_v17  ;;  %v7953_v33 = vsub.f32 %v758_v63, %v7905_v29  ;;  %v7955_v54 = vand.u32 4294901760, %v742_v12  ;;  %v12568_v36 = vand.u32 4294901760, %v7724_v26 }
 0x196   : > { %12561 = vst [vmem:[#allocation45_spill] sm:$0xff] %v7938_v45  ;;  %2109 = vmatpush2.msra.mxu0 %v12564_v9  ;;  %v12569_v55 = vand.u32 4294901760, %v12372_v60  ;;  %v12570_v58 = vand.u32 4294901760, %v7869_v23  ;;  %v7968_v7 = vsub.f32 %v751_v15, %v7915_v53  ;;  %v7970_v63 = vand.u32 4294901760, %v735_v44 }
 0x197   : > { %v7949_v21 = vsub.f32 %v7855_v17, %v12565_v56  ;;  %12566 = vst [vmem:[#allocation48_spill] sm:$0xff] %v7953_v33  ;;  %12567 = vst [vmem:[#allocation38_spill] sm:$0xff] %v7955_v54  ;;  %2440 = vmatpush1.msra.mxu1 %v12568_v36  ;;  %v12573_v46 = vand.u32 4294901760, %v7736_v18  ;;  %v12574_v26 = vand.u32 4294901760, %v12373_v13  ;;  %v12575_v36 = vand.u32 4294901760, %v7879_v28 }
 0x198   : > { %2113 = vmatprep.subr.mxu0 %v12569_v55  ;;  %v7964_v9 = vsub.f32 %v7869_v23, %v12570_v58  ;;  %12571 = vst [vmem:[#allocation52_spill] sm:$0xff] %v7968_v7  ;;  %12572 = vst [vmem:[#allocation40_spill] sm:$0xff] %v7970_v63  ;;  %v7984_v15 = vsub.f32 %v750_v32, %v7930_v62  ;;  %v12577_v56 = vand.u32 4294901760, %v7751_v49  ;;  %v12578_v18 = vand.u32 4294901760, %v12374_v52  ;;  %v983_v32 = vld [vmem:[#allocation2 + $0x7d8] sm:$0xff]  ;;  %v982_v52 = vld [vmem:[#allocation2 + $0x7d0] sm:$0xff] }
 0x199   : > { %2446 = vmatprep.subr.mxu1 %v12573_v46  ;;  %2117 = vmatpush2.msra.mxu0 %v12574_v26  ;;  %v7980_v55 = vsub.f32 %v7879_v28, %v12575_v36  ;;  %v12579_v13 = vand.u32 4294901760, %v7893_v0  ;;  %v7997_v36 = vsub.f32 %v743_v22, %v7940_v4  ;;  %v7999_v60 = vand.u32 4294901760, %v734_v2 }
 0x19a   : > { %12576 = vst [vmem:[#allocation55_spill] sm:$0xff] %v7984_v15  ;;  %2452 = vmatpush1.msra.mxu1 %v12577_v56  ;;  %2121 = vmatprep.subr.mxu0 %v12578_v18  ;;  %v12582_v58 = vand.u32 4294901760, %v7764_v57  ;;  %v12583_v49 = vand.u32 4294901760, %v12375_v14  ;;  %v12584_v56 = vand.u32 4294901760, %v7903_v6  ;;  %v8013_v22 = vsub.f32 %v742_v12, %v7955_v54  ;;  %v967_v12 = vld [vmem:[#allocation2 + $0x758] sm:$0xff] }
 0x19b   : > { %v7993_v46 = vsub.f32 %v7893_v0, %v12579_v13  ;;  %12580 = vst [vmem:[#allocation46_spill] sm:$0xff] %v7997_v36  ;;  %12581 = vst [vmem:[#allocation57_spill] sm:$0xff] %v7999_v60  ;;  %v12586_v26 = vand.u32 4294901760, %v7777_v8  ;;  %v12587_v57 = vand.u32 4294901760, %v7913_v27  ;;  %v12589_v8 = vand.u32 4294901760, %v7789_v19 }
 0x19c   : > { %2458 = vmatprep.subr.mxu1 %v12582_v58  ;;  %2125 = vmatpush2.msra.mxu0 %v12583_v49  ;;  %v8009_v18 = vsub.f32 %v7903_v6, %v12584_v56  ;;  %12585 = vst [vmem:[#allocation47_spill] sm:$0xff] %v8013_v22  ;;  %v8026_v56 = vsub.f32 %v735_v44, %v7970_v63  ;;  %v8038_v13 = vand.u32 4294901760, %v983_v32  ;;  %v975_v49 = vld [vmem:[#allocation2 + $0x798] sm:$0xff]  ;;  %v12593_v19 = vand.u32 4294901760, %v7938_v45 }
 0x19d   : > { %2464 = vmatpush1.msra.mxu1 %v12586_v26  ;;  %2129 = vmatmul.mubr.f32.vlgmr.msra.gmra.mxu0 %v12551_v24  ;;  %v8022_v58 = vsub.f32 %v7913_v27, %v12587_v57  ;;  %v12590_v26 = vand.u32 4294901760, %v7928_v11  ;;  %v12592_v44 = vld [vmem:[#allocation115_spill] sm:$0xff]  ;;  %v974_v57 = vld [vmem:[#allocation2 + $0x790] sm:$0xff]  ;;  %v12596_v27 = vand.u32 4294901760, %v7953_v33  ;;  %v12601_v0 = vand.u32 4294901760, %v7826_v59 }
 0x19e   : > { %12588 = vst [vmem:[#allocation58_spill] sm:$0xff] %v8026_v56  ;;  %2273 = vmatprep.subr.mxu0 %v7587_v10  ;;  %2470 = vmatprep.subr.mxu1 %v12589_v8  ;;  %12591 = vst [vmem:[#allocation49_spill] sm:$0xff] %v8038_v13  ;;  %v8046_v8 = vsub.f32 %v7938_v45, %v12593_v19  ;;  %v8062_v45 = vand.u32 4294901760, %v982_v52  ;;  %v966_v19 = vld [vmem:[#allocation2 + $0x750] sm:$0xff]  ;;  %v12605_v28 = vand.u32 4294901760, %v7840_v16  ;;  %v12608_v23 = vand.u32 4294901760, %v7852_v61 }
 0x19f   : > { %v8035_v14 = vsub.f32 %v7928_v11, %v12590_v26  ;;  %2275 = vmatpush1.msra.mxu0 %v7595_v20  ;;  %2405 = vmatprep.mubr.f32.mxu0 %v12592_v44  ;;  %v8050_v26 = vsub.f32 %v734_v2, %v7999_v60  ;;  %v12595_v11 = vand.u32 4294901760, %v7802_v37  ;;  %v8059_v6 = vsub.f32 %v7953_v33, %v12596_v27  ;;  %v959_v27 = vld [vmem:[#allocation2 + $0x718] sm:$0xff] }
 0x1a0   : > { %2277 = vmatprep.subr.mxu0 %v7600_v25  ;;  %12597 = vst [vmem:[#allocation50_spill] sm:$0xff] %v8062_v45  ;;  %v12598_v2 = vand.u32 4294901760, %v7814_v39  ;;  %v8074_v33 = vand.u32 4294901760, %v975_v49  ;;  %v12612_v17 = vand.u32 4294901760, %v7866_v47 }
 0x1a1   : > { %12594 = vst [vmem:[#allocation59_spill] sm:$0xff] %v8050_v26  ;;  %2476 = vmatpush1.msra.mxu1 %v12595_v11  ;;  %2279 = vmatpush1.msra.mxu0 %v7608_v35  ;;  %v12599_v11 = vand.u32 4294901760, %v7968_v7 }
 0x1a2   : > { %2482 = vmatprep.subr.mxu1 %v12598_v2  ;;  %12600 = vst [vmem:[#allocation60_spill] sm:$0xff] %v8074_v33  ;;  %2281 = vmatprep.subr.mxu0 %v7613_v5  ;;  %v12602_v2 = vand.u32 4294901760, %v7984_v15  ;;  %v12648_v5 = vld [vmem:[#allocation93_spill] sm:$0xff] }
 0x1a3   : > { %v8071_v44 = vsub.f32 %v7968_v7, %v12599_v11  ;;  %2488 = vmatpush1.msra.mxu1 %v12601_v0  ;;  %v8086_v11 = vsub.f32 %v983_v32, %v8038_v13  ;;  %v8088_v7 = vand.u32 4294901760, %v974_v57  ;;  %2283 = vmatpush1.msra.mxu0 %v7621_v51  ;;  %v12606_v0 = vand.u32 4294901760, %v7997_v36  ;;  %v958_v32 = vld [vmem:[#allocation2 + $0x710] sm:$0xff] }
 0x1a4   : > { %v8083_v37 = vsub.f32 %v7984_v15, %v12602_v2  ;;  %2494 = vmatprep.subr.mxu1 %v12605_v28  ;;  %v8100_v15 = vand.u32 4294901760, %v967_v12  ;;  %2285 = vmatprep.subr.mxu0 %v7629_v42  ;;  %v12609_v28 = vand.u32 4294901760, %v8013_v22  ;;  %v951_v2 = vld [vmem:[#allocation2 + $0x6d8] sm:$0xff]  ;;  %v12616_v42 = vand.u32 4294901760, %v7890_v48 }
 0x1a5   : > { %12603 = vst [vmem:[#allocation51_spill] sm:$0xff] %v8086_v11  ;;  %12604 = vst [vmem:[#allocation61_spill] sm:$0xff] %v8088_v7  ;;  %v8097_v39 = vsub.f32 %v7997_v36, %v12606_v0  ;;  %2500 = vmatpush1.msra.mxu1 %v12608_v23  ;;  %v8112_v0 = vsub.f32 %v982_v52, %v8062_v45  ;;  %v8114_v36 = vand.u32 4294901760, %v966_v19  ;;  %2287 = vmatpush1.msra.mxu0 %v7638_v40 }
 0x1a6   : > { %12607 = vst [vmem:[#allocation53_spill] sm:$0xff] %v8100_v15  ;;  %v8109_v59 = vsub.f32 %v8013_v22, %v12609_v28  ;;  %2506 = vmatprep.subr.mxu1 %v12612_v17  ;;  %v12613_v23 = vand.u32 4294901760, %v8026_v56  ;;  %v8126_v28 = vsub.f32 %v975_v49, %v8074_v33  ;;  %v8128_v52 = vand.u32 4294901760, %v959_v27  ;;  %v950_v22 = vld [vmem:[#allocation2 + $0x6d0] sm:$0xff]  ;;  %2289 = vmatprep.subr.mxu0 %v7646_v43 }
 0x1a7   : > { %12610 = vst [vmem:[#allocation67_spill] sm:$0xff] %v8112_v0  ;;  %12611 = vst [vmem:[#allocation54_spill] sm:$0xff] %v8114_v36  ;;  %2512 = vmatpush1.msra.mxu1 %v12616_v42  ;;  %v8136_v61 = vsub.f32 %v974_v57, %v8088_v7  ;;  %v12619_v49 = vand.u32 4294901760, %v7924_v1  ;;  %2291 = vmatpush1.msra.mxu0 %v7655_v41  ;;  %v12620_v42 = vand.u32 4294901760, %v8050_v26  ;;  %v8152_v57 = vand.u32 4294901760, %v951_v2  ;;  %v942_v17 = vld [vmem:[#allocation2 + $0x690] sm:$0xff] }
 0x1a8   : > { %v8123_v16 = vsub.f32 %v8026_v56, %v12613_v23  ;;  %12614 = vst [vmem:[#allocation68_spill] sm:$0xff] %v8126_v28  ;;  %12615 = vst [vmem:[#allocation56_spill] sm:$0xff] %v8128_v52  ;;  %v8138_v23 = vand.u32 4294901760, %v958_v32  ;;  %v943_v56 = vld [vmem:[#allocation2 + $0x698] sm:$0xff]  ;;  %v8150_v47 = vsub.f32 %v967_v12, %v8100_v15  ;;  %v12623_v40 = vand.u32 4294901760, %v7949_v21  ;;  %2293 = vmatprep.subr.mxu0 %v7664_v3 }
 0x1a9   : > { %12617 = vst [vmem:[#allocation70_spill] sm:$0xff] %v8136_v61  ;;  %2518 = vmatprep.subr.mxu1 %v12619_v49  ;;  %v8147_v43 = vsub.f32 %v8050_v26, %v12620_v42  ;;  %12622 = vst [vmem:[#allocation63_spill] sm:$0xff] %v8152_v57  ;;  %v8160_v48 = vsub.f32 %v966_v19, %v8114_v36  ;;  %v8162_v42 = vand.u32 4294901760, %v950_v22  ;;  %v935_v26 = vld [vmem:[#allocation2 + $0x658] sm:$0xff]  ;;  %v12626_v12 = vand.u32 4294901760, %v7964_v9  ;;  %v934_v49 = vld [vmem:[#allocation2 + $0x650] sm:$0xff] }
 0x1aa   : > { %12618 = vst [vmem:[#allocation62_spill] sm:$0xff] %v8138_v23  ;;  %12621 = vst [vmem:[#allocation72_spill] sm:$0xff] %v8150_v47  ;;  %2524 = vmatpush1.msra.mxu1 %v12623_v40  ;;  %2295 = vmatpush1.msra.mxu0 %v7678_v34  ;;  %v8170_v3 = vsub.f32 %v959_v27, %v8128_v52  ;;  %v8172_v1 = vand.u32 4294901760, %v943_v56  ;;  %v12629_v19 = vand.u32 4294901760, %v7980_v55  ;;  %v12630_v9 = vand.u32 4294901760, %v8086_v11  ;;  %v927_v34 = vld [vmem:[#allocation2 + $0x618] sm:$0xff] }
 0x1ab   : > { %12624 = vst [vmem:[#allocation74_spill] sm:$0xff] %v8160_v48  ;;  %12625 = vst [vmem:[#allocation64_spill] sm:$0xff] %v8162_v42  ;;  %2530 = vmatprep.subr.mxu1 %v12626_v12  ;;  %2297 = vmatprep.subr.mxu0 %v7687_v50  ;;  %v8184_v40 = vsub.f32 %v958_v32, %v8138_v23  ;;  %v8186_v27 = vand.u32 4294901760, %v942_v17  ;;  %v12633_v41 = vand.u32 4294901760, %v7993_v46  ;;  %v12634_v55 = vld [vmem:[#allocation33_spill] sm:$0xff]  ;;  %v12637_v32 = vand.u32 4294901760, %v8009_v18 }
 0x1ac   : > { %12627 = vst [vmem:[#allocation76_spill] sm:$0xff] %v8170_v3  ;;  %12628 = vst [vmem:[#allocation65_spill] sm:$0xff] %v8172_v1  ;;  %2536 = vmatpush1.msra.mxu1 %v12629_v19  ;;  %v8180_v12 = vsub.f32 %v8086_v11, %v12630_v9  ;;  %2299 = vmatpush1.msra.mxu0 %v12634_v55  ;;  %v8194_v9 = vsub.f32 %v951_v2, %v8152_v57  ;;  %v8196_v11 = vand.u32 4294901760, %v935_v26  ;;  %v12638_v21 = vld [vmem:[#allocation35_spill] sm:$0xff]  ;;  %v926_v2 = vld [vmem:[#allocation2 + $0x610] sm:$0xff] }
 0x1ad   : > { %12631 = vst [vmem:[#allocation78_spill] sm:$0xff] %v8184_v40  ;;  %12632 = vst [vmem:[#allocation66_spill] sm:$0xff] %v8186_v27  ;;  %2542 = vmatprep.subr.mxu1 %v12633_v41  ;;  %2301 = vmatprep.subr.mxu0 %v12638_v21  ;;  %v12639_v51 = vand.u32 4294901760, %v8112_v0  ;;  %v8208_v19 = vsub.f32 %v950_v22, %v8162_v42  ;;  %v8210_v50 = vand.u32 4294901760, %v934_v49  ;;  %v12642_v55 = vand.u32 4294901760, %v8022_v58  ;;  %v12643_v18 = vld [vmem:[#allocation100_spill] sm:$0xff] }
 0x1ae   : > { %12635 = vst [vmem:[#allocation80_spill] sm:$0xff] %v8194_v9  ;;  %12636 = vst [vmem:[#allocation69_spill] sm:$0xff] %v8196_v11  ;;  %2548 = vmatpush1.msra.mxu1 %v12637_v32  ;;  %2303 = vmatpush1.msra.mxu0 %v12643_v18  ;;  %v12644_v32 = vand.u32 4294901760, %v8126_v28  ;;  %v8222_v46 = vsub.f32 %v943_v56, %v8172_v1  ;;  %v8224_v22 = vand.u32 4294901760, %v927_v34  ;;  %v2613_v58 = vand.u32 4294901760, %v8180_v12  ;;  %v918_v12 = vld [vmem:[#allocation2 + $0x5d0] sm:$0xff] }
 0x1af   : > { %v8204_v41 = vsub.f32 %v8112_v0, %v12639_v51  ;;  %12640 = vst [vmem:[#allocation83_spill] sm:$0xff] %v8208_v19  ;;  %12641 = vst [vmem:[#allocation71_spill] sm:$0xff] %v8210_v50  ;;  %2554 = vmatprep.subr.mxu1 %v12642_v55  ;;  %v12647_v0 = vand.u32 4294901760, %v8035_v14  ;;  %2305 = vmatprep.subr.mxu0 %v12648_v5  ;;  %v12649_v55 = vand.u32 4294901760, %v8136_v61  ;;  %v12651_v56 = vand.u32 4294901760, %v8046_v8  ;;  %v12657_v8 = vld [vmem:[#allocation97_spill] sm:$0xff] }
 0x1b0   : > { %v8218_v21 = vsub.f32 %v8126_v28, %v12644_v32  ;;  %12645 = vst [vmem:[#allocation84_spill] sm:$0xff] %v8222_v46  ;;  %12646 = vst [vmem:[#allocation73_spill] sm:$0xff] %v8224_v22  ;;  %v8237_v51 = vsub.f32 %v942_v17, %v8186_v27  ;;  %v12652_v28 = vld [vmem:[#allocation8_spill] sm:$0xff]  ;;  %v12653_v14 = vand.u32 4294901760, %v8150_v47  ;;  %v919_v32 = vld [vmem:[#allocation2 + $0x5d8] sm:$0xff]  ;;  %v12656_v17 = vand.u32 4294901760, %v8059_v6 }
 0x1b1   : > { %2560 = vmatpush1.msra.mxu1 %v12647_v0  ;;  %v8233_v18 = vsub.f32 %v8136_v61, %v12649_v55  ;;  %2307 = vmatpush1.msra.mxu0 %v12652_v28  ;;  %v8249_v55 = vsub.f32 %v935_v26, %v8196_v11  ;;  %v8251_v61 = vand.u32 4294901760, %v926_v2  ;;  %v12658_v28 = vand.u32 4294901760, %v8160_v48  ;;  %v12661_v5 = vld [vmem:[#allocation101_spill] sm:$0xff] }
 0x1b2   : > { %12650 = vst [vmem:[#allocation86_spill] sm:$0xff] %v8237_v51  ;;  %2566 = vmatprep.subr.mxu1 %v12651_v56  ;;  %v8245_v0 = vsub.f32 %v8150_v47, %v12653_v14  ;;  %2309 = vmatprep.subr.mxu0 %v12657_v8  ;;  %v2619_v56 = vand.u32 4294901760, %v8204_v41  ;;  %v8264_v26 = vsub.f32 %v934_v49, %v8210_v50  ;;  %v12660_v47 = vand.u32 4294901760, %v8071_v44  ;;  %v12665_v44 = vld [vmem:[#allocation103_spill] sm:$0xff] }
 0x1b3   : > { %12654 = vst [vmem:[#allocation88_spill] sm:$0xff] %v8249_v55  ;;  %12655 = vst [vmem:[#allocation77_spill] sm:$0xff] %v8251_v61  ;;  %2572 = vmatpush1.msra.mxu1 %v12656_v17  ;;  %v8260_v14 = vsub.f32 %v8160_v48, %v12658_v28  ;;  %2311 = vmatpush1.msra.mxu0 %v12661_v5  ;;  %v2625_v6 = vand.u32 4294901760, %v8218_v21  ;;  %v12662_v17 = vand.u32 4294901760, %v8170_v3  ;;  %v12664_v49 = vand.u32 4294901760, %v8083_v37  ;;  %v911_v28 = vld [vmem:[#allocation2 + $0x598] sm:$0xff] }
 0x1b4   : > { %12659 = vst [vmem:[#allocation90_spill] sm:$0xff] %v8264_v26  ;;  %2578 = vmatprep.subr.mxu1 %v12660_v47  ;;  %v8277_v48 = vsub.f32 %v927_v34, %v8224_v22  ;;  %2313 = vmatprep.subr.mxu0 %v12665_v44  ;;  %v2631_v47 = vand.u32 4294901760, %v8233_v18  ;;  %v12666_v21 = vand.u32 4294901760, %v8184_v40  ;;  %v12668_v34 = vand.u32 4294901760, %v8097_v39  ;;  %v12669_v8 = vld [vmem:[#allocation107_spill] sm:$0xff] }
 0x1b5   : > { %v8273_v41 = vsub.f32 %v8170_v3, %v12662_v17  ;;  %2584 = vmatpush1.msra.mxu1 %v12664_v49  ;;  %v8289_v3 = vand.u32 4294901760, %v919_v32  ;;  %2315 = vmatpush1.msra.mxu0 %v12669_v8  ;;  %v2637_v37 = vand.u32 4294901760, %v8245_v0  ;;  %v12670_v49 = vand.u32 4294901760, %v8194_v9  ;;  %v910_v17 = vld [vmem:[#allocation2 + $0x590] sm:$0xff] }
 0x1b6   : > { %12663 = vst [vmem:[#allocation79_spill] sm:$0xff] %v8277_v48  ;;  %v8286_v5 = vsub.f32 %v8184_v40, %v12666_v21  ;;  %2590 = vmatprep.subr.mxu1 %v12668_v34  ;;  %v8302_v40 = vsub.f32 %v926_v2, %v8251_v61  ;;  %v12672_v44 = vand.u32 4294901760, %v8109_v59  ;;  %2317 = vmatprep.subr.mxu0 %v7871_v30  ;;  %v2643_v39 = vand.u32 4294901760, %v8260_v14  ;;  %v903_v21 = vld [vmem:[#allocation2 + $0x558] sm:$0xff] }
 0x1b7   : > { %12667 = vst [vmem:[#allocation92_spill] sm:$0xff] %v8289_v3  ;;  %v8298_v18 = vsub.f32 %v8194_v9, %v12670_v49  ;;  %v12673_v0 = vand.u32 4294901760, %v8208_v19  ;;  %v8314_v9 = vand.u32 4294901760, %v918_v12  ;;  %v12675_v2 = vand.u32 4294901760, %v8123_v16  ;;  %2319 = vmatpush1.msra.mxu0 %v7881_v38  ;;  %v902_v49 = vld [vmem:[#allocation2 + $0x550] sm:$0xff] }
 0x1b8   : > { %12671 = vst [vmem:[#allocation81_spill] sm:$0xff] %v8302_v40  ;;  %2596 = vmatpush1.msra.mxu1 %v12672_v44  ;;  %v2649_v59 = vand.u32 4294901760, %v8273_v41  ;;  %v12676_v44 = vand.u32 4294901760, %v8222_v46  ;;  %v12678_v30 = vand.u32 4294901760, %v8147_v43  ;;  %2321 = vmatprep.subr.mxu0 %v7895_v31  ;;  %v2655_v16 = vand.u32 4294901760, %v8286_v5 }
 0x1b9   : > { %v8311_v34 = vsub.f32 %v8208_v19, %v12673_v0  ;;  %12674 = vst [vmem:[#allocation94_spill] sm:$0xff] %v8314_v9  ;;  %2602 = vmatprep.subr.mxu1 %v12675_v2  ;;  %v8326_v19 = vand.u32 4294901760, %v911_v28  ;;  %v12679_v2 = vand.u32 4294901760, %v8237_v51  ;;  %v895_v0 = vld [vmem:[#allocation2 + $0x518] sm:$0xff]  ;;  %2323 = vmatpush1.msra.mxu0 %v7905_v29  ;;  %v2661_v43 = vand.u32 4294901760, %v8298_v18 }
 0x1ba   : > { %v8323_v14 = vsub.f32 %v8222_v46, %v12676_v44  ;;  %2608 = vmatpush1.msra.mxu1 %v12678_v30  ;;  %v8338_v44 = vsub.f32 %v919_v32, %v8289_v3  ;;  %v8340_v46 = vand.u32 4294901760, %v910_v17  ;;  %v12682_v30 = vand.u32 4294901760, %v8249_v55  ;;  %2325 = vmatprep.subr.mxu0 %v7915_v53 }
 0x1bb   : > { %12677 = vst [vmem:[#allocation82_spill] sm:$0xff] %v8326_v19  ;;  %v8335_v41 = vsub.f32 %v8237_v51, %v12679_v2  ;;  %2614 = vmatprep.subr.mxu1 %v2613_v58  ;;  %v8350_v2 = vand.u32 4294901760, %v903_v21  ;;  %v894_v51 = vld [vmem:[#allocation2 + $0x510] sm:$0xff]  ;;  %v2667_v32 = vand.u32 4294901760, %v8311_v34  ;;  %v12684_v58 = vand.u32 4294901760, %v8264_v26  ;;  %2327 = vmatpush1.msra.mxu0 %v7930_v62 }
 0x1bc   : > { %12680 = vst [vmem:[#allocation96_spill] sm:$0xff] %v8338_v44  ;;  %12681 = vst [vmem:[#allocation99_spill] sm:$0xff] %v8340_v46  ;;  %v8347_v5 = vsub.f32 %v8249_v55, %v12682_v30  ;;  %2620 = vmatpush2.msra.mxu1 %v2619_v56  ;;  %v8360_v18 = vsub.f32 %v918_v12, %v8314_v9  ;;  %v8362_v30 = vand.u32 4294901760, %v902_v49  ;;  %v887_v55 = vld [vmem:[#allocation2 + $0x4d8] sm:$0xff]  ;;  %v2673_v56 = vand.u32 4294901760, %v8323_v14  ;;  %v886_v12 = vld [vmem:[#allocation2 + $0x4d0] sm:$0xff] }
 0x1bd   : > { %12683 = vst [vmem:[#allocation87_spill] sm:$0xff] %v8350_v2  ;;  %v8357_v29 = vsub.f32 %v8264_v26, %v12684_v58  ;;  %2626 = vmatprep.subr.mxu1 %v2625_v6  ;;  %v12686_v31 = vand.u32 4294901760, %v8277_v48  ;;  %v8372_v53 = vsub.f32 %v911_v28, %v8326_v19  ;;  %v8374_v58 = vand.u32 4294901760, %v895_v0  ;;  %2329 = vmatprep.subr.mxu0 %v7940_v4 }
 0x1be   : > { %12685 = vst [vmem:[#allocation102_spill] sm:$0xff] %v8360_v18  ;;  %2632 = vmatpush2.msra.mxu1 %v2631_v47  ;;  %v2679_v6 = vand.u32 4294901760, %v8335_v41  ;;  %v8380_v14 = vsub.f32 %v910_v17, %v8340_v46  ;;  %v8382_v62 = vand.u32 4294901760, %v894_v51  ;;  %2331 = vmatpush1.msra.mxu0 %v7955_v54  ;;  %v2685_v28 = vand.u32 4294901760, %v8347_v5  ;;  %v878_v17 = vld [vmem:[#allocation2 + $0x490] sm:$0xff] }
 0x1bf   : > { %v8369_v34 = vsub.f32 %v8277_v48, %v12686_v31  ;;  %12687 = vst [vmem:[#allocation104_spill] sm:$0xff] %v8372_v53  ;;  %v879_v31 = vld [vmem:[#allocation2 + $0x498] sm:$0xff]  ;;  %2638 = vmatprep.subr.mxu1 %v2637_v37  ;;  %v12689_v48 = vand.u32 4294901760, %v8302_v40  ;;  %v8392_v41 = vsub.f32 %v903_v21, %v8350_v2  ;;  %v8394_v26 = vand.u32 4294901760, %v887_v55  ;;  %2333 = vmatprep.subr.mxu0 %v7970_v63 }
 0x1c0   : > { %12688 = vst [vmem:[#allocation106_spill] sm:$0xff] %v8380_v14  ;;  %2644 = vmatpush2.msra.mxu1 %v2643_v39  ;;  %v2691_v37 = vand.u32 4294901760, %v8357_v29  ;;  %v8400_v5 = vsub.f32 %v902_v49, %v8362_v30  ;;  %v8402_v4 = vand.u32 4294901760, %v886_v12  ;;  %2335 = vmatpush1.msra.mxu0 %v7999_v60  ;;  %v8408_v39 = vsub.f32 %v895_v0, %v8374_v58  ;;  %v870_v29 = vld [vmem:[#allocation2 + $0x450] sm:$0xff] }
 0x1c1   : > { %v8389_v47 = vsub.f32 %v8302_v40, %v12689_v48  ;;  %v871_v48 = vld [vmem:[#allocation2 + $0x458] sm:$0xff]  ;;  %2650 = vmatprep.subr.mxu1 %v2649_v59  ;;  %v2697_v21 = vand.u32 4294901760, %v8369_v34  ;;  %v8410_v63 = vand.u32 4294901760, %v879_v31  ;;  %2337 = vmatprep.subr.mxu0 %v8038_v13  ;;  %v12691_v49 = vand.u32 4294901760, %v8338_v44 }
 0x1c2   : > { %12690 = vst [vmem:[#allocation117_spill] sm:$0xff] %v8400_v5  ;;  %2656 = vmatpush2.msra.mxu1 %v2655_v16  ;;  %v8418_v60 = vsub.f32 %v894_v51, %v8382_v62  ;;  %v8420_v34 = vand.u32 4294901760, %v878_v17  ;;  %v863_v40 = vld [vmem:[#allocation2 + $0x418] sm:$0xff]  ;;  %2339 = vmatpush2.msra.mxu0 %v8062_v45  ;;  %v8426_v13 = vsub.f32 %v887_v55, %v8394_v26  ;;  %v8428_v38 = vand.u32 4294901760, %v871_v48 }
 0x1c3   : > { %v2708_v54 = vsub.f32 %v8338_v44, %v12691_v49  ;;  %2662 = vmatprep.subr.mxu1 %v2661_v43  ;;  %v2703_v0 = vand.u32 4294901760, %v8389_v47  ;;  %v862_v49 = vld [vmem:[#allocation2 + $0x410] sm:$0xff]  ;;  %2341 = vmatprep.subr.mxu0 %v8074_v33  ;;  %v12692_v51 = vand.u32 4294901760, %v8360_v18  ;;  %v8436_v44 = vsub.f32 %v886_v12, %v8402_v4 }
 0x1c4   : > { %2668 = vmatpush2.msra.mxu1 %v2667_v32  ;;  %v8438_v47 = vand.u32 4294901760, %v870_v29  ;;  %2343 = vmatpush2.msra.mxu0 %v8088_v7  ;;  %v12693_v55 = vand.u32 4294901760, %v8372_v53  ;;  %v8446_v33 = vsub.f32 %v879_v31, %v8410_v63  ;;  %v12695_v12 = vand.u32 4294901760, %v8380_v14 }
 0x1c5   : > { %v2714_v59 = vsub.f32 %v8360_v18, %v12692_v51  ;;  %2674 = vmatprep.subr.mxu1 %v2673_v56  ;;  %v8448_v51 = vand.u32 4294901760, %v863_v40  ;;  %2345 = vmatprep.subr.mxu0 %v8100_v15  ;;  %v8456_v18 = vsub.f32 %v878_v17, %v8420_v34  ;;  %v2709_v31 = vand.u32 4294901760, %v2708_v54 }
 0x1c6   : > { %v2720_v32 = vsub.f32 %v8372_v53, %v12693_v55  ;;  %12694 = vst [vmem:[#allocation118_spill] sm:$0xff] %v8446_v33  ;;  %2680 = vmatpush2.msra.mxu1 %v2679_v6  ;;  %v2726_v56 = vsub.f32 %v8380_v14, %v12695_v12  ;;  %v8458_v55 = vand.u32 4294901760, %v862_v49  ;;  %2347 = vmatpush2.msra.mxu0 %v8114_v36  ;;  %v12697_v16 = vand.u32 4294901760, %v8392_v41 }
 0x1c7   : > { %12696 = vst [vmem:[#allocation119_spill] sm:$0xff] %v8456_v18  ;;  %2686 = vmatprep.subr.mxu1 %v2685_v28  ;;  %v8466_v15 = vsub.f32 %v871_v48, %v8428_v38  ;;  %2349 = vmatprep.subr.mxu0 %v8128_v52  ;;  %v2715_v17 = vand.u32 4294901760, %v2714_v59  ;;  %v12699_v12 = vand.u32 4294901760, %v8400_v5  ;;  %v8474_v54 = vsub.f32 %v870_v29, %v8438_v47 }
 0x1c8   : > { %v2732_v6 = vsub.f32 %v8392_v41, %v12697_v16  ;;  %2692 = vmatpush2.msra.mxu1 %v2691_v37  ;;  %2351 = vmatpush2.msra.mxu0 %v8138_v23  ;;  %v2721_v16 = vand.u32 4294901760, %v2720_v32  ;;  %v12701_v48 = vand.u32 4294901760, %v8408_v39  ;;  %v8482_v59 = vsub.f32 %v863_v40, %v8448_v51 }
 0x1c9   : > { %12698 = vst [vmem:[#allocation120_spill] sm:$0xff] %v8466_v15  ;;  %v2738_v28 = vsub.f32 %v8400_v5, %v12699_v12  ;;  %12700 = vst [vmem:[#allocation121_spill] sm:$0xff] %v8474_v54  ;;  %2698 = vmatprep.subr.mxu1 %v2697_v21  ;;  %2353 = vmatprep.subr.mxu0 %v8152_v57  ;;  %v2727_v12 = vand.u32 4294901760, %v2726_v56  ;;  %v12703_v29 = vand.u32 4294901760, %v8418_v60  ;;  %v12705_v40 = vand.u32 4294901760, %v8426_v13 }
 0x1ca   : > { %v2744_v37 = vsub.f32 %v8408_v39, %v12701_v48  ;;  %12702 = vst [vmem:[#allocation122_spill] sm:$0xff] %v8482_v59  ;;  %2704 = vmatpush2.msra.mxu1 %v2703_v0  ;;  %v8490_v32 = vsub.f32 %v862_v49, %v8458_v55  ;;  %2355 = vmatpush2.msra.mxu0 %v8162_v42  ;;  %v2733_v48 = vand.u32 4294901760, %v2732_v6  ;;  %v12707_v6 = vand.u32 4294901760, %v8446_v33 }
 0x1cb   : > { %v2750_v21 = vsub.f32 %v8418_v60, %v12703_v29  ;;  %2710 = vmatprep.subr.mxu1 %v2709_v31  ;;  %v2756_v0 = vsub.f32 %v8426_v13, %v12705_v40  ;;  %2357 = vmatprep.subr.mxu0 %v8172_v1  ;;  %v2739_v56 = vand.u32 4294901760, %v2738_v28  ;;  %v12706_v29 = vand.u32 4294901760, %v8436_v44 }
 0x1cc   : > { %12704 = vst [vmem:[#allocation123_spill] sm:$0xff] %v8490_v32  ;;  %2716 = vmatpush2.msra.mxu1 %v2715_v17  ;;  %2359 = vmatpush2.msra.mxu0 %v8186_v27  ;;  %v2745_v31 = vand.u32 4294901760, %v2744_v37  ;;  %v2768_v40 = vsub.f32 %v8446_v33, %v12707_v6  ;;  %v12708_v28 = vand.u32 4294901760, %v8456_v18  ;;  %v11724_v49 = vand.u32 4294901760, %v8490_v32 }
 0x1cd   : > { %v2762_v43 = vsub.f32 %v8436_v44, %v12706_v29  ;;  %2722 = vmatprep.subr.mxu1 %v2721_v16  ;;  %2361 = vmatprep.subr.mxu0 %v8196_v11  ;;  %v2751_v17 = vand.u32 4294901760, %v2750_v21  ;;  %v2757_v16 = vand.u32 4294901760, %v2756_v0  ;;  %v12709_v37 = vand.u32 4294901760, %v8466_v15 }
 0x1ce   : > { %2728 = vmatpush2.msra.mxu1 %v2727_v12  ;;  %v2774_v29 = vsub.f32 %v8456_v18, %v12708_v28  ;;  %2363 = vmatpush2.msra.mxu0 %v8210_v50  ;;  %v12710_v21 = vand.u32 4294901760, %v8474_v54  ;;  %v2769_v28 = vand.u32 4294901760, %v2768_v40 }
 0x1cf   : > { %2734 = vmatprep.subr.mxu1 %v2733_v48  ;;  %v2780_v6 = vsub.f32 %v8466_v15, %v12709_v37  ;;  %2365 = vmatprep.subr.mxu0 %v8224_v22  ;;  %v2763_v12 = vand.u32 4294901760, %v2762_v43  ;;  %v12711_v48 = vand.u32 4294901760, %v8482_v59  ;;  %v2798_v43 = vsub.f32 %v8490_v32, %v11724_v49  ;;  %v12727_v49 = vld [vmem:[#allocation25_spill] sm:$0xff] }
 0x1d0   : > { %2740 = vmatpush2.msra.mxu1 %v2739_v56  ;;  %v2786_v53 = vsub.f32 %v8474_v54, %v12710_v21  ;;  %2367 = vmatpush2.msra.mxu0 %v8251_v61  ;;  %v2775_v37 = vand.u32 4294901760, %v2774_v29  ;;  %v12713_v29 = vld [vmem:[#allocation15_spill] sm:$0xff]  ;;  %v12717_v21 = vld [vmem:[#allocation116_spill] sm:$0xff] }
 0x1d1   : > { %2746 = vmatprep.subr.mxu1 %v2745_v31  ;;  %v2792_v0 = vsub.f32 %v8482_v59, %v12711_v48  ;;  %2369 = vmatprep.subr.mxu0 %v8289_v3  ;;  %v2781_v56 = vand.u32 4294901760, %v2780_v6  ;;  %v12715_v6 = vld [vmem:[#allocation13_spill] sm:$0xff]  ;;  %v12719_v48 = vld [vmem:[#allocation18_spill] sm:$0xff] }
 0x1d2   : > { %2752 = vmatpush2.msra.mxu1 %v2751_v17  ;;  %2371 = vmatpush2.msra.mxu0 %v8314_v9  ;;  %v2787_v31 = vand.u32 4294901760, %v2786_v53  ;;  %v2799_v17 = vand.u32 4294901760, %v2798_v43  ;;  %v12712_v53 = vld [vmem:[#allocation114_spill] sm:$0xff]  ;;  %v12722_v43 = vld [vmem:[#allocation19_spill] sm:$0xff] }
 0x1d3   : > { %2758 = vmatprep.subr.mxu1 %v2757_v16  ;;  %2373 = vmatprep.subr.mxu0 %v8326_v19  ;;  %v2793_v40 = vand.u32 4294901760, %v2792_v0  ;;  %v12714_v16 = vld [vmem:[#allocation16_spill] sm:$0xff]  ;;  %v12720_v0 = vld [vmem:[#allocation11_spill] sm:$0xff] }
 0x1d4   : > { %2764 = vmatpush2.msra.mxu1 %v2763_v12  ;;  %2375 = vmatpush2.msra.mxu0 %v8340_v46  ;;  %v12716_v12 = vld [vmem:[#allocation17_spill] sm:$0xff] }
 0x1d5   : > { %2770 = vmatprep.subr.mxu1 %v2769_v28  ;;  %2377 = vmatprep.subr.mxu0 %v8350_v2  ;;  %v12718_v28 = vld [vmem:[#allocation10_spill] sm:$0xff] }
 0x1d6   : > { %2776 = vmatpush2.msra.mxu1 %v2775_v37  ;;  %2379 = vmatpush2.msra.mxu0 %v8362_v30  ;;  %v12721_v37 = vld [vmem:[#allocation112_spill] sm:$0xff] }
 0x1d7   : > { %2782 = vmatprep.subr.mxu1 %v2781_v56  ;;  %2381 = vmatprep.subr.mxu0 %v8374_v58  ;;  %v12723_v56 = vld [vmem:[#allocation12_spill] sm:$0xff] }
 0x1d8   : > { %2788 = vmatpush2.msra.mxu1 %v2787_v31  ;;  %2383 = vmatpush2.msra.mxu0 %v8382_v62  ;;  %v12724_v31 = vld [vmem:[#allocation21_spill] sm:$0xff] }
 0x1d9   : > { %2794 = vmatprep.subr.mxu1 %v2793_v40  ;;  %2385 = vmatprep.subr.mxu0 %v8394_v26  ;;  %v12725_v40 = vld [vmem:[#allocation14_spill] sm:$0xff] }
 0x1da   : > { %2800 = vmatpush2.msra.mxu1 %v2799_v17  ;;  %2387 = vmatpush2.msra.mxu0 %v8402_v4  ;;  %v12726_v17 = vld [vmem:[#allocation23_spill] sm:$0xff] }
 0x1db   : > { %2804 = vmatmul.mubr.f32.vlgmr.msra.gmra.mxu1 %v12551_v24  ;;  %3014 = vmatprep.subr.mxu1 %v7587_v10  ;;  %v12730_v24 = vld [vmem:[#allocation33_spill] sm:$0xff] }
 0x1dc   : > { %3016 = vmatpush1.msra.mxu1 %v7595_v20  ;;  %3144 = vmatprep.mubr.f32.mxu1 %v12712_v53  ;;  %v12729_v53 = vld [vmem:[#allocation26_spill] sm:$0xff] }
 0x1dd   : > { %2389 = vmatprep.subr.mxu0 %v8410_v63  ;;  %3018 = vmatprep.subr.mxu1 %v7600_v25 }
 0x1de   : > { %2391 = vmatpush2.msra.mxu0 %v8420_v34  ;;  %3020 = vmatpush1.msra.mxu1 %v7608_v35 }
 0x1df   : > { %2393 = vmatprep.subr.mxu0 %v8428_v38  ;;  %3022 = vmatprep.subr.mxu1 %v12713_v29 }
 0x1e0   : > { %2395 = vmatpush2.msra.mxu0 %v8438_v47  ;;  %3024 = vmatpush1.msra.mxu1 %v12714_v16 }
 0x1e1   : > { %2397 = vmatprep.subr.mxu0 %v8448_v51  ;;  %3026 = vmatprep.subr.mxu1 %v12715_v6 }
 0x1e2   : > { %2399 = vmatpush2.msra.mxu0 %v8458_v55  ;;  %3028 = vmatpush1.msra.mxu1 %v12716_v12 }
 0x1e3   : > { %2411 = vmatmul.mubr.f32.vlgmr.msra.gmra.mxu0 %v12717_v21  ;;  %2812 = vmatprep.subr.mxu0 %v12718_v28  ;;  %v12728_v21 = vld [vmem:[#allocation30_spill] sm:$0xff] }
 0x1e4   : > { %3030 = vmatprep.subr.mxu1 %v12719_v48  ;;  %2815 = vmatpush1.msra.mxu0 %v12720_v0  ;;  %v12731_v0 = vld [vmem:[#allocation20_spill] sm:$0xff] }
 0x1e5   : > { %3004 = vmatprep.mubr.f32.mxu0 %v12721_v37  ;;  %3032 = vmatpush1.msra.mxu1 %v12722_v43  ;;  %v12732_v37 = vld [vmem:[#allocation35_spill] sm:$0xff]  ;;  %v12733_v43 = vld [vmem:[#allocation22_spill] sm:$0xff] }
 0x1e6   : > { %2818 = vmatprep.subr.mxu0 %v12723_v56  ;;  %3034 = vmatprep.subr.mxu1 %v12724_v31  ;;  %v12734_v56 = vld [vmem:[#allocation100_spill] sm:$0xff] }
 0x1e7   : > { %2821 = vmatpush1.msra.mxu0 %v12725_v40  ;;  %3036 = vmatpush1.msra.mxu1 %v12726_v17  ;;  %v12735_v31 = vld [vmem:[#allocation24_spill] sm:$0xff]  ;;  %v12736_v40 = vld [vmem:[#allocation93_spill] sm:$0xff]  ;;  %v12737_v17 = vld [vmem:[#allocation31_spill] sm:$0xff] }
 0x1e8   : > { %2824 = vmatprep.subr.mxu0 %v12727_v49  ;;  %3038 = vmatprep.subr.mxu1 %v12728_v21  ;;  %v12738_v49 = vld [vmem:[#allocation8_spill] sm:$0xff]  ;;  %v12739_v21 = vld [vmem:[#allocation34_spill] sm:$0xff] }
 0x1e9   : > { %2827 = vmatpush1.msra.mxu0 %v12729_v53  ;;  %3040 = vmatpush1.msra.mxu1 %v12730_v24  ;;  %v12740_v53 = vld [vmem:[#allocation97_spill] sm:$0xff]  ;;  %v12741_v24 = vld [vmem:[#allocation75_spill] sm:$0xff] }
 0x1ea   : > { %2830 = vmatprep.subr.mxu0 %v12731_v0  ;;  %3042 = vmatprep.subr.mxu1 %v12732_v37  ;;  %v12742_v0 = vld [vmem:[#allocation101_spill] sm:$0xff] }
 0x1eb   : > { %2833 = vmatpush1.msra.mxu0 %v12733_v43  ;;  %3044 = vmatpush1.msra.mxu1 %v12734_v56  ;;  %v12743_v37 = vld [vmem:[#allocation85_spill] sm:$0xff]  ;;  %v12744_v43 = vld [vmem:[#allocation103_spill] sm:$0xff] }
 0x1ec   : > { %2836 = vmatprep.subr.mxu0 %v12735_v31  ;;  %3046 = vmatprep.subr.mxu1 %v12736_v40  ;;  %v12745_v56 = vld [vmem:[#allocation89_spill] sm:$0xff]  ;;  %v12746_v40 = vld [vmem:[#allocation91_spill] sm:$0xff] }
 0x1ed   : > { %2839 = vmatpush1.msra.mxu0 %v12737_v17  ;;  %3048 = vmatpush1.msra.mxu1 %v12738_v49  ;;  %v12747_v17 = vld [vmem:[#allocation9_spill] sm:$0xff]  ;;  %v12748_v49 = vld [vmem:[#allocation95_spill] sm:$0xff] }
 0x1ee   : > { %2842 = vmatprep.subr.mxu0 %v12739_v21  ;;  %3050 = vmatprep.subr.mxu1 %v12740_v53  ;;  %v12749_v21 = vld [vmem:[#allocation28_spill] sm:$0xff]  ;;  %v12750_v53 = vld [vmem:[#allocation98_spill] sm:$0xff] }
 0x1ef   : > { %2845 = vmatpush1.msra.mxu0 %v12741_v24  ;;  %3052 = vmatpush1.msra.mxu1 %v12742_v0  ;;  %v12751_v24 = vld [vmem:[#allocation32_spill] sm:$0xff]  ;;  %v12752_v0 = vld [vmem:[#allocation105_spill] sm:$0xff] }
 0x1f0   : > { %2848 = vmatprep.subr.mxu0 %v12743_v37  ;;  %3054 = vmatprep.subr.mxu1 %v12744_v43  ;;  %v12753_v37 = vld [vmem:[#allocation39_spill] sm:$0xff]  ;;  %v12754_v43 = vld [vmem:[#allocation108_spill] sm:$0xff] }
 0x1f1   : > { %2851 = vmatpush1.msra.mxu0 %v12745_v56  ;;  %3056 = vmatpush1.msra.mxu1 %v12669_v8  ;;  %v12755_v56 = vld [vmem:[#allocation42_spill] sm:$0xff]  ;;  %v12756_v8 = vld [vmem:[#allocation27_spill] sm:$0xff] }
 0x1f2   : > { %2854 = vmatprep.subr.mxu0 %v12746_v40  ;;  %3058 = vmatprep.subr.mxu1 %v12747_v17  ;;  %v12757_v40 = vld [vmem:[#allocation44_spill] sm:$0xff]  ;;  %v12758_v17 = vld [vmem:[#allocation29_spill] sm:$0xff] }
 0x1f3   : > { %2857 = vmatpush1.msra.mxu0 %v12748_v49  ;;  %3060 = vmatpush1.msra.mxu1 %v12749_v21  ;;  %v12759_v49 = vld [vmem:[#allocation37_spill] sm:$0xff]  ;;  %v12760_v21 = vld [vmem:[#allocation36_spill] sm:$0xff] }
 0x1f4   : > { %2860 = vmatprep.subr.mxu0 %v12750_v53  ;;  %3062 = vmatprep.subr.mxu1 %v12751_v24  ;;  %v12761_v53 = vld [vmem:[#allocation38_spill] sm:$0xff]  ;;  %v12762_v24 = vld [vmem:[#allocation41_spill] sm:$0xff] }
 0x1f5   : > { %2863 = vmatpush1.msra.mxu0 %v12752_v0  ;;  %3064 = vmatpush1.msra.mxu1 %v12753_v37  ;;  %v12763_v0 = vld [vmem:[#allocation40_spill] sm:$0xff]  ;;  %v12764_v37 = vld [vmem:[#allocation43_spill] sm:$0xff] }
 0x1f6   : > { %2866 = vmatprep.subr.mxu0 %v12754_v43  ;;  %3066 = vmatprep.subr.mxu1 %v12755_v56  ;;  %v12765_v43 = vld [vmem:[#allocation57_spill] sm:$0xff] }
 0x1f7   : > { %2869 = vmatpush1.msra.mxu0 %v12756_v8  ;;  %3068 = vmatpush1.msra.mxu1 %v12757_v40  ;;  %v12766_v56 = vld [vmem:[#allocation45_spill] sm:$0xff]  ;;  %v12768_v40 = vld [vmem:[#allocation48_spill] sm:$0xff] }
 0x1f8   : > { %2872 = vmatprep.subr.mxu0 %v12758_v17  ;;  %3070 = vmatprep.subr.mxu1 %v12759_v49  ;;  %v12767_v8 = vld [vmem:[#allocation49_spill] sm:$0xff]  ;;  %v12769_v49 = vld [vmem:[#allocation52_spill] sm:$0xff] }
 0x1f9   : > { %2875 = vmatpush1.msra.mxu0 %v12760_v21  ;;  %3072 = vmatpush1.msra.mxu1 %v12761_v53  ;;  %v12770_v21 = vld [vmem:[#allocation60_spill] sm:$0xff]  ;;  %v12771_v53 = vld [vmem:[#allocation55_spill] sm:$0xff] }
 0x1fa   : > { %2878 = vmatprep.subr.mxu0 %v12762_v24  ;;  %3074 = vmatprep.subr.mxu1 %v12763_v0  ;;  %v12772_v0 = vld [vmem:[#allocation46_spill] sm:$0xff] }
 0x1fb   : > { %2881 = vmatpush1.msra.mxu0 %v12764_v37  ;;  %3076 = vmatpush1.msra.mxu1 %v12765_v43  ;;  %v12773_v37 = vld [vmem:[#allocation53_spill] sm:$0xff]  ;;  %v12774_v43 = vld [vmem:[#allocation47_spill] sm:$0xff] }
 0x1fc   : > { %2884 = vmatprep.subr.mxu0 %v12766_v56  ;;  %3078 = vmatprep.subr.mxu1 %v12767_v8  ;;  %v12775_v8 = vld [vmem:[#allocation58_spill] sm:$0xff] }
 0x1fd   : > { %2887 = vmatpush1.msra.mxu0 %v12768_v40  ;;  %3080 = vmatpush2.msra.mxu1 %v8062_v45  ;;  %v12776_v45 = vld [vmem:[#allocation59_spill] sm:$0xff] }
 0x1fe   : > { %2890 = vmatprep.subr.mxu0 %v12769_v49  ;;  %3082 = vmatprep.subr.mxu1 %v12770_v21  ;;  %v12777_v21 = vld [vmem:[#allocation51_spill] sm:$0xff] }
 0x1ff   : > { %2893 = vmatpush1.msra.mxu0 %v12771_v53  ;;  %3084 = vmatpush2.msra.mxu1 %v8088_v7  ;;  %v12778_v7 = vld [vmem:[#allocation67_spill] sm:$0xff] }
 0x200   : > { %2896 = vmatprep.subr.mxu0 %v12772_v0  ;;  %3086 = vmatprep.subr.mxu1 %v12773_v37  ;;  %v12779_v37 = vld [vmem:[#allocation68_spill] sm:$0xff] }
 0x201   : > { %2899 = vmatpush1.msra.mxu0 %v12774_v43  ;;  %3088 = vmatpush2.msra.mxu1 %v8114_v36  ;;  %v12780_v36 = vld [vmem:[#allocation70_spill] sm:$0xff] }
 0x202   : > { %2902 = vmatprep.subr.mxu0 %v12775_v8  ;;  %3090 = vmatprep.subr.mxu1 %v8128_v52  ;;  %v12781_v52 = vld [vmem:[#allocation72_spill] sm:$0xff] }
 0x203   : > { %2905 = vmatpush1.msra.mxu0 %v12776_v45  ;;  %3092 = vmatpush2.msra.mxu1 %v8138_v23  ;;  %v12782_v23 = vld [vmem:[#allocation74_spill] sm:$0xff] }
 0x204   : > { %2908 = vmatprep.subr.mxu0 %v12777_v21  ;;  %3094 = vmatprep.subr.mxu1 %v8152_v57  ;;  %v12783_v57 = vld [vmem:[#allocation76_spill] sm:$0xff] }
 0x205   : > { %2911 = vmatpush2.msra.mxu0 %v12778_v7  ;;  %3096 = vmatpush2.msra.mxu1 %v8162_v42  ;;  %v12784_v42 = vld [vmem:[#allocation78_spill] sm:$0xff] }
 0x206   : > { %2914 = vmatprep.subr.mxu0 %v12779_v37  ;;  %3098 = vmatprep.subr.mxu1 %v8172_v1  ;;  %v12785_v1 = vld [vmem:[#allocation80_spill] sm:$0xff] }
 0x207   : > { %2917 = vmatpush2.msra.mxu0 %v12780_v36  ;;  %3100 = vmatpush2.msra.mxu1 %v8186_v27  ;;  %v12786_v27 = vld [vmem:[#allocation83_spill] sm:$0xff] }
 0x208   : > { %2920 = vmatprep.subr.mxu0 %v12781_v52  ;;  %3102 = vmatprep.subr.mxu1 %v8196_v11  ;;  %v12787_v11 = vld [vmem:[#allocation84_spill] sm:$0xff] }
 0x209   : > { %2923 = vmatpush2.msra.mxu0 %v12782_v23  ;;  %3104 = vmatpush2.msra.mxu1 %v8210_v50  ;;  %v12788_v50 = vld [vmem:[#allocation86_spill] sm:$0xff] }
 0x20a   : > { %2926 = vmatprep.subr.mxu0 %v12783_v57  ;;  %3106 = vmatprep.subr.mxu1 %v8224_v22  ;;  %v12789_v22 = vld [vmem:[#allocation88_spill] sm:$0xff] }
 0x20b   : > { %2929 = vmatpush2.msra.mxu0 %v12784_v42  ;;  %3108 = vmatpush2.msra.mxu1 %v8251_v61  ;;  %v12790_v61 = vld [vmem:[#allocation90_spill] sm:$0xff] }
 0x20c   : > { %2932 = vmatprep.subr.mxu0 %v12785_v1  ;;  %3110 = vmatprep.subr.mxu1 %v8289_v3  ;;  %v12791_v3 = vld [vmem:[#allocation79_spill] sm:$0xff] }
 0x20d   : > { %2935 = vmatpush2.msra.mxu0 %v12786_v27  ;;  %3112 = vmatpush2.msra.mxu1 %v8314_v9  ;;  %v12792_v9 = vld [vmem:[#allocation81_spill] sm:$0xff] }
 0x20e   : > { %2938 = vmatprep.subr.mxu0 %v12787_v11  ;;  %3114 = vmatprep.subr.mxu1 %v8326_v19  ;;  %v12793_v19 = vld [vmem:[#allocation96_spill] sm:$0xff] }
 0x20f   : > { %2941 = vmatpush2.msra.mxu0 %v12788_v50  ;;  %3116 = vmatpush2.msra.mxu1 %v8340_v46  ;;  %v12794_v46 = vld [vmem:[#allocation102_spill] sm:$0xff] }
 0x210   : > { %2944 = vmatprep.subr.mxu0 %v12789_v22  ;;  %3118 = vmatprep.subr.mxu1 %v8350_v2  ;;  %v12795_v2 = vld [vmem:[#allocation104_spill] sm:$0xff] }
 0x211   : > { %2947 = vmatpush2.msra.mxu0 %v12790_v61  ;;  %3120 = vmatpush2.msra.mxu1 %v8362_v30 }
 0x212   : > { %2950 = vmatprep.subr.mxu0 %v12791_v3  ;;  %3122 = vmatprep.subr.mxu1 %v8374_v58 }
 0x213   : > { %2953 = vmatpush2.msra.mxu0 %v12792_v9  ;;  %3124 = vmatpush2.msra.mxu1 %v8382_v62 }
 0x214   : > { %2956 = vmatprep.subr.mxu0 %v12793_v19  ;;  %3126 = vmatprep.subr.mxu1 %v8394_v26 }
 0x215   : > { %2959 = vmatpush2.msra.mxu0 %v12794_v46  ;;  %3128 = vmatpush2.msra.mxu1 %v8402_v4 }
 0x216   : > { %2962 = vmatprep.subr.mxu0 %v12795_v2  ;;  %3130 = vmatprep.subr.mxu1 %v8410_v63 }
 0x217   : > { %2965 = vmatpush2.msra.mxu0 %v8380_v14  ;;  %3132 = vmatpush2.msra.mxu1 %v8420_v34  ;;  %v12796_v14 = vld [vmem:[#allocation113_spill] sm:$0xff] }
 0x218   : > { %2968 = vmatprep.subr.mxu0 %v8392_v41  ;;  %3134 = vmatprep.subr.mxu1 %v8428_v38 }
 0x219   : > { %2971 = vmatpush2.msra.mxu0 %v8400_v5  ;;  %3136 = vmatpush2.msra.mxu1 %v8438_v47  ;;  %v12797_v5 = vld [vmem:[#allocation111_spill] sm:$0xff] }
 0x21a   : > { %2974 = vmatprep.subr.mxu0 %v8408_v39  ;;  %3138 = vmatprep.subr.mxu1 %v8448_v51 }
 0x21b   : > { %2977 = vmatpush2.msra.mxu0 %v8418_v60  ;;  %3140 = vmatpush2.msra.mxu1 %v8458_v55 }
 0x21c   : > { %2980 = vmatprep.subr.mxu0 %v8426_v13  ;;  %3148 = vmatmul.mubr.f32.vlgmr.msra.gmra.mxu1 %v12796_v14  ;;  %v12805_v14 = vld [vmem:[#allocation21_spill] sm:$0xff] }
 0x21d   : > { %3420 = vmatprep.subr.mxu1 %v7587_v10  ;;  %2983 = vmatpush2.msra.mxu0 %v8436_v44  ;;  %v12798_v10 = vld [vmem:[#allocation110_spill] sm:$0xff] }
 0x21e   : > { %3422 = vmatpush1.msra.mxu1 %v7595_v20  ;;  %3548 = vmatprep.mubr.f32.mxu1 %v12797_v5  ;;  %v12799_v20 = vand.u32 4294901760, %v12718_v28  ;;  %v12809_v28 = vld [vmem:[#allocation25_spill] sm:$0xff] }
 0x21f   : > { %2986 = vmatprep.subr.mxu0 %v8446_v33  ;;  %3424 = vmatprep.subr.mxu1 %v7600_v25  ;;  %v12800_v25 = vld [vmem:[#allocation11_spill] sm:$0xff] }
 0x220   : > { %2989 = vmatpush2.msra.mxu0 %v8456_v18  ;;  %3426 = vmatpush1.msra.mxu1 %v7608_v35  ;;  %v12801_v35 = vand.u32 4294901760, %v12800_v25  ;;  %v12812_v25 = vld [vmem:[#allocation26_spill] sm:$0xff]  ;;  %v793_v18 = vld [vmem:[#allocation2 + $0x1e8] sm:$0xff] }
 0x221   : > { %2992 = vmatprep.subr.mxu0 %v8466_v15  ;;  %3428 = vmatprep.subr.mxu1 %v12713_v29  ;;  %v12802_v29 = vld [vmem:[#allocation19_spill] sm:$0xff]  ;;  %v800_v15 = vld [vmem:[#allocation2 + $0x220] sm:$0xff] }
 0x222   : > { %2995 = vmatpush2.msra.mxu0 %v8474_v54  ;;  %3430 = vmatpush1.msra.mxu1 %v12714_v16  ;;  %v12803_v16 = vld [vmem:[#allocation12_spill] sm:$0xff] }
 0x223   : > { %2998 = vmatprep.subr.mxu0 %v8482_v59  ;;  %3432 = vmatprep.subr.mxu1 %v12715_v6  ;;  %v12804_v6 = vand.u32 4294901760, %v12803_v16  ;;  %v12814_v59 = vld [vmem:[#allocation33_spill] sm:$0xff] }
 0x224   : > { %3001 = vmatpush2.msra.mxu0 %v8490_v32  ;;  %3434 = vmatpush1.msra.mxu1 %v12716_v12  ;;  %v12806_v12 = vld [vmem:[#allocation14_spill] sm:$0xff] }
 0x225   : > { %3007 = vmatmul.mubr.f32.vlgmr.msra.gmra.mxu0 %v12798_v10  ;;  %3157 = vmatprep.subr.mxu0 %v12799_v20  ;;  %v12807_v32 = vand.u32 4294901760, %v12806_v12  ;;  %v12808_v10 = vld [vmem:[#allocation23_spill] sm:$0xff]  ;;  %v12810_v20 = vand.u32 4294901760, %v12809_v28  ;;  %v12822_v28 = vld [vmem:[#allocation93_spill] sm:$0xff] }
 0x226   : > { %3436 = vmatprep.subr.mxu1 %v12719_v48  ;;  %3161 = vmatpush1.msra.mxu0 %v12801_v35  ;;  %v12811_v48 = vld [vmem:[#allocation30_spill] sm:$0xff]  ;;  %v12813_v35 = vand.u32 4294901760, %v12812_v25  ;;  %v12825_v25 = vld [vmem:[#allocation8_spill] sm:$0xff] }
 0x227   : > { %3411 = vmatprep.mubr.f32.mxu0 %v12797_v5  ;;  %3438 = vmatpush1.msra.mxu1 %v12802_v29  ;;  %v12815_v29 = vld [vmem:[#allocation20_spill] sm:$0xff] }
 0x228   : > { %3165 = vmatprep.subr.mxu0 %v12804_v6  ;;  %3440 = vmatprep.subr.mxu1 %v12805_v14  ;;  %v12816_v16 = vand.u32 4294901760, %v12815_v29  ;;  %v12817_v6 = vld [vmem:[#allocation35_spill] sm:$0xff]  ;;  %v12818_v14 = vld [vmem:[#allocation22_spill] sm:$0xff]  ;;  %v12828_v29 = vld [vmem:[#allocation97_spill] sm:$0xff] }
 0x229   : > { %3169 = vmatpush1.msra.mxu0 %v12807_v32  ;;  %3442 = vmatpush1.msra.mxu1 %v12808_v10  ;;  %v12819_v12 = vand.u32 4294901760, %v12818_v14  ;;  %v12820_v32 = vld [vmem:[#allocation100_spill] sm:$0xff]  ;;  %v12821_v10 = vand.u32 4294901760, %v12735_v31  ;;  %v12831_v14 = vld [vmem:[#allocation101_spill] sm:$0xff] }
 0x22a   : > { %3173 = vmatprep.subr.mxu0 %v12810_v20  ;;  %3444 = vmatprep.subr.mxu1 %v12811_v48  ;;  %v12823_v20 = vld [vmem:[#allocation31_spill] sm:$0xff] }
 0x22b   : > { %3177 = vmatpush1.msra.mxu0 %v12813_v35  ;;  %3446 = vmatpush1.msra.mxu1 %v12814_v59  ;;  %v12824_v48 = vand.u32 4294901760, %v12823_v20  ;;  %v12826_v59 = vld [vmem:[#allocation34_spill] sm:$0xff]  ;;  %v12837_v20 = vld [vmem:[#allocation107_spill] sm:$0xff] }
 0x22c   : > { %3181 = vmatprep.subr.mxu0 %v12816_v16  ;;  %3448 = vmatprep.subr.mxu1 %v12817_v6  ;;  %v12827_v35 = vand.u32 4294901760, %v12826_v59  ;;  %v12829_v16 = vld [vmem:[#allocation75_spill] sm:$0xff]  ;;  %v12840_v59 = vld [vmem:[#allocation9_spill] sm:$0xff] }
 0x22d   : > { %3185 = vmatpush1.msra.mxu0 %v12819_v12  ;;  %3450 = vmatpush1.msra.mxu1 %v12820_v32  ;;  %v12830_v6 = vand.u32 4294901760, %v12829_v16  ;;  %v12832_v12 = vld [vmem:[#allocation85_spill] sm:$0xff]  ;;  %v12834_v32 = vld [vmem:[#allocation103_spill] sm:$0xff]  ;;  %v12843_v16 = vld [vmem:[#allocation28_spill] sm:$0xff] }
 0x22e   : > { %3189 = vmatprep.subr.mxu0 %v12821_v10  ;;  %3452 = vmatprep.subr.mxu1 %v12822_v28  ;;  %v12833_v31 = vand.u32 4294901760, %v12832_v12  ;;  %v12835_v10 = vld [vmem:[#allocation89_spill] sm:$0xff]  ;;  %v12846_v12 = vld [vmem:[#allocation32_spill] sm:$0xff] }
 0x22f   : > { %3193 = vmatpush1.msra.mxu0 %v12824_v48  ;;  %3454 = vmatpush1.msra.mxu1 %v12825_v25  ;;  %v12836_v28 = vand.u32 4294901760, %v12835_v10  ;;  %v12838_v48 = vld [vmem:[#allocation91_spill] sm:$0xff]  ;;  %v857_v10 = vld [vmem:[#allocation2 + $0x3e8] sm:$0xff] }
 0x230   : > { %3197 = vmatprep.subr.mxu0 %v12827_v35  ;;  %3456 = vmatprep.subr.mxu1 %v12828_v29  ;;  %v12839_v25 = vand.u32 4294901760, %v12838_v48  ;;  %v12841_v35 = vld [vmem:[#allocation95_spill] sm:$0xff]  ;;  %v12850_v48 = vld [vmem:[#allocation108_spill] sm:$0xff] }
 0x231   : > { %3201 = vmatpush1.msra.mxu0 %v12830_v6  ;;  %3458 = vmatpush1.msra.mxu1 %v12831_v14  ;;  %v12842_v29 = vand.u32 4294901760, %v12841_v35  ;;  %v12844_v6 = vld [vmem:[#allocation98_spill] sm:$0xff]  ;;  %v12853_v35 = vld [vmem:[#allocation27_spill] sm:$0xff] }
 0x232   : > { %3205 = vmatprep.subr.mxu0 %v12833_v31  ;;  %3460 = vmatprep.subr.mxu1 %v12834_v32  ;;  %v12845_v14 = vand.u32 4294901760, %v12844_v6  ;;  %v12847_v31 = vld [vmem:[#allocation105_spill] sm:$0xff]  ;;  %v12856_v6 = vand.u32 4294901760, %v12758_v17 }
 0x233   : > { %3209 = vmatpush1.msra.mxu0 %v12836_v28  ;;  %3462 = vmatpush1.msra.mxu1 %v12837_v20  ;;  %v12848_v32 = vand.u32 4294901760, %v12847_v31  ;;  %v856_v28 = vld [vmem:[#allocation2 + $0x3e0] sm:$0xff]  ;;  %v12849_v20 = vld [vmem:[#allocation39_spill] sm:$0xff]  ;;  %v12859_v31 = vld [vmem:[#allocation37_spill] sm:$0xff] }
 0x234   : > { %3213 = vmatprep.subr.mxu0 %v12839_v25  ;;  %3464 = vmatprep.subr.mxu1 %v12840_v59  ;;  %v12851_v25 = vand.u32 4294901760, %v12850_v48  ;;  %v12852_v59 = vld [vmem:[#allocation42_spill] sm:$0xff] }
 0x235   : > { %3217 = vmatpush1.msra.mxu0 %v12842_v29  ;;  %3466 = vmatpush1.msra.mxu1 %v12843_v16  ;;  %v12854_v29 = vand.u32 4294901760, %v12853_v35  ;;  %v12855_v16 = vld [vmem:[#allocation44_spill] sm:$0xff]  ;;  %v12862_v48 = vld [vmem:[#allocation38_spill] sm:$0xff] }
 0x236   : > { %3221 = vmatprep.subr.mxu0 %v12845_v14  ;;  %3468 = vmatprep.subr.mxu1 %v12846_v12  ;;  %v8749_v14 = vand.u32 4294901760, %v857_v10  ;;  %v8751_v12 = vand.u32 4294901760, %v856_v28  ;;  %v12864_v35 = vld [vmem:[#allocation40_spill] sm:$0xff] }
 0x237   : > { %3225 = vmatpush1.msra.mxu0 %v12848_v32  ;;  %3470 = vmatpush1.msra.mxu1 %v12849_v20  ;;  %v12860_v32 = vld [vmem:[#allocation36_spill] sm:$0xff] }
 0x238   : > { %3229 = vmatprep.subr.mxu0 %v12851_v25  ;;  %3472 = vmatprep.subr.mxu1 %v12852_v59  ;;  %12857 = vst [vmem:[#allocation15_spill] sm:$0xff] %v8749_v14  ;;  %12858 = vst [vmem:[#allocation16_spill] sm:$0xff] %v8751_v12  ;;  %v12861_v20 = vand.u32 4294901760, %v12860_v32  ;;  %v12863_v25 = vand.u32 4294901760, %v12762_v24  ;;  %v849_v59 = vld [vmem:[#allocation2 + $0x3a8] sm:$0xff]  ;;  %v8769_v32 = vsub.f32 %v856_v28, %v8751_v12  ;;  %v1521_v12 = vpop.f32.mrf.mxu1 }
 0x239   : > { %3233 = vmatpush1.msra.mxu0 %v12854_v29  ;;  %3474 = vmatpush1.msra.mxu1 %v12855_v16  ;;  %v12865_v29 = vld [vmem:[#allocation43_spill] sm:$0xff]  ;;  %v12867_v16 = vld [vmem:[#allocation57_spill] sm:$0xff] }
 0x23a   : > { %3237 = vmatprep.subr.mxu0 %v12856_v6  ;;  %3476 = vmatprep.subr.mxu1 %v12859_v31  ;;  %v12866_v17 = vand.u32 4294901760, %v12865_v29  ;;  %v12868_v6 = vand.u32 4294901760, %v12766_v56  ;;  %v8766_v31 = vsub.f32 %v857_v10, %v8749_v14  ;;  %12870 = vst [vmem:[#allocation17_spill] sm:$0xff] %v8769_v32  ;;  %v12871_v24 = vld [vmem:[#allocation49_spill] sm:$0xff]  ;;  %v12875_v29 = vand.u32 4294901760, %v12769_v49  ;;  %v12876_v56 = vld [vmem:[#allocation60_spill] sm:$0xff] }
 0x23b   : > { %3241 = vmatpush1.msra.mxu0 %v12861_v20  ;;  %3478 = vmatpush1.msra.mxu1 %v12862_v48  ;;  %v848_v20 = vld [vmem:[#allocation2 + $0x3a0] sm:$0xff]  ;;  %v12872_v48 = vand.u32 4294901760, %v12768_v40  ;;  %v12877_v10 = vand.u32 4294901760, %v12771_v53  ;;  %v12880_v40 = vand.u32 4294901760, %v12772_v0  ;;  %v12881_v49 = vld [vmem:[#allocation53_spill] sm:$0xff] }
 0x23c   : > { %3245 = vmatprep.subr.mxu0 %v12863_v25  ;;  %3480 = vmatprep.subr.mxu1 %v12864_v35  ;;  %12869 = vst [vmem:[#allocation13_spill] sm:$0xff] %v8766_v31  ;;  %v8774_v25 = vand.u32 4294901760, %v849_v59  ;;  %v12874_v35 = vld [vmem:[#allocation50_spill] sm:$0xff]  ;;  %v8782_v28 = vand.u32 4294901760, %v848_v20 }
 0x23d   : > { %3249 = vmatpush1.msra.mxu0 %v12866_v17  ;;  %3482 = vmatpush1.msra.mxu1 %v12867_v16  ;;  %v841_v17 = vld [vmem:[#allocation2 + $0x368] sm:$0xff] }
 0x23e   : > { %3253 = vmatprep.subr.mxu0 %v12868_v6  ;;  %3484 = vmatprep.subr.mxu1 %v12871_v24  ;;  %12873 = vst [vmem:[#allocation10_spill] sm:$0xff] %v8774_v25  ;;  %12878 = vst [vmem:[#allocation18_spill] sm:$0xff] %v8782_v28  ;;  %v12879_v16 = vld [vmem:[#allocation61_spill] sm:$0xff]  ;;  %v11751_v6 = vand.u32 4294901760, %v8766_v31  ;;  %v8793_v53 = vsub.f32 %v849_v59, %v8774_v25  ;;  %v8798_v0 = vand.u32 4294901760, %v841_v17  ;;  %v12888_v24 = vand.u32 4294901760, %v12776_v45 }
 0x23f   : > { %3257 = vmatpush1.msra.mxu0 %v12872_v48  ;;  %3486 = vmatpush2.msra.mxu1 %v12874_v35  ;;  %v840_v48 = vld [vmem:[#allocation2 + $0x360] sm:$0xff]  ;;  %v12882_v35 = vand.u32 4294901760, %v12774_v43  ;;  %v8804_v43 = vsub.f32 %v848_v20, %v8782_v28  ;;  %v825_v59 = vld [vmem:[#allocation2 + $0x2e8] sm:$0xff]  ;;  %v12899_v25 = vand.u32 4294901760, %v12779_v37 }
 0x240   : > { %3261 = vmatprep.subr.mxu0 %v12875_v29  ;;  %3488 = vmatprep.subr.mxu1 %v12876_v56  ;;  %12883 = vst [vmem:[#allocation24_spill] sm:$0xff] %v8793_v53  ;;  %v12884_v29 = vld [vmem:[#allocation54_spill] sm:$0xff]  ;;  %v12885_v56 = vand.u32 4294901760, %v12775_v8  ;;  %12886 = vst [vmem:[#allocation29_spill] sm:$0xff] %v8798_v0  ;;  %v12892_v8 = vand.u32 4294901760, %v12777_v21  ;;  %v824_v20 = vld [vmem:[#allocation2 + $0x2e0] sm:$0xff] }
 0x241   : > { %3265 = vmatpush1.msra.mxu0 %v12877_v10  ;;  %3490 = vmatpush2.msra.mxu1 %v12879_v16  ;;  %v833_v10 = vld [vmem:[#allocation2 + $0x328] sm:$0xff]  ;;  %v832_v16 = vld [vmem:[#allocation2 + $0x320] sm:$0xff]  ;;  %12889 = vst [vmem:[#allocation41_spill] sm:$0xff] %v8804_v43 }
 0x242   : > { %3269 = vmatprep.subr.mxu0 %v12880_v40  ;;  %3492 = vmatprep.subr.mxu1 %v12881_v49  ;;  %v12887_v40 = vld [vmem:[#allocation56_spill] sm:$0xff]  ;;  %v8806_v49 = vand.u32 4294901760, %v840_v48  ;;  %v8825_v21 = vand.u32 4294901760, %v833_v10  ;;  %v817_v28 = vld [vmem:[#allocation2 + $0x2a8] sm:$0xff] }
 0x243   : > { %3273 = vmatpush1.msra.mxu0 %v12882_v35  ;;  %3494 = vmatpush2.msra.mxu1 %v12884_v29  ;;  %v12891_v35 = vld [vmem:[#allocation62_spill] sm:$0xff]  ;;  %v8814_v29 = vsub.f32 %v8766_v31, %v11751_v6  ;;  %v816_v6 = vld [vmem:[#allocation2 + $0x2a0] sm:$0xff]  ;;  %v8851_v54 = vand.u32 4294901760, %v817_v28 }
 0x244   : > { %3277 = vmatprep.subr.mxu0 %v12885_v56  ;;  %3496 = vmatprep.subr.mxu1 %v12887_v40  ;;  %12890 = vst [vmem:[#allocation45_spill] sm:$0xff] %v8806_v49  ;;  %v12893_v56 = vand.u32 4294901760, %v8769_v32  ;;  %v12895_v40 = vand.u32 4294901760, %v12778_v7  ;;  %12896 = vst [vmem:[#allocation48_spill] sm:$0xff] %v8825_v21  ;;  %v12898_v31 = vld [vmem:[#allocation64_spill] sm:$0xff]  ;;  %v809_v7 = vld [vmem:[#allocation2 + $0x268] sm:$0xff]  ;;  %v8842_v14 = vsub.f32 %v840_v48, %v8806_v49 }
 0x245   : > { %3281 = vmatpush1.msra.mxu0 %v12888_v24  ;;  %3498 = vmatpush2.msra.mxu1 %v12891_v35  ;;  %v12894_v24 = vld [vmem:[#allocation63_spill] sm:$0xff]  ;;  %v12903_v35 = vand.u32 4294901760, %v12780_v36  ;;  %v808_v37 = vld [vmem:[#allocation2 + $0x260] sm:$0xff]  ;;  %12908 = vst [vmem:[#allocation59_spill] sm:$0xff] %v8851_v54  ;;  %v8853_v36 = vand.u32 4294901760, %v816_v6  ;;  %v12910_v48 = vld [vmem:[#allocation69_spill] sm:$0xff] }
 0x246   : > { %3285 = vmatprep.subr.mxu0 %v12892_v8  ;;  %v8819_v45 = vsub.f32 %v8769_v32, %v12893_v56  ;;  %3500 = vmatprep.subr.mxu1 %v12894_v24  ;;  %v8827_v8 = vand.u32 4294901760, %v832_v16  ;;  %v8833_v56 = vsub.f32 %v841_v17, %v8798_v0  ;;  %v8835_v24 = vand.u32 4294901760, %v825_v59  ;;  %v12902_v32 = vld [vmem:[#allocation65_spill] sm:$0xff]  ;;  %12904 = vst [vmem:[#allocation47_spill] sm:$0xff] %v8842_v14 }
 0x247   : > { %3289 = vmatpush2.msra.mxu0 %v12895_v40  ;;  %3502 = vmatpush2.msra.mxu1 %v12898_v31  ;;  %v1128_v40 = vpop.f32.mrf.mxu0  ;;  %v8844_v31 = vand.u32 4294901760, %v824_v20  ;;  %v12907_v17 = vand.u32 4294901760, %v12781_v52  ;;  %12909 = vst [vmem:[#allocation51_spill] sm:$0xff] %v8853_v36  ;;  %v12911_v49 = vand.u32 4294901760, %v12782_v23  ;;  %v8869_v0 = vand.u32 4294901760, %v809_v7 }
 0x248   : > { %12897 = vst [vmem:[#allocation52_spill] sm:$0xff] %v8827_v8  ;;  %3293 = vmatprep.subr.mxu0 %v12899_v25  ;;  %12900 = vst [vmem:[#allocation55_spill] sm:$0xff] %v8833_v56  ;;  %3504 = vmatprep.subr.mxu1 %v12902_v32  ;;  %v12906_v25 = vld [vmem:[#allocation66_spill] sm:$0xff]  ;;  %v8867_v32 = vsub.f32 %v832_v16, %v8827_v8  ;;  %v8871_v33 = vadd.f32 %v1521_v12, %v1128_v40  ;;  %v12917_v23 = vand.u32 4294901760, %v12783_v57  ;;  %v1523_v57 = vpop.f32.mrf.mxu1 }
 0x249   : > { %12901 = vst [vmem:[#allocation46_spill] sm:$0xff] %v8835_v24  ;;  %3297 = vmatpush2.msra.mxu0 %v12903_v35  ;;  %12905 = vst [vmem:[#allocation58_spill] sm:$0xff] %v8844_v31  ;;  %3506 = vmatpush2.msra.mxu1 %v12906_v25  ;;  %v801_v35 = vld [vmem:[#allocation2 + $0x228] sm:$0xff]  ;;  %v12912_v25 = vand.u32 4294901760, %v8793_v53  ;;  %v1130_v16 = vpop.f32.mrf.mxu0  ;;  %v12921_v8 = vand.u32 4294901760, %v12784_v42  ;;  %v12922_v12 = vand.u32 4294901760, %v8804_v43  ;;  %v8900_v42 = vsub.f32 %v817_v28, %v8851_v54 }
 0x24a   : > { %3301 = vmatprep.subr.mxu0 %v12907_v17  ;;  %3508 = vmatprep.subr.mxu1 %v12910_v48  ;;  %v8864_v17 = vsub.f32 %v833_v10, %v8825_v21  ;;  %12914 = vst [vmem:[#allocation68_spill] sm:$0xff] %v8867_v32  ;;  %12915 = vst [vmem:[#allocation70_spill] sm:$0xff] %v8869_v0  ;;  %v12916_v48 = vld [vmem:[#allocation71_spill] sm:$0xff]  ;;  %v8880_v10 = vand.u32 4294901760, %v808_v37  ;;  %v12935_v54 = vand.u32 4294901760, %v12787_v11  ;;  %v792_v28 = vld [vmem:[#allocation2 + $0x1e0] sm:$0xff] }
 0x24b   : > { %3305 = vmatpush2.msra.mxu0 %v12911_v49  ;;  %v8861_v52 = vsub.f32 %v8793_v53, %v12912_v25  ;;  %3510 = vmatpush2.msra.mxu1 %v12916_v48  ;;  %v8878_v25 = vsub.f32 %v825_v59, %v8835_v24  ;;  %v12920_v53 = vld [vmem:[#allocation73_spill] sm:$0xff]  ;;  %v8888_v40 = vsub.f32 %v8804_v43, %v12922_v12  ;;  %v8894_v59 = vand.u32 4294901760, %v801_v35 }
 0x24c   : > { %12913 = vst [vmem:[#allocation67_spill] sm:$0xff] %v8864_v17  ;;  %3309 = vmatprep.subr.mxu0 %v12917_v23  ;;  %12919 = vst [vmem:[#allocation74_spill] sm:$0xff] %v8880_v10  ;;  %3512 = vmatprep.subr.mxu1 %v12920_v53  ;;  %v8892_v48 = vsub.f32 %v824_v20, %v8844_v31  ;;  %v12925_v23 = vld [vmem:[#allocation77_spill] sm:$0xff]  ;;  %v12926_v49 = vand.u32 4294901760, %v12785_v1  ;;  %v8903_v53 = vsub.f32 %v816_v6, %v8853_v36  ;;  %v12931_v20 = vld [vmem:[#allocation92_spill] sm:$0xff] }
 0x24d   : > { %12918 = vst [vmem:[#allocation72_spill] sm:$0xff] %v8878_v25  ;;  %3313 = vmatpush2.msra.mxu0 %v12921_v8  ;;  %12924 = vst [vmem:[#allocation78_spill] sm:$0xff] %v8894_v59  ;;  %3514 = vmatpush2.msra.mxu1 %v12925_v23  ;;  %v8905_v8 = vand.u32 4294901760, %v800_v15  ;;  %v8907_v12 = vand.u32 4294901760, %v793_v18  ;;  %v12932_v43 = vand.u32 4294901760, %v12786_v27  ;;  %v8918_v6 = vadd.f32 %v1523_v57, %v1130_v16  ;;  %v12934_v36 = vld [vmem:[#allocation94_spill] sm:$0xff] }
 0x24e   : > { %12923 = vst [vmem:[#allocation76_spill] sm:$0xff] %v8892_v48  ;;  %3317 = vmatprep.subr.mxu0 %v12926_v49  ;;  %12927 = vst [vmem:[#allocation80_spill] sm:$0xff] %v8900_v42  ;;  %3516 = vmatprep.subr.mxu1 %v12931_v20  ;;  %v8916_v49 = vsub.f32 %v809_v7, %v8869_v0  ;;  %v12936_v20 = vand.u32 4294901760, %v8833_v56  ;;  %v8930_v23 = vsub.f32 %v808_v37, %v8880_v10  ;;  %v12938_v7 = vld [vmem:[#allocation82_spill] sm:$0xff]  ;;  %v785_v37 = vld [vmem:[#allocation2 + $0x1a8] sm:$0xff] }
 0x24f   : > { %12928 = vst [vmem:[#allocation83_spill] sm:$0xff] %v8903_v53  ;;  %12929 = vst [vmem:[#allocation84_spill] sm:$0xff] %v8905_v8  ;;  %3321 = vmatpush2.msra.mxu0 %v12932_v43  ;;  %3518 = vmatpush2.msra.mxu1 %v12934_v36  ;;  %v12939_v16 = vand.u32 4294901760, %v12788_v50  ;;  %v12940_v11 = vand.u32 4294901760, %v8842_v14  ;;  %v12942_v43 = vld [vmem:[#allocation99_spill] sm:$0xff]  ;;  %v8951_v36 = vsub.f32 %v800_v15, %v8905_v8  ;;  %v784_v57 = vld [vmem:[#allocation2 + $0x1a0] sm:$0xff] }
 0x250   : > { %12930 = vst [vmem:[#allocation86_spill] sm:$0xff] %v8907_v12  ;;  %12933 = vst [vmem:[#allocation88_spill] sm:$0xff] %v8916_v49  ;;  %3325 = vmatprep.subr.mxu0 %v12935_v54  ;;  %v8926_v27 = vsub.f32 %v8833_v56, %v12936_v20  ;;  %3520 = vmatprep.subr.mxu1 %v12938_v7  ;;  %v8943_v20 = vsub.f32 %v801_v35, %v8894_v59  ;;  %v12943_v7 = vand.u32 4294901760, %v12789_v22  ;;  %v12946_v1 = vld [vmem:[#allocation87_spill] sm:$0xff] }
 0x251   : > { %12937 = vst [vmem:[#allocation90_spill] sm:$0xff] %v8930_v23  ;;  %3329 = vmatpush2.msra.mxu0 %v12939_v16  ;;  %v8939_v54 = vsub.f32 %v8842_v14, %v12940_v11  ;;  %3522 = vmatpush2.msra.mxu1 %v12942_v43  ;;  %12944 = vst [vmem:[#allocation81_spill] sm:$0xff] %v8951_v36  ;;  %v8954_v11 = vsub.f32 %v793_v18, %v8907_v12  ;;  %v12947_v35 = vand.u32 4294901760, %v12790_v61 }
 0x252   : > { %12941 = vst [vmem:[#allocation79_spill] sm:$0xff] %v8943_v20  ;;  %3333 = vmatprep.subr.mxu0 %v12943_v7  ;;  %3524 = vmatprep.subr.mxu1 %v12946_v1  ;;  %v12948_v43 = vand.u32 4294901760, %v8864_v17  ;;  %v12949_v7 = vand.u32 4294901760, %v8867_v32  ;;  %v8970_v18 = vand.u32 4294901760, %v792_v28  ;;  %v12951_v1 = vand.u32 4294901760, %v12791_v3 }
 0x253   : > { %12945 = vst [vmem:[#allocation96_spill] sm:$0xff] %v8954_v11  ;;  %3337 = vmatpush2.msra.mxu0 %v12947_v35  ;;  %3526 = vmatpush2.msra.mxu1 %v8362_v30  ;;  %v12952_v35 = vand.u32 4294901760, %v8878_v25  ;;  %v12954_v15 = vand.u32 4294901760, %v12792_v9  ;;  %v12955_v3 = vand.u32 4294901760, %v8892_v48  ;;  %v12957_v50 = vand.u32 4294901760, %v12793_v19  ;;  %v769_v19 = vld [vmem:[#allocation2 + $0x128] sm:$0xff] }
 0x254   : > { %v8962_v22 = vsub.f32 %v8864_v17, %v12948_v43  ;;  %v8967_v16 = vsub.f32 %v8867_v32, %v12949_v7  ;;  %12950 = vst [vmem:[#allocation102_spill] sm:$0xff] %v8970_v18  ;;  %3341 = vmatprep.subr.mxu0 %v12951_v1  ;;  %v8982_v7 = vand.u32 4294901760, %v785_v37  ;;  %3528 = vmatprep.subr.mxu1 %v8374_v58  ;;  %v12958_v9 = vand.u32 4294901760, %v8900_v42  ;;  %v1724_v32 = vpop.f32.mrf.mxu0  ;;  %v737_v17 = vld [vmem:[#allocation2 + $0x28] sm:$0xff] }
 0x255   : > { %v8979_v43 = vsub.f32 %v8878_v25, %v12952_v35  ;;  %3345 = vmatpush2.msra.mxu0 %v12954_v15  ;;  %v8991_v1 = vsub.f32 %v8892_v48, %v12955_v3  ;;  %v8994_v35 = vand.u32 4294901760, %v784_v57  ;;  %v777_v25 = vld [vmem:[#allocation2 + $0x168] sm:$0xff]  ;;  %3530 = vmatpush2.msra.mxu1 %v8382_v62  ;;  %v12959_v15 = vand.u32 4294901760, %v8903_v53  ;;  %v776_v48 = vld [vmem:[#allocation2 + $0x160] sm:$0xff] }
 0x256   : > { %12953 = vst [vmem:[#allocation104_spill] sm:$0xff] %v8982_v7  ;;  %3349 = vmatprep.subr.mxu0 %v12957_v50  ;;  %v9002_v58 = vsub.f32 %v8900_v42, %v12958_v9  ;;  %3532 = vmatprep.subr.mxu1 %v8394_v26  ;;  %v12960_v62 = vand.u32 4294901760, %v12794_v46  ;;  %v12961_v9 = vand.u32 4294901760, %v8916_v49  ;;  %v9022_v30 = vsub.f32 %v792_v28, %v8970_v18  ;;  %v768_v28 = vld [vmem:[#allocation2 + $0x120] sm:$0xff] }
 0x257   : > { %12956 = vst [vmem:[#allocation11_spill] sm:$0xff] %v8994_v35  ;;  %v9007_v3 = vsub.f32 %v8903_v53, %v12959_v15  ;;  %3534 = vmatpush2.msra.mxu1 %v8402_v4  ;;  %v12963_v61 = vand.u32 4294901760, %v12795_v2  ;;  %v12964_v26 = vand.u32 4294901760, %v8930_v23  ;;  %v9034_v50 = vsub.f32 %v785_v37, %v8982_v7  ;;  %v12967_v4 = vld [vmem:[#allocation106_spill] sm:$0xff]  ;;  %v1865_v53 = vpop.f32.mrf.mxu1  ;;  %v760_v42 = vld [vmem:[#allocation2 + $0xe0] sm:$0xff] }
 0x258   : > { %3353 = vmatpush2.msra.mxu0 %v12960_v62  ;;  %v9019_v15 = vsub.f32 %v8916_v49, %v12961_v9  ;;  %12962 = vst [vmem:[#allocation19_spill] sm:$0xff] %v9022_v30  ;;  %v9036_v9 = vand.u32 4294901760, %v777_v25  ;;  %3536 = vmatprep.subr.mxu1 %v8410_v63  ;;  %v12968_v49 = vand.u32 4294901760, %v12967_v4  ;;  %v9050_v37 = vand.u32 4294901760, %v776_v48 }
 0x259   : > { %3357 = vmatprep.subr.mxu0 %v12963_v61  ;;  %v9031_v62 = vsub.f32 %v8930_v23, %v12964_v26  ;;  %12965 = vst [vmem:[#allocation12_spill] sm:$0xff] %v9034_v50  ;;  %v12969_v61 = vand.u32 4294901760, %v8943_v20  ;;  %v9048_v26 = vsub.f32 %v784_v57, %v8994_v35  ;;  %3538 = vmatpush2.msra.mxu1 %v8420_v34  ;;  %v12972_v23 = vand.u32 4294901760, %v8392_v41  ;;  %v1726_v34 = vpop.f32.mrf.mxu0  ;;  %v12975_v41 = vld [vmem:[#allocation117_spill] sm:$0xff] }
 0x25a   : > { %12966 = vst [vmem:[#allocation21_spill] sm:$0xff] %v9036_v9  ;;  %3361 = vmatpush2.msra.mxu0 %v12968_v49  ;;  %12971 = vst [vmem:[#allocation23_spill] sm:$0xff] %v9050_v37  ;;  %v12973_v4 = vand.u32 4294901760, %v8951_v36  ;;  %3540 = vmatprep.subr.mxu1 %v8428_v38  ;;  %v753_v49 = vld [vmem:[#allocation2 + $0xa8] sm:$0xff]  ;;  %v12981_v63 = vand.u32 4294901760, %v8418_v60  ;;  %v12992_v60 = vand.u32 4294901760, %v8436_v44 }
 0x25b   : > { %v9045_v46 = vsub.f32 %v8943_v20, %v12969_v61  ;;  %12970 = vst [vmem:[#allocation14_spill] sm:$0xff] %v9048_v26  ;;  %3365 = vmatprep.subr.mxu0 %v12972_v23  ;;  %v12974_v61 = vand.u32 4294901760, %v8954_v11  ;;  %v761_v20 = vld [vmem:[#allocation2 + $0xe8] sm:$0xff]  ;;  %v12976_v23 = vand.u32 4294901760, %v12975_v41  ;;  %3542 = vmatpush2.msra.mxu1 %v8438_v47  ;;  %v12987_v41 = vand.u32 4294901760, %v8814_v29  ;;  %v12996_v44 = vld [vmem:[#allocation118_spill] sm:$0xff] }
 0x25c   : > { %v9060_v2 = vsub.f32 %v8951_v36, %v12973_v4  ;;  %v9072_v4 = vand.u32 4294901760, %v769_v19  ;;  %v9074_v36 = vand.u32 4294901760, %v768_v28  ;;  %3544 = vmatprep.subr.mxu1 %v8448_v51  ;;  %v12984_v51 = vand.u32 4294901760, %v8426_v13  ;;  %v745_v38 = vld [vmem:[#allocation2 + $0x68] sm:$0xff] }
 0x25d   : > { %v9065_v57 = vsub.f32 %v8954_v11, %v12974_v61  ;;  %3369 = vmatpush2.msra.mxu0 %v12976_v23  ;;  %v1725_v61 = vadd.f32 %v1724_v32, %v8871_v33  ;;  %v12979_v11 = vand.u32 4294901760, %v8408_v39  ;;  %v9083_v23 = vsub.f32 %v777_v25, %v9036_v9  ;;  %3546 = vmatpush2.msra.mxu1 %v8458_v55  ;;  %v12986_v47 = vld [vmem:[#allocation109_spill] sm:$0xff] }
 0x25e   : > { %12977 = vst [vmem:[#allocation25_spill] sm:$0xff] %v9072_v4  ;;  %12978 = vst [vmem:[#allocation30_spill] sm:$0xff] %v9074_v36  ;;  %v9092_v39 = vsub.f32 %v776_v48, %v9050_v37  ;;  %v9094_v32 = vand.u32 4294901760, %v761_v20  ;;  %v1727_v25 = vadd.f32 %v1726_v34, %v8918_v6  ;;  %v9102_v33 = vand.u32 4294901760, %v760_v42  ;;  %v1867_v48 = vpop.f32.mrf.mxu1  ;;  %3550 = vmatmul.mubr.f32.vlgmr.msra.gmra.mxu1 %v12986_v47 }
 0x25f   : > { %3373 = vmatprep.subr.mxu0 %v12979_v11  ;;  %12980 = vst [vmem:[#allocation26_spill] sm:$0xff] %v9083_v23  ;;  %v752_v11 = vld [vmem:[#allocation2 + $0xa0] sm:$0xff]  ;;  %3706 = vmatprep.subr.mxu1 %v12987_v41  ;;  %v12988_v6 = vand.u32 4294901760, %v9022_v30  ;;  %v9113_v13 = vsub.f32 %v769_v19, %v9072_v4  ;;  %v9116_v34 = vsub.f32 %v768_v28, %v9074_v36  ;;  %v12993_v29 = vand.u32 4294901760, %v8819_v45 }
 0x260   : > { %3377 = vmatpush2.msra.mxu0 %v12981_v63  ;;  %12982 = vst [vmem:[#allocation33_spill] sm:$0xff] %v9092_v39  ;;  %12983 = vst [vmem:[#allocation20_spill] sm:$0xff] %v9094_v32  ;;  %v744_v63 = vld [vmem:[#allocation2 + $0x60] sm:$0xff]  ;;  %v1866_v41 = vadd.f32 %v1865_v53, %v1725_v61  ;;  %v2267_v14 = vpop.f32.mrf.mxu1  ;;  %4086 = vmatprep.mubr.f32.mxu1 %v12797_v5  ;;  %v12997_v45 = vand.u32 4294901760, %v12996_v44  ;;  %v9148_v28 = vand.u32 4294901760, %v745_v38  ;;  %v13001_v56 = vand.u32 4294901760, %v8861_v52 }
 0x261   : > { %3381 = vmatprep.subr.mxu0 %v12984_v51  ;;  %12985 = vst [vmem:[#allocation35_spill] sm:$0xff] %v9102_v33  ;;  %v9110_v55 = vsub.f32 %v9022_v30, %v12988_v6  ;;  %12989 = vst [vmem:[#allocation22_spill] sm:$0xff] %v9113_v13  ;;  %v9118_v51 = vand.u32 4294901760, %v753_v49  ;;  %3712 = vmatpush1.msra.mxu1 %v12993_v29  ;;  %v12994_v6 = vand.u32 4294901760, %v9034_v50  ;;  %v9134_v30 = vand.u32 4294901760, %v752_v11  ;;  %v13002_v5 = vld [vmem:[#allocation119_spill] sm:$0xff] }
 0x262   : > { %12990 = vst [vmem:[#allocation100_spill] sm:$0xff] %v9116_v34  ;;  %3385 = vmatpush2.msra.mxu0 %v12992_v60  ;;  %v2130_v60 = vpop.f32.mrf.mxu0  ;;  %v12998_v29 = vand.u32 4294901760, %v9048_v26  ;;  %13000 = vst [vmem:[#allocation34_spill] sm:$0xff] %v9148_v28  ;;  %3718 = vmatprep.subr.mxu1 %v13001_v56  ;;  %v13003_v44 = vand.u32 4294901760, %v13002_v5  ;;  %v1868_v36 = vadd.f32 %v1867_v48, %v1727_v25  ;;  %v13006_v61 = vand.u32 4294901760, %v8888_v40  ;;  %v13012_v48 = vld [vmem:[#allocation121_spill] sm:$0xff] }
 0x263   : > { %12991 = vst [vmem:[#allocation93_spill] sm:$0xff] %v9118_v51  ;;  %v9131_v19 = vsub.f32 %v9034_v50, %v12994_v6  ;;  %12995 = vst [vmem:[#allocation31_spill] sm:$0xff] %v9134_v30  ;;  %3389 = vmatprep.subr.mxu0 %v12997_v45  ;;  %v9146_v6 = vsub.f32 %v761_v20, %v9094_v32  ;;  %v736_v50 = vld [vmem:[#allocation2 + $0x20] sm:$0xff]  ;;  %v2131_v45 = vadd.f32 %v2130_v60, %v1866_v41 }
 0x264   : > { %v9142_v53 = vsub.f32 %v9048_v26, %v12998_v29  ;;  %3393 = vmatpush2.msra.mxu0 %v13003_v44  ;;  %v9155_v4 = vsub.f32 %v760_v42, %v9102_v33  ;;  %v9157_v29 = vand.u32 4294901760, %v744_v63  ;;  %3724 = vmatpush1.msra.mxu1 %v13006_v61  ;;  %v13007_v20 = vld [vmem:[#allocation120_spill] sm:$0xff]  ;;  %v2132_v32 = vpop.f32.mrf.mxu0  ;;  %v11819_v52 = vand.u32 4294901760, %v9113_v13  ;;  %v2269_v44 = vpop.f32.mrf.mxu1 }
 0x265   : > { %12999 = vst [vmem:[#allocation8_spill] sm:$0xff] %v9146_v6  ;;  %v13008_v26 = vand.u32 4294901760, %v13007_v20  ;;  %v9166_v5 = vsub.f32 %v753_v49, %v9118_v51  ;;  %v9168_v25 = vand.u32 4294901760, %v737_v17  ;;  %v13011_v42 = vand.u32 4294901760, %v8926_v27  ;;  %v13017_v20 = vld [vmem:[#allocation122_spill] sm:$0xff]  ;;  %v13033_v27 = vld [vmem:[#allocation115_spill] sm:$0xff] }
 0x266   : > { %13004 = vst [vmem:[#allocation97_spill] sm:$0xff] %v9155_v4  ;;  %13005 = vst [vmem:[#allocation75_spill] sm:$0xff] %v9157_v29  ;;  %v13013_v40 = vand.u32 4294901760, %v13012_v48  ;;  %v2268_v41 = vadd.f32 %v2267_v14, %v2131_v45  ;;  %v2133_v60 = vadd.f32 %v2132_v32, %v1868_v36  ;;  %v9177_v61 = vand.u32 4294901760, %v736_v50 }
 0x267   : > { %3397 = vmatprep.subr.mxu0 %v13008_v26  ;;  %13009 = vst [vmem:[#allocation101_spill] sm:$0xff] %v9166_v5  ;;  %13010 = vst [vmem:[#allocation85_spill] sm:$0xff] %v9168_v25  ;;  %3730 = vmatprep.subr.mxu1 %v13011_v42  ;;  %v9175_v26 = vsub.f32 %v752_v11, %v9134_v30  ;;  %v13016_v49 = vand.u32 4294901760, %v8939_v54  ;;  %v13018_v56 = vand.u32 4294901760, %v13017_v20  ;;  %v13019_v42 = vand.u32 4294901760, %v9083_v23  ;;  %v13022_v54 = vld [vmem:[#allocation123_spill] sm:$0xff] }
 0x268   : > { %3401 = vmatpush2.msra.mxu0 %v13013_v40  ;;  %13015 = vst [vmem:[#allocation89_spill] sm:$0xff] %v9177_v61  ;;  %v11820_v14 = vand.u32 4294901760, %v9146_v6  ;;  %v9191_v36 = vsub.f32 %v745_v38, %v9148_v28  ;;  %v13021_v32 = vand.u32 4294901760, %v8962_v22  ;;  %v13023_v11 = vand.u32 4294901760, %v13022_v54  ;;  %6124 = vst [vmem:[%s9198_s7] sm:$0xff] %v2268_v41  ;;  %v985_v22 = vld [vmem:[#allocation2 + $0x7e8] sm:$0xff]  ;;  %v976_v54 = vld [vmem:[#allocation2 + $0x7a0] sm:$0xff] }
 0x269   : > { %13014 = vst [vmem:[#allocation103_spill] sm:$0xff] %v9175_v26  ;;  %3736 = vmatpush1.msra.mxu1 %v13016_v49  ;;  %3405 = vmatprep.subr.mxu0 %v13018_v56  ;;  %v9187_v48 = vsub.f32 %v9083_v23, %v13019_v42  ;;  %v2270_v45 = vadd.f32 %v2269_v44, %v2133_v60  ;;  %v13024_v56 = vand.u32 4294901760, %v9092_v39  ;;  %v11825_v38 = vand.u32 4294901760, %v9155_v4  ;;  %v13032_v42 = vld [vmem:[#allocation16_spill] sm:$0xff] }
 0x26a   : > { %13020 = vst [vmem:[#allocation107_spill] sm:$0xff] %v9191_v36  ;;  %3742 = vmatprep.subr.mxu1 %v13021_v32  ;;  %3409 = vmatpush2.msra.mxu0 %v13023_v11  ;;  %v9208_v49 = vsub.f32 %v744_v63, %v9157_v29  ;;  %v13026_v20 = vand.u32 4294901760, %v8967_v16  ;;  %v9217_v41 = vsub.f32 %v9113_v13, %v11819_v52  ;;  %v984_v63 = vld [vmem:[#allocation2 + $0x7e0] sm:$0xff]  ;;  %v13028_v32 = vld [vmem:[#allocation15_spill] sm:$0xff]  ;;  %v13029_v16 = vand.u32 4294901760, %v8979_v43 }
 0x26b   : > { %v9204_v40 = vsub.f32 %v9092_v39, %v13024_v56  ;;  %3413 = vmatmul.mubr.f32.vlgmr.msra.gmra.mxu0 %v12986_v47  ;;  %v9221_v44 = vsub.f32 %v737_v17, %v9168_v25  ;;  %3557 = vmatprep.subr.mxu0 %v13028_v32  ;;  %6125 = vst [vmem:[%s9198_s7 + $0x8] sm:$0xff] %v2270_v45  ;;  %v13030_v11 = vand.u32 4294901760, %v9116_v34  ;;  %v977_v17 = vld [vmem:[#allocation2 + $0x7a8] sm:$0xff]  ;;  %v13042_v13 = vand.u32 4294901760, %v9007_v3 }
 0x26c   : > { %13025 = vst [vmem:[#allocation91_spill] sm:$0xff] %v9208_v49  ;;  %3748 = vmatpush1.msra.mxu1 %v13026_v20  ;;  %v9235_v52 = vsub.f32 %v736_v50, %v9177_v61  ;;  %3559 = vmatpush1.msra.mxu0 %v13032_v42  ;;  %v9243_v45 = vsub.f32 %v9146_v6, %v11820_v14  ;;  %v13035_v50 = vand.u32 4294901760, %v8991_v1  ;;  %v13036_v20 = vld [vmem:[#allocation10_spill] sm:$0xff]  ;;  %v13038_v6 = vand.u32 4294901760, %v9002_v58  ;;  %v968_v14 = vld [vmem:[#allocation2 + $0x760] sm:$0xff]  ;;  %v13043_v39 = vld [vmem:[#allocation29_spill] sm:$0xff] }
 0x26d   : > { %13027 = vst [vmem:[#allocation9_spill] sm:$0xff] %v9221_v44  ;;  %3754 = vmatprep.subr.mxu1 %v13029_v16  ;;  %v9231_v56 = vsub.f32 %v9116_v34, %v13030_v11  ;;  %3689 = vmatprep.mubr.f32.mxu0 %v13033_v27  ;;  %v9246_v11 = vand.u32 4294901760, %v985_v22  ;;  %v9255_v43 = vsub.f32 %v9155_v4, %v11825_v38  ;;  %v9258_v27 = vand.u32 4294901760, %v984_v63  ;;  %v969_v16 = vld [vmem:[#allocation2 + $0x768] sm:$0xff]  ;;  %v13039_v34 = vld [vmem:[#allocation18_spill] sm:$0xff]  ;;  %v13072_v42 = vld [vmem:[#allocation51_spill] sm:$0xff] }
 0x26e   : > { %13031 = vst [vmem:[#allocation95_spill] sm:$0xff] %v9235_v52  ;;  %3760 = vmatpush1.msra.mxu1 %v13035_v50  ;;  %3561 = vmatprep.subr.mxu0 %v13036_v20  ;;  %v13040_v50 = vand.u32 4294901760, %v9166_v5  ;;  %v9270_v4 = vand.u32 4294901760, %v977_v17  ;;  %v961_v38 = vld [vmem:[#allocation2 + $0x728] sm:$0xff]  ;;  %v13046_v23 = vand.u32 4294901760, %v9019_v15  ;;  %v13057_v15 = vand.u32 4294901760, %v9221_v44 }
 0x26f   : > { %13034 = vst [vmem:[#allocation28_spill] sm:$0xff] %v9246_v11  ;;  %13037 = vst [vmem:[#allocation98_spill] sm:$0xff] %v9258_v27  ;;  %3766 = vmatprep.subr.mxu1 %v13038_v6  ;;  %3563 = vmatpush1.msra.mxu0 %v13039_v34  ;;  %v13044_v6 = vand.u32 4294901760, %v9175_v26  ;;  %v13047_v34 = vld [vmem:[#allocation45_spill] sm:$0xff]  ;;  %v13060_v20 = vand.u32 4294901760, %v9060_v2  ;;  %v13082_v32 = vand.u32 4294901760, %v9204_v40 }
 0x270   : > { %v9267_v60 = vsub.f32 %v9166_v5, %v13040_v50  ;;  %13041 = vst [vmem:[#allocation32_spill] sm:$0xff] %v9270_v4  ;;  %3772 = vmatpush1.msra.mxu1 %v13042_v13  ;;  %3565 = vmatprep.subr.mxu0 %v13043_v39  ;;  %v9282_v5 = vand.u32 4294901760, %v976_v54  ;;  %v13048_v13 = vand.u32 4294901760, %v9191_v36  ;;  %v960_v50 = vld [vmem:[#allocation2 + $0x720] sm:$0xff]  ;;  %v13051_v39 = vand.u32 4294901760, %v9031_v62 }
 0x271   : > { %v9279_v1 = vsub.f32 %v9175_v26, %v13044_v6  ;;  %3778 = vmatprep.subr.mxu1 %v13046_v23  ;;  %3567 = vmatpush1.msra.mxu0 %v13047_v34  ;;  %v9294_v6 = vsub.f32 %v985_v22, %v9246_v11  ;;  %v9296_v26 = vand.u32 4294901760, %v969_v16  ;;  %v13052_v23 = vand.u32 4294901760, %v9208_v49  ;;  %v13056_v62 = vld [vmem:[#allocation52_spill] sm:$0xff] }
 0x272   : > { %13045 = vst [vmem:[#allocation105_spill] sm:$0xff] %v9282_v5  ;;  %v9291_v58 = vsub.f32 %v9191_v36, %v13048_v13  ;;  %3784 = vmatpush1.msra.mxu1 %v13051_v39  ;;  %3569 = vmatprep.subr.mxu0 %v8825_v21  ;;  %v9308_v13 = vsub.f32 %v984_v63, %v9258_v27  ;;  %v9310_v22 = vand.u32 4294901760, %v968_v14  ;;  %v953_v36 = vld [vmem:[#allocation2 + $0x6e8] sm:$0xff]  ;;  %v13055_v34 = vand.u32 4294901760, %v9045_v46 }
 0x273   : > { %13049 = vst [vmem:[#allocation39_spill] sm:$0xff] %v9294_v6  ;;  %13050 = vst [vmem:[#allocation108_spill] sm:$0xff] %v9296_v26  ;;  %v9305_v3 = vsub.f32 %v9208_v49, %v13052_v23  ;;  %3571 = vmatpush1.msra.mxu0 %v13056_v62  ;;  %v9319_v21 = vsub.f32 %v9221_v44, %v13057_v15  ;;  %v9322_v23 = vsub.f32 %v977_v17, %v9270_v4  ;;  %v952_v49 = vld [vmem:[#allocation2 + $0x6e0] sm:$0xff]  ;;  %v945_v44 = vld [vmem:[#allocation2 + $0x6a8] sm:$0xff] }
 0x274   : > { %13053 = vst [vmem:[#allocation42_spill] sm:$0xff] %v9308_v13  ;;  %13054 = vst [vmem:[#allocation27_spill] sm:$0xff] %v9310_v22  ;;  %3790 = vmatprep.subr.mxu1 %v13055_v34  ;;  %v9324_v63 = vand.u32 4294901760, %v961_v38  ;;  %3573 = vmatprep.subr.mxu0 %v8835_v24  ;;  %v13061_v34 = vand.u32 4294901760, %v9235_v52  ;;  %v9336_v15 = vsub.f32 %v976_v54, %v9282_v5  ;;  %v9338_v17 = vand.u32 4294901760, %v960_v50  ;;  %v13068_v24 = vld [vmem:[#allocation59_spill] sm:$0xff] }
 0x275   : > { %13058 = vst [vmem:[#allocation44_spill] sm:$0xff] %v9322_v23  ;;  %3796 = vmatpush1.msra.mxu1 %v13060_v20  ;;  %v13064_v62 = vand.u32 4294901760, %v9065_v57  ;;  %3575 = vmatpush1.msra.mxu0 %v8844_v31  ;;  %v9346_v46 = vsub.f32 %v969_v16, %v9296_v26  ;;  %v13067_v54 = vand.u32 4294901760, %v9110_v55  ;;  %v9356_v31 = vsub.f32 %v968_v14, %v9310_v22  ;;  %v937_v20 = vld [vmem:[#allocation2 + $0x668] sm:$0xff] }
 0x276   : > { %13059 = vst [vmem:[#allocation37_spill] sm:$0xff] %v9324_v63  ;;  %v9333_v39 = vsub.f32 %v9235_v52, %v13061_v34  ;;  %13062 = vst [vmem:[#allocation36_spill] sm:$0xff] %v9336_v15  ;;  %v9348_v34 = vand.u32 4294901760, %v953_v36  ;;  %v944_v52 = vld [vmem:[#allocation2 + $0x6a0] sm:$0xff]  ;;  %3577 = vmatprep.subr.mxu0 %v13068_v24  ;;  %v9358_v2 = vand.u32 4294901760, %v952_v49  ;;  %v13071_v16 = vand.u32 4294901760, %v9131_v19 }
 0x277   : > { %13063 = vst [vmem:[#allocation38_spill] sm:$0xff] %v9338_v17  ;;  %3802 = vmatprep.subr.mxu1 %v13064_v62  ;;  %13065 = vst [vmem:[#allocation40_spill] sm:$0xff] %v9346_v46  ;;  %3579 = vmatpush1.msra.mxu0 %v13072_v42  ;;  %v9366_v24 = vsub.f32 %v961_v38, %v9324_v63  ;;  %v9368_v57 = vand.u32 4294901760, %v945_v44  ;;  %v936_v62 = vld [vmem:[#allocation2 + $0x660] sm:$0xff]  ;;  %v13075_v14 = vand.u32 4294901760, %v9142_v53  ;;  %v9378_v55 = vand.u32 4294901760, %v944_v52 }
 0x278   : > { %13066 = vst [vmem:[#allocation43_spill] sm:$0xff] %v9348_v34  ;;  %3808 = vmatpush1.msra.mxu1 %v13067_v54  ;;  %13069 = vst [vmem:[#allocation57_spill] sm:$0xff] %v9356_v31  ;;  %3581 = vmatprep.subr.mxu0 %v8869_v0  ;;  %v9376_v42 = vsub.f32 %v960_v50, %v9338_v17  ;;  %v929_v54 = vld [vmem:[#allocation2 + $0x628] sm:$0xff]  ;;  %v13078_v38 = vand.u32 4294901760, %v9187_v48  ;;  %v13079_v53 = vand.u32 4294901760, %v9294_v6  ;;  %v9392_v50 = vand.u32 4294901760, %v937_v20 }
 0x279   : > { %13070 = vst [vmem:[#allocation49_spill] sm:$0xff] %v9358_v2  ;;  %3814 = vmatprep.subr.mxu1 %v13071_v16  ;;  %13073 = vst [vmem:[#allocation50_spill] sm:$0xff] %v9366_v24  ;;  %3583 = vmatpush1.msra.mxu0 %v8880_v10  ;;  %v9390_v16 = vsub.f32 %v953_v36, %v9348_v34  ;;  %v928_v0 = vld [vmem:[#allocation2 + $0x620] sm:$0xff]  ;;  %v13083_v48 = vand.u32 4294901760, %v9308_v13  ;;  %v9404_v19 = vsub.f32 %v952_v49, %v9358_v2 }
 0x27a   : > { %13074 = vst [vmem:[#allocation60_spill] sm:$0xff] %v9368_v57  ;;  %3820 = vmatpush1.msra.mxu1 %v13075_v14  ;;  %13076 = vst [vmem:[#allocation61_spill] sm:$0xff] %v9376_v42  ;;  %v9386_v14 = vsub.f32 %v9294_v6, %v13079_v53  ;;  %3585 = vmatprep.subr.mxu0 %v8894_v59  ;;  %v9406_v36 = vand.u32 4294901760, %v936_v62  ;;  %v13086_v6 = vand.u32 4294901760, %v9217_v41  ;;  %v13087_v40 = vand.u32 4294901760, %v9322_v23 }
 0x27b   : > { %13077 = vst [vmem:[#allocation53_spill] sm:$0xff] %v9378_v55  ;;  %3826 = vmatprep.subr.mxu1 %v13078_v38  ;;  %13080 = vst [vmem:[#allocation54_spill] sm:$0xff] %v9390_v16  ;;  %v9400_v38 = vsub.f32 %v9308_v13, %v13083_v48  ;;  %3587 = vmatpush1.msra.mxu0 %v8905_v8  ;;  %v9418_v13 = vsub.f32 %v945_v44, %v9368_v57  ;;  %v9420_v53 = vand.u32 4294901760, %v929_v54 }
 0x27c   : > { %13081 = vst [vmem:[#allocation56_spill] sm:$0xff] %v9392_v50  ;;  %3832 = vmatpush1.msra.mxu1 %v13082_v32  ;;  %13084 = vst [vmem:[#allocation62_spill] sm:$0xff] %v9404_v19  ;;  %v9414_v32 = vsub.f32 %v9322_v23, %v13087_v40  ;;  %v13090_v49 = vand.u32 4294901760, %v9231_v56  ;;  %3589 = vmatprep.subr.mxu0 %v8907_v12  ;;  %v13091_v41 = vand.u32 4294901760, %v9336_v15  ;;  %v9434_v48 = vand.u32 4294901760, %v928_v0 }
 0x27d   : > { %13085 = vst [vmem:[#allocation63_spill] sm:$0xff] %v9406_v36  ;;  %3838 = vmatprep.subr.mxu1 %v13086_v6  ;;  %13088 = vst [vmem:[#allocation64_spill] sm:$0xff] %v9418_v13  ;;  %v9432_v23 = vsub.f32 %v944_v52, %v9378_v55  ;;  %v13094_v44 = vand.u32 4294901760, %v9243_v45  ;;  %3591 = vmatpush1.msra.mxu0 %v8970_v18  ;;  %v3897_v56 = vand.u32 4294901760, %v9386_v14  ;;  %v13097_v52 = vand.u32 4294901760, %v9255_v43 }
 0x27e   : > { %13089 = vst [vmem:[#allocation65_spill] sm:$0xff] %v9420_v53  ;;  %3844 = vmatpush1.msra.mxu1 %v13090_v49  ;;  %v9428_v6 = vsub.f32 %v9336_v15, %v13091_v41  ;;  %13093 = vst [vmem:[#allocation69_spill] sm:$0xff] %v9434_v48  ;;  %v13095_v49 = vand.u32 4294901760, %v9346_v46  ;;  %v9447_v40 = vsub.f32 %v937_v20, %v9392_v50  ;;  %3593 = vmatprep.subr.mxu0 %v8982_v7  ;;  %v921_v41 = vld [vmem:[#allocation2 + $0x5e8] sm:$0xff] }
 0x27f   : > { %13092 = vst [vmem:[#allocation66_spill] sm:$0xff] %v9432_v23  ;;  %3850 = vmatprep.subr.mxu1 %v13094_v44  ;;  %v3903_v45 = vand.u32 4294901760, %v9400_v38  ;;  %v13098_v44 = vand.u32 4294901760, %v9356_v31  ;;  %v13100_v20 = vand.u32 4294901760, %v9267_v60  ;;  %3595 = vmatpush1.msra.mxu0 %v8994_v35  ;;  %v3909_v43 = vand.u32 4294901760, %v9414_v32  ;;  %v13110_v15 = vld [vmem:[#allocation25_spill] sm:$0xff] }
 0x280   : > { %v9443_v12 = vsub.f32 %v9346_v46, %v13095_v49  ;;  %13096 = vst [vmem:[#allocation71_spill] sm:$0xff] %v9447_v40  ;;  %3856 = vmatpush1.msra.mxu1 %v13097_v52  ;;  %v9460_v46 = vsub.f32 %v936_v62, %v9406_v36  ;;  %v13101_v38 = vand.u32 4294901760, %v9366_v24  ;;  %v9473_v49 = vsub.f32 %v929_v54, %v9420_v53  ;;  %v920_v62 = vld [vmem:[#allocation2 + $0x5e0] sm:$0xff]  ;;  %v913_v54 = vld [vmem:[#allocation2 + $0x5a8] sm:$0xff] }
 0x281   : > { %v9456_v14 = vsub.f32 %v9356_v31, %v13098_v44  ;;  %3862 = vmatprep.subr.mxu1 %v13100_v20  ;;  %v13103_v31 = vand.u32 4294901760, %v9279_v1  ;;  %3597 = vmatprep.subr.mxu0 %v9036_v9  ;;  %v3915_v60 = vand.u32 4294901760, %v9428_v6  ;;  %v13104_v32 = vand.u32 4294901760, %v9376_v42  ;;  %v13114_v9 = vld [vmem:[#allocation30_spill] sm:$0xff]  ;;  %v13118_v35 = vld [vmem:[#allocation20_spill] sm:$0xff] }
 0x282   : > { %13099 = vst [vmem:[#allocation73_spill] sm:$0xff] %v9460_v46  ;;  %v9469_v52 = vsub.f32 %v9366_v24, %v13101_v38  ;;  %13102 = vst [vmem:[#allocation77_spill] sm:$0xff] %v9473_v49  ;;  %v9486_v44 = vsub.f32 %v928_v0, %v9434_v48  ;;  %v13106_v24 = vand.u32 4294901760, %v9291_v58  ;;  %3599 = vmatpush1.msra.mxu0 %v9050_v37  ;;  %v13107_v1 = vand.u32 4294901760, %v9390_v16  ;;  %v912_v38 = vld [vmem:[#allocation2 + $0x5a0] sm:$0xff] }
 0x283   : > { %3868 = vmatpush1.msra.mxu1 %v13103_v31  ;;  %v9482_v20 = vsub.f32 %v9376_v42, %v13104_v32  ;;  %v3921_v31 = vand.u32 4294901760, %v9443_v12  ;;  %v9498_v42 = vand.u32 4294901760, %v921_v41  ;;  %v13109_v0 = vand.u32 4294901760, %v9305_v3  ;;  %3601 = vmatprep.subr.mxu0 %v13110_v15  ;;  %v905_v32 = vld [vmem:[#allocation2 + $0x568] sm:$0xff] }
 0x284   : > { %13105 = vst [vmem:[#allocation92_spill] sm:$0xff] %v9486_v44  ;;  %3874 = vmatprep.subr.mxu1 %v13106_v24  ;;  %v9495_v6 = vsub.f32 %v9390_v16, %v13107_v1  ;;  %v3927_v24 = vand.u32 4294901760, %v9456_v14  ;;  %v13111_v58 = vand.u32 4294901760, %v9404_v19  ;;  %v9510_v16 = vand.u32 4294901760, %v920_v62  ;;  %3603 = vmatpush1.msra.mxu0 %v13114_v9  ;;  %v904_v1 = vld [vmem:[#allocation2 + $0x560] sm:$0xff] }
 0x285   : > { %13108 = vst [vmem:[#allocation94_spill] sm:$0xff] %v9498_v42  ;;  %3880 = vmatpush1.msra.mxu1 %v13109_v0  ;;  %v13113_v37 = vand.u32 4294901760, %v9319_v21  ;;  %v3933_v3 = vand.u32 4294901760, %v9469_v52  ;;  %v13115_v0 = vand.u32 4294901760, %v9418_v13  ;;  %v13117_v15 = vand.u32 4294901760, %v9333_v39  ;;  %3605 = vmatprep.subr.mxu0 %v13118_v35 }
 0x286   : > { %v9507_v12 = vsub.f32 %v9404_v19, %v13111_v58  ;;  %13112 = vst [vmem:[#allocation82_spill] sm:$0xff] %v9510_v16  ;;  %v9522_v19 = vand.u32 4294901760, %v913_v54  ;;  %v3939_v21 = vand.u32 4294901760, %v9482_v20  ;;  %v897_v58 = vld [vmem:[#allocation2 + $0x528] sm:$0xff]  ;;  %3607 = vmatpush1.msra.mxu0 %v9102_v33  ;;  %v3945_v39 = vand.u32 4294901760, %v9495_v6 }
 0x287   : > { %3886 = vmatprep.subr.mxu1 %v13113_v37  ;;  %v9519_v14 = vsub.f32 %v9418_v13, %v13115_v0  ;;  %v13119_v37 = vand.u32 4294901760, %v9432_v23  ;;  %v9534_v13 = vand.u32 4294901760, %v912_v38  ;;  %v9544_v20 = vsub.f32 %v921_v41, %v9498_v42  ;;  %3609 = vmatprep.subr.mxu0 %v9118_v51  ;;  %v889_v41 = vld [vmem:[#allocation2 + $0x4e8] sm:$0xff] }
 0x288   : > { %13116 = vst [vmem:[#allocation99_spill] sm:$0xff] %v9522_v19  ;;  %3892 = vmatpush1.msra.mxu1 %v13117_v15  ;;  %v13121_v15 = vand.u32 4294901760, %v9447_v40  ;;  %v13124_v0 = vand.u32 4294901760, %v9460_v46  ;;  %v9556_v33 = vsub.f32 %v920_v62, %v9510_v16  ;;  %3611 = vmatpush1.msra.mxu0 %v9134_v30  ;;  %v9568_v51 = vsub.f32 %v913_v54, %v9522_v19  ;;  %v888_v62 = vld [vmem:[#allocation2 + $0x4e0] sm:$0xff]  ;;  %v881_v54 = vld [vmem:[#allocation2 + $0x4a8] sm:$0xff] }
 0x289   : > { %v9531_v52 = vsub.f32 %v9432_v23, %v13119_v37  ;;  %13120 = vst [vmem:[#allocation87_spill] sm:$0xff] %v9534_v13  ;;  %3898 = vmatprep.subr.mxu1 %v3897_v56  ;;  %13122 = vst [vmem:[#allocation106_spill] sm:$0xff] %v9544_v20  ;;  %v9546_v37 = vand.u32 4294901760, %v905_v32  ;;  %v896_v23 = vld [vmem:[#allocation2 + $0x520] sm:$0xff]  ;;  %v3951_v56 = vand.u32 4294901760, %v9507_v12  ;;  %3613 = vmatprep.subr.mxu0 %v9148_v28  ;;  %v9590_v28 = vand.u32 4294901760, %v889_v41 }
 0x28a   : > { %v9541_v35 = vsub.f32 %v9447_v40, %v13121_v15  ;;  %3904 = vmatpush2.msra.mxu1 %v3903_v45  ;;  %v9553_v6 = vsub.f32 %v9460_v46, %v13124_v0  ;;  %13125 = vst [vmem:[#allocation118_spill] sm:$0xff] %v9556_v33  ;;  %v9558_v15 = vand.u32 4294901760, %v904_v1  ;;  %v3957_v45 = vand.u32 4294901760, %v9519_v14  ;;  %13127 = vst [vmem:[#allocation119_spill] sm:$0xff] %v9568_v51 }
 0x28b   : > { %13123 = vst [vmem:[#allocation117_spill] sm:$0xff] %v9546_v37  ;;  %3910 = vmatprep.subr.mxu1 %v3909_v43  ;;  %v13126_v40 = vand.u32 4294901760, %v9473_v49  ;;  %v9570_v0 = vand.u32 4294901760, %v897_v58  ;;  %v3963_v43 = vand.u32 4294901760, %v9531_v52  ;;  %v13128_v46 = vand.u32 4294901760, %v9486_v44  ;;  %3615 = vmatpush1.msra.mxu0 %v9157_v29 }
 0x28c   : > { %3916 = vmatpush2.msra.mxu1 %v3915_v60  ;;  %v9580_v30 = vsub.f32 %v912_v38, %v9534_v13  ;;  %v3969_v60 = vand.u32 4294901760, %v9541_v35  ;;  %v9588_v52 = vsub.f32 %v905_v32, %v9546_v37  ;;  %3617 = vmatprep.subr.mxu0 %v9168_v25  ;;  %v3975_v38 = vand.u32 4294901760, %v9553_v6  ;;  %v873_v35 = vld [vmem:[#allocation2 + $0x468] sm:$0xff]  ;;  %v872_v6 = vld [vmem:[#allocation2 + $0x460] sm:$0xff] }
 0x28d   : > { %v9565_v12 = vsub.f32 %v9473_v49, %v13126_v40  ;;  %v9577_v14 = vsub.f32 %v9486_v44, %v13128_v46  ;;  %v9582_v40 = vand.u32 4294901760, %v896_v23  ;;  %3922 = vmatprep.subr.mxu1 %v3921_v31  ;;  %v880_v46 = vld [vmem:[#allocation2 + $0x4a0] sm:$0xff]  ;;  %v9596_v31 = vsub.f32 %v904_v1, %v9558_v15  ;;  %3619 = vmatpush1.msra.mxu0 %v9177_v61 }
 0x28e   : > { %13129 = vst [vmem:[#allocation120_spill] sm:$0xff] %v9580_v30  ;;  %3928 = vmatpush2.msra.mxu1 %v3927_v24  ;;  %v9598_v29 = vand.u32 4294901760, %v888_v62  ;;  %v9604_v24 = vsub.f32 %v897_v58, %v9570_v0  ;;  %v9606_v25 = vand.u32 4294901760, %v881_v54  ;;  %3621 = vmatprep.subr.mxu0 %v9246_v11  ;;  %v9614_v61 = vand.u32 4294901760, %v880_v46  ;;  %v864_v44 = vld [vmem:[#allocation2 + $0x420] sm:$0xff] }
 0x28f   : > { %13130 = vst [vmem:[#allocation121_spill] sm:$0xff] %v9596_v31  ;;  %3934 = vmatprep.subr.mxu1 %v3933_v3  ;;  %v3981_v32 = vand.u32 4294901760, %v9565_v12  ;;  %v3987_v1 = vand.u32 4294901760, %v9577_v14  ;;  %v9612_v3 = vsub.f32 %v896_v23, %v9582_v40  ;;  %v865_v12 = vld [vmem:[#allocation2 + $0x428] sm:$0xff]  ;;  %3623 = vmatpush2.msra.mxu0 %v9258_v27  ;;  %v13131_v58 = vand.u32 4294901760, %v9544_v20 }
 0x290   : > { %3940 = vmatpush2.msra.mxu1 %v3939_v21  ;;  %v9622_v11 = vsub.f32 %v889_v41, %v9590_v28  ;;  %v9624_v14 = vand.u32 4294901760, %v873_v35  ;;  %3625 = vmatprep.subr.mxu0 %v9270_v4  ;;  %v13132_v23 = vand.u32 4294901760, %v9556_v33  ;;  %v9632_v9 = vsub.f32 %v888_v62, %v9598_v29 }
 0x291   : > { %3946 = vmatprep.subr.mxu1 %v3945_v39  ;;  %v3992_v49 = vsub.f32 %v9544_v20, %v13131_v58  ;;  %v9634_v58 = vand.u32 4294901760, %v872_v6  ;;  %3627 = vmatpush2.msra.mxu0 %v9282_v5  ;;  %v13133_v41 = vand.u32 4294901760, %v9568_v51  ;;  %v9642_v20 = vsub.f32 %v881_v54, %v9606_v25 }
 0x292   : > { %3952 = vmatpush2.msra.mxu1 %v3951_v56  ;;  %v3998_v39 = vsub.f32 %v9556_v33, %v13132_v23  ;;  %v9644_v23 = vand.u32 4294901760, %v865_v12  ;;  %3629 = vmatprep.subr.mxu0 %v9296_v26  ;;  %v13134_v62 = vand.u32 4294901760, %v9580_v30  ;;  %v9652_v33 = vsub.f32 %v880_v46, %v9614_v61 }
 0x293   : > { %3958 = vmatprep.subr.mxu1 %v3957_v45  ;;  %v4004_v56 = vsub.f32 %v9568_v51, %v13133_v41  ;;  %v9654_v41 = vand.u32 4294901760, %v864_v44  ;;  %3631 = vmatpush2.msra.mxu0 %v9310_v22  ;;  %v3993_v54 = vand.u32 4294901760, %v3992_v49  ;;  %v13136_v21 = vand.u32 4294901760, %v9588_v52 }
 0x294   : > { %3964 = vmatpush2.msra.mxu1 %v3963_v43  ;;  %v4010_v45 = vsub.f32 %v9580_v30, %v13134_v62  ;;  %13135 = vst [vmem:[#allocation122_spill] sm:$0xff] %v9652_v33  ;;  %v9662_v26 = vsub.f32 %v873_v35, %v9624_v14  ;;  %3633 = vmatprep.subr.mxu0 %v9324_v63  ;;  %v3999_v46 = vand.u32 4294901760, %v3998_v39  ;;  %v13138_v62 = vand.u32 4294901760, %v9596_v31 }
 0x295   : > { %3970 = vmatprep.subr.mxu1 %v3969_v60  ;;  %v4016_v43 = vsub.f32 %v9588_v52, %v13136_v21  ;;  %v9670_v49 = vsub.f32 %v872_v6, %v9634_v58  ;;  %3635 = vmatpush2.msra.mxu0 %v9338_v17  ;;  %v4005_v21 = vand.u32 4294901760, %v4004_v56  ;;  %v13140_v35 = vand.u32 4294901760, %v9604_v24 }
 0x296   : > { %13137 = vst [vmem:[#allocation123_spill] sm:$0xff] %v9662_v26  ;;  %3976 = vmatpush2.msra.mxu1 %v3975_v38  ;;  %v4022_v60 = vsub.f32 %v9596_v31, %v13138_v62  ;;  %v9678_v39 = vsub.f32 %v865_v12, %v9644_v23  ;;  %3637 = vmatprep.subr.mxu0 %v9348_v34  ;;  %v4011_v62 = vand.u32 4294901760, %v4010_v45  ;;  %v13142_v6 = vand.u32 4294901760, %v9612_v3 }
 0x297   : > { %13139 = vst [vmem:[#allocation124_spill] sm:$0xff] %v9670_v49  ;;  %3982 = vmatprep.subr.mxu1 %v3981_v32  ;;  %v4028_v38 = vsub.f32 %v9604_v24, %v13140_v35  ;;  %v9686_v56 = vsub.f32 %v864_v44, %v9654_v41  ;;  %3639 = vmatpush2.msra.mxu0 %v9358_v2  ;;  %v4017_v35 = vand.u32 4294901760, %v4016_v43  ;;  %v13144_v12 = vand.u32 4294901760, %v9622_v11 }
 0x298   : > { %13141 = vst [vmem:[#allocation125_spill] sm:$0xff] %v9678_v39  ;;  %3988 = vmatpush2.msra.mxu1 %v3987_v1  ;;  %v4034_v32 = vsub.f32 %v9612_v3, %v13142_v6  ;;  %3641 = vmatprep.subr.mxu0 %v9368_v57  ;;  %v4023_v45 = vand.u32 4294901760, %v4022_v60  ;;  %v13145_v6 = vand.u32 4294901760, %v9632_v9  ;;  %v13146_v43 = vand.u32 4294901760, %v9642_v20 }
 0x299   : > { %13143 = vst [vmem:[#allocation126_spill] sm:$0xff] %v9686_v56  ;;  %3994 = vmatprep.subr.mxu1 %v3993_v54  ;;  %v4040_v1 = vsub.f32 %v9622_v11, %v13144_v12  ;;  %3643 = vmatpush2.msra.mxu0 %v9378_v55  ;;  %v4029_v54 = vand.u32 4294901760, %v4028_v38  ;;  %v13147_v60 = vand.u32 4294901760, %v9652_v33  ;;  %v11920_v44 = vand.u32 4294901760, %v9686_v56 }
 0x29a   : > { %4000 = vmatpush2.msra.mxu1 %v3999_v46  ;;  %v4046_v27 = vsub.f32 %v9632_v9, %v13145_v6  ;;  %v4052_v12 = vsub.f32 %v9642_v20, %v13146_v43  ;;  %3645 = vmatprep.subr.mxu0 %v9392_v50  ;;  %v4035_v46 = vand.u32 4294901760, %v4034_v32  ;;  %v13148_v38 = vand.u32 4294901760, %v9662_v26 }
 0x29b   : > { %4006 = vmatprep.subr.mxu1 %v4005_v21  ;;  %v4058_v6 = vsub.f32 %v9652_v33, %v13147_v60  ;;  %3647 = vmatpush2.msra.mxu0 %v9406_v36  ;;  %v4041_v21 = vand.u32 4294901760, %v4040_v1  ;;  %v13149_v32 = vand.u32 4294901760, %v9670_v49 }
 0x29c   : > { %4012 = vmatpush2.msra.mxu1 %v4011_v62  ;;  %v4064_v43 = vsub.f32 %v9662_v26, %v13148_v38  ;;  %3649 = vmatprep.subr.mxu0 %v9420_v53  ;;  %v4047_v62 = vand.u32 4294901760, %v4046_v27  ;;  %v4053_v60 = vand.u32 4294901760, %v4052_v12  ;;  %v4082_v27 = vsub.f32 %v9686_v56, %v11920_v44  ;;  %v13166_v44 = vld [vmem:[#allocation24_spill] sm:$0xff]  ;;  %v13169_v56 = vld [vmem:[#allocation51_spill] sm:$0xff] }
 0x29d   : > { %4018 = vmatprep.subr.mxu1 %v4017_v35  ;;  %v4070_v51 = vsub.f32 %v9670_v49, %v13149_v32  ;;  %3651 = vmatpush2.msra.mxu0 %v9434_v48  ;;  %v13150_v35 = vand.u32 4294901760, %v9678_v39  ;;  %v4059_v38 = vand.u32 4294901760, %v4058_v6  ;;  %v13152_v6 = vld [vmem:[#allocation16_spill] sm:$0xff]  ;;  %v13156_v32 = vld [vmem:[#allocation29_spill] sm:$0xff] }
 0x29e   : > { %4024 = vmatpush2.msra.mxu1 %v4023_v45  ;;  %3653 = vmatprep.subr.mxu0 %v9498_v42  ;;  %v4065_v45 = vand.u32 4294901760, %v4064_v43  ;;  %v13154_v43 = vld [vmem:[#allocation10_spill] sm:$0xff] }
 0x29f   : > { %4030 = vmatprep.subr.mxu1 %v4029_v54  ;;  %v4076_v1 = vsub.f32 %v9678_v39, %v13150_v35  ;;  %3655 = vmatpush2.msra.mxu0 %v9510_v16  ;;  %v4071_v54 = vand.u32 4294901760, %v4070_v51  ;;  %v13151_v51 = vld [vmem:[#allocation15_spill] sm:$0xff]  ;;  %v13158_v35 = vld [vmem:[#allocation48_spill] sm:$0xff] }
 0x2a0   : > { %4036 = vmatpush2.msra.mxu1 %v4035_v46  ;;  %3657 = vmatprep.subr.mxu0 %v9522_v19  ;;  %v4083_v46 = vand.u32 4294901760, %v4082_v27  ;;  %v13161_v27 = vld [vmem:[#allocation13_spill] sm:$0xff] }
 0x2a1   : > { %4042 = vmatprep.subr.mxu1 %v4041_v21  ;;  %3659 = vmatpush2.msra.mxu0 %v9534_v13  ;;  %v4077_v12 = vand.u32 4294901760, %v4076_v1  ;;  %v13153_v21 = vld [vmem:[#allocation114_spill] sm:$0xff]  ;;  %v13159_v1 = vld [vmem:[#allocation52_spill] sm:$0xff] }
 0x2a2   : > { %4048 = vmatpush2.msra.mxu1 %v4047_v62  ;;  %3661 = vmatprep.subr.mxu0 %v9546_v37  ;;  %v13155_v62 = vld [vmem:[#allocation18_spill] sm:$0xff] }
 0x2a3   : > { %4054 = vmatprep.subr.mxu1 %v4053_v60  ;;  %3663 = vmatpush2.msra.mxu0 %v9558_v15  ;;  %v13157_v60 = vld [vmem:[#allocation45_spill] sm:$0xff] }
 0x2a4   : > { %4060 = vmatpush2.msra.mxu1 %v4059_v38  ;;  %3665 = vmatprep.subr.mxu0 %v9570_v0  ;;  %v13160_v38 = vld [vmem:[#allocation116_spill] sm:$0xff] }
 0x2a5   : > { %4066 = vmatprep.subr.mxu1 %v4065_v45  ;;  %3667 = vmatpush2.msra.mxu0 %v9582_v40  ;;  %v13162_v45 = vld [vmem:[#allocation46_spill] sm:$0xff] }
 0x2a6   : > { %4072 = vmatpush2.msra.mxu1 %v4071_v54  ;;  %3669 = vmatprep.subr.mxu0 %v9590_v28  ;;  %v13163_v54 = vld [vmem:[#allocation17_spill] sm:$0xff] }
 0x2a7   : > { %4078 = vmatprep.subr.mxu1 %v4077_v12  ;;  %3671 = vmatpush2.msra.mxu0 %v9598_v29  ;;  %v13164_v12 = vld [vmem:[#allocation112_spill] sm:$0xff] }
 0x2a8   : > { %4084 = vmatpush2.msra.mxu1 %v4083_v46  ;;  %3673 = vmatprep.subr.mxu0 %v9606_v25  ;;  %v13165_v46 = vld [vmem:[#allocation58_spill] sm:$0xff] }
 0x2a9   : > { %4088 = vmatmul.mubr.f32.vlgmr.msra.gmra.mxu1 %v12986_v47  ;;  %4298 = vmatprep.subr.mxu1 %v13151_v51  ;;  %v13168_v47 = vld [vmem:[#allocation41_spill] sm:$0xff] }
 0x2aa   : > { %4300 = vmatpush1.msra.mxu1 %v13152_v6  ;;  %4428 = vmatprep.mubr.f32.mxu1 %v13153_v21  ;;  %v13167_v21 = vld [vmem:[#allocation59_spill] sm:$0xff] }
 0x2ab   : > { %4302 = vmatprep.subr.mxu1 %v13154_v43  ;;  %3675 = vmatpush2.msra.mxu0 %v9614_v61 }
 0x2ac   : > { %4304 = vmatpush1.msra.mxu1 %v13155_v62  ;;  %3677 = vmatprep.subr.mxu0 %v9624_v14 }
 0x2ad   : > { %4306 = vmatprep.subr.mxu1 %v13156_v32  ;;  %3679 = vmatpush2.msra.mxu0 %v9634_v58 }
 0x2ae   : > { %4308 = vmatpush1.msra.mxu1 %v13157_v60  ;;  %3681 = vmatprep.subr.mxu0 %v9644_v23 }
 0x2af   : > { %4310 = vmatprep.subr.mxu1 %v13158_v35  ;;  %3683 = vmatpush2.msra.mxu0 %v9654_v41 }
 0x2b0   : > { %4312 = vmatpush1.msra.mxu1 %v13159_v1  ;;  %3695 = vmatmul.mubr.f32.vlgmr.msra.gmra.mxu0 %v13160_v38  ;;  %v13170_v1 = vld [vmem:[#allocation55_spill] sm:$0xff]  ;;  %v13171_v38 = vld [vmem:[#allocation70_spill] sm:$0xff] }
 0x2b1   : > { %4096 = vmatprep.subr.mxu0 %v13161_v27  ;;  %4314 = vmatprep.subr.mxu1 %v13162_v45  ;;  %v13172_v27 = vld [vmem:[#allocation47_spill] sm:$0xff] }
 0x2b2   : > { %4099 = vmatpush1.msra.mxu0 %v13163_v54  ;;  %4288 = vmatprep.mubr.f32.mxu0 %v13164_v12  ;;  %v13173_v54 = vld [vmem:[#allocation67_spill] sm:$0xff]  ;;  %v13174_v12 = vld [vmem:[#allocation68_spill] sm:$0xff] }
 0x2b3   : > { %4316 = vmatpush1.msra.mxu1 %v13165_v46  ;;  %4102 = vmatprep.subr.mxu0 %v13166_v44 }
 0x2b4   : > { %4318 = vmatprep.subr.mxu1 %v13167_v21  ;;  %4105 = vmatpush1.msra.mxu0 %v13168_v47  ;;  %v13175_v21 = vld [vmem:[#allocation72_spill] sm:$0xff]  ;;  %v13176_v47 = vld [vmem:[#allocation86_spill] sm:$0xff] }
 0x2b5   : > { %4320 = vmatpush1.msra.mxu1 %v13169_v56  ;;  %4108 = vmatprep.subr.mxu0 %v13170_v1  ;;  %v13177_v56 = vld [vmem:[#allocation76_spill] sm:$0xff] }
 0x2b6   : > { %4322 = vmatprep.subr.mxu1 %v13171_v38  ;;  %4111 = vmatpush1.msra.mxu0 %v13172_v27  ;;  %v13178_v38 = vld [vmem:[#allocation80_spill] sm:$0xff] }
 0x2b7   : > { %4324 = vmatpush1.msra.mxu1 %v8880_v10  ;;  %4114 = vmatprep.subr.mxu0 %v13173_v54  ;;  %v13179_v10 = vld [vmem:[#allocation83_spill] sm:$0xff] }
 0x2b8   : > { %4326 = vmatprep.subr.mxu1 %v8894_v59  ;;  %4117 = vmatpush1.msra.mxu0 %v13174_v12  ;;  %v13180_v54 = vld [vmem:[#allocation11_spill] sm:$0xff]  ;;  %v13181_v59 = vld [vmem:[#allocation88_spill] sm:$0xff]  ;;  %v13182_v12 = vld [vmem:[#allocation21_spill] sm:$0xff] }
 0x2b9   : > { %4328 = vmatpush1.msra.mxu1 %v8905_v8  ;;  %4120 = vmatprep.subr.mxu0 %v13175_v21  ;;  %v13183_v8 = vld [vmem:[#allocation90_spill] sm:$0xff]  ;;  %v13184_v21 = vld [vmem:[#allocation23_spill] sm:$0xff] }
 0x2ba   : > { %4330 = vmatprep.subr.mxu1 %v13176_v47  ;;  %4123 = vmatpush1.msra.mxu0 %v13177_v56  ;;  %v13185_v47 = vld [vmem:[#allocation79_spill] sm:$0xff]  ;;  %v13186_v56 = vld [vmem:[#allocation25_spill] sm:$0xff] }
 0x2bb   : > { %4332 = vmatpush1.msra.mxu1 %v8970_v18  ;;  %4126 = vmatprep.subr.mxu0 %v13178_v38  ;;  %v13187_v18 = vld [vmem:[#allocation81_spill] sm:$0xff]  ;;  %v13188_v38 = vld [vmem:[#allocation30_spill] sm:$0xff] }
 0x2bc   : > { %4334 = vmatprep.subr.mxu1 %v8982_v7  ;;  %4129 = vmatpush1.msra.mxu0 %v13179_v10  ;;  %v13189_v7 = vld [vmem:[#allocation96_spill] sm:$0xff] }
 0x2bd   : > { %4336 = vmatpush1.msra.mxu1 %v13180_v54  ;;  %4132 = vmatprep.subr.mxu0 %v13181_v59  ;;  %v13190_v10 = vld [vmem:[#allocation20_spill] sm:$0xff]  ;;  %v13191_v54 = vld [vmem:[#allocation19_spill] sm:$0xff] }
 0x2be   : > { %4338 = vmatprep.subr.mxu1 %v13182_v12  ;;  %4135 = vmatpush1.msra.mxu0 %v13183_v8  ;;  %v13192_v59 = vld [vmem:[#allocation35_spill] sm:$0xff]  ;;  %v13193_v12 = vld [vmem:[#allocation12_spill] sm:$0xff]  ;;  %v13194_v8 = vld [vmem:[#allocation93_spill] sm:$0xff] }
 0x2bf   : > { %4340 = vmatpush1.msra.mxu1 %v13184_v21  ;;  %4138 = vmatprep.subr.mxu0 %v13185_v47  ;;  %v13195_v21 = vld [vmem:[#allocation14_spill] sm:$0xff]  ;;  %v13196_v47 = vld [vmem:[#allocation31_spill] sm:$0xff] }
 0x2c0   : > { %4342 = vmatprep.subr.mxu1 %v13186_v56  ;;  %4141 = vmatpush1.msra.mxu0 %v13187_v18  ;;  %v13197_v56 = vld [vmem:[#allocation26_spill] sm:$0xff] }
 0x2c1   : > { %4344 = vmatpush1.msra.mxu1 %v13188_v38  ;;  %4144 = vmatprep.subr.mxu0 %v13189_v7  ;;  %v13198_v18 = vld [vmem:[#allocation34_spill] sm:$0xff]  ;;  %v13199_v38 = vld [vmem:[#allocation33_spill] sm:$0xff]  ;;  %v13200_v7 = vld [vmem:[#allocation75_spill] sm:$0xff] }
 0x2c2   : > { %4346 = vmatprep.subr.mxu1 %v13190_v10  ;;  %4147 = vmatpush1.msra.mxu0 %v13191_v54  ;;  %v13201_v10 = vld [vmem:[#allocation22_spill] sm:$0xff]  ;;  %v13202_v54 = vld [vmem:[#allocation85_spill] sm:$0xff] }
 0x2c3   : > { %4348 = vmatpush1.msra.mxu1 %v13192_v59  ;;  %4150 = vmatprep.subr.mxu0 %v13193_v12  ;;  %v13203_v59 = vld [vmem:[#allocation100_spill] sm:$0xff]  ;;  %v13204_v12 = vld [vmem:[#allocation89_spill] sm:$0xff] }
 0x2c4   : > { %4350 = vmatprep.subr.mxu1 %v13194_v8  ;;  %4153 = vmatpush1.msra.mxu0 %v13195_v21  ;;  %v13205_v8 = vld [vmem:[#allocation8_spill] sm:$0xff] }
 0x2c5   : > { %4352 = vmatpush1.msra.mxu1 %v13196_v47  ;;  %4156 = vmatprep.subr.mxu0 %v13197_v56  ;;  %v13206_v21 = vld [vmem:[#allocation28_spill] sm:$0xff]  ;;  %v13207_v47 = vld [vmem:[#allocation97_spill] sm:$0xff]  ;;  %v13208_v56 = vld [vmem:[#allocation98_spill] sm:$0xff] }
 0x2c6   : > { %4354 = vmatprep.subr.mxu1 %v13198_v18  ;;  %4159 = vmatpush1.msra.mxu0 %v13199_v38  ;;  %v13209_v18 = vld [vmem:[#allocation101_spill] sm:$0xff] }
 0x2c7   : > { %4356 = vmatpush1.msra.mxu1 %v13200_v7  ;;  %4162 = vmatprep.subr.mxu0 %v13201_v10  ;;  %v13210_v7 = vld [vmem:[#allocation103_spill] sm:$0xff] }
 0x2c8   : > { %4358 = vmatprep.subr.mxu1 %v13202_v54  ;;  %4165 = vmatpush1.msra.mxu0 %v13203_v59  ;;  %v13211_v54 = vld [vmem:[#allocation107_spill] sm:$0xff]  ;;  %v13212_v59 = vld [vmem:[#allocation108_spill] sm:$0xff] }
 0x2c9   : > { %4360 = vmatpush1.msra.mxu1 %v13204_v12  ;;  %4168 = vmatprep.subr.mxu0 %v13205_v8  ;;  %v13213_v12 = vld [vmem:[#allocation91_spill] sm:$0xff] }
 0x2ca   : > { %4362 = vmatprep.subr.mxu1 %v13206_v21  ;;  %4171 = vmatpush1.msra.mxu0 %v13207_v47  ;;  %v13214_v21 = vld [vmem:[#allocation9_spill] sm:$0xff] }
 0x2cb   : > { %4364 = vmatpush2.msra.mxu1 %v13208_v56  ;;  %4174 = vmatprep.subr.mxu0 %v13209_v18  ;;  %v13215_v56 = vld [vmem:[#allocation95_spill] sm:$0xff] }
 0x2cc   : > { %4366 = vmatprep.subr.mxu1 %v9270_v4  ;;  %4177 = vmatpush1.msra.mxu0 %v13210_v7  ;;  %v13216_v4 = vld [vmem:[#allocation39_spill] sm:$0xff] }
 0x2cd   : > { %4368 = vmatpush2.msra.mxu1 %v9282_v5  ;;  %4180 = vmatprep.subr.mxu0 %v13211_v54  ;;  %v13217_v5 = vld [vmem:[#allocation42_spill] sm:$0xff] }
 0x2ce   : > { %4370 = vmatprep.subr.mxu1 %v13212_v59  ;;  %4183 = vmatpush1.msra.mxu0 %v13213_v12  ;;  %v13218_v59 = vld [vmem:[#allocation44_spill] sm:$0xff] }
 0x2cf   : > { %4372 = vmatpush2.msra.mxu1 %v9310_v22  ;;  %4186 = vmatprep.subr.mxu0 %v13214_v21  ;;  %v13219_v22 = vld [vmem:[#allocation36_spill] sm:$0xff] }
 0x2d0   : > { %4374 = vmatprep.subr.mxu1 %v9324_v63  ;;  %4189 = vmatpush1.msra.mxu0 %v13215_v56  ;;  %v13220_v63 = vld [vmem:[#allocation40_spill] sm:$0xff] }
 0x2d1   : > { %4376 = vmatpush2.msra.mxu1 %v9338_v17  ;;  %4192 = vmatprep.subr.mxu0 %v13216_v4  ;;  %v13221_v17 = vld [vmem:[#allocation57_spill] sm:$0xff] }
 0x2d2   : > { %4378 = vmatprep.subr.mxu1 %v9348_v34  ;;  %4195 = vmatpush2.msra.mxu0 %v13217_v5  ;;  %v13222_v34 = vld [vmem:[#allocation50_spill] sm:$0xff] }
 0x2d3   : > { %4380 = vmatpush2.msra.mxu1 %v9358_v2  ;;  %4198 = vmatprep.subr.mxu0 %v13218_v59  ;;  %v13223_v2 = vld [vmem:[#allocation61_spill] sm:$0xff] }
 0x2d4   : > { %4382 = vmatprep.subr.mxu1 %v9368_v57  ;;  %4201 = vmatpush2.msra.mxu0 %v13219_v22  ;;  %v13224_v57 = vld [vmem:[#allocation54_spill] sm:$0xff] }
 0x2d5   : > { %4384 = vmatpush2.msra.mxu1 %v9378_v55  ;;  %4204 = vmatprep.subr.mxu0 %v13220_v63  ;;  %v13225_v55 = vld [vmem:[#allocation62_spill] sm:$0xff] }
 0x2d6   : > { %4386 = vmatprep.subr.mxu1 %v9392_v50  ;;  %4207 = vmatpush2.msra.mxu0 %v13221_v17  ;;  %v13226_v50 = vld [vmem:[#allocation64_spill] sm:$0xff] }
 0x2d7   : > { %4388 = vmatpush2.msra.mxu1 %v9406_v36  ;;  %4210 = vmatprep.subr.mxu0 %v13222_v34  ;;  %v13227_v36 = vld [vmem:[#allocation66_spill] sm:$0xff] }
 0x2d8   : > { %4390 = vmatprep.subr.mxu1 %v9420_v53  ;;  %4213 = vmatpush2.msra.mxu0 %v13223_v2  ;;  %v13228_v53 = vld [vmem:[#allocation71_spill] sm:$0xff] }
 0x2d9   : > { %4392 = vmatpush2.msra.mxu1 %v9434_v48  ;;  %4216 = vmatprep.subr.mxu0 %v13224_v57  ;;  %v13229_v48 = vld [vmem:[#allocation73_spill] sm:$0xff] }
 0x2da   : > { %4394 = vmatprep.subr.mxu1 %v9498_v42  ;;  %4219 = vmatpush2.msra.mxu0 %v13225_v55  ;;  %v13230_v42 = vld [vmem:[#allocation77_spill] sm:$0xff] }
 0x2db   : > { %4396 = vmatpush2.msra.mxu1 %v9510_v16  ;;  %4222 = vmatprep.subr.mxu0 %v13226_v50  ;;  %v13231_v16 = vld [vmem:[#allocation92_spill] sm:$0xff] }
 0x2dc   : > { %4398 = vmatprep.subr.mxu1 %v9522_v19  ;;  %4225 = vmatpush2.msra.mxu0 %v13227_v36  ;;  %v13232_v19 = vld [vmem:[#allocation106_spill] sm:$0xff] }
 0x2dd   : > { %4400 = vmatpush2.msra.mxu1 %v9534_v13  ;;  %4228 = vmatprep.subr.mxu0 %v13228_v53  ;;  %v13233_v13 = vld [vmem:[#allocation118_spill] sm:$0xff] }
 0x2de   : > { %4402 = vmatprep.subr.mxu1 %v9546_v37  ;;  %4231 = vmatpush2.msra.mxu0 %v13229_v48  ;;  %v13234_v37 = vld [vmem:[#allocation119_spill] sm:$0xff] }
 0x2df   : > { %4404 = vmatpush2.msra.mxu1 %v9558_v15  ;;  %4234 = vmatprep.subr.mxu0 %v13230_v42 }
 0x2e0   : > { %4406 = vmatprep.subr.mxu1 %v9570_v0  ;;  %4237 = vmatpush2.msra.mxu0 %v13231_v16 }
 0x2e1   : > { %4408 = vmatpush2.msra.mxu1 %v9582_v40  ;;  %4240 = vmatprep.subr.mxu0 %v13232_v19 }
 0x2e2   : > { %4410 = vmatprep.subr.mxu1 %v9590_v28  ;;  %4243 = vmatpush2.msra.mxu0 %v13233_v13 }
 0x2e3   : > { %4412 = vmatpush2.msra.mxu1 %v9598_v29  ;;  %4246 = vmatprep.subr.mxu0 %v13234_v37 }
 0x2e4   : > { %4414 = vmatprep.subr.mxu1 %v9606_v25  ;;  %4249 = vmatpush2.msra.mxu0 %v9580_v30  ;;  %v13235_v30 = vld [vmem:[#allocation113_spill] sm:$0xff] }
 0x2e5   : > { %4416 = vmatpush2.msra.mxu1 %v9614_v61  ;;  %4252 = vmatprep.subr.mxu0 %v9588_v52 }
 0x2e6   : > { %4418 = vmatprep.subr.mxu1 %v9624_v14  ;;  %4255 = vmatpush2.msra.mxu0 %v9596_v31  ;;  %v13236_v31 = vld [vmem:[#allocation111_spill] sm:$0xff] }
 0x2e7   : > { %4420 = vmatpush2.msra.mxu1 %v9634_v58  ;;  %4258 = vmatprep.subr.mxu0 %v9604_v24 }
 0x2e8   : > { %4422 = vmatprep.subr.mxu1 %v9644_v23  ;;  %4261 = vmatpush2.msra.mxu0 %v9612_v3 }
 0x2e9   : > { %4424 = vmatpush2.msra.mxu1 %v9654_v41  ;;  %4264 = vmatprep.subr.mxu0 %v9622_v11 }
 0x2ea   : > { %4432 = vmatmul.mubr.f32.vlgmr.msra.gmra.mxu1 %v13235_v30  ;;  %4704 = vmatprep.subr.mxu1 %v13151_v51  ;;  %v13237_v51 = vld [vmem:[#allocation126_spill] sm:$0xff]  ;;  %v13240_v30 = vld [vmem:[#allocation13_spill] sm:$0xff] }
 0x2eb   : > { %4267 = vmatpush2.msra.mxu0 %v9632_v9  ;;  %4706 = vmatpush1.msra.mxu1 %v13152_v6  ;;  %v13238_v6 = vld [vmem:[#allocation52_spill] sm:$0xff] }
 0x2ec   : > { %4832 = vmatprep.mubr.f32.mxu1 %v13236_v31  ;;  %4270 = vmatprep.subr.mxu0 %v9642_v20 }
 0x2ed   : > { %4708 = vmatprep.subr.mxu1 %v13154_v43  ;;  %4273 = vmatpush2.msra.mxu0 %v9652_v33  ;;  %v13239_v43 = vld [vmem:[#allocation110_spill] sm:$0xff]  ;;  %v13354_v33 = vld [vmem:[#allocation63_spill] sm:$0xff] }
 0x2ee   : > { %4710 = vmatpush1.msra.mxu1 %v13155_v62  ;;  %4276 = vmatprep.subr.mxu0 %v9662_v26  ;;  %v13241_v62 = vand.u32 4294901760, %v13240_v30  ;;  %v13249_v30 = vand.u32 4294901760, %v13170_v1 }
 0x2ef   : > { %4712 = vmatprep.subr.mxu1 %v13156_v32  ;;  %4279 = vmatpush2.msra.mxu0 %v9670_v49  ;;  %v13242_v32 = vld [vmem:[#allocation17_spill] sm:$0xff] }
 0x2f0   : > { %4714 = vmatpush1.msra.mxu1 %v13157_v60  ;;  %4282 = vmatprep.subr.mxu0 %v9678_v39  ;;  %v13243_v26 = vand.u32 4294901760, %v13242_v32  ;;  %v13244_v60 = vand.u32 4294901760, %v13166_v44  ;;  %v13255_v32 = vld [vmem:[#allocation78_spill] sm:$0xff]  ;;  %v13349_v39 = vld [vmem:[#allocation56_spill] sm:$0xff] }
 0x2f1   : > { %4716 = vmatprep.subr.mxu1 %v13158_v35  ;;  %4285 = vmatpush2.msra.mxu0 %v13237_v51  ;;  %v13245_v35 = vld [vmem:[#allocation59_spill] sm:$0xff] }
 0x2f2   : > { %4718 = vmatpush1.msra.mxu1 %v13238_v6  ;;  %4291 = vmatmul.mubr.f32.vlgmr.msra.gmra.mxu0 %v13239_v43  ;;  %v13246_v6 = vld [vmem:[#allocation41_spill] sm:$0xff]  ;;  %v13248_v43 = vld [vmem:[#allocation51_spill] sm:$0xff] }
 0x2f3   : > { %4441 = vmatprep.subr.mxu0 %v13241_v62  ;;  %4720 = vmatprep.subr.mxu1 %v13162_v45  ;;  %v13247_v51 = vand.u32 4294901760, %v13246_v6  ;;  %v13250_v45 = vld [vmem:[#allocation70_spill] sm:$0xff] }
 0x2f4   : > { %4445 = vmatpush1.msra.mxu0 %v13243_v26  ;;  %4695 = vmatprep.mubr.f32.mxu0 %v13236_v31  ;;  %v13251_v26 = vand.u32 4294901760, %v13172_v27  ;;  %v13252_v62 = vld [vmem:[#allocation74_spill] sm:$0xff] }
 0x2f5   : > { %4722 = vmatpush1.msra.mxu1 %v13165_v46  ;;  %4449 = vmatprep.subr.mxu0 %v13244_v60  ;;  %v13253_v46 = vld [vmem:[#allocation67_spill] sm:$0xff]  ;;  %v13256_v60 = vld [vmem:[#allocation68_spill] sm:$0xff]  ;;  %v13261_v6 = vld [vmem:[#allocation86_spill] sm:$0xff] }
 0x2f6   : > { %4724 = vmatprep.subr.mxu1 %v13245_v35  ;;  %4453 = vmatpush1.msra.mxu0 %v13247_v51  ;;  %v13254_v44 = vand.u32 4294901760, %v13253_v46  ;;  %v13257_v35 = vand.u32 4294901760, %v13256_v60  ;;  %v13258_v51 = vld [vmem:[#allocation84_spill] sm:$0xff]  ;;  %v13270_v60 = vld [vmem:[#allocation11_spill] sm:$0xff] }
 0x2f7   : > { %4726 = vmatpush1.msra.mxu1 %v13248_v43  ;;  %4457 = vmatprep.subr.mxu0 %v13249_v30  ;;  %v13259_v43 = vld [vmem:[#allocation72_spill] sm:$0xff] }
 0x2f8   : > { %4728 = vmatprep.subr.mxu1 %v13250_v45  ;;  %4461 = vmatpush1.msra.mxu0 %v13251_v26  ;;  %v13260_v1 = vand.u32 4294901760, %v13259_v43  ;;  %v13262_v30 = vld [vmem:[#allocation76_spill] sm:$0xff]  ;;  %v13264_v45 = vld [vmem:[#allocation102_spill] sm:$0xff]  ;;  %v13273_v43 = vld [vmem:[#allocation21_spill] sm:$0xff] }
 0x2f9   : > { %4730 = vmatpush1.msra.mxu1 %v13252_v62  ;;  %4465 = vmatprep.subr.mxu0 %v13254_v44  ;;  %v13263_v27 = vand.u32 4294901760, %v13262_v30  ;;  %v13265_v26 = vld [vmem:[#allocation80_spill] sm:$0xff]  ;;  %v13268_v44 = vld [vmem:[#allocation83_spill] sm:$0xff] }
 0x2fa   : > { %4732 = vmatprep.subr.mxu1 %v13255_v32  ;;  %4469 = vmatpush1.msra.mxu0 %v13257_v35  ;;  %v13266_v62 = vand.u32 4294901760, %v13265_v26  ;;  %v13267_v46 = vld [vmem:[#allocation104_spill] sm:$0xff]  ;;  %v13269_v32 = vand.u32 4294901760, %v13268_v44  ;;  %v13276_v30 = vld [vmem:[#allocation23_spill] sm:$0xff]  ;;  %v13279_v26 = vld [vmem:[#allocation25_spill] sm:$0xff] }
 0x2fb   : > { %4734 = vmatpush1.msra.mxu1 %v13258_v51  ;;  %4473 = vmatprep.subr.mxu0 %v13260_v1  ;;  %v13271_v35 = vld [vmem:[#allocation88_spill] sm:$0xff]  ;;  %v13274_v1 = vld [vmem:[#allocation90_spill] sm:$0xff] }
 0x2fc   : > { %4736 = vmatprep.subr.mxu1 %v13261_v6  ;;  %4477 = vmatpush1.msra.mxu0 %v13263_v27  ;;  %v13272_v51 = vand.u32 4294901760, %v13271_v35  ;;  %v13275_v6 = vand.u32 4294901760, %v13274_v1  ;;  %v13277_v27 = vld [vmem:[#allocation79_spill] sm:$0xff]  ;;  %v13282_v44 = vld [vmem:[#allocation30_spill] sm:$0xff]  ;;  %v13285_v35 = vld [vmem:[#allocation20_spill] sm:$0xff] }
 0x2fd   : > { %4738 = vmatpush1.msra.mxu1 %v13264_v45  ;;  %4481 = vmatprep.subr.mxu0 %v13266_v62  ;;  %v13278_v45 = vand.u32 4294901760, %v13277_v27  ;;  %v13280_v62 = vld [vmem:[#allocation81_spill] sm:$0xff]  ;;  %v859_v1 = vld [vmem:[#allocation2 + $0x3f8] sm:$0xff] }
 0x2fe   : > { %4740 = vmatprep.subr.mxu1 %v13267_v46  ;;  %4485 = vmatpush1.msra.mxu0 %v13269_v32  ;;  %v13281_v46 = vand.u32 4294901760, %v13280_v62  ;;  %v13283_v32 = vld [vmem:[#allocation96_spill] sm:$0xff]  ;;  %v13292_v62 = vld [vmem:[#allocation14_spill] sm:$0xff] }
 0x2ff   : > { %4742 = vmatpush1.msra.mxu1 %v13270_v60  ;;  %4489 = vmatprep.subr.mxu0 %v13272_v51  ;;  %v13284_v60 = vand.u32 4294901760, %v13283_v32  ;;  %v13286_v51 = vld [vmem:[#allocation19_spill] sm:$0xff]  ;;  %v13295_v32 = vld [vmem:[#allocation26_spill] sm:$0xff] }
 0x300   : > { %4744 = vmatprep.subr.mxu1 %v13273_v43  ;;  %4493 = vmatpush1.msra.mxu0 %v13275_v6  ;;  %v13287_v43 = vand.u32 4294901760, %v13286_v51  ;;  %v13288_v6 = vld [vmem:[#allocation35_spill] sm:$0xff]  ;;  %v13298_v51 = vld [vmem:[#allocation34_spill] sm:$0xff] }
 0x301   : > { %4746 = vmatpush1.msra.mxu1 %v13276_v30  ;;  %4497 = vmatprep.subr.mxu0 %v13278_v45  ;;  %v13289_v30 = vld [vmem:[#allocation12_spill] sm:$0xff]  ;;  %v858_v45 = vld [vmem:[#allocation2 + $0x3f0] sm:$0xff] }
 0x302   : > { %4748 = vmatprep.subr.mxu1 %v13279_v26  ;;  %4501 = vmatpush1.msra.mxu0 %v13281_v46  ;;  %v13290_v27 = vand.u32 4294901760, %v13289_v30  ;;  %v13291_v26 = vld [vmem:[#allocation93_spill] sm:$0xff]  ;;  %v13293_v46 = vand.u32 4294901760, %v13292_v62  ;;  %v13301_v30 = vld [vmem:[#allocation75_spill] sm:$0xff]  ;;  %v13304_v62 = vld [vmem:[#allocation100_spill] sm:$0xff] }
 0x303   : > { %4750 = vmatpush1.msra.mxu1 %v13282_v44  ;;  %4505 = vmatprep.subr.mxu0 %v13284_v60  ;;  %v13294_v44 = vld [vmem:[#allocation31_spill] sm:$0xff]  ;;  %v13296_v60 = vand.u32 4294901760, %v13295_v32  ;;  %v13306_v32 = vld [vmem:[#allocation89_spill] sm:$0xff] }
 0x304   : > { %4752 = vmatprep.subr.mxu1 %v13285_v35  ;;  %4509 = vmatpush1.msra.mxu0 %v13287_v43  ;;  %v9945_v35 = vand.u32 4294901760, %v859_v1  ;;  %v13299_v43 = vand.u32 4294901760, %v13199_v38 }
 0x305   : > { %4754 = vmatpush1.msra.mxu1 %v13288_v6  ;;  %4513 = vmatprep.subr.mxu0 %v13290_v27  ;;  %v9950_v6 = vand.u32 4294901760, %v858_v45  ;;  %v13302_v27 = vand.u32 4294901760, %v13201_v10  ;;  %v13310_v10 = vand.u32 4294901760, %v13207_v47  ;;  %v13318_v47 = vld [vmem:[#allocation105_spill] sm:$0xff] }
 0x306   : > { %4756 = vmatprep.subr.mxu1 %v13291_v26  ;;  %4517 = vmatpush1.msra.mxu0 %v13293_v46  ;;  %13297 = vst [vmem:[#allocation15_spill] sm:$0xff] %v9945_v35  ;;  %v13303_v26 = vld [vmem:[#allocation85_spill] sm:$0xff]  ;;  %v13305_v46 = vand.u32 4294901760, %v13304_v62  ;;  %v9962_v38 = vsub.f32 %v859_v1, %v9945_v35  ;;  %v13316_v1 = vand.u32 4294901760, %v13210_v7  ;;  %v13322_v7 = vld [vmem:[#allocation27_spill] sm:$0xff]  ;;  %v13342_v35 = vand.u32 4294901760, %v13219_v22 }
 0x307   : > { %4758 = vmatpush1.msra.mxu1 %v13294_v44  ;;  %4521 = vmatprep.subr.mxu0 %v13296_v60  ;;  %13300 = vst [vmem:[#allocation16_spill] sm:$0xff] %v9950_v6  ;;  %v851_v44 = vld [vmem:[#allocation2 + $0x3b8] sm:$0xff]  ;;  %v13307_v60 = vand.u32 4294901760, %v13205_v8  ;;  %v13315_v8 = vld [vmem:[#allocation32_spill] sm:$0xff] }
 0x308   : > { %4760 = vmatprep.subr.mxu1 %v13298_v51  ;;  %4525 = vmatpush1.msra.mxu0 %v13299_v43  ;;  %13308 = vst [vmem:[#allocation10_spill] sm:$0xff] %v9962_v38  ;;  %v850_v51 = vld [vmem:[#allocation2 + $0x3b0] sm:$0xff]  ;;  %v13309_v43 = vld [vmem:[#allocation28_spill] sm:$0xff]  ;;  %v9973_v62 = vand.u32 4294901760, %v851_v44 }
 0x309   : > { %4762 = vmatpush1.msra.mxu1 %v13301_v30  ;;  %4529 = vmatprep.subr.mxu0 %v13302_v27  ;;  %v9968_v30 = vsub.f32 %v858_v45, %v9950_v6  ;;  %v13312_v27 = vld [vmem:[#allocation98_spill] sm:$0xff]  ;;  %v13319_v45 = vand.u32 4294901760, %v13211_v54  ;;  %v13341_v6 = vld [vmem:[#allocation60_spill] sm:$0xff] }
 0x30a   : > { %4764 = vmatprep.subr.mxu1 %v13303_v26  ;;  %4533 = vmatpush1.msra.mxu0 %v13305_v46  ;;  %v13313_v26 = vand.u32 4294901760, %v13209_v18  ;;  %13314 = vst [vmem:[#allocation29_spill] sm:$0xff] %v9973_v62  ;;  %v9978_v46 = vand.u32 4294901760, %v850_v51  ;;  %v13320_v18 = vld [vmem:[#allocation108_spill] sm:$0xff] }
 0x30b   : > { %4766 = vmatpush1.msra.mxu1 %v13306_v32  ;;  %4537 = vmatprep.subr.mxu0 %v13307_v60  ;;  %13311 = vst [vmem:[#allocation18_spill] sm:$0xff] %v9968_v30  ;;  %v843_v32 = vld [vmem:[#allocation2 + $0x378] sm:$0xff]  ;;  %v11954_v60 = vand.u32 4294901760, %v9962_v38 }
 0x30c   : > { %4768 = vmatprep.subr.mxu1 %v13309_v43  ;;  %4541 = vmatpush1.msra.mxu0 %v13310_v10  ;;  %13317 = vst [vmem:[#allocation45_spill] sm:$0xff] %v9978_v46  ;;  %v842_v43 = vld [vmem:[#allocation2 + $0x370] sm:$0xff]  ;;  %v13321_v10 = vand.u32 4294901760, %v13213_v12  ;;  %v9994_v54 = vand.u32 4294901760, %v843_v32  ;;  %v10000_v12 = vsub.f32 %v850_v51, %v9978_v46  ;;  %v13333_v51 = vand.u32 4294901760, %v13217_v5 }
 0x30d   : > { %4770 = vmatpush2.msra.mxu1 %v13312_v27  ;;  %4545 = vmatprep.subr.mxu0 %v13313_v26  ;;  %v13323_v26 = vand.u32 4294901760, %v13214_v21  ;;  %v13330_v21 = vld [vmem:[#allocation38_spill] sm:$0xff]  ;;  %v2412_v27 = vpop.f32.mrf.mxu0 }
 0x30e   : > { %4772 = vmatprep.subr.mxu1 %v13315_v8  ;;  %4549 = vmatpush1.msra.mxu0 %v13316_v1  ;;  %v9992_v8 = vsub.f32 %v851_v44, %v9973_v62  ;;  %13325 = vst [vmem:[#allocation46_spill] sm:$0xff] %v9994_v54  ;;  %v835_v1 = vld [vmem:[#allocation2 + $0x338] sm:$0xff]  ;;  %13328 = vst [vmem:[#allocation58_spill] sm:$0xff] %v10000_v12  ;;  %v13331_v44 = vand.u32 4294901760, %v13216_v4  ;;  %v818_v62 = vld [vmem:[#allocation2 + $0x2b0] sm:$0xff]  ;;  %v10029_v5 = vsub.f32 %v843_v32, %v9994_v54 }
 0x30f   : > { %4774 = vmatpush2.msra.mxu1 %v13318_v47  ;;  %4553 = vmatprep.subr.mxu0 %v13319_v45  ;;  %v834_v47 = vld [vmem:[#allocation2 + $0x330] sm:$0xff]  ;;  %v13326_v45 = vld [vmem:[#allocation37_spill] sm:$0xff]  ;;  %v13346_v54 = vand.u32 4294901760, %v13220_v63  ;;  %v10050_v22 = vand.u32 4294901760, %v818_v62 }
 0x310   : > { %4776 = vmatprep.subr.mxu1 %v13320_v18  ;;  %4557 = vmatpush1.msra.mxu0 %v13321_v10  ;;  %13324 = vst [vmem:[#allocation48_spill] sm:$0xff] %v9992_v8  ;;  %v13327_v18 = vand.u32 4294901760, %v13215_v56  ;;  %v10002_v10 = vand.u32 4294901760, %v842_v43  ;;  %v13332_v56 = vld [vmem:[#allocation43_spill] sm:$0xff]  ;;  %v10022_v4 = vand.u32 4294901760, %v834_v47  ;;  %13339 = vst [vmem:[#allocation33_spill] sm:$0xff] %v10029_v5 }
 0x311   : > { %4778 = vmatpush2.msra.mxu1 %v13322_v7  ;;  %4561 = vmatprep.subr.mxu0 %v13323_v26  ;;  %v827_v7 = vld [vmem:[#allocation2 + $0x2f8] sm:$0xff]  ;;  %v10010_v26 = vsub.f32 %v9962_v38, %v11954_v60  ;;  %v13337_v60 = vld [vmem:[#allocation49_spill] sm:$0xff]  ;;  %v13338_v38 = vand.u32 4294901760, %v13218_v59  ;;  %13348 = vst [vmem:[#allocation103_spill] sm:$0xff] %v10050_v22 }
 0x312   : > { %4780 = vmatprep.subr.mxu1 %v13326_v45  ;;  %4565 = vmatpush1.msra.mxu0 %v13327_v18  ;;  %13329 = vst [vmem:[#allocation24_spill] sm:$0xff] %v10002_v10  ;;  %v826_v45 = vld [vmem:[#allocation2 + $0x2f0] sm:$0xff]  ;;  %v13334_v18 = vand.u32 4294901760, %v9968_v30  ;;  %13336 = vst [vmem:[#allocation47_spill] sm:$0xff] %v10022_v4  ;;  %v13345_v32 = vld [vmem:[#allocation53_spill] sm:$0xff]  ;;  %v10060_v63 = vsub.f32 %v834_v47, %v10022_v4 }
 0x313   : > { %4782 = vmatpush2.msra.mxu1 %v13330_v21  ;;  %4569 = vmatprep.subr.mxu0 %v13331_v44  ;;  %v10020_v21 = vand.u32 4294901760, %v835_v1  ;;  %v819_v44 = vld [vmem:[#allocation2 + $0x2b8] sm:$0xff]  ;;  %v10040_v59 = vand.u32 4294901760, %v826_v45  ;;  %v13359_v4 = vld [vmem:[#allocation65_spill] sm:$0xff] }
 0x314   : > { %4784 = vmatprep.subr.mxu1 %v13332_v56  ;;  %4573 = vmatpush2.msra.mxu0 %v13333_v51  ;;  %v10018_v46 = vsub.f32 %v9968_v30, %v13334_v18  ;;  %v10031_v51 = vand.u32 4294901760, %v827_v7  ;;  %v811_v18 = vld [vmem:[#allocation2 + $0x278] sm:$0xff]  ;;  %v2805_v30 = vpop.f32.mrf.mxu1  ;;  %v10048_v49 = vand.u32 4294901760, %v819_v44  ;;  %13352 = vst [vmem:[#allocation91_spill] sm:$0xff] %v10060_v63 }
 0x315   : > { %13335 = vst [vmem:[#allocation55_spill] sm:$0xff] %v10020_v21  ;;  %4786 = vmatpush2.msra.mxu1 %v13337_v60  ;;  %4577 = vmatprep.subr.mxu0 %v13338_v38  ;;  %v10038_v60 = vsub.f32 %v842_v43, %v10002_v10  ;;  %13344 = vst [vmem:[#allocation97_spill] sm:$0xff] %v10040_v59  ;;  %v810_v38 = vld [vmem:[#allocation2 + $0x270] sm:$0xff]  ;;  %v10042_v56 = vadd.f32 %v2805_v30, %v2412_v27  ;;  %v13350_v43 = vand.u32 4294901760, %v13221_v17  ;;  %v2414_v10 = vpop.f32.mrf.mxu0 }
 0x316   : > { %13340 = vst [vmem:[#allocation22_spill] sm:$0xff] %v10031_v51  ;;  %4788 = vmatprep.subr.mxu1 %v13341_v6  ;;  %4581 = vmatpush2.msra.mxu0 %v13342_v35  ;;  %13347 = vst [vmem:[#allocation101_spill] sm:$0xff] %v10048_v49  ;;  %v803_v35 = vld [vmem:[#allocation2 + $0x238] sm:$0xff]  ;;  %v10057_v27 = vsub.f32 %v835_v1, %v10020_v21  ;;  %v13356_v17 = vand.u32 4294901760, %v9992_v8  ;;  %v10074_v47 = vsub.f32 %v827_v7, %v10031_v51  ;;  %v2807_v7 = vpop.f32.mrf.mxu1 }
 0x317   : > { %13343 = vst [vmem:[#allocation8_spill] sm:$0xff] %v10038_v60  ;;  %4790 = vmatpush2.msra.mxu1 %v13345_v32  ;;  %4585 = vmatprep.subr.mxu0 %v13346_v54  ;;  %v10062_v54 = vand.u32 4294901760, %v811_v18  ;;  %v802_v32 = vld [vmem:[#allocation2 + $0x230] sm:$0xff]  ;;  %v795_v6 = vld [vmem:[#allocation2 + $0x1f8] sm:$0xff]  ;;  %v10076_v30 = vand.u32 4294901760, %v810_v38  ;;  %v13360_v21 = vand.u32 4294901760, %v13223_v2  ;;  %v10096_v2 = vsub.f32 %v819_v44, %v10048_v49 }
 0x318   : > { %4792 = vmatprep.subr.mxu1 %v13349_v39  ;;  %4589 = vmatpush2.msra.mxu0 %v13350_v43  ;;  %13351 = vst [vmem:[#allocation107_spill] sm:$0xff] %v10057_v27  ;;  %v13355_v39 = vand.u32 4294901760, %v13222_v34  ;;  %v10070_v43 = vsub.f32 %v9992_v8, %v13356_v17  ;;  %13357 = vst [vmem:[#allocation95_spill] sm:$0xff] %v10074_v47  ;;  %v10088_v17 = vsub.f32 %v826_v45, %v10040_v59  ;;  %v13364_v8 = vld [vmem:[#allocation69_spill] sm:$0xff] }
 0x319   : > { %13353 = vst [vmem:[#allocation9_spill] sm:$0xff] %v10062_v54  ;;  %4794 = vmatpush2.msra.mxu1 %v13354_v33  ;;  %13358 = vst [vmem:[#allocation39_spill] sm:$0xff] %v10076_v30  ;;  %v13361_v33 = vand.u32 4294901760, %v10000_v12  ;;  %v10090_v1 = vand.u32 4294901760, %v803_v35  ;;  %v10105_v45 = vadd.f32 %v2807_v7, %v2414_v10  ;;  %v13371_v59 = vand.u32 4294901760, %v13225_v55 }
 0x31a   : > { %4593 = vmatprep.subr.mxu0 %v13355_v39  ;;  %4796 = vmatprep.subr.mxu1 %v13359_v4  ;;  %13362 = vst [vmem:[#allocation42_spill] sm:$0xff] %v10088_v17  ;;  %v13365_v4 = vand.u32 4294901760, %v13224_v57  ;;  %13366 = vst [vmem:[#allocation36_spill] sm:$0xff] %v10096_v2  ;;  %v10103_v39 = vand.u32 4294901760, %v795_v6  ;;  %v10113_v44 = vsub.f32 %v811_v18, %v10062_v54  ;;  %v13375_v7 = vand.u32 4294901760, %v10029_v5  ;;  %v13377_v18 = vld [vmem:[#allocation99_spill] sm:$0xff] }
 0x31b   : > { %4597 = vmatpush2.msra.mxu0 %v13360_v21  ;;  %v10084_v34 = vsub.f32 %v10000_v12, %v13361_v33  ;;  %13363 = vst [vmem:[#allocation44_spill] sm:$0xff] %v10090_v1  ;;  %4798 = vmatpush2.msra.mxu1 %v13364_v8  ;;  %v10099_v21 = vsub.f32 %v818_v62, %v10050_v22  ;;  %v10101_v33 = vand.u32 4294901760, %v802_v32  ;;  %v13370_v12 = vld [vmem:[#allocation94_spill] sm:$0xff]  ;;  %v13381_v57 = vld [vmem:[#allocation87_spill] sm:$0xff] }
 0x31c   : > { %4601 = vmatprep.subr.mxu0 %v13365_v4  ;;  %13369 = vst [vmem:[#allocation50_spill] sm:$0xff] %v10103_v39  ;;  %4800 = vmatprep.subr.mxu1 %v13370_v12  ;;  %13372 = vst [vmem:[#allocation61_spill] sm:$0xff] %v10113_v44  ;;  %v13373_v62 = vld [vmem:[#allocation82_spill] sm:$0xff]  ;;  %v13374_v4 = vand.u32 4294901760, %v13226_v50  ;;  %v10122_v12 = vsub.f32 %v10029_v5, %v13375_v7  ;;  %v10139_v55 = vsub.f32 %v803_v35, %v10090_v1 }
 0x31d   : > { %13367 = vst [vmem:[#allocation40_spill] sm:$0xff] %v10099_v21  ;;  %13368 = vst [vmem:[#allocation57_spill] sm:$0xff] %v10101_v33  ;;  %4605 = vmatpush2.msra.mxu0 %v13371_v59  ;;  %4802 = vmatpush2.msra.mxu1 %v13373_v62  ;;  %v10126_v59 = vsub.f32 %v810_v38, %v10076_v30  ;;  %v794_v8 = vld [vmem:[#allocation2 + $0x1f0] sm:$0xff]  ;;  %v13378_v62 = vand.u32 4294901760, %v13227_v36  ;;  %v787_v38 = vld [vmem:[#allocation2 + $0x1b8] sm:$0xff]  ;;  %v10147_v50 = vsub.f32 %v802_v32, %v10101_v33 }
 0x31e   : > { %4609 = vmatprep.subr.mxu0 %v13374_v4  ;;  %4804 = vmatprep.subr.mxu1 %v13377_v18  ;;  %v13379_v4 = vand.u32 4294901760, %v10038_v60  ;;  %13380 = vst [vmem:[#allocation62_spill] sm:$0xff] %v10139_v55  ;;  %v13382_v18 = vand.u32 4294901760, %v13228_v53  ;;  %v786_v7 = vld [vmem:[#allocation2 + $0x1b0] sm:$0xff]  ;;  %v13386_v35 = vand.u32 4294901760, %v13229_v48  ;;  %v13393_v32 = vand.u32 4294901760, %v13231_v16 }
 0x31f   : > { %13376 = vst [vmem:[#allocation54_spill] sm:$0xff] %v10126_v59  ;;  %4613 = vmatpush2.msra.mxu0 %v13378_v62  ;;  %4806 = vmatpush2.msra.mxu1 %v13381_v57  ;;  %13383 = vst [vmem:[#allocation64_spill] sm:$0xff] %v10147_v50  ;;  %v13387_v57 = vand.u32 4294901760, %v10057_v27  ;;  %v13396_v36 = vand.u32 4294901760, %v13232_v19  ;;  %v13397_v16 = vand.u32 4294901760, %v10096_v2  ;;  %v13399_v19 = vand.u32 4294901760, %v13233_v13 }
 0x320   : > { %v10135_v10 = vsub.f32 %v10038_v60, %v13379_v4  ;;  %4617 = vmatprep.subr.mxu0 %v13382_v18  ;;  %v10150_v4 = vsub.f32 %v795_v6, %v10103_v39  ;;  %v13385_v60 = vld [vmem:[#allocation117_spill] sm:$0xff]  ;;  %v13388_v18 = vand.u32 4294901760, %v10060_v63  ;;  %v10166_v6 = vand.u32 4294901760, %v794_v8 }
 0x321   : > { %4808 = vmatprep.subr.mxu1 %v13385_v60  ;;  %4621 = vmatpush2.msra.mxu0 %v13386_v35  ;;  %v10158_v53 = vsub.f32 %v10057_v27, %v13387_v57  ;;  %v13390_v60 = vand.u32 4294901760, %v13230_v42  ;;  %v13391_v35 = vand.u32 4294901760, %v10074_v47  ;;  %v13394_v42 = vand.u32 4294901760, %v10088_v17 }
 0x322   : > { %13384 = vst [vmem:[#allocation66_spill] sm:$0xff] %v10150_v4  ;;  %v10163_v62 = vsub.f32 %v10060_v63, %v13388_v18  ;;  %13389 = vst [vmem:[#allocation71_spill] sm:$0xff] %v10166_v6  ;;  %4810 = vmatpush2.msra.mxu1 %v9558_v15  ;;  %v10178_v18 = vand.u32 4294901760, %v787_v38  ;;  %v3008_v63 = vpop.f32.mrf.mxu0  ;;  %v10218_v15 = vsub.f32 %v794_v8, %v10166_v6  ;;  %v13402_v48 = vand.u32 4294901760, %v13234_v37  ;;  %v770_v8 = vld [vmem:[#allocation2 + $0x130] sm:$0xff] }
 0x323   : > { %4625 = vmatprep.subr.mxu0 %v13390_v60  ;;  %v10175_v57 = vsub.f32 %v10074_v47, %v13391_v35  ;;  %4812 = vmatprep.subr.mxu1 %v9570_v0  ;;  %v10187_v60 = vsub.f32 %v10088_v17, %v13394_v42  ;;  %v10190_v35 = vand.u32 4294901760, %v786_v7  ;;  %v779_v47 = vld [vmem:[#allocation2 + $0x178] sm:$0xff]  ;;  %v10198_v0 = vsub.f32 %v10096_v2, %v13397_v16  ;;  %v778_v17 = vld [vmem:[#allocation2 + $0x170] sm:$0xff] }
 0x324   : > { %13392 = vst [vmem:[#allocation73_spill] sm:$0xff] %v10178_v18  ;;  %4629 = vmatpush2.msra.mxu0 %v13393_v32  ;;  %4814 = vmatpush2.msra.mxu1 %v9582_v40  ;;  %v13398_v32 = vand.u32 4294901760, %v10099_v21  ;;  %v13400_v16 = vand.u32 4294901760, %v10113_v44  ;;  %13401 = vst [vmem:[#allocation92_spill] sm:$0xff] %v10218_v15  ;;  %v13403_v13 = vand.u32 4294901760, %v10126_v59  ;;  %v771_v40 = vld [vmem:[#allocation2 + $0x138] sm:$0xff] }
 0x325   : > { %13395 = vst [vmem:[#allocation77_spill] sm:$0xff] %v10190_v35  ;;  %4633 = vmatprep.subr.mxu0 %v13396_v36  ;;  %4816 = vmatprep.subr.mxu1 %v9590_v28  ;;  %v10230_v36 = vsub.f32 %v787_v38, %v10178_v18  ;;  %v10246_v38 = vand.u32 4294901760, %v778_v17  ;;  %v10268_v2 = vand.u32 4294901760, %v771_v40 }
 0x326   : > { %v10203_v42 = vsub.f32 %v10099_v21, %v13398_v32  ;;  %4637 = vmatpush2.msra.mxu0 %v13399_v19  ;;  %v10215_v32 = vsub.f32 %v10113_v44, %v13400_v16  ;;  %4818 = vmatpush2.msra.mxu1 %v9598_v29  ;;  %v10227_v19 = vsub.f32 %v10126_v59, %v13403_v13  ;;  %v10232_v16 = vand.u32 4294901760, %v779_v47  ;;  %v13406_v29 = vld [vmem:[#allocation120_spill] sm:$0xff]  ;;  %v3149_v21 = vpop.f32.mrf.mxu1 }
 0x327   : > { %4641 = vmatprep.subr.mxu0 %v13402_v48  ;;  %13404 = vst [vmem:[#allocation106_spill] sm:$0xff] %v10230_v36  ;;  %4820 = vmatprep.subr.mxu1 %v9606_v25  ;;  %v13407_v44 = vand.u32 4294901760, %v13406_v29  ;;  %v13408_v48 = vand.u32 4294901760, %v10139_v55  ;;  %v10244_v13 = vsub.f32 %v786_v7, %v10190_v35  ;;  %13410 = vst [vmem:[#allocation52_spill] sm:$0xff] %v10246_v38  ;;  %v13411_v59 = vand.u32 4294901760, %v9588_v52  ;;  %v13414_v52 = vld [vmem:[#allocation121_spill] sm:$0xff] }
 0x328   : > { %13405 = vst [vmem:[#allocation118_spill] sm:$0xff] %v10232_v16  ;;  %4822 = vmatpush2.msra.mxu1 %v9614_v61  ;;  %v13412_v29 = vand.u32 4294901760, %v10147_v50  ;;  %v3010_v61 = vpop.f32.mrf.mxu0  ;;  %13416 = vst [vmem:[#allocation13_spill] sm:$0xff] %v10268_v2  ;;  %v13420_v25 = vand.u32 4294901760, %v9612_v3  ;;  %v13431_v3 = vand.u32 4294901760, %v9632_v9  ;;  %v13433_v27 = vand.u32 4294901760, %v10230_v36 }
 0x329   : > { %4645 = vmatpush2.msra.mxu0 %v13407_v44  ;;  %v10241_v28 = vsub.f32 %v10139_v55, %v13408_v48  ;;  %13409 = vst [vmem:[#allocation119_spill] sm:$0xff] %v10244_v13  ;;  %v13413_v48 = vand.u32 4294901760, %v10150_v4  ;;  %v763_v55 = vld [vmem:[#allocation2 + $0xf8] sm:$0xff]  ;;  %4824 = vmatprep.subr.mxu1 %v9624_v14  ;;  %v3011_v14 = vadd.f32 %v3010_v61, %v10105_v45  ;;  %v13427_v45 = vand.u32 4294901760, %v10218_v15 }
 0x32a   : > { %4649 = vmatprep.subr.mxu0 %v13411_v59  ;;  %v10256_v37 = vsub.f32 %v10147_v50, %v13412_v29  ;;  %v13415_v59 = vand.u32 4294901760, %v13414_v52  ;;  %v10270_v29 = vand.u32 4294901760, %v770_v8  ;;  %v762_v50 = vld [vmem:[#allocation2 + $0xf0] sm:$0xff]  ;;  %4826 = vmatpush2.msra.mxu1 %v9634_v58  ;;  %v755_v44 = vld [vmem:[#allocation2 + $0xb8] sm:$0xff]  ;;  %v3151_v58 = vpop.f32.mrf.mxu1  ;;  %v13426_v52 = vand.u32 4294901760, %v10010_v26 }
 0x32b   : > { %v10261_v7 = vsub.f32 %v10150_v4, %v13413_v48  ;;  %v3009_v48 = vadd.f32 %v3008_v63, %v10042_v56  ;;  %v13418_v4 = vand.u32 4294901760, %v9604_v24  ;;  %4828 = vmatprep.subr.mxu1 %v9644_v23  ;;  %v10287_v24 = vsub.f32 %v778_v17, %v10246_v38  ;;  %v747_v56 = vld [vmem:[#allocation2 + $0x78] sm:$0xff]  ;;  %v13425_v17 = vld [vmem:[#allocation109_spill] sm:$0xff]  ;;  %v746_v23 = vld [vmem:[#allocation2 + $0x70] sm:$0xff] }
 0x32c   : > { %4653 = vmatpush2.msra.mxu0 %v13415_v59  ;;  %13417 = vst [vmem:[#allocation17_spill] sm:$0xff] %v10270_v29  ;;  %v10279_v59 = vsub.f32 %v779_v47, %v10232_v16  ;;  %v10289_v63 = vand.u32 4294901760, %v763_v55  ;;  %4830 = vmatpush2.msra.mxu1 %v9654_v41  ;;  %v13423_v47 = vand.u32 4294901760, %v9622_v11  ;;  %v10305_v41 = vsub.f32 %v10218_v15, %v13427_v45  ;;  %v3551_v5 = vpop.f32.mrf.mxu1 }
 0x32d   : > { %4657 = vmatprep.subr.mxu0 %v13418_v4  ;;  %13421 = vst [vmem:[#allocation41_spill] sm:$0xff] %v10287_v24  ;;  %v754_v4 = vld [vmem:[#allocation2 + $0xb0] sm:$0xff]  ;;  %4834 = vmatmul.mubr.f32.vlgmr.msra.gmra.mxu1 %v13425_v17  ;;  %v10308_v11 = vsub.f32 %v771_v40, %v10268_v2  ;;  %v10311_v61 = vsub.f32 %v770_v8, %v10270_v29  ;;  %v13432_v26 = vand.u32 4294901760, %v10018_v46  ;;  %v739_v8 = vld [vmem:[#allocation2 + $0x38] sm:$0xff]  ;;  %v13435_v9 = vand.u32 4294901760, %v9642_v20 }
 0x32e   : > { %13419 = vst [vmem:[#allocation59_spill] sm:$0xff] %v10279_v59  ;;  %4661 = vmatpush2.msra.mxu0 %v13420_v25  ;;  %13422 = vst [vmem:[#allocation51_spill] sm:$0xff] %v10289_v63  ;;  %v10297_v25 = vand.u32 4294901760, %v762_v50  ;;  %4990 = vmatprep.subr.mxu1 %v13426_v52  ;;  %v3150_v52 = vadd.f32 %v3149_v21, %v3009_v48  ;;  %v10322_v45 = vsub.f32 %v10230_v36, %v13433_v27  ;;  %v738_v40 = vld [vmem:[#allocation2 + $0x30] sm:$0xff] }
 0x32f   : > { %4665 = vmatprep.subr.mxu0 %v13423_v47  ;;  %13428 = vst [vmem:[#allocation74_spill] sm:$0xff] %v10308_v11  ;;  %13429 = vst [vmem:[#allocation67_spill] sm:$0xff] %v10311_v61  ;;  %v10313_v47 = vand.u32 4294901760, %v755_v44  ;;  %4996 = vmatpush1.msra.mxu1 %v13432_v26  ;;  %v10325_v15 = vand.u32 4294901760, %v754_v4  ;;  %v13436_v46 = vand.u32 4294901760, %v10244_v13  ;;  %v10337_v48 = vsub.f32 %v763_v55, %v10289_v63  ;;  %v13445_v55 = vld [vmem:[#allocation123_spill] sm:$0xff] }
 0x330   : > { %13424 = vst [vmem:[#allocation70_spill] sm:$0xff] %v10297_v25  ;;  %4669 = vmatpush2.msra.mxu0 %v13431_v3  ;;  %5370 = vmatprep.mubr.f32.mxu1 %v13236_v31  ;;  %v3414_v3 = vpop.f32.mrf.mxu0  ;;  %v10339_v26 = vand.u32 4294901760, %v747_v56  ;;  %v13439_v36 = vand.u32 4294901760, %v10070_v43  ;;  %v13440_v31 = vld [vmem:[#allocation122_spill] sm:$0xff]  ;;  %v3152_v29 = vadd.f32 %v3151_v58, %v3011_v14  ;;  %v10346_v2 = vsub.f32 %v762_v50, %v10297_v25  ;;  %v13450_v58 = vld [vmem:[#allocation124_spill] sm:$0xff] }
 0x331   : > { %13430 = vst [vmem:[#allocation78_spill] sm:$0xff] %v10313_v47  ;;  %13434 = vst [vmem:[#allocation68_spill] sm:$0xff] %v10325_v15  ;;  %4673 = vmatprep.subr.mxu0 %v13435_v9  ;;  %v10333_v21 = vsub.f32 %v10244_v13, %v13436_v46  ;;  %v13441_v20 = vand.u32 4294901760, %v13440_v31  ;;  %v3415_v9 = vadd.f32 %v3414_v3, %v3150_v52  ;;  %v10348_v46 = vand.u32 4294901760, %v746_v23 }
 0x332   : > { %13437 = vst [vmem:[#allocation84_spill] sm:$0xff] %v10337_v48  ;;  %13438 = vst [vmem:[#allocation72_spill] sm:$0xff] %v10339_v26  ;;  %5002 = vmatprep.subr.mxu1 %v13439_v36  ;;  %v13444_v27 = vand.u32 4294901760, %v10084_v34  ;;  %v13446_v13 = vand.u32 4294901760, %v13445_v55  ;;  %v3416_v63 = vpop.f32.mrf.mxu0  ;;  %v12019_v43 = vand.u32 4294901760, %v10308_v11  ;;  %v10357_v31 = vsub.f32 %v755_v44, %v10313_v47  ;;  %v13455_v55 = vld [vmem:[#allocation125_spill] sm:$0xff] }
 0x333   : > { %4677 = vmatpush2.msra.mxu0 %v13441_v20  ;;  %13442 = vst [vmem:[#allocation86_spill] sm:$0xff] %v10346_v2  ;;  %13443 = vst [vmem:[#allocation76_spill] sm:$0xff] %v10348_v46  ;;  %v10359_v14 = vand.u32 4294901760, %v739_v8  ;;  %v13449_v50 = vand.u32 4294901760, %v10122_v12  ;;  %v13451_v34 = vand.u32 4294901760, %v13450_v58  ;;  %v3552_v52 = vadd.f32 %v3551_v5, %v3415_v9  ;;  %v3553_v20 = vpop.f32.mrf.mxu1  ;;  %v13471_v12 = vld [vmem:[#allocation115_spill] sm:$0xff] }
 0x334   : > { %5008 = vmatpush1.msra.mxu1 %v13444_v27  ;;  %4681 = vmatprep.subr.mxu0 %v13446_v13  ;;  %13447 = vst [vmem:[#allocation102_spill] sm:$0xff] %v10357_v31  ;;  %v3417_v3 = vadd.f32 %v3416_v63, %v3152_v29  ;;  %v10366_v13 = vsub.f32 %v754_v4, %v10325_v15  ;;  %v10368_v27 = vand.u32 4294901760, %v738_v40  ;;  %v13454_v44 = vand.u32 4294901760, %v10135_v10  ;;  %v13460_v10 = vld [vmem:[#allocation126_spill] sm:$0xff] }
 0x335   : > { %13448 = vst [vmem:[#allocation80_spill] sm:$0xff] %v10359_v14  ;;  %5014 = vmatprep.subr.mxu1 %v13449_v50  ;;  %4685 = vmatpush2.msra.mxu0 %v13451_v34  ;;  %v13456_v36 = vand.u32 4294901760, %v13455_v55  ;;  %v13457_v50 = vand.u32 4294901760, %v10279_v59  ;;  %v12020_v5 = vand.u32 4294901760, %v10337_v48  ;;  %v10382_v29 = vsub.f32 %v747_v56, %v10339_v26  ;;  %6126 = vst [vmem:[%s9198_s7 + $0x10] sm:$0xff] %v3552_v52  ;;  %v987_v56 = vld [vmem:[#allocation2 + $0x7f8] sm:$0xff] }
 0x336   : > { %13452 = vst [vmem:[#allocation104_spill] sm:$0xff] %v10366_v13  ;;  %13453 = vst [vmem:[#allocation83_spill] sm:$0xff] %v10368_v27  ;;  %5020 = vmatpush1.msra.mxu1 %v13454_v44  ;;  %v13459_v63 = vand.u32 4294901760, %v10158_v53  ;;  %v13461_v4 = vand.u32 4294901760, %v13460_v10  ;;  %v3554_v9 = vadd.f32 %v3553_v20, %v3417_v3  ;;  %v12025_v44 = vand.u32 4294901760, %v10346_v2  ;;  %v978_v10 = vld [vmem:[#allocation2 + $0x7b0] sm:$0xff] }
 0x337   : > { %4689 = vmatprep.subr.mxu0 %v13456_v36  ;;  %v10378_v58 = vsub.f32 %v10279_v59, %v13457_v50  ;;  %13458 = vst [vmem:[#allocation11_spill] sm:$0xff] %v10382_v29  ;;  %v13462_v36 = vand.u32 4294901760, %v10287_v24  ;;  %v10396_v55 = vsub.f32 %v746_v23, %v10348_v46  ;;  %v13464_v53 = vand.u32 4294901760, %v10163_v62  ;;  %v986_v23 = vld [vmem:[#allocation2 + $0x7f0] sm:$0xff]  ;;  %v13470_v50 = vld [vmem:[#allocation16_spill] sm:$0xff] }
 0x338   : > { %5026 = vmatprep.subr.mxu1 %v13459_v63  ;;  %4693 = vmatpush2.msra.mxu0 %v13461_v4  ;;  %v10405_v52 = vsub.f32 %v10308_v11, %v12019_v43  ;;  %v10409_v20 = vsub.f32 %v739_v8, %v10359_v14  ;;  %v13466_v63 = vld [vmem:[#allocation15_spill] sm:$0xff]  ;;  %v13467_v62 = vand.u32 4294901760, %v10175_v57  ;;  %6127 = vst [vmem:[%s9198_s7 + $0x18] sm:$0xff] %v3554_v9  ;;  %v13468_v4 = vand.u32 4294901760, %v10311_v61 }
 0x339   : > { %v10392_v34 = vsub.f32 %v10287_v24, %v13462_v36  ;;  %13463 = vst [vmem:[#allocation88_spill] sm:$0xff] %v10396_v55  ;;  %5032 = vmatpush1.msra.mxu1 %v13464_v53  ;;  %4697 = vmatmul.mubr.f32.vlgmr.msra.gmra.mxu0 %v13425_v17  ;;  %v10423_v43 = vsub.f32 %v738_v40, %v10368_v27  ;;  %v979_v8 = vld [vmem:[#allocation2 + $0x7b8] sm:$0xff]  ;;  %v13473_v40 = vand.u32 4294901760, %v10187_v60  ;;  %v13474_v53 = vld [vmem:[#allocation29_spill] sm:$0xff]  ;;  %v10446_v57 = vand.u32 4294901760, %v986_v23  ;;  %v13481_v24 = vld [vmem:[#allocation46_spill] sm:$0xff] }
 0x33a   : > { %13465 = vst [vmem:[#allocation21_spill] sm:$0xff] %v10409_v20  ;;  %4841 = vmatprep.subr.mxu0 %v13466_v63  ;;  %5038 = vmatprep.subr.mxu1 %v13467_v62  ;;  %v10419_v36 = vsub.f32 %v10311_v61, %v13468_v4  ;;  %v10431_v9 = vsub.f32 %v10337_v48, %v12020_v5  ;;  %v10434_v4 = vand.u32 4294901760, %v987_v56  ;;  %v971_v62 = vld [vmem:[#allocation2 + $0x778] sm:$0xff]  ;;  %v13476_v48 = vand.u32 4294901760, %v10198_v0  ;;  %v13477_v61 = vld [vmem:[#allocation45_spill] sm:$0xff]  ;;  %v970_v5 = vld [vmem:[#allocation2 + $0x770] sm:$0xff] }
 0x33b   : > { %13469 = vst [vmem:[#allocation90_spill] sm:$0xff] %v10423_v43  ;;  %4843 = vmatpush1.msra.mxu0 %v13470_v50  ;;  %4973 = vmatprep.mubr.f32.mxu0 %v13471_v12  ;;  %v10443_v12 = vsub.f32 %v10346_v2, %v12025_v44  ;;  %13475 = vst [vmem:[#allocation79_spill] sm:$0xff] %v10446_v57  ;;  %v10458_v2 = vand.u32 4294901760, %v979_v8  ;;  %v13480_v11 = vand.u32 4294901760, %v10203_v42  ;;  %v963_v44 = vld [vmem:[#allocation2 + $0x738] sm:$0xff]  ;;  %v13484_v59 = vand.u32 4294901760, %v10215_v32 }
 0x33c   : > { %13472 = vst [vmem:[#allocation23_spill] sm:$0xff] %v10434_v4  ;;  %5044 = vmatpush1.msra.mxu1 %v13473_v40  ;;  %4845 = vmatprep.subr.mxu0 %v13474_v53  ;;  %v13478_v40 = vand.u32 4294901760, %v10357_v31  ;;  %v13490_v32 = vld [vmem:[#allocation55_spill] sm:$0xff]  ;;  %v13491_v42 = vand.u32 4294901760, %v10396_v55  ;;  %v13494_v53 = vand.u32 4294901760, %v10241_v28  ;;  %v13499_v50 = vand.u32 4294901760, %v10256_v37 }
 0x33d   : > { %5050 = vmatprep.subr.mxu1 %v13476_v48  ;;  %4847 = vmatpush1.msra.mxu0 %v13477_v61  ;;  %13479 = vst [vmem:[#allocation25_spill] sm:$0xff] %v10458_v2  ;;  %v13482_v48 = vand.u32 4294901760, %v10366_v13  ;;  %v13485_v61 = vld [vmem:[#allocation24_spill] sm:$0xff]  ;;  %v13504_v37 = vld [vmem:[#allocation97_spill] sm:$0xff]  ;;  %v939_v28 = vld [vmem:[#allocation2 + $0x678] sm:$0xff]  ;;  %v13520_v63 = vand.u32 4294901760, %v10392_v34 }
 0x33e   : > { %v10455_v3 = vsub.f32 %v10357_v31, %v13478_v40  ;;  %5056 = vmatpush1.msra.mxu1 %v13480_v11  ;;  %4849 = vmatprep.subr.mxu0 %v13481_v24  ;;  %v10470_v31 = vand.u32 4294901760, %v978_v10  ;;  %v13486_v11 = vand.u32 4294901760, %v10382_v29  ;;  %v962_v40 = vld [vmem:[#allocation2 + $0x730] sm:$0xff]  ;;  %v13489_v24 = vand.u32 4294901760, %v10227_v19  ;;  %v13495_v19 = vld [vmem:[#allocation47_spill] sm:$0xff] }
 0x33f   : > { %v10467_v60 = vsub.f32 %v10366_v13, %v13482_v48  ;;  %5062 = vmatprep.subr.mxu1 %v13484_v59  ;;  %4851 = vmatpush1.msra.mxu0 %v13485_v61  ;;  %v10482_v48 = vsub.f32 %v987_v56, %v10434_v4  ;;  %v10484_v13 = vand.u32 4294901760, %v971_v62  ;;  %v10493_v61 = vsub.f32 %v10396_v55, %v13491_v42  ;;  %v954_v55 = vld [vmem:[#allocation2 + $0x6f0] sm:$0xff] }
 0x340   : > { %13483 = vst [vmem:[#allocation81_spill] sm:$0xff] %v10470_v31  ;;  %v10479_v0 = vsub.f32 %v10382_v29, %v13486_v11  ;;  %5068 = vmatpush1.msra.mxu1 %v13489_v24  ;;  %4853 = vmatprep.subr.mxu0 %v13490_v32  ;;  %v10496_v11 = vsub.f32 %v986_v23, %v10446_v57  ;;  %v10498_v56 = vand.u32 4294901760, %v970_v5  ;;  %v955_v29 = vld [vmem:[#allocation2 + $0x6f8] sm:$0xff]  ;;  %v13496_v59 = vand.u32 4294901760, %v10409_v20 }
 0x341   : > { %13487 = vst [vmem:[#allocation30_spill] sm:$0xff] %v10482_v48  ;;  %13488 = vst [vmem:[#allocation96_spill] sm:$0xff] %v10484_v13  ;;  %5074 = vmatprep.subr.mxu1 %v13494_v53  ;;  %4855 = vmatpush1.msra.mxu0 %v13495_v19  ;;  %v10510_v42 = vsub.f32 %v979_v8, %v10458_v2  ;;  %v10512_v23 = vand.u32 4294901760, %v963_v44  ;;  %v13500_v53 = vand.u32 4294901760, %v10423_v43  ;;  %v10526_v8 = vand.u32 4294901760, %v962_v40 }
 0x342   : > { %13492 = vst [vmem:[#allocation20_spill] sm:$0xff] %v10496_v11  ;;  %13493 = vst [vmem:[#allocation19_spill] sm:$0xff] %v10498_v56  ;;  %v10507_v32 = vsub.f32 %v10409_v20, %v13496_v59  ;;  %5080 = vmatpush1.msra.mxu1 %v13499_v50  ;;  %4857 = vmatprep.subr.mxu0 %v10031_v51  ;;  %v10524_v59 = vsub.f32 %v978_v10, %v10470_v31  ;;  %v947_v20 = vld [vmem:[#allocation2 + $0x6b8] sm:$0xff]  ;;  %v13503_v19 = vand.u32 4294901760, %v10261_v7 }
 0x343   : > { %13497 = vst [vmem:[#allocation35_spill] sm:$0xff] %v10510_v42  ;;  %13498 = vst [vmem:[#allocation12_spill] sm:$0xff] %v10512_v23  ;;  %v10521_v24 = vsub.f32 %v10423_v43, %v13500_v53  ;;  %4859 = vmatpush1.msra.mxu0 %v13504_v37  ;;  %v10534_v51 = vsub.f32 %v971_v62, %v10484_v13  ;;  %v10536_v53 = vand.u32 4294901760, %v955_v29  ;;  %v946_v43 = vld [vmem:[#allocation2 + $0x6b0] sm:$0xff]  ;;  %v13507_v10 = vand.u32 4294901760, %v10305_v41 }
 0x344   : > { %13501 = vst [vmem:[#allocation93_spill] sm:$0xff] %v10524_v59  ;;  %13502 = vst [vmem:[#allocation14_spill] sm:$0xff] %v10526_v8  ;;  %5086 = vmatprep.subr.mxu1 %v13503_v19  ;;  %4861 = vmatprep.subr.mxu0 %v10048_v49  ;;  %v10544_v37 = vsub.f32 %v970_v5, %v10498_v56  ;;  %v10546_v50 = vand.u32 4294901760, %v954_v55  ;;  %v13510_v62 = vand.u32 4294901760, %v10322_v45  ;;  %v10556_v7 = vand.u32 4294901760, %v947_v20  ;;  %v938_v19 = vld [vmem:[#allocation2 + $0x670] sm:$0xff] }
 0x345   : > { %13505 = vst [vmem:[#allocation31_spill] sm:$0xff] %v10534_v51  ;;  %13506 = vst [vmem:[#allocation26_spill] sm:$0xff] %v10536_v53  ;;  %5092 = vmatpush1.msra.mxu1 %v13507_v10  ;;  %4863 = vmatpush1.msra.mxu0 %v10050_v22  ;;  %v10554_v49 = vsub.f32 %v963_v44, %v10512_v23  ;;  %v13513_v5 = vand.u32 4294901760, %v10333_v21  ;;  %v10564_v22 = vsub.f32 %v962_v40, %v10526_v8  ;;  %v931_v10 = vld [vmem:[#allocation2 + $0x638] sm:$0xff] }
 0x346   : > { %13508 = vst [vmem:[#allocation34_spill] sm:$0xff] %v10544_v37  ;;  %13509 = vst [vmem:[#allocation75_spill] sm:$0xff] %v10546_v50  ;;  %5098 = vmatprep.subr.mxu1 %v13510_v62  ;;  %4865 = vmatprep.subr.mxu0 %v10062_v54  ;;  %v10566_v41 = vand.u32 4294901760, %v946_v43  ;;  %v13516_v44 = vand.u32 4294901760, %v10378_v58  ;;  %v13517_v21 = vand.u32 4294901760, %v10482_v48  ;;  %v10578_v62 = vsub.f32 %v955_v29, %v10536_v53  ;;  %v930_v54 = vld [vmem:[#allocation2 + $0x630] sm:$0xff] }
 0x347   : > { %13511 = vst [vmem:[#allocation85_spill] sm:$0xff] %v10554_v49  ;;  %13512 = vst [vmem:[#allocation100_spill] sm:$0xff] %v10556_v7  ;;  %5104 = vmatpush1.msra.mxu1 %v13513_v5  ;;  %4867 = vmatpush1.msra.mxu0 %v10076_v30  ;;  %v10580_v40 = vand.u32 4294901760, %v939_v28  ;;  %v13521_v58 = vand.u32 4294901760, %v10496_v11  ;;  %v10592_v45 = vsub.f32 %v954_v55, %v10546_v50  ;;  %v10594_v29 = vand.u32 4294901760, %v938_v19 }
 0x348   : > { %13514 = vst [vmem:[#allocation89_spill] sm:$0xff] %v10564_v22  ;;  %13515 = vst [vmem:[#allocation28_spill] sm:$0xff] %v10566_v41  ;;  %5110 = vmatprep.subr.mxu1 %v13516_v44  ;;  %v10574_v5 = vsub.f32 %v10482_v48, %v13517_v21  ;;  %4869 = vmatprep.subr.mxu0 %v10090_v1  ;;  %v13524_v48 = vand.u32 4294901760, %v10405_v52  ;;  %v13525_v34 = vand.u32 4294901760, %v10510_v42  ;;  %v10608_v21 = vand.u32 4294901760, %v931_v10 }
 0x349   : > { %13518 = vst [vmem:[#allocation98_spill] sm:$0xff] %v10578_v62  ;;  %13519 = vst [vmem:[#allocation32_spill] sm:$0xff] %v10580_v40  ;;  %5116 = vmatpush1.msra.mxu1 %v13520_v63  ;;  %v10588_v44 = vsub.f32 %v10496_v11, %v13521_v58  ;;  %4871 = vmatpush1.msra.mxu0 %v10101_v33  ;;  %v10606_v11 = vsub.f32 %v947_v20, %v10556_v7  ;;  %v13528_v55 = vand.u32 4294901760, %v10419_v36 }
 0x34a   : > { %13522 = vst [vmem:[#allocation105_spill] sm:$0xff] %v10592_v45  ;;  %13523 = vst [vmem:[#allocation108_spill] sm:$0xff] %v10594_v29  ;;  %5122 = vmatprep.subr.mxu1 %v13524_v48  ;;  %v10602_v63 = vsub.f32 %v10510_v42, %v13525_v34  ;;  %4873 = vmatprep.subr.mxu0 %v10103_v39  ;;  %v13529_v52 = vand.u32 4294901760, %v10524_v59  ;;  %v10620_v42 = vsub.f32 %v946_v43, %v10566_v41 }
 0x34b   : > { %13526 = vst [vmem:[#allocation27_spill] sm:$0xff] %v10606_v11  ;;  %13527 = vst [vmem:[#allocation37_spill] sm:$0xff] %v10608_v21  ;;  %5128 = vmatpush1.msra.mxu1 %v13528_v55  ;;  %v10622_v58 = vand.u32 4294901760, %v930_v54  ;;  %v13532_v20 = vand.u32 4294901760, %v10431_v9  ;;  %4875 = vmatpush1.msra.mxu0 %v10166_v6  ;;  %v5181_v36 = vand.u32 4294901760, %v10574_v5  ;;  %v13533_v55 = vand.u32 4294901760, %v10534_v51 }
 0x34c   : > { %v10616_v48 = vsub.f32 %v10524_v59, %v13529_v52  ;;  %13530 = vst [vmem:[#allocation38_spill] sm:$0xff] %v10620_v42  ;;  %v10635_v34 = vsub.f32 %v939_v28, %v10580_v40  ;;  %v13535_v43 = vand.u32 4294901760, %v10443_v12  ;;  %4877 = vmatprep.subr.mxu0 %v10178_v18  ;;  %v5187_v9 = vand.u32 4294901760, %v10588_v44  ;;  %v923_v52 = vld [vmem:[#allocation2 + $0x5f8] sm:$0xff]  ;;  %v13548_v59 = vld [vmem:[#allocation13_spill] sm:$0xff] }
 0x34d   : > { %13531 = vst [vmem:[#allocation43_spill] sm:$0xff] %v10622_v58  ;;  %5134 = vmatprep.subr.mxu1 %v13532_v20  ;;  %v10631_v39 = vsub.f32 %v10534_v51, %v13533_v55  ;;  %v13536_v20 = vand.u32 4294901760, %v10544_v37  ;;  %v10648_v51 = vsub.f32 %v938_v19, %v10594_v29  ;;  %v13538_v28 = vand.u32 4294901760, %v10455_v3  ;;  %4879 = vmatpush1.msra.mxu0 %v10190_v35  ;;  %v922_v19 = vld [vmem:[#allocation2 + $0x5f0] sm:$0xff]  ;;  %v13556_v35 = vld [vmem:[#allocation51_spill] sm:$0xff] }
 0x34e   : > { %13534 = vst [vmem:[#allocation49_spill] sm:$0xff] %v10635_v34  ;;  %5140 = vmatpush1.msra.mxu1 %v13535_v43  ;;  %v5193_v12 = vand.u32 4294901760, %v10602_v63  ;;  %v13539_v44 = vand.u32 4294901760, %v10554_v49  ;;  %v10661_v55 = vsub.f32 %v931_v10, %v10608_v21  ;;  %4881 = vmatprep.subr.mxu0 %v10232_v16  ;;  %v5199_v3 = vand.u32 4294901760, %v10616_v48  ;;  %v915_v10 = vld [vmem:[#allocation2 + $0x5b8] sm:$0xff]  ;;  %v13552_v16 = vld [vmem:[#allocation17_spill] sm:$0xff] }
 0x34f   : > { %v10644_v5 = vsub.f32 %v10544_v37, %v13536_v20  ;;  %13537 = vst [vmem:[#allocation60_spill] sm:$0xff] %v10648_v51  ;;  %5146 = vmatprep.subr.mxu1 %v13538_v28  ;;  %v13541_v37 = vand.u32 4294901760, %v10467_v60  ;;  %v13542_v63 = vand.u32 4294901760, %v10564_v22  ;;  %v10674_v20 = vsub.f32 %v930_v54, %v10622_v58  ;;  %4883 = vmatpush1.msra.mxu0 %v10246_v38 }
 0x350   : > { %v10657_v43 = vsub.f32 %v10554_v49, %v13539_v44  ;;  %13540 = vst [vmem:[#allocation53_spill] sm:$0xff] %v10661_v55  ;;  %v13544_v49 = vand.u32 4294901760, %v10479_v0  ;;  %v5205_v60 = vand.u32 4294901760, %v10631_v39  ;;  %v914_v44 = vld [vmem:[#allocation2 + $0x5b0] sm:$0xff]  ;;  %v13547_v54 = vand.u32 4294901760, %v10493_v61  ;;  %4885 = vmatprep.subr.mxu0 %v13548_v59 }
 0x351   : > { %5152 = vmatpush1.msra.mxu1 %v13541_v37  ;;  %v10670_v28 = vsub.f32 %v10564_v22, %v13542_v63  ;;  %13543 = vst [vmem:[#allocation56_spill] sm:$0xff] %v10674_v20  ;;  %v13545_v37 = vand.u32 4294901760, %v10578_v62  ;;  %v10686_v22 = vand.u32 4294901760, %v923_v52  ;;  %v13549_v0 = vand.u32 4294901760, %v10592_v45  ;;  %v907_v63 = vld [vmem:[#allocation2 + $0x578] sm:$0xff]  ;;  %4887 = vmatpush1.msra.mxu0 %v13552_v16 }
 0x352   : > { %5158 = vmatprep.subr.mxu1 %v13544_v49  ;;  %v5211_v49 = vand.u32 4294901760, %v10644_v5  ;;  %v13551_v38 = vand.u32 4294901760, %v10507_v32  ;;  %v5217_v61 = vand.u32 4294901760, %v10657_v43  ;;  %v13555_v59 = vand.u32 4294901760, %v10521_v24  ;;  %4889 = vmatprep.subr.mxu0 %v13556_v35 }
 0x353   : > { %v10683_v48 = vsub.f32 %v10578_v62, %v13545_v37  ;;  %13546 = vst [vmem:[#allocation63_spill] sm:$0xff] %v10686_v22  ;;  %5164 = vmatpush1.msra.mxu1 %v13547_v54  ;;  %v10695_v39 = vsub.f32 %v10592_v45, %v13549_v0  ;;  %v10698_v62 = vand.u32 4294901760, %v922_v19  ;;  %v13553_v54 = vand.u32 4294901760, %v10606_v11  ;;  %v906_v37 = vld [vmem:[#allocation2 + $0x570] sm:$0xff]  ;;  %v899_v0 = vld [vmem:[#allocation2 + $0x538] sm:$0xff]  ;;  %4891 = vmatpush1.msra.mxu0 %v10297_v25 }
 0x354   : > { %5170 = vmatprep.subr.mxu1 %v13551_v38  ;;  %v10710_v45 = vand.u32 4294901760, %v915_v10  ;;  %v5223_v38 = vand.u32 4294901760, %v10670_v28  ;;  %v13557_v32 = vand.u32 4294901760, %v10620_v42  ;;  %v10732_v28 = vsub.f32 %v923_v52, %v10686_v22  ;;  %4893 = vmatprep.subr.mxu0 %v10313_v47  ;;  %v891_v52 = vld [vmem:[#allocation2 + $0x4f8] sm:$0xff] }
 0x355   : > { %13550 = vst [vmem:[#allocation65_spill] sm:$0xff] %v10698_v62  ;;  %v10707_v5 = vsub.f32 %v10606_v11, %v13553_v54  ;;  %5176 = vmatpush1.msra.mxu1 %v13555_v59  ;;  %v10722_v11 = vand.u32 4294901760, %v914_v44  ;;  %v5229_v24 = vand.u32 4294901760, %v10683_v48  ;;  %v13559_v59 = vand.u32 4294901760, %v10635_v34  ;;  %4895 = vmatpush1.msra.mxu0 %v10325_v15 }
 0x356   : > { %13554 = vst [vmem:[#allocation69_spill] sm:$0xff] %v10710_v45  ;;  %v10719_v43 = vsub.f32 %v10620_v42, %v13557_v32  ;;  %5182 = vmatprep.subr.mxu1 %v5181_v36  ;;  %13560 = vst [vmem:[#allocation82_spill] sm:$0xff] %v10732_v28  ;;  %v10734_v32 = vand.u32 4294901760, %v907_v63  ;;  %v898_v42 = vld [vmem:[#allocation2 + $0x530] sm:$0xff]  ;;  %v5235_v36 = vand.u32 4294901760, %v10695_v39  ;;  %v13562_v54 = vand.u32 4294901760, %v10648_v51  ;;  %4897 = vmatprep.subr.mxu0 %v10339_v26 }
 0x357   : > { %13558 = vst [vmem:[#allocation94_spill] sm:$0xff] %v10722_v11  ;;  %v10729_v35 = vsub.f32 %v10635_v34, %v13559_v59  ;;  %5188 = vmatpush2.msra.mxu1 %v5187_v9  ;;  %v10744_v25 = vsub.f32 %v922_v19, %v10698_v62  ;;  %v10746_v59 = vand.u32 4294901760, %v906_v37  ;;  %v5241_v9 = vand.u32 4294901760, %v10707_v5  ;;  %v890_v19 = vld [vmem:[#allocation2 + $0x4f0] sm:$0xff]  ;;  %4899 = vmatpush1.msra.mxu0 %v10348_v46 }
 0x358   : > { %13561 = vst [vmem:[#allocation99_spill] sm:$0xff] %v10734_v32  ;;  %v10741_v48 = vsub.f32 %v10648_v51, %v13562_v54  ;;  %5194 = vmatprep.subr.mxu1 %v5193_v12  ;;  %v13564_v34 = vand.u32 4294901760, %v10661_v55  ;;  %v10756_v47 = vsub.f32 %v915_v10, %v10710_v45  ;;  %v10758_v54 = vand.u32 4294901760, %v899_v0  ;;  %v883_v10 = vld [vmem:[#allocation2 + $0x4b8] sm:$0xff]  ;;  %4901 = vmatprep.subr.mxu0 %v10359_v14 }
 0x359   : > { %13563 = vst [vmem:[#allocation87_spill] sm:$0xff] %v10744_v25  ;;  %5200 = vmatpush2.msra.mxu1 %v5199_v3  ;;  %v5247_v12 = vand.u32 4294901760, %v10719_v43  ;;  %v13566_v51 = vand.u32 4294901760, %v10674_v20  ;;  %v10768_v15 = vsub.f32 %v914_v44, %v10722_v11  ;;  %v5253_v3 = vand.u32 4294901760, %v10729_v35  ;;  %v875_v35 = vld [vmem:[#allocation2 + $0x478] sm:$0xff]  ;;  %4903 = vmatpush1.msra.mxu0 %v10368_v27 }
 0x35a   : > { %v10753_v39 = vsub.f32 %v10661_v55, %v13564_v34  ;;  %13565 = vst [vmem:[#allocation117_spill] sm:$0xff] %v10756_v47  ;;  %v10770_v34 = vand.u32 4294901760, %v898_v42  ;;  %5206 = vmatprep.subr.mxu1 %v5205_v60  ;;  %v10776_v43 = vsub.f32 %v907_v63, %v10734_v32  ;;  %v10778_v26 = vand.u32 4294901760, %v891_v52  ;;  %4905 = vmatprep.subr.mxu0 %v10434_v4 }
 0x35b   : > { %v10765_v5 = vsub.f32 %v10674_v20, %v13566_v51  ;;  %13567 = vst [vmem:[#allocation120_spill] sm:$0xff] %v10768_v15  ;;  %v882_v51 = vld [vmem:[#allocation2 + $0x4b0] sm:$0xff]  ;;  %5212 = vmatpush2.msra.mxu1 %v5211_v49  ;;  %v5259_v44 = vand.u32 4294901760, %v10741_v48  ;;  %v10784_v60 = vsub.f32 %v906_v37, %v10746_v59  ;;  %v10786_v46 = vand.u32 4294901760, %v890_v19  ;;  %4907 = vmatpush2.msra.mxu0 %v10446_v57 }
 0x35c   : > { %5218 = vmatprep.subr.mxu1 %v5217_v61  ;;  %v5265_v63 = vand.u32 4294901760, %v10753_v39  ;;  %v10792_v49 = vsub.f32 %v899_v0, %v10758_v54  ;;  %v10794_v14 = vand.u32 4294901760, %v883_v10  ;;  %v874_v48 = vld [vmem:[#allocation2 + $0x470] sm:$0xff]  ;;  %v10800_v61 = vsub.f32 %v898_v42, %v10770_v34  ;;  %v867_v39 = vld [vmem:[#allocation2 + $0x438] sm:$0xff]  ;;  %4909 = vmatprep.subr.mxu0 %v10458_v2 }
 0x35d   : > { %13568 = vst [vmem:[#allocation121_spill] sm:$0xff] %v10784_v60  ;;  %5224 = vmatpush2.msra.mxu1 %v5223_v38  ;;  %v5271_v37 = vand.u32 4294901760, %v10765_v5  ;;  %v10802_v27 = vand.u32 4294901760, %v882_v51  ;;  %v13569_v0 = vand.u32 4294901760, %v10732_v28  ;;  %v10810_v4 = vsub.f32 %v891_v52, %v10778_v26  ;;  %v866_v20 = vld [vmem:[#allocation2 + $0x430] sm:$0xff]  ;;  %4911 = vmatpush2.msra.mxu0 %v10470_v31 }
 0x35e   : > { %5230 = vmatprep.subr.mxu1 %v5229_v24  ;;  %v10812_v5 = vand.u32 4294901760, %v875_v35  ;;  %v13570_v42 = vand.u32 4294901760, %v10744_v25  ;;  %v10820_v16 = vsub.f32 %v890_v19, %v10786_v46  ;;  %v13571_v52 = vand.u32 4294901760, %v10756_v47  ;;  %4913 = vmatprep.subr.mxu0 %v10484_v13 }
 0x35f   : > { %v5276_v55 = vsub.f32 %v10732_v28, %v13569_v0  ;;  %5236 = vmatpush2.msra.mxu1 %v5235_v36  ;;  %v10822_v0 = vand.u32 4294901760, %v874_v48  ;;  %v10830_v28 = vsub.f32 %v883_v10, %v10794_v14  ;;  %v13572_v19 = vand.u32 4294901760, %v10768_v15  ;;  %4915 = vmatpush2.msra.mxu0 %v10498_v56 }
 0x360   : > { %v5282_v24 = vsub.f32 %v10744_v25, %v13570_v42  ;;  %5242 = vmatprep.subr.mxu1 %v5241_v9  ;;  %v5288_v36 = vsub.f32 %v10756_v47, %v13571_v52  ;;  %v10832_v42 = vand.u32 4294901760, %v867_v39  ;;  %v10840_v25 = vsub.f32 %v882_v51, %v10802_v27  ;;  %4917 = vmatprep.subr.mxu0 %v10512_v23 }
 0x361   : > { %5248 = vmatpush2.msra.mxu1 %v5247_v12  ;;  %v5294_v9 = vsub.f32 %v10768_v15, %v13572_v19  ;;  %v10842_v52 = vand.u32 4294901760, %v866_v20  ;;  %v5277_v10 = vand.u32 4294901760, %v5276_v55  ;;  %v13573_v38 = vand.u32 4294901760, %v10776_v43  ;;  %4919 = vmatpush2.msra.mxu0 %v10526_v8 }
 0x362   : > { %5254 = vmatprep.subr.mxu1 %v5253_v3  ;;  %v10850_v13 = vsub.f32 %v875_v35, %v10812_v5  ;;  %v5283_v51 = vand.u32 4294901760, %v5282_v24  ;;  %v13575_v19 = vand.u32 4294901760, %v10784_v60  ;;  %v10858_v55 = vsub.f32 %v874_v48, %v10822_v0  ;;  %4921 = vmatprep.subr.mxu0 %v10536_v53 }
 0x363   : > { %v5300_v12 = vsub.f32 %v10776_v43, %v13573_v38  ;;  %5260 = vmatpush2.msra.mxu1 %v5259_v44  ;;  %v5289_v38 = vand.u32 4294901760, %v5288_v36  ;;  %v13576_v35 = vand.u32 4294901760, %v10792_v49  ;;  %v10866_v24 = vsub.f32 %v867_v39, %v10832_v42  ;;  %4923 = vmatpush2.msra.mxu0 %v10546_v50 }
 0x364   : > { %13574 = vst [vmem:[#allocation122_spill] sm:$0xff] %v10850_v13  ;;  %v5306_v3 = vsub.f32 %v10784_v60, %v13575_v19  ;;  %5266 = vmatprep.subr.mxu1 %v5265_v63  ;;  %v5295_v19 = vand.u32 4294901760, %v5294_v9  ;;  %v13577_v48 = vand.u32 4294901760, %v10800_v61  ;;  %v10874_v36 = vsub.f32 %v866_v20, %v10842_v52  ;;  %4925 = vmatprep.subr.mxu0 %v10556_v7 }
 0x365   : > { %v5312_v44 = vsub.f32 %v10792_v49, %v13576_v35  ;;  %5272 = vmatpush2.msra.mxu1 %v5271_v37  ;;  %v5301_v35 = vand.u32 4294901760, %v5300_v12  ;;  %v13579_v39 = vand.u32 4294901760, %v10810_v4  ;;  %4927 = vmatpush2.msra.mxu0 %v10566_v41  ;;  %v13581_v12 = vand.u32 4294901760, %v10830_v28 }
 0x366   : > { %v5318_v63 = vsub.f32 %v10800_v61, %v13577_v48  ;;  %13578 = vst [vmem:[#allocation123_spill] sm:$0xff] %v10874_v36  ;;  %5278 = vmatprep.subr.mxu1 %v5277_v10  ;;  %v5307_v9 = vand.u32 4294901760, %v5306_v3  ;;  %v13580_v48 = vand.u32 4294901760, %v10820_v16  ;;  %4929 = vmatprep.subr.mxu0 %v10580_v40  ;;  %v13582_v3 = vand.u32 4294901760, %v10840_v25 }
 0x367   : > { %v5324_v37 = vsub.f32 %v10810_v4, %v13579_v39  ;;  %5284 = vmatpush2.msra.mxu1 %v5283_v51  ;;  %v5313_v10 = vand.u32 4294901760, %v5312_v44  ;;  %v5336_v39 = vsub.f32 %v10830_v28, %v13581_v12  ;;  %v12120_v20 = vand.u32 4294901760, %v10874_v36  ;;  %4931 = vmatpush2.msra.mxu0 %v10594_v29 }
 0x368   : > { %v5330_v57 = vsub.f32 %v10820_v16, %v13580_v48  ;;  %5290 = vmatprep.subr.mxu1 %v5289_v38  ;;  %v5319_v51 = vand.u32 4294901760, %v5318_v63  ;;  %v5342_v48 = vsub.f32 %v10840_v25, %v13582_v3  ;;  %v13583_v44 = vand.u32 4294901760, %v10850_v13  ;;  %4933 = vmatprep.subr.mxu0 %v10608_v21 }
 0x369   : > { %5296 = vmatpush2.msra.mxu1 %v5295_v19  ;;  %v5325_v38 = vand.u32 4294901760, %v5324_v37  ;;  %v13584_v63 = vand.u32 4294901760, %v10858_v55  ;;  %4935 = vmatpush2.msra.mxu0 %v10622_v58  ;;  %v5337_v3 = vand.u32 4294901760, %v5336_v39 }
 0x36a   : > { %5302 = vmatprep.subr.mxu1 %v5301_v35  ;;  %v5348_v12 = vsub.f32 %v10850_v13, %v13583_v44  ;;  %v5331_v19 = vand.u32 4294901760, %v5330_v57  ;;  %v13585_v35 = vand.u32 4294901760, %v10866_v24  ;;  %4937 = vmatprep.subr.mxu0 %v10686_v22  ;;  %v5343_v44 = vand.u32 4294901760, %v5342_v48  ;;  %v13587_v48 = vld [vmem:[#allocation16_spill] sm:$0xff] }
 0x36b   : > { %5308 = vmatpush2.msra.mxu1 %v5307_v9  ;;  %v5354_v47 = vsub.f32 %v10858_v55, %v13584_v63  ;;  %v5366_v57 = vsub.f32 %v10874_v36, %v12120_v20  ;;  %4939 = vmatpush2.msra.mxu0 %v10698_v62  ;;  %v13591_v63 = vld [vmem:[#allocation46_spill] sm:$0xff]  ;;  %v13602_v20 = vld [vmem:[#allocation101_spill] sm:$0xff]  ;;  %v13604_v36 = vld [vmem:[#allocation103_spill] sm:$0xff] }
 0x36c   : > { %5314 = vmatprep.subr.mxu1 %v5313_v10  ;;  %v5360_v37 = vsub.f32 %v10866_v24, %v13585_v35  ;;  %v5349_v9 = vand.u32 4294901760, %v5348_v12  ;;  %4941 = vmatprep.subr.mxu0 %v10710_v45  ;;  %v13589_v12 = vld [vmem:[#allocation29_spill] sm:$0xff]  ;;  %v13593_v35 = vld [vmem:[#allocation55_spill] sm:$0xff] }
 0x36d   : > { %5320 = vmatpush2.msra.mxu1 %v5319_v51  ;;  %v5355_v10 = vand.u32 4294901760, %v5354_v47  ;;  %4943 = vmatpush2.msra.mxu0 %v10722_v11  ;;  %v5367_v51 = vand.u32 4294901760, %v5366_v57  ;;  %v13586_v47 = vld [vmem:[#allocation15_spill] sm:$0xff]  ;;  %v13596_v57 = vld [vmem:[#allocation10_spill] sm:$0xff] }
 0x36e   : > { %5326 = vmatprep.subr.mxu1 %v5325_v38  ;;  %v5361_v39 = vand.u32 4294901760, %v5360_v37  ;;  %4945 = vmatprep.subr.mxu0 %v10734_v32  ;;  %v13588_v38 = vld [vmem:[#allocation114_spill] sm:$0xff]  ;;  %v13594_v37 = vld [vmem:[#allocation47_spill] sm:$0xff] }
 0x36f   : > { %5332 = vmatpush2.msra.mxu1 %v5331_v19  ;;  %4947 = vmatpush2.msra.mxu0 %v10746_v59  ;;  %v13590_v19 = vld [vmem:[#allocation45_spill] sm:$0xff] }
 0x370   : > { %5338 = vmatprep.subr.mxu1 %v5337_v3  ;;  %4949 = vmatprep.subr.mxu0 %v10758_v54  ;;  %v13592_v3 = vld [vmem:[#allocation24_spill] sm:$0xff] }
 0x371   : > { %5344 = vmatpush2.msra.mxu1 %v5343_v44  ;;  %4951 = vmatpush2.msra.mxu0 %v10770_v34  ;;  %v13595_v44 = vld [vmem:[#allocation116_spill] sm:$0xff] }
 0x372   : > { %5350 = vmatprep.subr.mxu1 %v5349_v9  ;;  %4953 = vmatprep.subr.mxu0 %v10778_v26  ;;  %v13597_v9 = vld [vmem:[#allocation22_spill] sm:$0xff] }
 0x373   : > { %5356 = vmatpush2.msra.mxu1 %v5355_v10  ;;  %4955 = vmatpush2.msra.mxu0 %v10786_v46  ;;  %v13598_v10 = vld [vmem:[#allocation18_spill] sm:$0xff] }
 0x374   : > { %5362 = vmatprep.subr.mxu1 %v5361_v39  ;;  %4957 = vmatprep.subr.mxu0 %v10794_v14  ;;  %v13599_v39 = vld [vmem:[#allocation112_spill] sm:$0xff] }
 0x375   : > { %5368 = vmatpush2.msra.mxu1 %v5367_v51  ;;  %4959 = vmatpush2.msra.mxu0 %v10802_v27  ;;  %v13600_v51 = vld [vmem:[#allocation97_spill] sm:$0xff] }
 0x376   : > { %5372 = vmatmul.mubr.f32.vlgmr.msra.gmra.mxu1 %v13425_v17  ;;  %5582 = vmatprep.subr.mxu1 %v13586_v47  ;;  %v13603_v17 = vld [vmem:[#allocation58_spill] sm:$0xff] }
 0x377   : > { %5584 = vmatpush1.msra.mxu1 %v13587_v48  ;;  %5712 = vmatprep.mubr.f32.mxu1 %v13588_v38  ;;  %v13601_v38 = vld [vmem:[#allocation48_spill] sm:$0xff] }
 0x378   : > { %5586 = vmatprep.subr.mxu1 %v13589_v12  ;;  %4961 = vmatprep.subr.mxu0 %v10812_v5 }
 0x379   : > { %5588 = vmatpush1.msra.mxu1 %v13590_v19  ;;  %4963 = vmatpush2.msra.mxu0 %v10822_v0 }
 0x37a   : > { %5590 = vmatprep.subr.mxu1 %v13591_v63  ;;  %4965 = vmatprep.subr.mxu0 %v10832_v42 }
 0x37b   : > { %5592 = vmatpush1.msra.mxu1 %v13592_v3  ;;  %4967 = vmatpush2.msra.mxu0 %v10842_v52 }
 0x37c   : > { %5594 = vmatprep.subr.mxu1 %v13593_v35  ;;  %4979 = vmatmul.mubr.f32.vlgmr.msra.gmra.mxu0 %v13595_v44  ;;  %v13606_v44 = vld [vmem:[#allocation9_spill] sm:$0xff] }
 0x37d   : > { %5596 = vmatpush1.msra.mxu1 %v13594_v37  ;;  %5380 = vmatprep.subr.mxu0 %v13596_v57  ;;  %v13605_v37 = vld [vmem:[#allocation33_spill] sm:$0xff]  ;;  %v13607_v57 = vld [vmem:[#allocation8_spill] sm:$0xff] }
 0x37e   : > { %5598 = vmatprep.subr.mxu1 %v13597_v9  ;;  %5383 = vmatpush1.msra.mxu0 %v13598_v10  ;;  %v13608_v10 = vld [vmem:[#allocation107_spill] sm:$0xff] }
 0x37f   : > { %5572 = vmatprep.mubr.f32.mxu0 %v13599_v39  ;;  %5600 = vmatpush1.msra.mxu1 %v13600_v51  ;;  %v13609_v39 = vld [vmem:[#allocation91_spill] sm:$0xff] }
 0x380   : > { %5386 = vmatprep.subr.mxu0 %v13601_v38  ;;  %5602 = vmatprep.subr.mxu1 %v13602_v20  ;;  %v13610_v20 = vld [vmem:[#allocation95_spill] sm:$0xff] }
 0x381   : > { %5389 = vmatpush1.msra.mxu0 %v13603_v17  ;;  %5604 = vmatpush1.msra.mxu1 %v13604_v36  ;;  %v13611_v17 = vld [vmem:[#allocation50_spill] sm:$0xff] }
 0x382   : > { %5392 = vmatprep.subr.mxu0 %v13605_v37  ;;  %5606 = vmatprep.subr.mxu1 %v13606_v44  ;;  %v13612_v36 = vld [vmem:[#allocation42_spill] sm:$0xff]  ;;  %v13613_v44 = vld [vmem:[#allocation36_spill] sm:$0xff] }
 0x383   : > { %5395 = vmatpush1.msra.mxu0 %v13607_v57  ;;  %5608 = vmatpush1.msra.mxu1 %v10076_v30  ;;  %v13614_v30 = vld [vmem:[#allocation40_spill] sm:$0xff] }
 0x384   : > { %5398 = vmatprep.subr.mxu0 %v13608_v10  ;;  %5610 = vmatprep.subr.mxu1 %v10090_v1  ;;  %v13615_v10 = vld [vmem:[#allocation77_spill] sm:$0xff] }
 0x385   : > { %5401 = vmatpush1.msra.mxu0 %v13609_v39  ;;  %5612 = vmatpush1.msra.mxu1 %v10101_v33  ;;  %v13616_v1 = vld [vmem:[#allocation61_spill] sm:$0xff]  ;;  %v13617_v39 = vld [vmem:[#allocation118_spill] sm:$0xff] }
 0x386   : > { %5404 = vmatprep.subr.mxu0 %v13610_v20  ;;  %5614 = vmatprep.subr.mxu1 %v13611_v17  ;;  %v13618_v33 = vld [vmem:[#allocation54_spill] sm:$0xff]  ;;  %v13619_v20 = vld [vmem:[#allocation52_spill] sm:$0xff] }
 0x387   : > { %5407 = vmatpush1.msra.mxu0 %v13612_v36  ;;  %5616 = vmatpush1.msra.mxu1 %v10166_v6  ;;  %v13620_v17 = vld [vmem:[#allocation62_spill] sm:$0xff]  ;;  %v13621_v36 = vld [vmem:[#allocation13_spill] sm:$0xff]  ;;  %v13622_v6 = vld [vmem:[#allocation64_spill] sm:$0xff] }
 0x388   : > { %5410 = vmatprep.subr.mxu0 %v13613_v44  ;;  %5618 = vmatprep.subr.mxu1 %v10178_v18  ;;  %v13623_v44 = vld [vmem:[#allocation17_spill] sm:$0xff]  ;;  %v13624_v18 = vld [vmem:[#allocation66_spill] sm:$0xff] }
 0x389   : > { %5413 = vmatpush1.msra.mxu0 %v13614_v30  ;;  %5620 = vmatpush1.msra.mxu1 %v13615_v10  ;;  %v13625_v30 = vld [vmem:[#allocation51_spill] sm:$0xff]  ;;  %v13626_v10 = vld [vmem:[#allocation92_spill] sm:$0xff] }
 0x38a   : > { %5416 = vmatprep.subr.mxu0 %v13616_v1  ;;  %5622 = vmatprep.subr.mxu1 %v13617_v39  ;;  %v13627_v1 = vld [vmem:[#allocation70_spill] sm:$0xff] }
 0x38b   : > { %5419 = vmatpush1.msra.mxu0 %v13618_v33  ;;  %5624 = vmatpush1.msra.mxu1 %v13619_v20  ;;  %v13628_v39 = vld [vmem:[#allocation106_spill] sm:$0xff]  ;;  %v13630_v20 = vld [vmem:[#allocation119_spill] sm:$0xff] }
 0x38c   : > { %5422 = vmatprep.subr.mxu0 %v13620_v17  ;;  %5626 = vmatprep.subr.mxu1 %v13621_v36  ;;  %v13629_v33 = vld [vmem:[#allocation78_spill] sm:$0xff]  ;;  %v13631_v17 = vld [vmem:[#allocation68_spill] sm:$0xff]  ;;  %v13632_v36 = vld [vmem:[#allocation59_spill] sm:$0xff] }
 0x38d   : > { %5425 = vmatpush1.msra.mxu0 %v13622_v6  ;;  %5628 = vmatpush1.msra.mxu1 %v13623_v44  ;;  %v13633_v6 = vld [vmem:[#allocation72_spill] sm:$0xff]  ;;  %v13634_v44 = vld [vmem:[#allocation41_spill] sm:$0xff] }
 0x38e   : > { %5428 = vmatprep.subr.mxu0 %v13624_v18  ;;  %5630 = vmatprep.subr.mxu1 %v13625_v30  ;;  %v13635_v18 = vld [vmem:[#allocation76_spill] sm:$0xff]  ;;  %v13636_v30 = vld [vmem:[#allocation74_spill] sm:$0xff] }
 0x38f   : > { %5431 = vmatpush1.msra.mxu0 %v13626_v10  ;;  %5632 = vmatpush1.msra.mxu1 %v13627_v1  ;;  %v13637_v10 = vld [vmem:[#allocation80_spill] sm:$0xff]  ;;  %v13638_v1 = vld [vmem:[#allocation67_spill] sm:$0xff] }
 0x390   : > { %5434 = vmatprep.subr.mxu0 %v13628_v39  ;;  %5634 = vmatprep.subr.mxu1 %v13629_v33  ;;  %v13639_v39 = vld [vmem:[#allocation83_spill] sm:$0xff]  ;;  %v13640_v33 = vld [vmem:[#allocation84_spill] sm:$0xff] }
 0x391   : > { %5437 = vmatpush1.msra.mxu0 %v13630_v20  ;;  %5636 = vmatpush1.msra.mxu1 %v13631_v17  ;;  %v13641_v20 = vld [vmem:[#allocation23_spill] sm:$0xff]  ;;  %v13642_v17 = vld [vmem:[#allocation86_spill] sm:$0xff] }
 0x392   : > { %5440 = vmatprep.subr.mxu0 %v13632_v36  ;;  %5638 = vmatprep.subr.mxu1 %v13633_v6  ;;  %v13643_v36 = vld [vmem:[#allocation79_spill] sm:$0xff]  ;;  %v13644_v6 = vld [vmem:[#allocation102_spill] sm:$0xff] }
 0x393   : > { %5443 = vmatpush1.msra.mxu0 %v13634_v44  ;;  %5640 = vmatpush1.msra.mxu1 %v13635_v18  ;;  %v13645_v18 = vld [vmem:[#allocation104_spill] sm:$0xff] }
 0x394   : > { %5446 = vmatprep.subr.mxu0 %v13636_v30  ;;  %5642 = vmatprep.subr.mxu1 %v13637_v10  ;;  %v13646_v10 = vld [vmem:[#allocation11_spill] sm:$0xff] }
 0x395   : > { %5449 = vmatpush1.msra.mxu0 %v13638_v1  ;;  %5644 = vmatpush1.msra.mxu1 %v13639_v39  ;;  %v13647_v1 = vld [vmem:[#allocation96_spill] sm:$0xff] }
 0x396   : > { %5452 = vmatprep.subr.mxu0 %v13640_v33  ;;  %5646 = vmatprep.subr.mxu1 %v13641_v20  ;;  %v13648_v39 = vld [vmem:[#allocation88_spill] sm:$0xff]  ;;  %v13649_v20 = vld [vmem:[#allocation21_spill] sm:$0xff] }
 0x397   : > { %5455 = vmatpush1.msra.mxu0 %v13642_v17  ;;  %5648 = vmatpush2.msra.mxu1 %v13643_v36  ;;  %v13650_v36 = vld [vmem:[#allocation90_spill] sm:$0xff] }
 0x398   : > { %5458 = vmatprep.subr.mxu0 %v13644_v6  ;;  %5650 = vmatprep.subr.mxu1 %v10458_v2  ;;  %v13651_v2 = vld [vmem:[#allocation30_spill] sm:$0xff] }
 0x399   : > { %5461 = vmatpush1.msra.mxu0 %v13645_v18  ;;  %5652 = vmatpush2.msra.mxu1 %v10470_v31  ;;  %v13652_v31 = vld [vmem:[#allocation20_spill] sm:$0xff] }
 0x39a   : > { %5464 = vmatprep.subr.mxu0 %v13646_v10  ;;  %5654 = vmatprep.subr.mxu1 %v13647_v1  ;;  %v13653_v1 = vld [vmem:[#allocation35_spill] sm:$0xff] }
 0x39b   : > { %5467 = vmatpush1.msra.mxu0 %v13648_v39  ;;  %5656 = vmatpush2.msra.mxu1 %v10498_v56  ;;  %v13654_v56 = vld [vmem:[#allocation93_spill] sm:$0xff] }
 0x39c   : > { %5470 = vmatprep.subr.mxu0 %v13649_v20  ;;  %5658 = vmatprep.subr.mxu1 %v10512_v23  ;;  %v13655_v23 = vld [vmem:[#allocation31_spill] sm:$0xff] }
 0x39d   : > { %5473 = vmatpush1.msra.mxu0 %v13650_v36  ;;  %5660 = vmatpush2.msra.mxu1 %v10526_v8  ;;  %v13656_v8 = vld [vmem:[#allocation34_spill] sm:$0xff] }
 0x39e   : > { %5476 = vmatprep.subr.mxu0 %v13651_v2  ;;  %5662 = vmatprep.subr.mxu1 %v10536_v53  ;;  %v13657_v53 = vld [vmem:[#allocation85_spill] sm:$0xff] }
 0x39f   : > { %5479 = vmatpush2.msra.mxu0 %v13652_v31  ;;  %5664 = vmatpush2.msra.mxu1 %v10546_v50  ;;  %v13658_v50 = vld [vmem:[#allocation89_spill] sm:$0xff] }
 0x3a0   : > { %5482 = vmatprep.subr.mxu0 %v13653_v1  ;;  %5666 = vmatprep.subr.mxu1 %v10556_v7  ;;  %v13659_v7 = vld [vmem:[#allocation98_spill] sm:$0xff] }
 0x3a1   : > { %5485 = vmatpush2.msra.mxu0 %v13654_v56  ;;  %5668 = vmatpush2.msra.mxu1 %v10566_v41  ;;  %v13660_v41 = vld [vmem:[#allocation105_spill] sm:$0xff] }
 0x3a2   : > { %5488 = vmatprep.subr.mxu0 %v13655_v23  ;;  %5670 = vmatprep.subr.mxu1 %v10580_v40  ;;  %v13661_v40 = vld [vmem:[#allocation27_spill] sm:$0xff] }
 0x3a3   : > { %5491 = vmatpush2.msra.mxu0 %v13656_v8  ;;  %5672 = vmatpush2.msra.mxu1 %v10594_v29  ;;  %v13662_v29 = vld [vmem:[#allocation38_spill] sm:$0xff] }
 0x3a4   : > { %5494 = vmatprep.subr.mxu0 %v13657_v53  ;;  %5674 = vmatprep.subr.mxu1 %v10608_v21  ;;  %v13663_v21 = vld [vmem:[#allocation49_spill] sm:$0xff] }
 0x3a5   : > { %5497 = vmatpush2.msra.mxu0 %v13658_v50  ;;  %5676 = vmatpush2.msra.mxu1 %v10622_v58  ;;  %v13664_v58 = vld [vmem:[#allocation60_spill] sm:$0xff] }
 0x3a6   : > { %5500 = vmatprep.subr.mxu0 %v13659_v7  ;;  %5678 = vmatprep.subr.mxu1 %v10686_v22  ;;  %v13665_v22 = vld [vmem:[#allocation53_spill] sm:$0xff] }
 0x3a7   : > { %5503 = vmatpush2.msra.mxu0 %v13660_v41  ;;  %5680 = vmatpush2.msra.mxu1 %v10698_v62  ;;  %v13666_v62 = vld [vmem:[#allocation56_spill] sm:$0xff] }
 0x3a8   : > { %5506 = vmatprep.subr.mxu0 %v13661_v40  ;;  %5682 = vmatprep.subr.mxu1 %v10710_v45  ;;  %v13667_v45 = vld [vmem:[#allocation82_spill] sm:$0xff] }
 0x3a9   : > { %5509 = vmatpush2.msra.mxu0 %v13662_v29  ;;  %5684 = vmatpush2.msra.mxu1 %v10722_v11  ;;  %v13668_v11 = vld [vmem:[#allocation87_spill] sm:$0xff] }
 0x3aa   : > { %5512 = vmatprep.subr.mxu0 %v13663_v21  ;;  %5686 = vmatprep.subr.mxu1 %v10734_v32  ;;  %v13669_v32 = vld [vmem:[#allocation117_spill] sm:$0xff] }
 0x3ab   : > { %5515 = vmatpush2.msra.mxu0 %v13664_v58  ;;  %5688 = vmatpush2.msra.mxu1 %v10746_v59 }
 0x3ac   : > { %5518 = vmatprep.subr.mxu0 %v13665_v22  ;;  %5690 = vmatprep.subr.mxu1 %v10758_v54 }
 0x3ad   : > { %5521 = vmatpush2.msra.mxu0 %v13666_v62  ;;  %5692 = vmatpush2.msra.mxu1 %v10770_v34 }
 0x3ae   : > { %5524 = vmatprep.subr.mxu0 %v13667_v45  ;;  %5694 = vmatprep.subr.mxu1 %v10778_v26 }
 0x3af   : > { %5527 = vmatpush2.msra.mxu0 %v13668_v11  ;;  %5696 = vmatpush2.msra.mxu1 %v10786_v46 }
 0x3b0   : > { %5530 = vmatprep.subr.mxu0 %v13669_v32  ;;  %5698 = vmatprep.subr.mxu1 %v10794_v14 }
 0x3b1   : > { %5533 = vmatpush2.msra.mxu0 %v10768_v15  ;;  %5700 = vmatpush2.msra.mxu1 %v10802_v27  ;;  %v13670_v15 = vld [vmem:[#allocation113_spill] sm:$0xff] }
 0x3b2   : > { %5536 = vmatprep.subr.mxu0 %v10776_v43  ;;  %5702 = vmatprep.subr.mxu1 %v10812_v5 }
 0x3b3   : > { %5539 = vmatpush2.msra.mxu0 %v10784_v60  ;;  %5704 = vmatpush2.msra.mxu1 %v10822_v0  ;;  %v13671_v60 = vld [vmem:[#allocation111_spill] sm:$0xff] }
 0x3b4   : > { %5542 = vmatprep.subr.mxu0 %v10792_v49  ;;  %5706 = vmatprep.subr.mxu1 %v10832_v42 }
 0x3b5   : > { %5545 = vmatpush2.msra.mxu0 %v10800_v61  ;;  %5708 = vmatpush2.msra.mxu1 %v10842_v52 }
 0x3b6   : > { %5548 = vmatprep.subr.mxu0 %v10810_v4  ;;  %5716 = vmatmul.mubr.f32.vlgmr.msra.gmra.mxu1 %v13670_v15  ;;  %v13672_v15 = vld [vmem:[#allocation123_spill] sm:$0xff] }
 0x3b7   : > { %5988 = vmatprep.subr.mxu1 %v13586_v47  ;;  %5551 = vmatpush2.msra.mxu0 %v10820_v16  ;;  %v13673_v47 = vld [vmem:[#allocation47_spill] sm:$0xff] }
 0x3b8   : > { %5990 = vmatpush1.msra.mxu1 %v13587_v48  ;;  %6116 = vmatprep.mubr.f32.mxu1 %v13671_v60  ;;  %v13674_v48 = vld [vmem:[#allocation110_spill] sm:$0xff] }
 0x3b9   : > { %5554 = vmatprep.subr.mxu0 %v10830_v28  ;;  %5992 = vmatprep.subr.mxu1 %v13589_v12  ;;  %v13675_v12 = vld [vmem:[#allocation10_spill] sm:$0xff] }
 0x3ba   : > { %5557 = vmatpush2.msra.mxu0 %v10840_v25  ;;  %5994 = vmatpush1.msra.mxu1 %v13590_v19  ;;  %v13676_v19 = vand.u32 4294901760, %v13675_v12  ;;  %v13684_v12 = vand.u32 4294901760, %v13605_v37 }
 0x3bb   : > { %5560 = vmatprep.subr.mxu0 %v10850_v13  ;;  %5996 = vmatprep.subr.mxu1 %v13591_v63  ;;  %v13677_v63 = vld [vmem:[#allocation18_spill] sm:$0xff] }
 0x3bc   : > { %5563 = vmatpush2.msra.mxu0 %v10858_v55  ;;  %5998 = vmatpush1.msra.mxu1 %v13592_v3  ;;  %v13678_v13 = vand.u32 4294901760, %v13677_v63  ;;  %v13679_v3 = vand.u32 4294901760, %v13601_v38  ;;  %v13691_v63 = vld [vmem:[#allocation91_spill] sm:$0xff] }
 0x3bd   : > { %5566 = vmatprep.subr.mxu0 %v10866_v24  ;;  %6000 = vmatprep.subr.mxu1 %v13593_v35  ;;  %v13680_v35 = vld [vmem:[#allocation101_spill] sm:$0xff] }
 0x3be   : > { %5569 = vmatpush2.msra.mxu0 %v13672_v15  ;;  %6002 = vmatpush1.msra.mxu1 %v13673_v47  ;;  %v13681_v47 = vld [vmem:[#allocation58_spill] sm:$0xff] }
 0x3bf   : > { %5575 = vmatmul.mubr.f32.vlgmr.msra.gmra.mxu0 %v13674_v48  ;;  %5725 = vmatprep.subr.mxu0 %v13676_v19  ;;  %v13682_v15 = vand.u32 4294901760, %v13681_v47  ;;  %v13683_v48 = vld [vmem:[#allocation103_spill] sm:$0xff]  ;;  %v13690_v19 = vld [vmem:[#allocation44_spill] sm:$0xff]  ;;  %v13696_v47 = vld [vmem:[#allocation50_spill] sm:$0xff] }
 0x3c0   : > { %6004 = vmatprep.subr.mxu1 %v13597_v9  ;;  %5729 = vmatpush1.msra.mxu0 %v13678_v13  ;;  %v13685_v9 = vld [vmem:[#allocation9_spill] sm:$0xff]  ;;  %v13686_v13 = vand.u32 4294901760, %v13607_v57 }
 0x3c1   : > { %5979 = vmatprep.mubr.f32.mxu0 %v13671_v60  ;;  %6006 = vmatpush1.msra.mxu1 %v13600_v51  ;;  %v13687_v60 = vld [vmem:[#allocation39_spill] sm:$0xff] }
 0x3c2   : > { %5733 = vmatprep.subr.mxu0 %v13679_v3  ;;  %6008 = vmatprep.subr.mxu1 %v13680_v35  ;;  %v13688_v51 = vld [vmem:[#allocation107_spill] sm:$0xff]  ;;  %v13692_v3 = vand.u32 4294901760, %v13691_v63  ;;  %v13706_v63 = vld [vmem:[#allocation61_spill] sm:$0xff] }
 0x3c3   : > { %5737 = vmatpush1.msra.mxu0 %v13682_v15  ;;  %6010 = vmatpush1.msra.mxu1 %v13683_v48  ;;  %v13689_v38 = vand.u32 4294901760, %v13688_v51  ;;  %v13693_v15 = vld [vmem:[#allocation57_spill] sm:$0xff]  ;;  %v13694_v35 = vld [vmem:[#allocation95_spill] sm:$0xff]  ;;  %v13697_v48 = vld [vmem:[#allocation42_spill] sm:$0xff] }
 0x3c4   : > { %5741 = vmatprep.subr.mxu0 %v13684_v12  ;;  %6012 = vmatprep.subr.mxu1 %v13685_v9  ;;  %v13695_v37 = vand.u32 4294901760, %v13694_v35  ;;  %v13698_v57 = vand.u32 4294901760, %v13697_v48  ;;  %v13699_v12 = vld [vmem:[#allocation71_spill] sm:$0xff]  ;;  %v13700_v9 = vld [vmem:[#allocation36_spill] sm:$0xff]  ;;  %v13709_v35 = vld [vmem:[#allocation54_spill] sm:$0xff] }
 0x3c5   : > { %5745 = vmatpush1.msra.mxu0 %v13686_v13  ;;  %6014 = vmatpush1.msra.mxu1 %v13687_v60  ;;  %v13701_v13 = vand.u32 4294901760, %v13700_v9  ;;  %v13702_v60 = vld [vmem:[#allocation73_spill] sm:$0xff]  ;;  %v13703_v51 = vld [vmem:[#allocation40_spill] sm:$0xff]  ;;  %v13712_v48 = vld [vmem:[#allocation62_spill] sm:$0xff] }
 0x3c6   : > { %5749 = vmatprep.subr.mxu0 %v13689_v38  ;;  %6016 = vmatprep.subr.mxu1 %v13690_v19  ;;  %v13704_v38 = vand.u32 4294901760, %v13703_v51  ;;  %v13705_v19 = vld [vmem:[#allocation77_spill] sm:$0xff]  ;;  %v13715_v9 = vld [vmem:[#allocation64_spill] sm:$0xff]  ;;  %v13718_v51 = vld [vmem:[#allocation66_spill] sm:$0xff] }
 0x3c7   : > { %5753 = vmatpush1.msra.mxu0 %v13692_v3  ;;  %6018 = vmatpush1.msra.mxu1 %v13693_v15  ;;  %v13707_v3 = vand.u32 4294901760, %v13706_v63  ;;  %v13708_v15 = vld [vmem:[#allocation118_spill] sm:$0xff]  ;;  %v13721_v63 = vld [vmem:[#allocation92_spill] sm:$0xff] }
 0x3c8   : > { %5757 = vmatprep.subr.mxu0 %v13695_v37  ;;  %6020 = vmatprep.subr.mxu1 %v13696_v47  ;;  %v13710_v37 = vand.u32 4294901760, %v13709_v35  ;;  %v13711_v47 = vld [vmem:[#allocation52_spill] sm:$0xff]  ;;  %v13724_v35 = vld [vmem:[#allocation106_spill] sm:$0xff] }
 0x3c9   : > { %5761 = vmatpush1.msra.mxu0 %v13698_v57  ;;  %6022 = vmatpush1.msra.mxu1 %v13699_v12  ;;  %v13713_v57 = vand.u32 4294901760, %v13712_v48  ;;  %v13714_v12 = vld [vmem:[#allocation13_spill] sm:$0xff]  ;;  %v13727_v48 = vld [vmem:[#allocation119_spill] sm:$0xff] }
 0x3ca   : > { %5765 = vmatprep.subr.mxu0 %v13701_v13  ;;  %6024 = vmatprep.subr.mxu1 %v13702_v60  ;;  %v13716_v13 = vand.u32 4294901760, %v13715_v9  ;;  %v13717_v60 = vld [vmem:[#allocation17_spill] sm:$0xff]  ;;  %v13730_v9 = vld [vmem:[#allocation59_spill] sm:$0xff] }
 0x3cb   : > { %5769 = vmatpush1.msra.mxu0 %v13704_v38  ;;  %6026 = vmatpush1.msra.mxu1 %v13705_v19  ;;  %v13719_v38 = vand.u32 4294901760, %v13718_v51  ;;  %v13720_v19 = vld [vmem:[#allocation51_spill] sm:$0xff]  ;;  %v13733_v51 = vand.u32 4294901760, %v13634_v44  ;;  %v13742_v44 = vand.u32 4294901760, %v13642_v17  ;;  %v13750_v17 = vand.u32 4294901760, %v13648_v39 }
 0x3cc   : > { %5773 = vmatprep.subr.mxu0 %v13707_v3  ;;  %6028 = vmatprep.subr.mxu1 %v13708_v15  ;;  %v13722_v3 = vand.u32 4294901760, %v13721_v63  ;;  %v13723_v15 = vld [vmem:[#allocation70_spill] sm:$0xff]  ;;  %v13736_v63 = vld [vmem:[#allocation80_spill] sm:$0xff]  ;;  %v13758_v39 = vand.u32 4294901760, %v13652_v31  ;;  %v13766_v31 = vand.u32 4294901760, %v13656_v8  ;;  %v13774_v8 = vand.u32 4294901760, %v13660_v41 }
 0x3cd   : > { %5777 = vmatpush1.msra.mxu0 %v13710_v37  ;;  %6030 = vmatpush1.msra.mxu1 %v13711_v47  ;;  %v13725_v37 = vand.u32 4294901760, %v13724_v35  ;;  %v13726_v47 = vld [vmem:[#allocation78_spill] sm:$0xff]  ;;  %v13739_v35 = vld [vmem:[#allocation83_spill] sm:$0xff]  ;;  %v13782_v41 = vand.u32 4294901760, %v13664_v58  ;;  %v13786_v58 = vand.u32 4294901760, %v13668_v11 }
 0x3ce   : > { %5781 = vmatprep.subr.mxu0 %v13713_v57  ;;  %6032 = vmatprep.subr.mxu1 %v13714_v12  ;;  %v13728_v57 = vand.u32 4294901760, %v13727_v48  ;;  %v13729_v12 = vld [vmem:[#allocation68_spill] sm:$0xff]  ;;  %v13743_v48 = vld [vmem:[#allocation79_spill] sm:$0xff] }
 0x3cf   : > { %5785 = vmatpush1.msra.mxu0 %v13716_v13  ;;  %6034 = vmatpush1.msra.mxu1 %v13717_v60  ;;  %v13731_v13 = vand.u32 4294901760, %v13730_v9  ;;  %v13732_v60 = vld [vmem:[#allocation72_spill] sm:$0xff]  ;;  %v13747_v9 = vld [vmem:[#allocation81_spill] sm:$0xff] }
 0x3d0   : > { %5789 = vmatprep.subr.mxu0 %v13719_v38  ;;  %6036 = vmatprep.subr.mxu1 %v13720_v19  ;;  %v13734_v38 = vld [vmem:[#allocation76_spill] sm:$0xff]  ;;  %v13735_v19 = vand.u32 4294901760, %v13636_v30  ;;  %v13744_v30 = vand.u32 4294901760, %v13644_v6  ;;  %v13752_v6 = vand.u32 4294901760, %v13649_v20  ;;  %v13760_v20 = vand.u32 4294901760, %v13653_v1 }
 0x3d1   : > { %5793 = vmatpush1.msra.mxu0 %v13722_v3  ;;  %6038 = vmatpush1.msra.mxu1 %v13723_v15  ;;  %v13737_v3 = vld [vmem:[#allocation67_spill] sm:$0xff]  ;;  %v13768_v1 = vand.u32 4294901760, %v13657_v53  ;;  %v13776_v53 = vand.u32 4294901760, %v13661_v40  ;;  %v13783_v40 = vand.u32 4294901760, %v13665_v22  ;;  %v13787_v22 = vand.u32 4294901760, %v13669_v32 }
 0x3d2   : > { %5797 = vmatprep.subr.mxu0 %v13725_v37  ;;  %6040 = vmatprep.subr.mxu1 %v13726_v47  ;;  %v13738_v15 = vand.u32 4294901760, %v13737_v3  ;;  %v13740_v37 = vand.u32 4294901760, %v13640_v33  ;;  %v13741_v47 = vld [vmem:[#allocation23_spill] sm:$0xff]  ;;  %v13748_v33 = vand.u32 4294901760, %v13646_v10  ;;  %v13756_v10 = vand.u32 4294901760, %v13651_v2  ;;  %v13761_v3 = vld [vmem:[#allocation100_spill] sm:$0xff] }
 0x3d3   : > { %5801 = vmatpush1.msra.mxu0 %v13728_v57  ;;  %6042 = vmatpush1.msra.mxu1 %v13729_v12  ;;  %v13745_v57 = vld [vmem:[#allocation25_spill] sm:$0xff]  ;;  %v13746_v12 = vand.u32 4294901760, %v13645_v18  ;;  %v13754_v18 = vand.u32 4294901760, %v13650_v36  ;;  %v13762_v36 = vand.u32 4294901760, %v13654_v56  ;;  %v13764_v2 = vand.u32 4294901760, %v13655_v23 }
 0x3d4   : > { %5805 = vmatprep.subr.mxu0 %v13731_v13  ;;  %6044 = vmatprep.subr.mxu1 %v13732_v60  ;;  %v13749_v13 = vld [vmem:[#allocation96_spill] sm:$0xff]  ;;  %v13751_v60 = vld [vmem:[#allocation19_spill] sm:$0xff]  ;;  %v13770_v56 = vand.u32 4294901760, %v13658_v50  ;;  %v13772_v23 = vand.u32 4294901760, %v13659_v7  ;;  %v13778_v50 = vand.u32 4294901760, %v13662_v29  ;;  %v13780_v7 = vand.u32 4294901760, %v13663_v21 }
 0x3d5   : > { %5809 = vmatpush1.msra.mxu0 %v13733_v51  ;;  %6046 = vmatpush1.msra.mxu1 %v13734_v38  ;;  %v13753_v51 = vld [vmem:[#allocation12_spill] sm:$0xff]  ;;  %v13755_v38 = vld [vmem:[#allocation14_spill] sm:$0xff]  ;;  %v13784_v29 = vand.u32 4294901760, %v13666_v62  ;;  %v13785_v21 = vand.u32 4294901760, %v13667_v45  ;;  %v13790_v45 = vand.u32 4294901760, %v10776_v43 }
 0x3d6   : > { %5813 = vmatprep.subr.mxu0 %v13735_v19  ;;  %6048 = vmatprep.subr.mxu1 %v13736_v63  ;;  %v13757_v19 = vld [vmem:[#allocation26_spill] sm:$0xff]  ;;  %v13759_v63 = vld [vmem:[#allocation75_spill] sm:$0xff]  ;;  %v13788_v62 = vld [vmem:[#allocation120_spill] sm:$0xff] }
 0x3d7   : > { %5817 = vmatpush1.msra.mxu0 %v13738_v15  ;;  %6050 = vmatpush1.msra.mxu1 %v13739_v35  ;;  %v13763_v15 = vld [vmem:[#allocation28_spill] sm:$0xff] }
 0x3d8   : > { %5821 = vmatprep.subr.mxu0 %v13740_v37  ;;  %6052 = vmatprep.subr.mxu1 %v13741_v47  ;;  %v13765_v35 = vld [vmem:[#allocation32_spill] sm:$0xff]  ;;  %v13769_v47 = vld [vmem:[#allocation37_spill] sm:$0xff] }
 0x3d9   : > { %5825 = vmatpush1.msra.mxu0 %v13742_v44  ;;  %6054 = vmatpush2.msra.mxu1 %v13743_v48  ;;  %v13767_v37 = vld [vmem:[#allocation108_spill] sm:$0xff]  ;;  %v13771_v44 = vld [vmem:[#allocation43_spill] sm:$0xff] }
 0x3da   : > { %5829 = vmatprep.subr.mxu0 %v13744_v30  ;;  %6056 = vmatprep.subr.mxu1 %v13745_v57  ;;  %v13773_v48 = vld [vmem:[#allocation63_spill] sm:$0xff]  ;;  %v13775_v30 = vld [vmem:[#allocation65_spill] sm:$0xff]  ;;  %v3696_v57 = vpop.f32.mrf.mxu0 }
 0x3db   : > { %5833 = vmatpush1.msra.mxu0 %v13746_v12  ;;  %6058 = vmatpush2.msra.mxu1 %v13747_v9  ;;  %v13777_v12 = vld [vmem:[#allocation69_spill] sm:$0xff]  ;;  %v13779_v9 = vld [vmem:[#allocation94_spill] sm:$0xff] }
 0x3dc   : > { %5837 = vmatprep.subr.mxu0 %v13748_v33  ;;  %6060 = vmatprep.subr.mxu1 %v13749_v13  ;;  %v13781_v33 = vld [vmem:[#allocation99_spill] sm:$0xff]  ;;  %v4089_v13 = vpop.f32.mrf.mxu1 }
 0x3dd   : > { %5841 = vmatpush1.msra.mxu0 %v13750_v17  ;;  %6062 = vmatpush2.msra.mxu1 %v13751_v60  ;;  %v3698_v17 = vpop.f32.mrf.mxu0 }
 0x3de   : > { %5845 = vmatprep.subr.mxu0 %v13752_v6  ;;  %6064 = vmatprep.subr.mxu1 %v13753_v51 }
 0x3df   : > { %5849 = vmatpush1.msra.mxu0 %v13754_v18  ;;  %6066 = vmatpush2.msra.mxu1 %v13755_v38  ;;  %v4292_v60 = vpop.f32.mrf.mxu0  ;;  %v13796_v38 = vld [vmem:[#allocation109_spill] sm:$0xff] }
 0x3e0   : > { %5853 = vmatprep.subr.mxu0 %v13756_v10  ;;  %6068 = vmatprep.subr.mxu1 %v13757_v19  ;;  %v13797_v10 = vand.u32 4294901760, %v10820_v16  ;;  %v13800_v19 = vld [vmem:[#allocation122_spill] sm:$0xff] }
 0x3e1   : > { %5857 = vmatpush2.msra.mxu0 %v13758_v39  ;;  %6070 = vmatpush2.msra.mxu1 %v13759_v63  ;;  %v4294_v11 = vpop.f32.mrf.mxu0 }
 0x3e2   : > { %5861 = vmatprep.subr.mxu0 %v13760_v20  ;;  %6072 = vmatprep.subr.mxu1 %v13761_v3  ;;  %v13802_v20 = vand.u32 4294901760, %v10858_v55 }
 0x3e3   : > { %5865 = vmatpush2.msra.mxu0 %v13762_v36  ;;  %6074 = vmatpush2.msra.mxu1 %v13763_v15 }
 0x3e4   : > { %5869 = vmatprep.subr.mxu0 %v13764_v2  ;;  %6076 = vmatprep.subr.mxu1 %v13765_v35  ;;  %v13804_v2 = vld [vmem:[#allocation123_spill] sm:$0xff] }
 0x3e5   : > { %5873 = vmatpush2.msra.mxu0 %v13766_v31  ;;  %6078 = vmatpush2.msra.mxu1 %v13767_v37 }
 0x3e6   : > { %5877 = vmatprep.subr.mxu0 %v13768_v1  ;;  %6080 = vmatprep.subr.mxu1 %v13769_v47 }
 0x3e7   : > { %5881 = vmatpush2.msra.mxu0 %v13770_v56  ;;  %6082 = vmatpush2.msra.mxu1 %v13771_v44 }
 0x3e8   : > { %5885 = vmatprep.subr.mxu0 %v13772_v23  ;;  %6084 = vmatprep.subr.mxu1 %v13773_v48 }
 0x3e9   : > { %5889 = vmatpush2.msra.mxu0 %v13774_v8  ;;  %6086 = vmatpush2.msra.mxu1 %v13775_v30 }
 0x3ea   : > { %5893 = vmatprep.subr.mxu0 %v13776_v53  ;;  %6088 = vmatprep.subr.mxu1 %v13777_v12 }
 0x3eb   : > { %5897 = vmatpush2.msra.mxu0 %v13778_v50  ;;  %6090 = vmatpush2.msra.mxu1 %v13779_v9 }
 0x3ec   : > { %5901 = vmatprep.subr.mxu0 %v13780_v7  ;;  %6092 = vmatprep.subr.mxu1 %v13781_v33 }
 0x3ed   : > { %5905 = vmatpush2.msra.mxu0 %v13782_v41  ;;  %6094 = vmatpush2.msra.mxu1 %v10746_v59  ;;  %v4091_v59 = vpop.f32.mrf.mxu1 }
 0x3ee   : > { %5909 = vmatprep.subr.mxu0 %v13783_v40  ;;  %6096 = vmatprep.subr.mxu1 %v10758_v54  ;;  %v13789_v54 = vand.u32 4294901760, %v13788_v62  ;;  %v4092_v32 = vadd.f32 %v4091_v59, %v3698_v17 }
 0x3ef   : > { %5913 = vmatpush2.msra.mxu0 %v13784_v29  ;;  %6098 = vmatpush2.msra.mxu1 %v10770_v34  ;;  %v4090_v34 = vadd.f32 %v4089_v13, %v3696_v57 }
 0x3f0   : > { %5917 = vmatprep.subr.mxu0 %v13785_v21  ;;  %6100 = vmatprep.subr.mxu1 %v10778_v26  ;;  %v4433_v26 = vpop.f32.mrf.mxu1  ;;  %v4295_v43 = vadd.f32 %v4294_v11, %v4092_v32 }
 0x3f1   : > { %5921 = vmatpush2.msra.mxu0 %v13786_v58  ;;  %6102 = vmatpush2.msra.mxu1 %v10786_v46  ;;  %v13791_v46 = vld [vmem:[#allocation121_spill] sm:$0xff]  ;;  %v4293_v51 = vadd.f32 %v4292_v60, %v4090_v34 }
 0x3f2   : > { %5925 = vmatprep.subr.mxu0 %v13787_v22  ;;  %6104 = vmatprep.subr.mxu1 %v10794_v14  ;;  %v13792_v6 = vand.u32 4294901760, %v13791_v46  ;;  %v13793_v14 = vand.u32 4294901760, %v10792_v49  ;;  %v4435_v18 = vpop.f32.mrf.mxu1  ;;  %v13798_v49 = vand.u32 4294901760, %v10830_v28  ;;  %v13803_v28 = vand.u32 4294901760, %v10866_v24 }
 0x3f3   : > { %5929 = vmatpush2.msra.mxu0 %v13789_v54  ;;  %6106 = vmatpush2.msra.mxu1 %v10802_v27  ;;  %v13794_v27 = vand.u32 4294901760, %v10800_v61  ;;  %v13799_v61 = vand.u32 4294901760, %v10840_v25  ;;  %v4436_v63 = vadd.f32 %v4435_v18, %v4295_v43  ;;  %v13805_v25 = vand.u32 4294901760, %v13804_v2 }
 0x3f4   : > { %5933 = vmatprep.subr.mxu0 %v13790_v45  ;;  %6108 = vmatprep.subr.mxu1 %v10812_v5  ;;  %v13795_v5 = vand.u32 4294901760, %v10810_v4  ;;  %v13801_v4 = vand.u32 4294901760, %v13800_v19 }
 0x3f5   : > { %5937 = vmatpush2.msra.mxu0 %v13792_v6  ;;  %6110 = vmatpush2.msra.mxu1 %v10822_v0  ;;  %v4434_v0 = vadd.f32 %v4433_v26, %v4293_v51 }
 0x3f6   : > { %5941 = vmatprep.subr.mxu0 %v13793_v14  ;;  %6112 = vmatprep.subr.mxu1 %v10832_v42  ;;  %v4835_v42 = vpop.f32.mrf.mxu1 }
 0x3f7   : > { %5945 = vmatpush2.msra.mxu0 %v13794_v27  ;;  %6114 = vmatpush2.msra.mxu1 %v10842_v52 }
 0x3f8   : > { %5949 = vmatprep.subr.mxu0 %v13795_v5  ;;  %6118 = vmatmul.mubr.f32.vlgmr.msra.gmra.mxu1 %v13796_v38  ;;  %v4837_v15 = vpop.f32.mrf.mxu1 }
 0x3f9   : > { %5953 = vmatpush2.msra.mxu0 %v13797_v10  ;;  %v4698_v52 = vpop.f32.mrf.mxu0 }
 0x3fa   : > { %5957 = vmatprep.subr.mxu0 %v13798_v49  ;;  %v4699_v39 = vadd.f32 %v4698_v52, %v4434_v0 }
 0x3fb   : > { %5961 = vmatpush2.msra.mxu0 %v13799_v61  ;;  %v4700_v16 = vpop.f32.mrf.mxu0 }
 0x3fc   : > { %5965 = vmatprep.subr.mxu0 %v13801_v4  ;;  %v4836_v3 = vadd.f32 %v4835_v42, %v4699_v39  ;;  %v4701_v36 = vadd.f32 %v4700_v16, %v4436_v63 }
 0x3fd   : > { %5969 = vmatpush2.msra.mxu0 %v13802_v20 }
 0x3fe   : > { %5973 = vmatprep.subr.mxu0 %v13803_v28  ;;  %6128 = vst [vmem:[%s9198_s7 + $0x20] sm:$0xff] %v4836_v3  ;;  %v4838_v35 = vadd.f32 %v4837_v15, %v4701_v36 }
 0x3ff   : > { %5977 = vmatpush2.msra.mxu0 %v13805_v25 }
 0x400   : > { %5981 = vmatmul.mubr.f32.vlgmr.msra.gmra.mxu0 %v13796_v38  ;;  %6129 = vst [vmem:[%s9198_s7 + $0x28] sm:$0xff] %v4838_v35 }
 0x436   : > { %v5373_v37 = vpop.f32.mrf.mxu1 }
 0x438   : > { %v5375_v47 = vpop.f32.mrf.mxu1 }
 0x43c   : > { %v4980_v31 = vpop.f32.mrf.mxu0 }
 0x43d   : > { %v5374_v24 = vadd.f32 %v5373_v37, %v4980_v31 }
 0x43e   : > { %v4982_v1 = vpop.f32.mrf.mxu0 }
 0x43f   : > { %v5376_v23 = vadd.f32 %v5375_v47, %v4982_v1 }
 0x476   : > { %v5717_v56 = vpop.f32.mrf.mxu1 }
 0x478   : > { %v5719_v30 = vpop.f32.mrf.mxu1 }
 0x47f   : > { %v5576_v55 = vpop.f32.mrf.mxu0 }
 0x480   : > { %v5577_v48 = vadd.f32 %v5576_v55, %v5374_v24 }
 0x481   : > { %v5578_v44 = vpop.f32.mrf.mxu0 }
 0x482   : > { %v5579_v8 = vadd.f32 %v5578_v44, %v5376_v23  ;;  %v5718_v53 = vadd.f32 %v5717_v56, %v5577_v48 }
 0x484   : > { %v5720_v9 = vadd.f32 %v5719_v30, %v5579_v8 }
 0x4b8   : > { %v6119_v57 = vpop.f32.mrf.mxu1 }
 0x4ba   : > { %v6121_v40 = vpop.f32.mrf.mxu1 }
 0x4c0   : > { %v5982_v12 = vpop.f32.mrf.mxu0 }
 0x4c1   : > { %v5983_v50 = vadd.f32 %v5982_v12, %v5718_v53 }
 0x4c2   : > { %v5984_v7 = vpop.f32.mrf.mxu0 }
 0x4c3   : > { %v6120_v33 = vadd.f32 %v6119_v57, %v5983_v50  ;;  %v5985_v41 = vadd.f32 %v5984_v7, %v5720_v9 }
 0x4c5   : > { %6130 = vst [vmem:[%s9198_s7 + $0x30] sm:$0xff] %v6120_v33  ;;  %v6122_v13 = vadd.f32 %v6121_v40, %v5985_v41 }
 0x4c7   : > { %6131 = vst [vmem:[%s9198_s7 + $0x38] sm:$0xff] %v6122_v13 }
 0x4c8   : > { %6365 = shalt.err (!%p6362_p3)
}
 0x4c9   : > { %s6366_s24 = scalar_lea.hbm %s6147_s12, 1024  ;;  %s6370_s30 = scalar_lea.hbm %s11306_s4, 2048 }
 0x4ca   : > { %p6367_p5 = scmp.ne.s32.totalorder %s6147_s12, %s6366_s24  ;;  %p6371_p9 = scmp.lt.s32.totalorder %s6147_s12, %s11306_s4 }
 0x4cb   : > { %p6372_p12 = scmp.lt.s32.totalorder %s6370_s30, %s6366_s24 }
 0x4cc   : > { %p6368_p6 = pnand %p6367_p5, %p6505_p4 }
 0x4cd   : > { %p6373_p10 = por %p6372_p12, %p6371_p9 }
 0x4ce   : > { %p6369_p7 = pneg %p6368_p6 }
 0x4d0   : > { %p6374_p11 = pnand %p6373_p10, %p6369_p7 }
 0x4d2   : > { %6377 = shalt.err (!%p6374_p11)
}
 0x4d3   : > { %6258 = dma.vmem_to_hbm [thread:$0]  (%p6505_p4), %s6150_s9, 1024, %s6147_s12, %s6133_s13  }
 0x4d4 PF: > { %p6270_p13 = scmp.ge.s32.totalorder %s6432_s20, 2  ;;  %s6161_s7 = sand.u32 1, %s6412_s15  }
 0x4d5   : > { %s6162_s8 = scalar_lea.sflag [#allocation4], %s6161_s7 }
 0x4d6   : > { %p6265_p0 = pnand %p6270_p13, %p6512_p8 }
 0x4d8   : > { %p6266_p1 = pneg %p6265_p0 }
 0x4da   : > { %6407 = dma.done.wait (%p6266_p1), %s6162_s8, 1024  }
 0x4db   : > { %6409 = vsyncadd (%p6266_p1), %s6162_s8, 4294966272  ;;  %s18_s20 = sadd.s32 1, %s6432_s20   ;;  %s13806_s15 = smov %s6416_s16 }
 0x4dc   : > { %p15_p2 = scmp.ge.s32.totalorder %s18_s20, 4   ;;  %s13807_s16 = smov %s6420_s17 }
 0x4dd   : > { %s13808_s17 = smov %s6518_s28  ;;  %s13809_s18 = smov %s6428_s19 }
 0x4de   : > { %s13810_s19 = smov %s13812_s23  ;;  %17 = sbr.rel (!%p15_p2) target bundleno = 5 (0x5), region = 76 }
 0x4e3   :  { %6167 = vsyncpa [#allocation3], 1 }
 0x4e4   :  { %6169 = vsyncpa [#allocation3 + $0x1], 1 }
 0x4e5   :  { %6170 = vsyncpa [#allocation4], 1 }
 0x4e6   :  { %6172 = vsyncpa [#allocation4 + $0x1], 1 }

</bundles_post_ra>
